<compile_context>
chip_gen: v7x
topology: tpu7x:2x2x1
jax: 0.10.0
libtpu: 0.0.40
codegen_flags: <defaults>
</compile_context>

<pallas_src>
import jax
import jax.numpy as jnp
from jax.experimental import pallas as pl
from jax.experimental.pallas import tpu as pltpu

EPS_BN = 1e-5
EPS_SN = 1e-12
LANE = 128   # channel axis padded to the 128-lane width


# ---------------------------------------------------------------------------
# Small static helpers
# ---------------------------------------------------------------------------
def _round_up(n, m):
    return ((n + m - 1) // m) * m


def _vmem_limit_bytes():
    """Generation-aware scoped-VMEM limit: ~60% of physical, capped at 64 MiB
    (v7x has 64 MiB physical per TC; v5e/v6e have 128 MiB)."""
    try:
        cap = int(pltpu.get_tpu_info().vmem_capacity_bytes)
    except Exception:
        cap = 64 * 1024 * 1024
    return max(16 * 1024 * 1024, min(cap * 3 // 5, 64 * 1024 * 1024))


def _const_spec(block_shape, index_map):
    """BlockSpec for operands whose block index never changes across the grid
    (weights / BN affine): single-buffer them so the pipeline does not allocate a
    second, never-refetched VMEM copy."""
    try:
        return pl.BlockSpec(block_shape, index_map, pipeline_mode=pl.Buffered(1))
    except Exception:   # older jax without pipeline_mode support
        return pl.BlockSpec(block_shape, index_map)


def _per_step_vmem_bytes(hp2, wp2, cin_p, cout_p):
    """Rough per-grid-step VMEM need (double-buffered blocks + weights + temps)."""
    in_x = 2 * hp2 * wp2 * cin_p * 2
    out_h = 2 * hp2 * wp2 * cout_p * 2
    wts = (3 * 3 * cin_p + cin_p) * cout_p * 2
    tmps = hp2 * wp2 * 4 * cin_p * 2 + (hp2 - 2) * (wp2 - 2) * cout_p * 4
    return in_x + out_h + wts + tmps


# ---------------------------------------------------------------------------
# Pallas kernels
# ---------------------------------------------------------------------------
def stats_kernel(xp_ref, st_ref):
    """Per-image partial BatchNorm statistics (sum, sum of squares).
    The 1-px spatial border of the input is exact zeros so it contributes nothing."""
    _, hp2, wp2, c = xp_ref.shape
    x = xp_ref[0].reshape(hp2 * wp2, c).astype(jnp.float32)
    s1 = jnp.sum(x, axis=0, keepdims=True)            # (1, C)
    s2 = jnp.sum(x * x, axis=0, keepdims=True)        # (1, C)
    st_ref[...] = jnp.concatenate([s1, s2], axis=0)[None]


def _affine_relu_border0(xp_ref, ss_ref, h, w):
    """y = relu(x*scale + shift) on a spatially padded (h+2, w+2, C) block with the
    1-px border forced back to zero afterwards -- conv zero padding must be applied
    AFTER the activation (this was the previous version's border bug)."""
    xp = xp_ref[0].astype(jnp.float32)
    c = xp.shape[-1]
    ss = ss_ref[...]
    scale = ss[0:1, :].reshape(1, 1, c)
    shift = ss[1:2, :].reshape(1, 1, c)
    a = jnp.maximum(xp * scale + shift, 0.0)
    row = jax.lax.broadcasted_iota(jnp.int32, (h + 2, w + 2, 1), 0)
    col = jax.lax.broadcasted_iota(jnp.int32, (h + 2, w + 2, 1), 1)
    interior = (row >= 1) & (row <= h) & (col >= 1) & (col <= w)
    return jnp.where(interior, a, 0.0).astype(jnp.bfloat16)


def _conv3x3_folded(a, w_ref, h, w, acc):
    """acc += 3x3 conv of `a` ((h+2, w+2, Cin), zero border) as 3 MXU matmuls with
    the ky taps folded into the contraction dim (K = 3*Cin): fewer, larger matmuls
    that fill the 256-wide MXU instead of 9 small slice/relayout matmuls."""
    cin = a.shape[-1]
    # b[y, c, ky*Cin + i] = a[y + ky, c, i]
    b = jnp.concatenate([a[0:h, :, :], a[1:h + 1, :, :], a[2:h + 2, :, :]], axis=-1)
    for kx in range(3):
        tap = b[:, kx:kx + w, :].reshape(h * w, 3 * cin)
        acc = acc + jnp.dot(tap, w_ref[kx], preferred_element_type=jnp.float32)
    return acc


def conv1_kernel(xp_ref, ss_ref, w_ref, hp_ref, st_ref):
    """h1 = conv3x3(relu(bn1(x))), written into a zero-bordered spatially padded
    output block, plus fused per-image partial statistics of h1 for norm2."""
    _, hp2, wp2, _ = xp_ref.shape
    h, w = hp2 - 2, wp2 - 2
    cout = hp_ref.shape[-1]

    a = _affine_relu_border0(xp_ref, ss_ref, h, w)
    acc = jnp.zeros((h * w, cout), jnp.float32)
    acc = _conv3x3_folded(a, w_ref, h, w, acc)
    hb = acc.reshape(h, w, cout).astype(jnp.bfloat16)

    # Write conv result into a pre-padded output (border = conv zero padding),
    # so conv2 never needs an HBM re-pad of h1.
    hp_ref[...] = jnp.zeros(hp_ref.shape, hp_ref.dtype)
    hp_ref[:, 1:h + 1, 1:w + 1, :] = hb[None]

    # Fused norm2 partial statistics (computed while h1 is still in VMEM).
    hf = hb.astype(jnp.float32).reshape(h * w, cout)
    s1 = jnp.sum(hf, axis=0, keepdims=True)
    s2 = jnp.sum(hf * hf, axis=0, keepdims=True)
    st_ref[...] = jnp.concatenate([s1, s2], axis=0)[None]


def conv2_kernel(hp_ref, xp_ref, ss_ref, w_ref, wsk_ref, o_ref):
    """out = conv3x3(relu(bn2(h1))) + x @ W_skip, the 1x1 SN skip fused into the
    f32 accumulator (no separate skip pass over x)."""
    _, hp2, wp2, _ = hp_ref.shape
    h, w = hp2 - 2, wp2 - 2
    cout = o_ref.shape[-1]
    cin = xp_ref.shape[-1]

    # skip: interior of the (already padded) x block, 1x1 conv as one matmul
    xsk = xp_ref[0, 1:h + 1, 1:w + 1, :].reshape(h * w, cin)
    acc = jnp.dot(xsk, wsk_ref[...], preferred_element_type=jnp.float32)

    a = _affine_relu_border0(hp_ref, ss_ref, h, w)
    acc = _conv3x3_folded(a, w_ref, h, w, acc)
    o_ref[...] = acc.reshape(1, h, w, cout).astype(o_ref.dtype)


# ---------------------------------------------------------------------------
# pallas_call wrappers
# ---------------------------------------------------------------------------
def bn_partial_stats(xp, vmem_limit):
    N, hp2, wp2, C = xp.shape
    return pl.pallas_call(
        stats_kernel,
        out_shape=jax.ShapeDtypeStruct((N, 2, C), jnp.float32),
        grid=(N,),
        in_specs=[pl.BlockSpec((1, hp2, wp2, C), lambda n: (n, 0, 0, 0))],
        out_specs=pl.BlockSpec((1, 2, C), lambda n: (n, 0, 0)),
        compiler_params=pltpu.CompilerParams(
            dimension_semantics=("parallel",), vmem_limit_bytes=vmem_limit),
    )(xp)


def fused_bn_relu_conv3x3_stats(xp, ss1, w1_fold, cout_p, vmem_limit):
    """h1p (zero-bordered padded) = conv3x3(relu(bn1(x))) plus fused norm2 partials."""
    N, hp2, wp2, cin = xp.shape
    H, W = hp2 - 2, wp2 - 2
    flops = 2 * N * H * W * 9 * cin * cout_p
    bytes_acc = (xp.size * xp.dtype.itemsize
                 + w1_fold.size * w1_fold.dtype.itemsize
                 + N * hp2 * wp2 * cout_p * 2 + N * 2 * cout_p * 4)
    return pl.pallas_call(
        conv1_kernel,
        out_shape=(jax.ShapeDtypeStruct((N, hp2, wp2, cout_p), jnp.bfloat16),
                   jax.ShapeDtypeStruct((N, 2, cout_p), jnp.float32)),
        grid=(N,),
        in_specs=[
            pl.BlockSpec((1, hp2, wp2, cin), lambda n: (n, 0, 0, 0)),
            _const_spec((2, cin), lambda n: (0, 0)),
            _const_spec((3, 3 * cin, cout_p), lambda n: (0, 0, 0)),
        ],
        out_specs=(
            pl.BlockSpec((1, hp2, wp2, cout_p), lambda n: (n, 0, 0, 0)),
            pl.BlockSpec((1, 2, cout_p), lambda n: (n, 0, 0)),
        ),
        compiler_params=pltpu.CompilerParams(
            dimension_semantics=("parallel",), vmem_limit_bytes=vmem_limit),
        cost_estimate=pl.CostEstimate(flops=flops, transcendentals=0,
                                      bytes_accessed=bytes_acc),
    )(xp, ss1, w1_fold)


def fused_bn_relu_conv3x3_skip(h1p, xp, ss2, w2_fold, w_skip, vmem_limit):
    """out = conv3x3(relu(bn2(h1))) + skip(x), bf16 writeback."""
    N, hp2, wp2, cmid = h1p.shape
    cin = xp.shape[-1]
    cout = w2_fold.shape[-1]
    H, W = hp2 - 2, wp2 - 2
    flops = 2 * N * H * W * (9 * cmid + cin) * cout
    bytes_acc = (h1p.size * h1p.dtype.itemsize + xp.size * xp.dtype.itemsize
                 + (w2_fold.size + w_skip.size) * 2 + N * H * W * cout * 2)
    return pl.pallas_call(
        conv2_kernel,
        out_shape=jax.ShapeDtypeStruct((N, H, W, cout), jnp.bfloat16),
        grid=(N,),
        in_specs=[
            pl.BlockSpec((1, hp2, wp2, cmid), lambda n: (n, 0, 0, 0)),
            pl.BlockSpec((1, hp2, wp2, cin), lambda n: (n, 0, 0, 0)),
            _const_spec((2, cmid), lambda n: (0, 0)),
            _const_spec((3, 3 * cmid, cout), lambda n: (0, 0, 0)),
            _const_spec((cin, cout), lambda n: (0, 0)),
        ],
        out_specs=pl.BlockSpec((1, H, W, cout), lambda n: (n, 0, 0, 0)),
        compiler_params=pltpu.CompilerParams(
            dimension_semantics=("parallel",), vmem_limit_bytes=vmem_limit),
        cost_estimate=pl.CostEstimate(flops=flops, transcendentals=0,
                                      bytes_accessed=bytes_acc),
    )(h1p, xp, ss2, w2_fold, w_skip)


# ---------------------------------------------------------------------------
# BatchNorm finalize + parameter preprocessing (spectral norm, lane-dense layout)
# ---------------------------------------------------------------------------
def _bn_affine(partials, gamma_beta, count):
    """Finalize BN from summed partials: y = x*scale + shift (biased batch variance)."""
    s = jnp.sum(partials, axis=0)                   # (2, C) f32
    mean = s[0] / count
    var = s[1] / count - mean * mean
    scale = gamma_beta[0] * jax.lax.rsqrt(var + EPS_BN)
    shift = gamma_beta[1] - mean * scale
    return jnp.stack([scale, shift], axis=0)        # (2, C) f32


def spectral_normalize(w_oihw, key, n_iter=1):
    """Spectral norm a la torch.nn.utils.spectral_norm (one power iteration)."""
    o = w_oihw.shape[0]
    w_mat = w_oihw.reshape(o, -1)
    u = jax.random.normal(key, (o,), jnp.float32)
    u = u / (jnp.linalg.norm(u) + EPS_SN)
    v = None
    for _ in range(n_iter):
        v = w_mat.T @ u
        v = v / (jnp.linalg.norm(v) + EPS_SN)
        u = w_mat @ v
        u = u / (jnp.linalg.norm(u) + EPS_SN)
    sigma = u @ (w_mat @ v)
    return w_oihw / sigma


def prepare_params(w1_sn, w2_sn, wsk_sn, gamma1, beta1, gamma2, beta2):
    cout, cin = w1_sn.shape[0], w1_sn.shape[1]
    cin_p = _round_up(max(cin, LANE), LANE)
    cout_p = _round_up(max(cout, LANE), LANE)

    def fold3x3(w_oihw, ci_p, co_p):
        # (O, I, KH, KW) -> (KW, KH, I, O) -> (3, 3*I_p, O_p): kernel tap kx selects
        # w_fold[kx], with rows ordered [ky, channel] to match the ky-folded operand.
        o, i = w_oihw.shape[0], w_oihw.shape[1]
        w = jnp.transpose(w_oihw, (3, 2, 1, 0))
        w = jnp.pad(w, ((0, 0), (0, 0), (0, ci_p - i), (0, co_p - o)))
        return w.reshape(3, 3 * ci_p, co_p).astype(jnp.bfloat16)

    def mat1x1(w_oihw, ci_p, co_p):
        o, i = w_oihw.shape[0], w_oihw.shape[1]
        w = jnp.transpose(w_oihw.reshape(o, i), (1, 0))
        return jnp.pad(w, ((0, ci_p - i), (0, co_p - o))).astype(jnp.bfloat16)

    def gb(gamma, beta, c_p):
        # Invariant: the padded tail of gamma/beta is exactly zero, which keeps the
        # padded channels inert (scale = shift = 0) despite rsqrt(0 + eps).
        g = jnp.pad(gamma.astype(jnp.float32), (0, c_p - gamma.shape[0]))
        b = jnp.pad(beta.astype(jnp.float32), (0, c_p - beta.shape[0]))
        return jnp.stack([g, b], axis=0)            # (2, c_p)

    return {
        "w1": fold3x3(w1_sn, cin_p, cout_p),        # (3, 3*Cin_p, Cout_p) bf16
        "w2": fold3x3(w2_sn, cout_p, cout_p),       # (3, 3*Cout_p, Cout_p) bf16
        "wsk": mat1x1(wsk_sn, cin_p, cout_p),       # (Cin_p, Cout_p) bf16
        "gb1": gb(gamma1, beta1, cin_p),            # (2, Cin_p) f32
        "gb2": gb(gamma2, beta2, cout_p),           # (2, Cout_p) f32
    }


# ---------------------------------------------------------------------------
# ResidualBlock forward
# ---------------------------------------------------------------------------
def residual_block_forward(x_nchw, params, out_ch):
    N, in_ch, H, W = x_nchw.shape
    cin_p = params["gb1"].shape[1]
    cout_p = params["gb2"].shape[1]
    vmem_limit = _vmem_limit_bytes()
    assert _per_step_vmem_bytes(H + 2, W + 2, cin_p, cout_p) < vmem_limit, (
        "image too large for whole-image tiles; needs H-band tiling")

    # NCHW -> NHWC, +1px spatial border (conv padding), channel pad to 128 lanes,
    # bf16 MXU operand -- all folded into ONE materialization of x.  This single
    # padded copy feeds the stats kernel, conv1, and the fused 1x1 skip in conv2.
    x = jnp.transpose(x_nchw, (0, 2, 3, 1)).astype(jnp.float32)
    xp = jnp.pad(x, ((0, 0), (1, 1), (1, 1), (0, cin_p - in_ch))).astype(jnp.bfloat16)

    count = float(N * H * W)

    # norm1 statistics: per-image partials in Pallas, tiny (2, C) finalize in jnp.
    ss1 = _bn_affine(bn_partial_stats(xp, vmem_limit), params["gb1"], count)

    # conv1(act1(norm1(x))): writes a zero-bordered padded h1 and fused norm2
    # partials, so h1 is never re-read from HBM for statistics.
    h1p, st2 = fused_bn_relu_conv3x3_stats(xp, ss1, params["w1"], cout_p, vmem_limit)
    ss2 = _bn_affine(st2, params["gb2"], count)

    # conv2(act2(norm2(h1))) + skip(x): 1x1 SN skip fused into the f32 accumulator.
    out = fused_bn_relu_conv3x3_skip(h1p, xp, ss2, params["w2"], params["wsk"],
                                     vmem_limit)

    # NOTE: real pipelines should stay NHWC / padded-C; the slice + transpose below
    # only restores the PyTorch module's NCHW contract for the comparison.
    out = out[..., :out_ch].astype(jnp.float32)
    return jnp.transpose(out, (0, 3, 1, 2))


# ---------------------------------------------------------------------------
# Pure-JAX reference (correctness check only)
# ---------------------------------------------------------------------------
def _bn_relu_ref(x_nchw, gamma, beta):
    mean = jnp.mean(x_nchw, axis=(0, 2, 3), keepdims=True)
    var = jnp.mean(jnp.square(x_nchw - mean), axis=(0, 2, 3), keepdims=True)
    y = (x_nchw - mean) * jax.lax.rsqrt(var + EPS_BN)
    y = y * gamma.reshape(1, -1, 1, 1) + beta.reshape(1, -1, 1, 1)
    return jnp.maximum(y, 0.0)


def _conv_ref(x_nchw, w_oihw, pad):
    return jax.lax.conv_general_dilated(
        x_nchw, w_oihw, window_strides=(1, 1), padding=[(pad, pad), (pad, pad)],
        dimension_numbers=("NCHW", "OIHW", "NCHW"))


def residual_block_ref(x_nchw, raw):
    h = _conv_ref(_bn_relu_ref(x_nchw, raw["gamma1"], raw["beta1"]), raw["w1_sn"], 1)
    h = _conv_ref(_bn_relu_ref(h, raw["gamma2"], raw["beta2"]), raw["w2_sn"], 1)
    return h + _conv_ref(x_nchw, raw["wsk_sn"], 0)


# ---------------------------------------------------------------------------
if __name__ == "__main__":
    key = jax.random.PRNGKey(0)
    k_x, k_w1, k_w2, k_wsk, k_u1, k_u2, k_usk = jax.random.split(key, 7)

    N, IN_CH, OUT_CH, HW = 2, 4, 8, 16
    x = jax.random.normal(k_x, (N, IN_CH, HW, HW), jnp.float32)

    # Deterministic parameter init (torch BN init: gamma=1, beta=0).
    w1 = jax.random.normal(k_w1, (OUT_CH, IN_CH, 3, 3), jnp.float32) * 0.1
    w2 = jax.random.normal(k_w2, (OUT_CH, OUT_CH, 3, 3), jnp.float32) * 0.1
    wsk = jax.random.normal(k_wsk, (OUT_CH, IN_CH, 1, 1), jnp.float32) * 0.1
    gamma1, beta1 = jnp.ones((IN_CH,), jnp.float32), jnp.zeros((IN_CH,), jnp.float32)
    gamma2, beta2 = jnp.ones((OUT_CH,), jnp.float32), jnp.zeros((OUT_CH,), jnp.float32)

    # Spectral normalization (SNConv2d) as parameter preprocessing.
    w1_sn = spectral_normalize(w1, k_u1)
    w2_sn = spectral_normalize(w2, k_u2)
    wsk_sn = spectral_normalize(wsk, k_usk)

    params = prepare_params(w1_sn, w2_sn, wsk_sn, gamma1, beta1, gamma2, beta2)

    fwd = jax.jit(residual_block_forward, static_argnums=2)
    out = jax.block_until_ready(fwd(x, params, OUT_CH))
    assert out.shape == (N, OUT_CH, HW, HW), out.shape

    # Correctness check against a pure-JAX f32 NCHW reference (bf16 MXU operands /
    # bf16 activation writeback in the kernels -> relaxed tolerance).
    ref = residual_block_ref(x, {
        "gamma1": gamma1, "beta1": beta1, "gamma2": gamma2, "beta2": beta2,
        "w1_sn": w1_sn, "w2_sn": w2_sn, "wsk_sn": wsk_sn,
    })
    max_err = float(jnp.max(jnp.abs(out - ref)))
    assert jnp.allclose(out, ref, rtol=3e-2, atol=3e-2), f"max_err={max_err}"

    print("KERNEL_OK")
</pallas_src>

<mosaic_0001>
module attributes {stable_mosaic.version = 11 : i64} {
  func.func @stats_kernel(%arg0: i32, %arg1: memref<1x18x18x128xbf16, #tpu.memory_space<vmem>>, %arg2: memref<1x2x128xf32, #tpu.memory_space<vmem>>) attributes {dimension_semantics = [#tpu.dimension_semantics<parallel>], iteration_bounds = array<i64: 2>, scalar_prefetch = 0 : i64, scratch_operands = 0 : i64, tpu.core_type = #tpu.core_type<tc>, window_params = [{transform_indices = @transform_0, window_bounds = array<i64: 1, 18, 18, 128>}, {transform_indices = @transform_1, window_bounds = array<i64: 1, 2, 128>}]} {
    %c0 = arith.constant 0 : index
    %c0_0 = arith.constant 0 : index
    %c0_1 = arith.constant 0 : index
    %c0_2 = arith.constant 0 : index
    %0 = vector.load %arg1[%c0, %c0_0, %c0_1, %c0_2] : memref<1x18x18x128xbf16, #tpu.memory_space<vmem>>, vector<1x18x18x128xbf16>
    %1 = vector.shape_cast %0 : vector<1x18x18x128xbf16> to vector<18x18x128xbf16>
    %2 = vector.shape_cast %1 : vector<18x18x128xbf16> to vector<324x128xbf16>
    %3 = arith.extf %2 : vector<324x128xbf16> to vector<324x128xf32>
    %cst = arith.constant dense<0.000000e+00> : vector<128xf32>
    %4 = vector.multi_reduction <add>, %3, %cst [0] : vector<324x128xf32> to vector<128xf32>
    %5 = vector.shape_cast %4 : vector<128xf32> to vector<1x128xf32>
    %6 = arith.mulf %3, %3 : vector<324x128xf32>
    %cst_3 = arith.constant dense<0.000000e+00> : vector<128xf32>
    %7 = vector.multi_reduction <add>, %6, %cst_3 [0] : vector<324x128xf32> to vector<128xf32>
    %8 = vector.shape_cast %7 : vector<128xf32> to vector<1x128xf32>
    %9 = tpu.concatenate %5, %8 in 0 : vector<1x128xf32>, vector<1x128xf32> -> vector<2x128xf32>
    %10 = vector.shape_cast %9 : vector<2x128xf32> to vector<1x2x128xf32>
    %c0_4 = arith.constant 0 : index
    %c0_5 = arith.constant 0 : index
    %c0_6 = arith.constant 0 : index
    %11 = vector.load %arg2[%c0_4, %c0_5, %c0_6] : memref<1x2x128xf32, #tpu.memory_space<vmem>>, vector<1x2x128xf32>
    tpu.vector_store %arg2[%c0_4, %c0_5, %c0_6], %10 {strides = array<i32>} : memref<1x2x128xf32, #tpu.memory_space<vmem>>, vector<1x2x128xf32>,
    return
  }
  func.func @transform_0(%arg0: i32) -> (i32, i32, i32, i32) {
    %c0_i32 = arith.constant 0 : i32
    %c0_i32_0 = arith.constant 0 : i32
    %c0_i32_1 = arith.constant 0 : i32
    %c0_i32_2 = arith.constant 0 : i32
    return %arg0, %c0_i32, %c0_i32_0, %c0_i32_1 : i32, i32, i32, i32
  }
  func.func @transform_1(%arg0: i32) -> (i32, i32, i32) {
    %c0_i32 = arith.constant 0 : i32
    %c0_i32_0 = arith.constant 0 : i32
    %c0_i32_1 = arith.constant 0 : i32
    return %arg0, %c0_i32, %c0_i32_0 : i32, i32, i32
  }
}

module attributes {stable_mosaic.version = 11 : i64} {
  func.func @conv2_kernel(%arg0: i32, %arg1: memref<1x18x18x128xbf16, #tpu.memory_space<vmem>>, %arg2: memref<1x18x18x128xbf16, #tpu.memory_space<vmem>>, %arg3: memref<2x128xf32, #tpu.memory_space<vmem>>, %arg4: memref<3x384x128xbf16, #tpu.memory_space<vmem>>, %arg5: memref<128x128xbf16, #tpu.memory_space<vmem>>, %arg6: memref<1x16x16x128xbf16, #tpu.memory_space<vmem>>) attributes {dimension_semantics = [#tpu.dimension_semantics<parallel>], iteration_bounds = array<i64: 2>, scalar_prefetch = 0 : i64, scratch_operands = 0 : i64, tpu.core_type = #tpu.core_type<tc>, window_params = [{transform_indices = @transform_0, window_bounds = array<i64: 1, 18, 18, 128>}, {transform_indices = @transform_1, window_bounds = array<i64: 1, 18, 18, 128>}, {pipeline_mode = #tpu.pipeline_mode<synchronous>, transform_indices = @transform_2, window_bounds = array<i64: 2, 128>}, {pipeline_mode = #tpu.pipeline_mode<synchronous>, transform_indices = @transform_3, window_bounds = array<i64: 3, 384, 128>}, {pipeline_mode = #tpu.pipeline_mode<synchronous>, transform_indices = @transform_4, window_bounds = array<i64: 128, 128>}, {transform_indices = @transform_5, window_bounds = array<i64: 1, 16, 16, 128>}]} {
    %c0 = arith.constant 0 : index
    %c1 = arith.constant 1 : index
    %c1_0 = arith.constant 1 : index
    %c0_1 = arith.constant 0 : index
    %0 = vector.load %arg2[%c0, %c1, %c1_0, %c0_1] : memref<1x18x18x128xbf16, #tpu.memory_space<vmem>>, vector<1x16x16x128xbf16>
    %1 = vector.shape_cast %0 : vector<1x16x16x128xbf16> to vector<16x16x128xbf16>
    %2 = vector.shape_cast %1 : vector<16x16x128xbf16> to vector<256x128xbf16>
    %c0_2 = arith.constant 0 : index
    %c0_3 = arith.constant 0 : index
    %3 = vector.load %arg5[%c0_2, %c0_3] : memref<128x128xbf16, #tpu.memory_space<vmem>>, vector<128x128xbf16>
    %cst = arith.constant dense<0.000000e+00> : vector<256x128xf32>
    %4 = tpu.matmul %2, %3, %cst {dimension_numbers = #tpu.dot_dimension_numbers<[1], [0], [0], [1], [0, 0, 1, 1], [], []>} : vector<256x128xbf16>, vector<128x128xbf16>, vector<256x128xf32> -> vector<256x128xf32>
    %c0_4 = arith.constant 0 : index
    %c0_5 = arith.constant 0 : index
    %c0_6 = arith.constant 0 : index
    %c0_7 = arith.constant 0 : index
    %5 = vector.load %arg1[%c0_4, %c0_5, %c0_6, %c0_7] : memref<1x18x18x128xbf16, #tpu.memory_space<vmem>>, vector<1x18x18x128xbf16>
    %6 = vector.shape_cast %5 : vector<1x18x18x128xbf16> to vector<18x18x128xbf16>
    %7 = arith.extf %6 : vector<18x18x128xbf16> to vector<18x18x128xf32>
    %c0_8 = arith.constant 0 : index
    %c0_9 = arith.constant 0 : index
    %8 = vector.load %arg3[%c0_8, %c0_9] : memref<2x128xf32, #tpu.memory_space<vmem>>, vector<2x128xf32>
    %9 = vector.extract_strided_slice %8 {offsets = [0, 0], sizes = [1, 128], strides = [1, 1]} : vector<2x128xf32> to vector<1x128xf32>
    %10 = vector.shape_cast %9 : vector<1x128xf32> to vector<1x1x128xf32>
    %11 = vector.extract_strided_slice %8 {offsets = [1, 0], sizes = [1, 128], strides = [1, 1]} : vector<2x128xf32> to vector<1x128xf32>
    %12 = vector.shape_cast %11 : vector<1x128xf32> to vector<1x1x128xf32>
    %13 = vector.broadcast %10 : vector<1x1x128xf32> to vector<18x18x128xf32>
    %14 = arith.mulf %7, %13 : vector<18x18x128xf32>
    %15 = vector.broadcast %12 : vector<1x1x128xf32> to vector<18x18x128xf32>
    %16 = arith.addf %14, %15 : vector<18x18x128xf32>
    %cst_10 = arith.constant 0.000000e+00 : f32
    %17 = vector.broadcast %cst_10 : f32 to vector<18x18x128xf32>
    %18 = arith.maximumf %16, %17 : vector<18x18x128xf32>
    %19 = tpu.iota {dimensions = array<i32: 0>} : vector<18x18x1xi32>
    %20 = tpu.iota {dimensions = array<i32: 1>} : vector<18x18x1xi32>
    %c1_i32 = arith.constant 1 : i32
    %21 = vector.broadcast %c1_i32 : i32 to vector<18x18x1xi32>
    %22 = arith.cmpi sge, %19, %21 : vector<18x18x1xi32>
    %c16_i32 = arith.constant 16 : i32
    %23 = vector.broadcast %c16_i32 : i32 to vector<18x18x1xi32>
    %24 = arith.cmpi sle, %19, %23 : vector<18x18x1xi32>
    %25 = arith.andi %22, %24 : vector<18x18x1xi1>
    %c1_i32_11 = arith.constant 1 : i32
    %26 = vector.broadcast %c1_i32_11 : i32 to vector<18x18x1xi32>
    %27 = arith.cmpi sge, %20, %26 : vector<18x18x1xi32>
    %28 = arith.andi %25, %27 : vector<18x18x1xi1>
    %c16_i32_12 = arith.constant 16 : i32
    %29 = vector.broadcast %c16_i32_12 : i32 to vector<18x18x1xi32>
    %30 = arith.cmpi sle, %20, %29 : vector<18x18x1xi32>
    %31 = arith.andi %28, %30 : vector<18x18x1xi1>
    %cst_13 = arith.constant 0.000000e+00 : f32
    %32 = vector.shape_cast %31 : vector<18x18x1xi1> to vector<18x18x1xi1>
    %33 = vector.broadcast %32 : vector<18x18x1xi1> to vector<18x18x128xi1>
    %34 = vector.broadcast %cst_13 : f32 to vector<18x18x128xf32>
    %35 = arith.select %33, %18, %34 : vector<18x18x128xi1>, vector<18x18x128xf32>
    %36 = arith.truncf %35 : vector<18x18x128xf32> to vector<18x18x128xbf16>
    %37 = vector.extract_strided_slice %36 {offsets = [0, 0, 0], sizes = [16, 18, 128], strides = [1, 1, 1]} : vector<18x18x128xbf16> to vector<16x18x128xbf16>
    %38 = vector.extract_strided_slice %36 {offsets = [1, 0, 0], sizes = [16, 18, 128], strides = [1, 1, 1]} : vector<18x18x128xbf16> to vector<16x18x128xbf16>
    %39 = vector.extract_strided_slice %36 {offsets = [2, 0, 0], sizes = [16, 18, 128], strides = [1, 1, 1]} : vector<18x18x128xbf16> to vector<16x18x128xbf16>
    %40 = tpu.concatenate %37, %38, %39 in 2 : vector<16x18x128xbf16>, vector<16x18x128xbf16>, vector<16x18x128xbf16> -> vector<16x18x384xbf16>
    %41 = vector.extract_strided_slice %40 {offsets = [0, 0, 0], sizes = [16, 16, 384], strides = [1, 1, 1]} : vector<16x18x384xbf16> to vector<16x16x384xbf16>
    %42 = vector.shape_cast %41 : vector<16x16x384xbf16> to vector<256x384xbf16>
    %c0_14 = arith.constant 0 : index
    %c0_15 = arith.constant 0 : index
    %c0_16 = arith.constant 0 : index
    %43 = vector.load %arg4[%c0_14, %c0_15, %c0_16] : memref<3x384x128xbf16, #tpu.memory_space<vmem>>, vector<1x384x128xbf16>
    %44 = vector.shape_cast %43 : vector<1x384x128xbf16> to vector<384x128xbf16>
    %cst_17 = arith.constant dense<0.000000e+00> : vector<256x128xf32>
    %45 = tpu.matmul %42, %44, %cst_17 {dimension_numbers = #tpu.dot_dimension_numbers<[1], [0], [0], [1], [0, 0, 1, 1], [], []>} : vector<256x384xbf16>, vector<384x128xbf16>, vector<256x128xf32> -> vector<256x128xf32>
    %46 = arith.addf %4, %45 : vector<256x128xf32>
    %47 = vector.extract_strided_slice %40 {offsets = [0, 1, 0], sizes = [16, 16, 384], strides = [1, 1, 1]} : vector<16x18x384xbf16> to vector<16x16x384xbf16>
    %48 = vector.shape_cast %47 : vector<16x16x384xbf16> to vector<256x384xbf16>
    %c1_18 = arith.constant 1 : index
    %c0_19 = arith.constant 0 : index
    %c0_20 = arith.constant 0 : index
    %49 = vector.load %arg4[%c1_18, %c0_19, %c0_20] : memref<3x384x128xbf16, #tpu.memory_space<vmem>>, vector<1x384x128xbf16>
    %50 = vector.shape_cast %49 : vector<1x384x128xbf16> to vector<384x128xbf16>
    %cst_21 = arith.constant dense<0.000000e+00> : vector<256x128xf32>
    %51 = tpu.matmul %48, %50, %cst_21 {dimension_numbers = #tpu.dot_dimension_numbers<[1], [0], [0], [1], [0, 0, 1, 1], [], []>} : vector<256x384xbf16>, vector<384x128xbf16>, vector<256x128xf32> -> vector<256x128xf32>
    %52 = arith.addf %46, %51 : vector<256x128xf32>
    %53 = vector.extract_strided_slice %40 {offsets = [0, 2, 0], sizes = [16, 16, 384], strides = [1, 1, 1]} : vector<16x18x384xbf16> to vector<16x16x384xbf16>
    %54 = vector.shape_cast %53 : vector<16x16x384xbf16> to vector<256x384xbf16>
    %c2 = arith.constant 2 : index
    %c0_22 = arith.constant 0 : index
    %c0_23 = arith.constant 0 : index
    %55 = vector.load %arg4[%c2, %c0_22, %c0_23] : memref<3x384x128xbf16, #tpu.memory_space<vmem>>, vector<1x384x128xbf16>
    %56 = vector.shape_cast %55 : vector<1x384x128xbf16> to vector<384x128xbf16>
    %cst_24 = arith.constant dense<0.000000e+00> : vector<256x128xf32>
    %57 = tpu.matmul %54, %56, %cst_24 {dimension_numbers = #tpu.dot_dimension_numbers<[1], [0], [0], [1], [0, 0, 1, 1], [], []>} : vector<256x384xbf16>, vector<384x128xbf16>, vector<256x128xf32> -> vector<256x128xf32>
    %58 = arith.addf %52, %57 : vector<256x128xf32>
    %59 = vector.shape_cast %58 : vector<256x128xf32> to vector<1x16x16x128xf32>
    %60 = arith.truncf %59 : vector<1x16x16x128xf32> to vector<1x16x16x128xbf16>
    %c0_25 = arith.constant 0 : index
    %c0_26 = arith.constant 0 : index
    %c0_27 = arith.constant 0 : index
    %c0_28 = arith.constant 0 : index
    %61 = vector.load %arg6[%c0_25, %c0_26, %c0_27, %c0_28] : memref<1x16x16x128xbf16, #tpu.memory_space<vmem>>, vector<1x16x16x128xbf16>
    tpu.vector_store %arg6[%c0_25, %c0_26, %c0_27, %c0_28], %60 {strides = array<i32>} : memref<1x16x16x128xbf16, #tpu.memory_space<vmem>>, vector<1x16x16x128xbf16>,
    return
  }
  func.func @transform_0(%arg0: i32) -> (i32, i32, i32, i32) {
    %c0_i32 = arith.constant 0 : i32
    %c0_i32_0 = arith.constant 0 : i32
    %c0_i32_1 = arith.constant 0 : i32
    %c0_i32_2 = arith.constant 0 : i32
    return %arg0, %c0_i32, %c0_i32_0, %c0_i32_1 : i32, i32, i32, i32
  }
  func.func @transform_1(%arg0: i32) -> (i32, i32, i32, i32) {
    %c0_i32 = arith.constant 0 : i32
    %c0_i32_0 = arith.constant 0 : i32
    %c0_i32_1 = arith.constant 0 : i32
    %c0_i32_2 = arith.constant 0 : i32
    return %arg0, %c0_i32, %c0_i32_0, %c0_i32_1 : i32, i32, i32, i32
  }
  func.func @transform_2(%arg0: i32) -> (i32, i32) {
    %c0_i32 = arith.constant 0 : i32
    %c0_i32_0 = arith.constant 0 : i32
    %c0_i32_1 = arith.constant 0 : i32
    return %c0_i32, %c0_i32_0 : i32, i32
  }
  func.func @transform_3(%arg0: i32) -> (i32, i32, i32) {
    %c0_i32 = arith.constant 0 : i32
    %c0_i32_0 = arith.constant 0 : i32
    %c0_i32_1 = arith.constant 0 : i32
    %c0_i32_2 = arith.constant 0 : i32
    return %c0_i32, %c0_i32_0, %c0_i32_1 : i32, i32, i32
  }
  func.func @transform_4(%arg0: i32) -> (i32, i32) {
    %c0_i32 = arith.constant 0 : i32
    %c0_i32_0 = arith.constant 0 : i32
    %c0_i32_1 = arith.constant 0 : i32
    return %c0_i32, %c0_i32_0 : i32, i32
  }
  func.func @transform_5(%arg0: i32) -> (i32, i32, i32, i32) {
    %c0_i32 = arith.constant 0 : i32
    %c0_i32_0 = arith.constant 0 : i32
    %c0_i32_1 = arith.constant 0 : i32
    %c0_i32_2 = arith.constant 0 : i32
    return %arg0, %c0_i32, %c0_i32_0, %c0_i32_1 : i32, i32, i32, i32
  }
}

module attributes {stable_mosaic.version = 11 : i64} {
  func.func @conv1_kernel(%arg0: i32, %arg1: memref<1x18x18x128xbf16, #tpu.memory_space<vmem>>, %arg2: memref<2x128xf32, #tpu.memory_space<vmem>>, %arg3: memref<3x384x128xbf16, #tpu.memory_space<vmem>>, %arg4: memref<1x18x18x128xbf16, #tpu.memory_space<vmem>>, %arg5: memref<1x2x128xf32, #tpu.memory_space<vmem>>) attributes {dimension_semantics = [#tpu.dimension_semantics<parallel>], iteration_bounds = array<i64: 2>, scalar_prefetch = 0 : i64, scratch_operands = 0 : i64, tpu.core_type = #tpu.core_type<tc>, window_params = [{transform_indices = @transform_0, window_bounds = array<i64: 1, 18, 18, 128>}, {pipeline_mode = #tpu.pipeline_mode<synchronous>, transform_indices = @transform_1, window_bounds = array<i64: 2, 128>}, {pipeline_mode = #tpu.pipeline_mode<synchronous>, transform_indices = @transform_2, window_bounds = array<i64: 3, 384, 128>}, {transform_indices = @transform_3, window_bounds = array<i64: 1, 18, 18, 128>}, {transform_indices = @transform_4, window_bounds = array<i64: 1, 2, 128>}]} {
    %c0 = arith.constant 0 : index
    %c0_0 = arith.constant 0 : index
    %c0_1 = arith.constant 0 : index
    %c0_2 = arith.constant 0 : index
    %0 = vector.load %arg1[%c0, %c0_0, %c0_1, %c0_2] : memref<1x18x18x128xbf16, #tpu.memory_space<vmem>>, vector<1x18x18x128xbf16>
    %1 = vector.shape_cast %0 : vector<1x18x18x128xbf16> to vector<18x18x128xbf16>
    %2 = arith.extf %1 : vector<18x18x128xbf16> to vector<18x18x128xf32>
    %c0_3 = arith.constant 0 : index
    %c0_4 = arith.constant 0 : index
    %3 = vector.load %arg2[%c0_3, %c0_4] : memref<2x128xf32, #tpu.memory_space<vmem>>, vector<2x128xf32>
    %4 = vector.extract_strided_slice %3 {offsets = [0, 0], sizes = [1, 128], strides = [1, 1]} : vector<2x128xf32> to vector<1x128xf32>
    %5 = vector.shape_cast %4 : vector<1x128xf32> to vector<1x1x128xf32>
    %6 = vector.extract_strided_slice %3 {offsets = [1, 0], sizes = [1, 128], strides = [1, 1]} : vector<2x128xf32> to vector<1x128xf32>
    %7 = vector.shape_cast %6 : vector<1x128xf32> to vector<1x1x128xf32>
    %8 = vector.broadcast %5 : vector<1x1x128xf32> to vector<18x18x128xf32>
    %9 = arith.mulf %2, %8 : vector<18x18x128xf32>
    %10 = vector.broadcast %7 : vector<1x1x128xf32> to vector<18x18x128xf32>
    %11 = arith.addf %9, %10 : vector<18x18x128xf32>
    %cst = arith.constant 0.000000e+00 : f32
    %12 = vector.broadcast %cst : f32 to vector<18x18x128xf32>
    %13 = arith.maximumf %11, %12 : vector<18x18x128xf32>
    %14 = tpu.iota {dimensions = array<i32: 0>} : vector<18x18x1xi32>
    %15 = tpu.iota {dimensions = array<i32: 1>} : vector<18x18x1xi32>
    %c1_i32 = arith.constant 1 : i32
    %16 = vector.broadcast %c1_i32 : i32 to vector<18x18x1xi32>
    %17 = arith.cmpi sge, %14, %16 : vector<18x18x1xi32>
    %c16_i32 = arith.constant 16 : i32
    %18 = vector.broadcast %c16_i32 : i32 to vector<18x18x1xi32>
    %19 = arith.cmpi sle, %14, %18 : vector<18x18x1xi32>
    %20 = arith.andi %17, %19 : vector<18x18x1xi1>
    %c1_i32_5 = arith.constant 1 : i32
    %21 = vector.broadcast %c1_i32_5 : i32 to vector<18x18x1xi32>
    %22 = arith.cmpi sge, %15, %21 : vector<18x18x1xi32>
    %23 = arith.andi %20, %22 : vector<18x18x1xi1>
    %c16_i32_6 = arith.constant 16 : i32
    %24 = vector.broadcast %c16_i32_6 : i32 to vector<18x18x1xi32>
    %25 = arith.cmpi sle, %15, %24 : vector<18x18x1xi32>
    %26 = arith.andi %23, %25 : vector<18x18x1xi1>
    %cst_7 = arith.constant 0.000000e+00 : f32
    %27 = vector.shape_cast %26 : vector<18x18x1xi1> to vector<18x18x1xi1>
    %28 = vector.broadcast %27 : vector<18x18x1xi1> to vector<18x18x128xi1>
    %29 = vector.broadcast %cst_7 : f32 to vector<18x18x128xf32>
    %30 = arith.select %28, %13, %29 : vector<18x18x128xi1>, vector<18x18x128xf32>
    %31 = arith.truncf %30 : vector<18x18x128xf32> to vector<18x18x128xbf16>
    %cst_8 = arith.constant 0.000000e+00 : f32
    %32 = vector.broadcast %cst_8 : f32 to vector<256x128xf32>
    %33 = vector.extract_strided_slice %31 {offsets = [0, 0, 0], sizes = [16, 18, 128], strides = [1, 1, 1]} : vector<18x18x128xbf16> to vector<16x18x128xbf16>
    %34 = vector.extract_strided_slice %31 {offsets = [1, 0, 0], sizes = [16, 18, 128], strides = [1, 1, 1]} : vector<18x18x128xbf16> to vector<16x18x128xbf16>
    %35 = vector.extract_strided_slice %31 {offsets = [2, 0, 0], sizes = [16, 18, 128], strides = [1, 1, 1]} : vector<18x18x128xbf16> to vector<16x18x128xbf16>
    %36 = tpu.concatenate %33, %34, %35 in 2 : vector<16x18x128xbf16>, vector<16x18x128xbf16>, vector<16x18x128xbf16> -> vector<16x18x384xbf16>
    %37 = vector.extract_strided_slice %36 {offsets = [0, 0, 0], sizes = [16, 16, 384], strides = [1, 1, 1]} : vector<16x18x384xbf16> to vector<16x16x384xbf16>
    %38 = vector.shape_cast %37 : vector<16x16x384xbf16> to vector<256x384xbf16>
    %c0_9 = arith.constant 0 : index
    %c0_10 = arith.constant 0 : index
    %c0_11 = arith.constant 0 : index
    %39 = vector.load %arg3[%c0_9, %c0_10, %c0_11] : memref<3x384x128xbf16, #tpu.memory_space<vmem>>, vector<1x384x128xbf16>
    %40 = vector.shape_cast %39 : vector<1x384x128xbf16> to vector<384x128xbf16>
    %cst_12 = arith.constant dense<0.000000e+00> : vector<256x128xf32>
    %41 = tpu.matmul %38, %40, %cst_12 {dimension_numbers = #tpu.dot_dimension_numbers<[1], [0], [0], [1], [0, 0, 1, 1], [], []>} : vector<256x384xbf16>, vector<384x128xbf16>, vector<256x128xf32> -> vector<256x128xf32>
    %42 = arith.addf %32, %41 : vector<256x128xf32>
    %43 = vector.extract_strided_slice %36 {offsets = [0, 1, 0], sizes = [16, 16, 384], strides = [1, 1, 1]} : vector<16x18x384xbf16> to vector<16x16x384xbf16>
    %44 = vector.shape_cast %43 : vector<16x16x384xbf16> to vector<256x384xbf16>
    %c1 = arith.constant 1 : index
    %c0_13 = arith.constant 0 : index
    %c0_14 = arith.constant 0 : index
    %45 = vector.load %arg3[%c1, %c0_13, %c0_14] : memref<3x384x128xbf16, #tpu.memory_space<vmem>>, vector<1x384x128xbf16>
    %46 = vector.shape_cast %45 : vector<1x384x128xbf16> to vector<384x128xbf16>
    %cst_15 = arith.constant dense<0.000000e+00> : vector<256x128xf32>
    %47 = tpu.matmul %44, %46, %cst_15 {dimension_numbers = #tpu.dot_dimension_numbers<[1], [0], [0], [1], [0, 0, 1, 1], [], []>} : vector<256x384xbf16>, vector<384x128xbf16>, vector<256x128xf32> -> vector<256x128xf32>
    %48 = arith.addf %42, %47 : vector<256x128xf32>
    %49 = vector.extract_strided_slice %36 {offsets = [0, 2, 0], sizes = [16, 16, 384], strides = [1, 1, 1]} : vector<16x18x384xbf16> to vector<16x16x384xbf16>
    %50 = vector.shape_cast %49 : vector<16x16x384xbf16> to vector<256x384xbf16>
    %c2 = arith.constant 2 : index
    %c0_16 = arith.constant 0 : index
    %c0_17 = arith.constant 0 : index
    %51 = vector.load %arg3[%c2, %c0_16, %c0_17] : memref<3x384x128xbf16, #tpu.memory_space<vmem>>, vector<1x384x128xbf16>
    %52 = vector.shape_cast %51 : vector<1x384x128xbf16> to vector<384x128xbf16>
    %cst_18 = arith.constant dense<0.000000e+00> : vector<256x128xf32>
    %53 = tpu.matmul %50, %52, %cst_18 {dimension_numbers = #tpu.dot_dimension_numbers<[1], [0], [0], [1], [0, 0, 1, 1], [], []>} : vector<256x384xbf16>, vector<384x128xbf16>, vector<256x128xf32> -> vector<256x128xf32>
    %54 = arith.addf %48, %53 : vector<256x128xf32>
    %55 = vector.shape_cast %54 : vector<256x128xf32> to vector<16x16x128xf32>
    %56 = arith.truncf %55 : vector<16x16x128xf32> to vector<16x16x128xbf16>
    %cst_19 = arith.constant 0.000000e+00 : bf16
    %57 = vector.broadcast %cst_19 : bf16 to vector<1x18x18x128xbf16>
    %c0_20 = arith.constant 0 : index
    %c0_21 = arith.constant 0 : index
    %c0_22 = arith.constant 0 : index
    %c0_23 = arith.constant 0 : index
    %58 = vector.load %arg4[%c0_20, %c0_21, %c0_22, %c0_23] : memref<1x18x18x128xbf16, #tpu.memory_space<vmem>>, vector<1x18x18x128xbf16>
    tpu.vector_store %arg4[%c0_20, %c0_21, %c0_22, %c0_23], %57 {strides = array<i32>} : memref<1x18x18x128xbf16, #tpu.memory_space<vmem>>, vector<1x18x18x128xbf16>,
    %59 = vector.shape_cast %56 : vector<16x16x128xbf16> to vector<1x16x16x128xbf16>
    %c0_24 = arith.constant 0 : index
    %c1_25 = arith.constant 1 : index
    %c1_26 = arith.constant 1 : index
    %c0_27 = arith.constant 0 : index
    %60 = vector.load %arg4[%c0_24, %c1_25, %c1_26, %c0_27] : memref<1x18x18x128xbf16, #tpu.memory_space<vmem>>, vector<1x16x16x128xbf16>
    tpu.vector_store %arg4[%c0_24, %c1_25, %c1_26, %c0_27], %59 {strides = array<i32>} : memref<1x18x18x128xbf16, #tpu.memory_space<vmem>>, vector<1x16x16x128xbf16>,
    %61 = arith.extf %56 : vector<16x16x128xbf16> to vector<16x16x128xf32>
    %62 = vector.shape_cast %61 : vector<16x16x128xf32> to vector<256x128xf32>
    %cst_28 = arith.constant dense<0.000000e+00> : vector<128xf32>
    %63 = vector.multi_reduction <add>, %62, %cst_28 [0] : vector<256x128xf32> to vector<128xf32>
    %64 = vector.shape_cast %63 : vector<128xf32> to vector<1x128xf32>
    %65 = arith.mulf %62, %62 : vector<256x128xf32>
    %cst_29 = arith.constant dense<0.000000e+00> : vector<128xf32>
    %66 = vector.multi_reduction <add>, %65, %cst_29 [0] : vector<256x128xf32> to vector<128xf32>
    %67 = vector.shape_cast %66 : vector<128xf32> to vector<1x128xf32>
    %68 = tpu.concatenate %64, %67 in 0 : vector<1x128xf32>, vector<1x128xf32> -> vector<2x128xf32>
    %69 = vector.shape_cast %68 : vector<2x128xf32> to vector<1x2x128xf32>
    %c0_30 = arith.constant 0 : index
    %c0_31 = arith.constant 0 : index
    %c0_32 = arith.constant 0 : index
    %70 = vector.load %arg5[%c0_30, %c0_31, %c0_32] : memref<1x2x128xf32, #tpu.memory_space<vmem>>, vector<1x2x128xf32>
    tpu.vector_store %arg5[%c0_30, %c0_31, %c0_32], %69 {strides = array<i32>} : memref<1x2x128xf32, #tpu.memory_space<vmem>>, vector<1x2x128xf32>,
    return
  }
  func.func @transform_0(%arg0: i32) -> (i32, i32, i32, i32) {
    %c0_i32 = arith.constant 0 : i32
    %c0_i32_0 = arith.constant 0 : i32
    %c0_i32_1 = arith.constant 0 : i32
    %c0_i32_2 = arith.constant 0 : i32
    return %arg0, %c0_i32, %c0_i32_0, %c0_i32_1 : i32, i32, i32, i32
  }
  func.func @transform_1(%arg0: i32) -> (i32, i32) {
    %c0_i32 = arith.constant 0 : i32
    %c0_i32_0 = arith.constant 0 : i32
    %c0_i32_1 = arith.constant 0 : i32
    return %c0_i32, %c0_i32_0 : i32, i32
  }
  func.func @transform_2(%arg0: i32) -> (i32, i32, i32) {
    %c0_i32 = arith.constant 0 : i32
    %c0_i32_0 = arith.constant 0 : i32
    %c0_i32_1 = arith.constant 0 : i32
    %c0_i32_2 = arith.constant 0 : i32
    return %c0_i32, %c0_i32_0, %c0_i32_1 : i32, i32, i32
  }
  func.func @transform_3(%arg0: i32) -> (i32, i32, i32, i32) {
    %c0_i32 = arith.constant 0 : i32
    %c0_i32_0 = arith.constant 0 : i32
    %c0_i32_1 = arith.constant 0 : i32
    %c0_i32_2 = arith.constant 0 : i32
    return %arg0, %c0_i32, %c0_i32_0, %c0_i32_1 : i32, i32, i32, i32
  }
  func.func @transform_4(%arg0: i32) -> (i32, i32, i32) {
    %c0_i32 = arith.constant 0 : i32
    %c0_i32_0 = arith.constant 0 : i32
    %c0_i32_1 = arith.constant 0 : i32
    return %arg0, %c0_i32, %c0_i32_0 : i32, i32, i32
  }
}

</mosaic_0001>

<bundles_post_ra>
// kernel: residual_block_forward.3
= control target key start
LH: loop header
LB: loop body
LE: loop exit
PB: predicated region body
PF: predicated region fallthrough
CT: control target
= control target key end

     0   :  { %s3852_s6 = smov 0   ;;  %s6309_s0 = inlined_call_operand.vmem [shape: bf16[2,18,18,128], index: 0, kind: input, shape index: {}]   ;;  %s6310_s1 = inlined_call_operand.vmem [shape: f32[2,2,128], index: 1, kind: output, shape index: {}]  }
   0x1 LB: > { %s3758_s7 = sadd.s32 4294967295, %s3838_s6   ;;  %p3762_p0 = scmp.ge.s32.totalorder %s3838_s6, 1  ;;  %s3838_s6 = sphi %s3852_s6, %s11_s6  }
   0x2   : > { %p87_p1 = scmp.lt.s32.totalorder %s3838_s6, 3 }
   0x4   : > { %p88_p2 = pnand %p3762_p0, %p87_p1 }
   0x6   : > { %91 = sbr.rel (%p88_p2) target bundleno = 352 (0x160), region = 24 }
   0xd   : > { %p106_p3 = scmp.lt.s32.totalorder %s3758_s7, 1  ;;  %v3840_v0 = vmov 1966171168   ;;  %v234_v2 = vlaneseq  ;;  %v3841_v5 = vmov 1983009808   ;;  %vm2593_vm0 = vcmask 1043456  }
   0xe   : > { %v232_v1 = vunpack.c.l.s4 %v3840_v0  ;;  %v1828_v6 = vunpack.c.l.s4 %v3841_v5  ;;  %vm3702_vm1 = vcmask 1040384  }
   0xf   : > { %s7287_s7 = smov (!%p106_p3, %s3758_s7), 1  ;;  %v235_v4 = vshrl.u32 %v234_v2, 7 }
  0x10   : > { %s3821_s8 = smul.u32 216, %s7287_s7  ;;  %v233_v3 = vunpack.c.0.s8 %v232_v1  ;;  %v1829_v10 = vunpack.c.0.s8 %v1828_v6  ;;  %s3764_s12 = sshll.u32 %s7287_s7, 1 }
  0x11   : > { %s114_s15 = scalar_lea.vmem %s6310_s1, %s3764_s12 }
  0x12   : > { %s3866_s11 = scalar_lea.vmem %s6309_s0, %s3821_s8  ;;  %v3868_v7 = vsub.s32 %v233_v3, %v235_v4  ;;  %v3897_v26 = vsub.s32 %v1829_v10, %v235_v4 }
  0x13   : > { %v3765_v8 = vld.sshfl [vmem:[%s3866_s11] sm:$0x33 pattern:$0x75316420] }
  0x14   : > { %v3766_v9 = vld.sshfl [vmem:[%s3866_s11 + $0x4] sm:$0x33 pattern:$0x75316420]  ;;  %v230_v14 = vcombine.high %v3765_v8, %v3765_v8  ;;  %v3880_v15 = vrot.slane %v3765_v8, %v3868_v7  ;;  %6564 = vst [vmem:[#allocation3_spill] sm:$0xff] %v3897_v26 }
  0x15   : > { %v3808_v11 = vld.sshfl [vmem:[%s3866_s11 + $0xac] sm:$0x33 pattern:$0x75316420]  ;;  %v254_v28 = vcombine.high %v3766_v9, %v3766_v9  ;;  %v3903_v29 = vrot.slane %v3766_v9, %v3868_v7 }
  0x16   : > { %v3874_v12 = vld.sshfl [vmem:[%s3866_s11 + $0x8] sm:$0x1 pattern:$0x75316420]  ;;  %v1122_v16 = vcombine.high %v3808_v11, %v3808_v11  ;;  %v3883_v17 = vrot.slane %v3808_v11, %v3868_v7  ;;  %v3911_v34 = vrot.slane %v230_v14, %v3868_v7  ;;  %v245_v35 = vcombine.high %v3880_v15, %v3880_v15 }
  0x17   : > { %v3877_v13 = vld.sshfl [vmem:[%s3866_s11 + $0xb0] sm:$0x1 pattern:$0x75316420]  ;;  %v3937_v48 = vunpack.c.l.bf16 %v3880_v15  ;;  %v3942_v51 = vrot.slane %v254_v28, %v3868_v7 }
  0x18   : > { %6563 = vst [vmem:[#allocation2_spill] sm:$0xff] %v3877_v13  ;;  %v3768_v18 = vld.sshfl [vmem:[%s3866_s11 + $0xc] sm:$0x33 pattern:$0x75316420]  ;;  %v3892_v23 = vrot.slane %v1122_v16, %v3868_v7  ;;  %v246_v16 = vcombine.high %v3911_v34, %v3911_v34 }
  0x19   : > { %v3810_v19 = vld.sshfl [vmem:[%s3866_s11 + $0xb4] sm:$0x33 pattern:$0x75316420]  ;;  %v292_v45 = vcombine.high %v3768_v18, %v3768_v18  ;;  %6567 = vst [vmem:[#allocation6_spill] sm:$0xff] %v3937_v48  ;;  %v3951_v56 = vrot.slane %v3768_v18, %v3868_v7 }
  0x1a   : > { %v3769_v21 = vld.sshfl [vmem:[%s3866_s11 + $0x10] sm:$0x33 pattern:$0x75316420]  ;;  %v1160_v24 = vcombine.high %v3810_v19, %v3810_v19  ;;  %v3895_v25 = vrot.slane %v3810_v19, %v3868_v7 }
  0x1b   : > { %v3811_v22 = vld.sshfl [vmem:[%s3866_s11 + $0xb8] sm:$0x33 pattern:$0x75316420]  ;;  %v316_v52 = vcombine.high %v3769_v21, %v3769_v21  ;;  %v3963_v61 = vrot.slane %v3769_v21, %v3868_v7  ;;  %v3970_v2 = vrot.slane %v292_v45, %v3868_v7  ;;  %v4000_v21 = vunpack.c.l.bf16 %v3911_v34 }
  0x1c   : > { %v3900_v27 = vld.sshfl [vmem:[%s3866_s11 + $0xbc] sm:$0x1 pattern:$0x75316420]  ;;  %v1184_v30 = vcombine.high %v3811_v22, %v3811_v22  ;;  %v3906_v31 = vrot.slane %v3811_v22, %v3868_v7  ;;  %v3916_v36 = vrot.slane %v1160_v24, %v3868_v7 }
  0x1d   : > { %6565 = vst [vmem:[#allocation4_spill] sm:$0xff] %v3900_v27  ;;  %v3771_v32 = vld.sshfl [vmem:[%s3866_s11 + $0x18] sm:$0x33 pattern:$0x75316420]  ;;  %v3983_v9 = vrot.slane %v316_v52, %v3868_v7  ;;  %6569 = vst [vmem:[#allocation8_spill] sm:$0xff] %v4000_v21  ;;  %v6589_v21 = vcombine.high %v3942_v51, %v3942_v51 }
  0x1e   : > { %v3813_v33 = vld.sshfl [vmem:[%s3866_s11 + $0xc0] sm:$0x33 pattern:$0x75316420]  ;;  %v3925_v41 = vrot.slane %v1184_v30, %v3868_v7  ;;  %v354_v62 = vcombine.high %v3771_v32, %v3771_v32  ;;  %v3986_v10 = vrot.slane %v3771_v32, %v3868_v7 }
  0x1f   : > { %v3772_v38 = vld.sshfl [vmem:[%s3866_s11 + $0x1c] sm:$0x33 pattern:$0x75316420]  ;;  %v1222_v42 = vcombine.high %v3813_v33, %v3813_v33  ;;  %v3928_v43 = vrot.slane %v3813_v33, %v3868_v7 }
  0x20   : > { %v3814_v39 = vld.sshfl [vmem:[%s3866_s11 + $0xc4] sm:$0x33 pattern:$0x75316420]  ;;  %v378_v3 = vcombine.high %v3772_v38, %v3772_v38  ;;  %v4006_v28 = vrot.slane %v354_v62, %v3868_v7  ;;  %v4009_v30 = vrot.slane %v3772_v38, %v3868_v7 }
  0x21   : > { %v3931_v44 = vld.sshfl [vmem:[%s3866_s11 + $0xc8] sm:$0x1 pattern:$0x75316420]  ;;  %v1246_v46 = vcombine.high %v3814_v39, %v3814_v39  ;;  %v3934_v47 = vrot.slane %v3814_v39, %v3868_v7  ;;  %v3945_v53 = vrot.slane %v1222_v42, %v3868_v7  ;;  %v4055_v42 = vunpack.c.l.bf16 %v246_v16 }
  0x22   : > { %6566 = vst [vmem:[#allocation5_spill] sm:$0xff] %v3931_v44  ;;  %v3774_v49 = vld.sshfl [vmem:[%s3866_s11 + $0x24] sm:$0x33 pattern:$0x75316420]  ;;  %v4021_v45 = vrot.slane %v378_v3, %v3868_v7 }
  0x23   : > { %v3816_v50 = vld.sshfl [vmem:[%s3866_s11 + $0xcc] sm:$0x33 pattern:$0x75316420]  ;;  %v3954_v57 = vrot.slane %v1246_v46, %v3868_v7  ;;  %v416_v19 = vcombine.high %v3774_v49, %v3774_v49  ;;  %v4029_v52 = vrot.slane %v3774_v49, %v3868_v7  ;;  %6571 = vst [vmem:[#allocation10_spill] sm:$0xff] %v4055_v42 }
  0x24   : > { %v3817_v55 = vld.sshfl [vmem:[%s3866_s11 + $0xd0] sm:$0x33 pattern:$0x75316420]  ;;  %v1284_v58 = vcombine.high %v3816_v50, %v3816_v50  ;;  %v3957_v59 = vrot.slane %v3816_v50, %v3868_v7 }
  0x25   : > { %v3960_v60 = vld.sshfl [vmem:[%s3866_s11 + $0xd4] sm:$0x1 pattern:$0x75316420]  ;;  %v1308_v63 = vcombine.high %v3817_v55, %v3817_v55  ;;  %v3966_v0 = vrot.slane %v3817_v55, %v3868_v7  ;;  %v4031_v55 = vunpack.c.l.bf16 %v245_v35  ;;  %v4035_v62 = vrot.slane %v416_v19, %v3868_v7 }
  0x26   : > { %6568 = vst [vmem:[#allocation7_spill] sm:$0xff] %v3960_v60  ;;  %v3775_v1 = vld.sshfl [vmem:[%s3866_s11 + $0x28] sm:$0x33 pattern:$0x75316420]  ;;  %v3973_v4 = vrot.slane %v1284_v58, %v3868_v7 }
  0x27   : > { %v3978_v6 = vld.sshfl [vmem:[%s3866_s11 + $0x14] sm:$0x1 pattern:$0x75316420]  ;;  %v3989_v11 = vrot.slane %v1308_v63, %v3868_v7  ;;  %v440_v32 = vcombine.high %v3775_v1, %v3775_v1  ;;  %6570 = vst [vmem:[#allocation9_spill] sm:$0xff] %v4031_v55  ;;  %v4038_v63 = vrot.slane %v3775_v1, %v3868_v7 }
  0x28   : > { %v3992_v14 = vld.sshfl [vmem:[%s3866_s11 + $0x20] sm:$0x1 pattern:$0x75316420] }
  0x29   : > { %v3777_v15 = vld.sshfl [vmem:[%s3866_s11 + $0x30] sm:$0x33 pattern:$0x75316420]  ;;  %v4047_v37 = vrot.slane %v440_v32, %v3868_v7 }
  0x2a   : > { %v3778_v22 = vld.sshfl [vmem:[%s3866_s11 + $0x34] sm:$0x33 pattern:$0x75316420]  ;;  %v478_v3 = vcombine.high %v3777_v15, %v3777_v15  ;;  %v4053_v20 = vrot.slane %v3777_v15, %v3868_v7  ;;  %v4085_v15 = vunpack.c.l.bf16 %v3903_v29 }
  0x2b   : > { %v4012_v33 = vld.sshfl [vmem:[%s3866_s11 + $0x2c] sm:$0x1 pattern:$0x75316420]  ;;  %v502_v5 = vcombine.high %v3778_v22, %v3778_v22  ;;  %v4063_v35 = vrot.slane %v3778_v22, %v3868_v7 }
  0x2c   : > { %v3780_v46 = vld.sshfl [vmem:[%s3866_s11 + $0x3c] sm:$0x33 pattern:$0x75316420]  ;;  %v4073_v34 = vrot.slane %v478_v3, %v3868_v7  ;;  %6572 = vst [vmem:[#allocation11_spill] sm:$0xff] %v4085_v15  ;;  %v4118_v15 = vunpack.c.l.bf16 %v3942_v51  ;;  %v6594_v51 = vrot.slane %v3874_v12, %v3868_v7  ;;  %v4248_v12 = vunpack.c.l.bf16 %v3951_v56 }
  0x2d   : > { %v3781_v58 = vld.sshfl [vmem:[%s3866_s11 + $0x40] sm:$0x33 pattern:$0x75316420]  ;;  %v540_v50 = vcombine.high %v3780_v46, %v3780_v46  ;;  %v4076_v49 = vrot.slane %v502_v5, %v3868_v7  ;;  %v4082_v39 = vrot.slane %v3780_v46, %v3868_v7 }
  0x2e   : > { %v3783_v19 = vld.sshfl [vmem:[%s3866_s11 + $0x48] sm:$0x33 pattern:$0x75316420]  ;;  %v564_v38 = vcombine.high %v3781_v58, %v3781_v58  ;;  %v4094_v40 = vrot.slane %v3781_v58, %v3868_v7  ;;  %6576 = vst [vmem:[#allocation15_spill] sm:$0xff] %v4118_v15  ;;  %v6582_v15 = vcombine.high %v3903_v29, %v3903_v29  ;;  %6602 = vst [vmem:[#allocation38_spill] sm:$0xff] %v4248_v12 }
  0x2f   : > { %v3784_v54 = vld.sshfl [vmem:[%s3866_s11 + $0x4c] sm:$0x33 pattern:$0x75316420]  ;;  %v602_v24 = vcombine.high %v3783_v19, %v3783_v19  ;;  %v4091_v5 = vrot.slane %v540_v50, %v3868_v7  ;;  %v4107_v3 = vrot.slane %v3783_v19, %v3868_v7 }
  0x30   : > { %v4066_v1 = vld.sshfl [vmem:[%s3866_s11 + $0x38] sm:$0x1 pattern:$0x75316420]  ;;  %v626_v18 = vcombine.high %v3784_v54, %v3784_v54  ;;  %v4104_v60 = vrot.slane %v564_v38, %v3868_v7  ;;  %v4127_v55 = vrot.slane %v3784_v54, %v3868_v7  ;;  %v4152_v27 = vunpack.c.l.bf16 %v6582_v15 }
  0x31   : > { %v3786_v32 = vld.sshfl [vmem:[%s3866_s11 + $0x54] sm:$0x33 pattern:$0x75316420]  ;;  %6574 = vst [vmem:[#allocation13_spill] sm:$0xff] %v4107_v3  ;;  %v4124_v8 = vrot.slane %v602_v24, %v3868_v7 }
  0x32   : > { %v3787_v16 = vld.sshfl [vmem:[%s3866_s11 + $0x58] sm:$0x33 pattern:$0x75316420]  ;;  %v664_v46 = vcombine.high %v3786_v32, %v3786_v32  ;;  %6578 = vst [vmem:[#allocation17_spill] sm:$0xff] %v4127_v55  ;;  %v4139_v19 = vrot.slane %v626_v18, %v3868_v7  ;;  %v4147_v44 = vrot.slane %v3786_v32, %v3868_v7  ;;  %6583 = vst [vmem:[#allocation21_spill] sm:$0xff] %v4152_v27  ;;  %v4182_v55 = vunpack.c.l.bf16 %v6589_v21 }
  0x33   : > { %v4097_v22 = vld.sshfl [vmem:[%s3866_s11 + $0x44] sm:$0x1 pattern:$0x75316420]  ;;  %6577 = vst [vmem:[#allocation16_spill] sm:$0xff] %v4124_v8  ;;  %v688_v42 = vcombine.high %v3787_v16, %v3787_v16  ;;  %v4159_v13 = vrot.slane %v3787_v16, %v3868_v7 }
  0x34   : > { %6573 = vst [vmem:[#allocation12_spill] sm:$0xff] %v4097_v22  ;;  %v4110_v50 = vld.sshfl [vmem:[%s3866_s11 + $0x50] sm:$0x1 pattern:$0x75316420]  ;;  %6580 = vst [vmem:[#allocation19_spill] sm:$0xff] %v4139_v19  ;;  %v4156_v18 = vrot.slane %v664_v46, %v3868_v7 }
  0x35   : > { %6575 = vst [vmem:[#allocation14_spill] sm:$0xff] %v4110_v50  ;;  %v3789_v58 = vld.sshfl [vmem:[%s3866_s11 + $0x60] sm:$0x33 pattern:$0x75316420]  ;;  %6581 = vst [vmem:[#allocation20_spill] sm:$0xff] %v4147_v44  ;;  %v4168_v15 = vrot.slane %v688_v42, %v3868_v7 }
  0x36   : > { %v3790_v38 = vld.sshfl [vmem:[%s3866_s11 + $0x64] sm:$0x33 pattern:$0x75316420]  ;;  %6584 = vst [vmem:[#allocation22_spill] sm:$0xff] %v4156_v18  ;;  %6585 = vst [vmem:[#allocation23_spill] sm:$0xff] %v4159_v13  ;;  %v726_v54 = vcombine.high %v3789_v58, %v3789_v58  ;;  %v4177_v3 = vrot.slane %v3789_v58, %v3868_v7  ;;  %v4214_v18 = vunpack.c.l.bf16 %v6594_v51 }
  0x37   : > { %v4130_v26 = vld.sshfl [vmem:[%s3866_s11 + $0x5c] sm:$0x1 pattern:$0x75316420]  ;;  %v750_v22 = vcombine.high %v3790_v38, %v3790_v38  ;;  %6586 = vst [vmem:[#allocation24_spill] sm:$0xff] %v4168_v15  ;;  %6590 = vst [vmem:[#allocation27_spill] sm:$0xff] %v4182_v55  ;;  %v4190_v8 = vrot.slane %v3790_v38, %v3868_v7 }
  0x38   : > { %6579 = vst [vmem:[#allocation18_spill] sm:$0xff] %v4130_v26  ;;  %v3792_v24 = vld.sshfl [vmem:[%s3866_s11 + $0x6c] sm:$0x33 pattern:$0x75316420]  ;;  %6588 = vst [vmem:[#allocation26_spill] sm:$0xff] %v4177_v3  ;;  %v4200_v55 = vrot.slane %v726_v54, %v3868_v7 }
  0x39   : > { %v3793_v48 = vld.sshfl [vmem:[%s3866_s11 + $0x70] sm:$0x33 pattern:$0x75316420]  ;;  %v788_v32 = vcombine.high %v3792_v24, %v3792_v24  ;;  %6591 = vst [vmem:[#allocation28_spill] sm:$0xff] %v4190_v8  ;;  %v4203_v42 = vrot.slane %v750_v22, %v3868_v7  ;;  %v4209_v26 = vrot.slane %v3792_v24, %v3868_v7  ;;  %6595 = vst [vmem:[#allocation31_spill] sm:$0xff] %v4214_v18 }
  0x3a   : > { %v4171_v46 = vld.sshfl [vmem:[%s3866_s11 + $0x68] sm:$0x1 pattern:$0x75316420]  ;;  %v812_v27 = vcombine.high %v3793_v48, %v3793_v48  ;;  %v4223_v13 = vrot.slane %v3793_v48, %v3868_v7 }
  0x3b   : > { %6587 = vst [vmem:[#allocation25_spill] sm:$0xff] %v4171_v46  ;;  %v3795_v16 = vld.sshfl [vmem:[%s3866_s11 + $0x78] sm:$0x33 pattern:$0x75316420]  ;;  %6593 = vst [vmem:[#allocation30_spill] sm:$0xff] %v4209_v26  ;;  %v4220_v54 = vrot.slane %v788_v32, %v3868_v7 }
  0x3c   : > { %v3796_v29 = vld.sshfl [vmem:[%s3866_s11 + $0x7c] sm:$0x33 pattern:$0x75316420]  ;;  %v850_v44 = vcombine.high %v3795_v16, %v3795_v16  ;;  %6597 = vst [vmem:[#allocation33_spill] sm:$0xff] %v4223_v13  ;;  %v4234_v18 = vrot.slane %v812_v27, %v3868_v7  ;;  %v4237_v32 = vrot.slane %v3795_v16, %v3868_v7  ;;  %v4267_v27 = vunpack.c.l.bf16 %v3970_v2 }
  0x3d   : > { %v4193_v58 = vld.sshfl [vmem:[%s3866_s11 + $0x74] sm:$0x1 pattern:$0x75316420]  ;;  %6596 = vst [vmem:[#allocation32_spill] sm:$0xff] %v4220_v54  ;;  %v874_v38 = vcombine.high %v3796_v29, %v3796_v29  ;;  %v4245_v19 = vrot.slane %v3796_v29, %v3868_v7 }
  0x3e   : > { %6592 = vst [vmem:[#allocation29_spill] sm:$0xff] %v4193_v58  ;;  %v3798_v50 = vld.sshfl [vmem:[%s3866_s11 + $0x84] sm:$0x33 pattern:$0x75316420]  ;;  %6599 = vst [vmem:[#allocation35_spill] sm:$0xff] %v4234_v18  ;;  %v4256_v46 = vrot.slane %v850_v44, %v3868_v7 }
  0x3f   : > { %v3799_v21 = vld.sshfl [vmem:[%s3866_s11 + $0x88] sm:$0x33 pattern:$0x75316420]  ;;  %6600 = vst [vmem:[#allocation36_spill] sm:$0xff] %v4237_v32  ;;  %6601 = vst [vmem:[#allocation37_spill] sm:$0xff] %v4245_v19  ;;  %v912_v22 = vcombine.high %v3798_v50, %v3798_v50  ;;  %v4264_v12 = vrot.slane %v874_v38, %v3868_v7  ;;  %v4275_v58 = vrot.slane %v3798_v50, %v3868_v7 }
  0x40   : > { %v4226_v24 = vld.sshfl [vmem:[%s3866_s11 + $0x80] sm:$0x1 pattern:$0x75316420]  ;;  %6603 = vst [vmem:[#allocation39_spill] sm:$0xff] %v4256_v46  ;;  %6605 = vst [vmem:[#allocation41_spill] sm:$0xff] %v4267_v27  ;;  %v936_v29 = vcombine.high %v3799_v21, %v3799_v21  ;;  %v4290_v50 = vrot.slane %v3799_v21, %v3868_v7 }
  0x41   : > { %6598 = vst [vmem:[#allocation34_spill] sm:$0xff] %v4226_v24  ;;  %v3801_v15 = vld.sshfl [vmem:[%s3866_s11 + $0x90] sm:$0x33 pattern:$0x75316420]  ;;  %6604 = vst [vmem:[#allocation40_spill] sm:$0xff] %v4264_v12  ;;  %v4287_v16 = vrot.slane %v912_v22, %v3868_v7  ;;  %v6610_v24 = vcombine.high %v3951_v56, %v3951_v56 }
  0x42   : > { %v3802_v48 = vld.sshfl [vmem:[%s3866_s11 + $0x94] sm:$0x33 pattern:$0x75316420]  ;;  %6606 = vst [vmem:[#allocation42_spill] sm:$0xff] %v4275_v58  ;;  %v974_v13 = vcombine.high %v3801_v15, %v3801_v15  ;;  %6609 = vst [vmem:[#allocation45_spill] sm:$0xff] %v4290_v50  ;;  %v4302_v22 = vrot.slane %v936_v29, %v3868_v7  ;;  %v4305_v21 = vrot.slane %v3801_v15, %v3868_v7  ;;  %v4538_v50 = vunpack.c.l.bf16 %v4082_v39 }
  0x43   : > { %v3804_v51 = vld.sshfl [vmem:[%s3866_s11 + $0x9c] sm:$0x33 pattern:$0x75316420]  ;;  %v998_v27 = vcombine.high %v3802_v48, %v3802_v48  ;;  %6608 = vst [vmem:[#allocation44_spill] sm:$0xff] %v4287_v16  ;;  %v4297_v18 = vunpack.c.l.bf16 %v6610_v24  ;;  %v4308_v46 = vrot.slane %v3802_v48, %v3868_v7  ;;  %v6625_v48 = vcombine.high %v3970_v2, %v3970_v2 }
  0x44   : > { %v3805_v8 = vld.sshfl [vmem:[%s3866_s11 + $0xa0] sm:$0x33 pattern:$0x75316420]  ;;  %v1036_v32 = vcombine.high %v3804_v51, %v3804_v51  ;;  %6612 = vst [vmem:[#allocation47_spill] sm:$0xff] %v4302_v22  ;;  %6613 = vst [vmem:[#allocation48_spill] sm:$0xff] %v4305_v21  ;;  %v4316_v56 = vrot.slane %v974_v13, %v3868_v7  ;;  %v4322_v29 = vrot.slane %v3804_v51, %v3868_v7  ;;  %v4541_v16 = vunpack.c.l.bf16 %v4091_v5 }
  0x45   : > { %v3807_v26 = vld.sshfl [vmem:[%s3866_s11 + $0xa8] sm:$0x33 pattern:$0x75316420]  ;;  %v1060_v19 = vcombine.high %v3805_v8, %v3805_v8  ;;  %6611 = vst [vmem:[#allocation46_spill] sm:$0xff] %v4297_v18  ;;  %6614 = vst [vmem:[#allocation49_spill] sm:$0xff] %v4308_v46  ;;  %v4319_v24 = vrot.slane %v998_v27, %v3868_v7  ;;  %v4332_v12 = vrot.slane %v3805_v8, %v3868_v7  ;;  %v4349_v15 = vunpack.c.l.bf16 %v6625_v48 }
  0x46   : > { %v4282_v54 = vld.sshfl [vmem:[%s3866_s11 + $0x8c] sm:$0x1 pattern:$0x75316420]  ;;  %v1098_v38 = vcombine.high %v3807_v26, %v3807_v26  ;;  %6616 = vst [vmem:[#allocation51_spill] sm:$0xff] %v4316_v56  ;;  %6618 = vst [vmem:[#allocation53_spill] sm:$0xff] %v4322_v29  ;;  %v4329_v44 = vrot.slane %v1036_v32, %v3868_v7  ;;  %v4341_v51 = vrot.slane %v3807_v26, %v3868_v7  ;;  %v4366_v8 = vunpack.c.l.bf16 %v3963_v61 }
  0x47   : > { %6607 = vst [vmem:[#allocation43_spill] sm:$0xff] %v4282_v54  ;;  %v4311_v3 = vld.sshfl [vmem:[%s3866_s11 + $0x98] sm:$0x1 pattern:$0x75316420]  ;;  %6617 = vst [vmem:[#allocation52_spill] sm:$0xff] %v4319_v24  ;;  %v4338_v27 = vrot.slane %v1060_v19, %v3868_v7  ;;  %v6629_v2 = vcombine.high %v3963_v61, %v3963_v61  ;;  %v6631_v26 = vcombine.high %v3983_v9, %v3983_v9  ;;  %v4501_v46 = vunpack.c.l.bf16 %v4053_v20 }
  0x48   : > { %6615 = vst [vmem:[#allocation50_spill] sm:$0xff] %v4311_v3  ;;  %6619 = vst [vmem:[#allocation54_spill] sm:$0xff] %v4329_v44  ;;  %v4335_v13 = vld.sshfl [vmem:[%s3866_s11 + $0xa4] sm:$0x1 pattern:$0x75316420]  ;;  %v4344_v54 = vrot.slane %v1098_v38, %v3868_v7  ;;  %v4375_v38 = vunpack.c.l.bf16 %v3983_v9  ;;  %v6633_v48 = vrot.slane %v3978_v6, %v3868_v7  ;;  %v6637_v6 = vcombine.high %v3986_v10, %v3986_v10 }
  0x49   : > { %6620 = vst [vmem:[#allocation55_spill] sm:$0xff] %v4332_v12  ;;  %6621 = vst [vmem:[#allocation56_spill] sm:$0xff] %v4335_v13  ;;  %v4405_v32 = vunpack.c.l.bf16 %v6631_v26  ;;  %v4423_v26 = vunpack.c.l.bf16 %v3986_v10  ;;  %v4426_v13 = vunpack.c.l.bf16 %v4006_v28  ;;  %v6638_v19 = vcombine.high %v4006_v28, %v4006_v28 }
  0x4a   : > { %6622 = vst [vmem:[#allocation57_spill] sm:$0xff] %v4338_v27  ;;  %6623 = vst [vmem:[#allocation58_spill] sm:$0xff] %v4341_v51  ;;  %v4394_v27 = vunpack.c.l.bf16 %v6629_v2  ;;  %v4416_v29 = vunpack.c.l.bf16 %v6633_v48  ;;  %v4433_v48 = vunpack.c.l.bf16 %v6637_v6  ;;  %v4441_v9 = vunpack.c.l.bf16 %v4009_v30 }
  0x4b   : > { %6624 = vst [vmem:[#allocation59_spill] sm:$0xff] %v4344_v54  ;;  %6626 = vst [vmem:[#allocation60_spill] sm:$0xff] %v4349_v15  ;;  %v4438_v61 = vunpack.c.l.bf16 %v6638_v19  ;;  %v4446_v51 = vunpack.c.l.bf16 %v4021_v45  ;;  %v6640_v2 = vcombine.high %v4009_v30, %v4009_v30  ;;  %v6641_v6 = vcombine.high %v4021_v45, %v4021_v45 }
  0x4c   : > { %6627 = vst [vmem:[#allocation61_spill] sm:$0xff] %v4366_v8  ;;  %6628 = vst [vmem:[#allocation62_spill] sm:$0xff] %v4375_v38  ;;  %v6642_v19 = vrot.slane %v3992_v14, %v3868_v7  ;;  %v4464_v54 = vunpack.c.l.bf16 %v4029_v52  ;;  %v4467_v44 = vunpack.c.l.bf16 %v4035_v62  ;;  %v6646_v30 = vcombine.high %v4029_v52, %v4029_v52 }
  0x4d   : > { %6630 = vst [vmem:[#allocation63_spill] sm:$0xff] %v4394_v27  ;;  %6632 = vst [vmem:[#allocation64_spill] sm:$0xff] %v4405_v32  ;;  %v4451_v10 = vunpack.c.l.bf16 %v6640_v2  ;;  %v4456_v28 = vunpack.c.l.bf16 %v6641_v6  ;;  %v6648_v45 = vcombine.high %v4035_v62, %v4035_v62  ;;  %v4480_v14 = vunpack.c.l.bf16 %v4038_v63 }
  0x4e   : > { %6634 = vst [vmem:[#allocation65_spill] sm:$0xff] %v4416_v29  ;;  %6635 = vst [vmem:[#allocation66_spill] sm:$0xff] %v4423_v26  ;;  %v4461_v12 = vunpack.c.l.bf16 %v6642_v19  ;;  %v4472_v2 = vunpack.c.l.bf16 %v6646_v30  ;;  %v4483_v19 = vunpack.c.l.bf16 %v4047_v37  ;;  %v6652_v3 = vcombine.high %v4038_v63, %v4038_v63 }
  0x4f   : > { %6636 = vst [vmem:[#allocation67_spill] sm:$0xff] %v4426_v13  ;;  %6639 = vst [vmem:[#allocation68_spill] sm:$0xff] %v4438_v61  ;;  %v4477_v6 = vunpack.c.l.bf16 %v6648_v45  ;;  %v6654_v52 = vcombine.high %v4047_v37, %v4047_v37  ;;  %v6656_v62 = vrot.slane %v4012_v33, %v3868_v7  ;;  %v4504_v56 = vunpack.c.l.bf16 %v4073_v34 }
  0x50   : > { %6643 = vst [vmem:[#allocation69_spill] sm:$0xff] %v4461_v12  ;;  %6644 = vst [vmem:[#allocation70_spill] sm:$0xff] %v4464_v54  ;;  %v4488_v24 = vunpack.c.l.bf16 %v6652_v3  ;;  %v6660_v63 = vcombine.high %v4053_v20, %v4053_v20  ;;  %v6662_v37 = vcombine.high %v4073_v34, %v4073_v34  ;;  %v4517_v33 = vunpack.c.l.bf16 %v4063_v35 }
  0x51   : > { %6645 = vst [vmem:[#allocation71_spill] sm:$0xff] %v4467_v44  ;;  %6647 = vst [vmem:[#allocation72_spill] sm:$0xff] %v4472_v2  ;;  %v4493_v30 = vunpack.c.l.bf16 %v6654_v52  ;;  %v4498_v45 = vunpack.c.l.bf16 %v6656_v62  ;;  %v4520_v62 = vunpack.c.l.bf16 %v4076_v49  ;;  %v6666_v21 = vcombine.high %v4063_v35, %v4063_v35 }
  0x52   : > { %6649 = vst [vmem:[#allocation73_spill] sm:$0xff] %v4477_v6  ;;  %6650 = vst [vmem:[#allocation74_spill] sm:$0xff] %v4480_v14  ;;  %v4509_v3 = vunpack.c.l.bf16 %v6660_v63  ;;  %v4514_v52 = vunpack.c.l.bf16 %v6662_v37  ;;  %v6668_v20 = vcombine.high %v4076_v49, %v4076_v49  ;;  %v6670_v34 = vrot.slane %v4066_v1, %v3868_v7 }
  0x53   : > { %6651 = vst [vmem:[#allocation75_spill] sm:$0xff] %v4483_v19  ;;  %6653 = vst [vmem:[#allocation76_spill] sm:$0xff] %v4488_v24  ;;  %v4525_v22 = vunpack.c.l.bf16 %v6666_v21  ;;  %v6674_v35 = vcombine.high %v4082_v39, %v4082_v39  ;;  %v6676_v49 = vcombine.high %v4091_v5, %v4091_v5  ;;  %v4554_v1 = vunpack.c.l.bf16 %v4094_v40 }
  0x54   : > { %6655 = vst [vmem:[#allocation77_spill] sm:$0xff] %v4493_v30  ;;  %6657 = vst [vmem:[#allocation78_spill] sm:$0xff] %v4498_v45  ;;  %v4530_v63 = vunpack.c.l.bf16 %v6668_v20  ;;  %v4535_v37 = vunpack.c.l.bf16 %v6670_v34  ;;  %v4557_v34 = vunpack.c.l.bf16 %v4104_v60  ;;  %v6680_v58 = vcombine.high %v4094_v40, %v4094_v40  ;;  %v6795_v45 = vld [vmem:[#allocation41_spill] sm:$0xff] }
  0x55   : > { %6658 = vst [vmem:[#allocation79_spill] sm:$0xff] %v4501_v46  ;;  %6659 = vst [vmem:[#allocation80_spill] sm:$0xff] %v4504_v56  ;;  %v4546_v21 = vunpack.c.l.bf16 %v6674_v35  ;;  %v4551_v20 = vunpack.c.l.bf16 %v6676_v49  ;;  %v6682_v39 = vcombine.high %v4104_v60, %v4104_v60  ;;  %v6792_v46 = vld [vmem:[#allocation21_spill] sm:$0xff]  ;;  %v6794_v56 = vld [vmem:[#allocation31_spill] sm:$0xff]  ;;  %v1860_v19 = vcombine.low %v6795_v45, %v4297_v18 }
  0x56   : > { %6661 = vst [vmem:[#allocation81_spill] sm:$0xff] %v4509_v3  ;;  %6663 = vst [vmem:[#allocation82_spill] sm:$0xff] %v4514_v52  ;;  %v6791_v52 = vld [vmem:[#allocation27_spill] sm:$0xff]  ;;  %v1876_v24 = vcombine.low %v4349_v15, %v4366_v8  ;;  %v4816_v18 = vunpack.c.l.bf16 %v3954_v57  ;;  %v6802_v8 = vcombine.high %v3934_v47, %v3934_v47  ;;  %v4834_v15 = vunpack.c.l.bf16 %v3957_v59 }
  0x57   : > { %6664 = vst [vmem:[#allocation83_spill] sm:$0xff] %v4517_v33  ;;  %6665 = vst [vmem:[#allocation84_spill] sm:$0xff] %v4520_v62  ;;  %v4567_v35 = vunpack.c.l.bf16 %v6682_v39  ;;  %v6788_v33 = vld [vmem:[#allocation9_spill] sm:$0xff]  ;;  %v6810_v45 = vld [vmem:[#allocation3_spill] sm:$0xff] }
  0x58   : > { %6667 = vst [vmem:[#allocation85_spill] sm:$0xff] %v4525_v22  ;;  %6669 = vst [vmem:[#allocation86_spill] sm:$0xff] %v4530_v63  ;;  %v6785_v22 = vld [vmem:[#allocation8_spill] sm:$0xff]  ;;  %v6787_v63 = vld [vmem:[#allocation10_spill] sm:$0xff] }
  0x59   : > { %6671 = vst [vmem:[#allocation87_spill] sm:$0xff] %v4535_v37  ;;  %6672 = vst [vmem:[#allocation88_spill] sm:$0xff] %v4538_v50  ;;  %v6689_v37 = vld [vmem:[#allocation16_spill] sm:$0xff]  ;;  %v4784_v50 = vunpack.c.l.bf16 %v3945_v53  ;;  %v1826_v62 = vcombine.low %v6788_v33, %v6787_v63  ;;  %v6796_v63 = vcombine.high %v3928_v43, %v3928_v43 }
  0x5a   : > { %6673 = vst [vmem:[#allocation89_spill] sm:$0xff] %v4541_v16  ;;  %6675 = vst [vmem:[#allocation90_spill] sm:$0xff] %v4546_v21  ;;  %v4562_v16 = vunpack.c.l.bf16 %v6680_v58  ;;  %v6684_v21 = vld [vmem:[#allocation12_spill] sm:$0xff]  ;;  %v6693_v60 = vcombine.high %v6689_v37, %v6689_v37 }
  0x5b   : > { %6677 = vst [vmem:[#allocation91_spill] sm:$0xff] %v4551_v20  ;;  %6678 = vst [vmem:[#allocation92_spill] sm:$0xff] %v4554_v1  ;;  %v6685_v5 = vrot.slane %v6684_v21, %v3868_v7  ;;  %v6687_v20 = vld [vmem:[#allocation13_spill] sm:$0xff]  ;;  %v4805_v33 = vunpack.c.l.bf16 %v6796_v63 }
  0x5c   : > { %6679 = vst [vmem:[#allocation93_spill] sm:$0xff] %v4557_v34  ;;  %6681 = vst [vmem:[#allocation94_spill] sm:$0xff] %v4562_v16  ;;  %v4575_v1 = vunpack.c.l.bf16 %v6687_v20  ;;  %v4578_v34 = vunpack.c.l.bf16 %v6689_v37  ;;  %v6691_v40 = vcombine.high %v6687_v20, %v6687_v20  ;;  %v4588_v39 = vunpack.c.l.bf16 %v6693_v60  ;;  %v6708_v16 = vld [vmem:[#allocation22_spill] sm:$0xff] }
  0x5d   : > { %6683 = vst [vmem:[#allocation95_spill] sm:$0xff] %v4567_v35  ;;  %v4572_v49 = vunpack.c.l.bf16 %v6685_v5  ;;  %v6695_v35 = vld [vmem:[#allocation17_spill] sm:$0xff]  ;;  %v6697_v5 = vld [vmem:[#allocation19_spill] sm:$0xff]  ;;  %6784 = vst [vmem:[#allocation125_spill] sm:$0xff] %v4784_v50 }
  0x5e   : > { %6688 = vst [vmem:[#allocation13_spill] sm:$0xff] %v4575_v1  ;;  %6690 = vst [vmem:[#allocation16_spill] sm:$0xff] %v4578_v34  ;;  %v4583_v58 = vunpack.c.l.bf16 %v6691_v40  ;;  %v4591_v21 = vunpack.c.l.bf16 %v6695_v35  ;;  %v6699_v1 = vcombine.high %v6695_v35, %v6695_v35  ;;  %v6701_v20 = vcombine.high %v6697_v5, %v6697_v5 }
  0x5f   : > { %6686 = vst [vmem:[#allocation12_spill] sm:$0xff] %v4572_v49  ;;  %6694 = vst [vmem:[#allocation97_spill] sm:$0xff] %v4588_v39  ;;  %v4594_v49 = vunpack.c.l.bf16 %v6697_v5  ;;  %v6706_v39 = vld [vmem:[#allocation20_spill] sm:$0xff]  ;;  %v6712_v5 = vcombine.high %v6708_v16, %v6708_v16 }
  0x60   : > { %6692 = vst [vmem:[#allocation96_spill] sm:$0xff] %v4583_v58  ;;  %6696 = vst [vmem:[#allocation17_spill] sm:$0xff] %v4591_v21  ;;  %v4599_v34 = vunpack.c.l.bf16 %v6699_v1  ;;  %v4604_v40 = vunpack.c.l.bf16 %v6701_v20  ;;  %v6703_v58 = vld [vmem:[#allocation14_spill] sm:$0xff]  ;;  %v4612_v21 = vunpack.c.l.bf16 %v6706_v39  ;;  %v6710_v1 = vcombine.high %v6706_v39, %v6706_v39 }
  0x61   : > { %6698 = vst [vmem:[#allocation19_spill] sm:$0xff] %v4594_v49  ;;  %v6704_v37 = vrot.slane %v6703_v58, %v3868_v7  ;;  %v4615_v49 = vunpack.c.l.bf16 %v6708_v16  ;;  %v4625_v20 = vunpack.c.l.bf16 %v6712_v5  ;;  %6797 = vst [vmem:[#allocation126_spill] sm:$0xff] %v4805_v33 }
  0x62   : > { %6700 = vst [vmem:[#allocation98_spill] sm:$0xff] %v4599_v34  ;;  %6702 = vst [vmem:[#allocation99_spill] sm:$0xff] %v4604_v40  ;;  %v4620_v35 = vunpack.c.l.bf16 %v6710_v1  ;;  %v6714_v34 = vld [vmem:[#allocation23_spill] sm:$0xff]  ;;  %v4781_v40 = vunpack.c.l.bf16 %v3928_v43  ;;  %v6804_v43 = vcombine.high %v3954_v57, %v3954_v57 }
  0x63   : > { %v4609_v60 = vunpack.c.l.bf16 %v6704_v37  ;;  %6707 = vst [vmem:[#allocation20_spill] sm:$0xff] %v4612_v21  ;;  %6709 = vst [vmem:[#allocation22_spill] sm:$0xff] %v4615_v49  ;;  %v4628_v58 = vunpack.c.l.bf16 %v6714_v34  ;;  %v6716_v37 = vld [vmem:[#allocation24_spill] sm:$0xff]  ;;  %v6718_v21 = vcombine.high %v6714_v34, %v6714_v34 }
  0x64   : > { %6711 = vst [vmem:[#allocation100_spill] sm:$0xff] %v4620_v35  ;;  %6713 = vst [vmem:[#allocation101_spill] sm:$0xff] %v4625_v20  ;;  %v6720_v39 = vcombine.high %v6716_v37, %v6716_v37  ;;  %v6722_v35 = vld [vmem:[#allocation18_spill] sm:$0xff]  ;;  %v4826_v63 = vunpack.c.l.bf16 %v6804_v43 }
  0x65   : > { %6705 = vst [vmem:[#allocation14_spill] sm:$0xff] %v4609_v60  ;;  %6715 = vst [vmem:[#allocation23_spill] sm:$0xff] %v4628_v58  ;;  %v4631_v60 = vunpack.c.l.bf16 %v6716_v37  ;;  %v4636_v49 = vunpack.c.l.bf16 %v6718_v21  ;;  %v6723_v16 = vrot.slane %v6722_v35, %v3868_v7  ;;  %v6725_v20 = vld [vmem:[#allocation26_spill] sm:$0xff]  ;;  %v6730_v37 = vcombine.high %v4200_v55, %v4200_v55 }
  0x66   : > { %v4641_v1 = vunpack.c.l.bf16 %v6720_v39  ;;  %v4649_v58 = vunpack.c.l.bf16 %v6725_v20  ;;  %v6728_v34 = vcombine.high %v6725_v20, %v6725_v20  ;;  %v6737_v20 = vcombine.high %v4203_v42, %v4203_v42  ;;  %6783 = vst [vmem:[#allocation124_spill] sm:$0xff] %v4781_v40  ;;  %6801 = vst [vmem:[#allocation129_spill] sm:$0xff] %v4816_v18 }
  0x67   : > { %6717 = vst [vmem:[#allocation24_spill] sm:$0xff] %v4631_v60  ;;  %6719 = vst [vmem:[#allocation102_spill] sm:$0xff] %v4636_v49  ;;  %v4646_v5 = vunpack.c.l.bf16 %v6723_v16  ;;  %v4652_v60 = vunpack.c.l.bf16 %v4200_v55  ;;  %v4662_v39 = vunpack.c.l.bf16 %v6730_v37  ;;  %v4668_v16 = vunpack.c.l.bf16 %v4203_v42  ;;  %v6780_v49 = vld [vmem:[#allocation4_spill] sm:$0xff] }
  0x68   : > { %6721 = vst [vmem:[#allocation103_spill] sm:$0xff] %v4641_v1  ;;  %6726 = vst [vmem:[#allocation26_spill] sm:$0xff] %v4649_v58  ;;  %v4657_v21 = vunpack.c.l.bf16 %v6728_v34  ;;  %v6732_v1 = vld [vmem:[#allocation28_spill] sm:$0xff]  ;;  %v4678_v34 = vunpack.c.l.bf16 %v6737_v20 }
  0x69   : > { %6724 = vst [vmem:[#allocation18_spill] sm:$0xff] %v4646_v5  ;;  %6727 = vst [vmem:[#allocation104_spill] sm:$0xff] %v4652_v60  ;;  %v4665_v35 = vunpack.c.l.bf16 %v6732_v1  ;;  %v6735_v58 = vcombine.high %v6732_v1, %v6732_v1  ;;  %v6744_v5 = vld [vmem:[#allocation32_spill] sm:$0xff] }
  0x6a   : > { %6729 = vst [vmem:[#allocation105_spill] sm:$0xff] %v4657_v21  ;;  %6731 = vst [vmem:[#allocation106_spill] sm:$0xff] %v4662_v39  ;;  %v6739_v21 = vld [vmem:[#allocation25_spill] sm:$0xff]  ;;  %v6742_v39 = vld [vmem:[#allocation30_spill] sm:$0xff]  ;;  %v6748_v42 = vcombine.high %v6744_v5, %v6744_v5 }
  0x6b   : > { %6733 = vst [vmem:[#allocation28_spill] sm:$0xff] %v4665_v35  ;;  %6734 = vst [vmem:[#allocation107_spill] sm:$0xff] %v4668_v16  ;;  %v4673_v60 = vunpack.c.l.bf16 %v6735_v58  ;;  %v6740_v55 = vrot.slane %v6739_v21, %v3868_v7  ;;  %v4686_v35 = vunpack.c.l.bf16 %v6742_v39  ;;  %v4689_v16 = vunpack.c.l.bf16 %v6744_v5 }
  0x6c   : > { %6738 = vst [vmem:[#allocation109_spill] sm:$0xff] %v4678_v34  ;;  %v6746_v58 = vcombine.high %v6742_v39, %v6742_v39  ;;  %v4699_v20 = vunpack.c.l.bf16 %v6748_v42  ;;  %6805 = vst [vmem:[#allocation131_spill] sm:$0xff] %v4826_v63 }
  0x6d   : > { %6736 = vst [vmem:[#allocation108_spill] sm:$0xff] %v4673_v60  ;;  %v4683_v37 = vunpack.c.l.bf16 %v6740_v55  ;;  %6743 = vst [vmem:[#allocation30_spill] sm:$0xff] %v4686_v35  ;;  %v6750_v60 = vld [vmem:[#allocation33_spill] sm:$0xff]  ;;  %v6752_v55 = vld [vmem:[#allocation35_spill] sm:$0xff] }
  0x6e   : > { %6745 = vst [vmem:[#allocation32_spill] sm:$0xff] %v4689_v16  ;;  %v4694_v1 = vunpack.c.l.bf16 %v6746_v58  ;;  %6749 = vst [vmem:[#allocation111_spill] sm:$0xff] %v4699_v20  ;;  %v4702_v21 = vunpack.c.l.bf16 %v6750_v60  ;;  %v6754_v35 = vcombine.high %v6750_v60, %v6750_v60  ;;  %v6756_v39 = vcombine.high %v6752_v55, %v6752_v55 }
  0x6f   : > { %6741 = vst [vmem:[#allocation25_spill] sm:$0xff] %v4683_v37  ;;  %v4705_v37 = vunpack.c.l.bf16 %v6752_v55  ;;  %v4723_v20 = vunpack.c.l.bf16 %v3883_v17  ;;  %v6761_v60 = vcombine.high %v3883_v17, %v3883_v17  ;;  %v6763_v55 = vcombine.high %v3892_v23, %v3892_v23  ;;  %6809 = vst [vmem:[#allocation132_spill] sm:$0xff] %v4834_v15 }
  0x70   : > { %6747 = vst [vmem:[#allocation110_spill] sm:$0xff] %v4694_v1  ;;  %6751 = vst [vmem:[#allocation33_spill] sm:$0xff] %v4702_v21  ;;  %v4710_v16 = vunpack.c.l.bf16 %v6754_v35  ;;  %v4715_v58 = vunpack.c.l.bf16 %v6756_v39  ;;  %v6758_v1 = vld [vmem:[#allocation29_spill] sm:$0xff]  ;;  %v6770_v17 = vcombine.high %v3895_v25, %v3895_v25  ;;  %v6776_v21 = vcombine.high %v3906_v31, %v3906_v31 }
  0x71   : > { %6753 = vst [vmem:[#allocation35_spill] sm:$0xff] %v4705_v37  ;;  %v6759_v5 = vrot.slane %v6758_v1, %v3868_v7  ;;  %v4726_v37 = vunpack.c.l.bf16 %v3892_v23  ;;  %v4731_v35 = vunpack.c.l.bf16 %v6761_v60  ;;  %v4736_v39 = vunpack.c.l.bf16 %v6763_v55 }
  0x72   : > { %6755 = vst [vmem:[#allocation112_spill] sm:$0xff] %v4710_v16  ;;  %6757 = vst [vmem:[#allocation113_spill] sm:$0xff] %v4715_v58  ;;  %v6765_v58 = vld [vmem:[#allocation2_spill] sm:$0xff]  ;;  %v4747_v16 = vunpack.c.l.bf16 %v3916_v36  ;;  %v4752_v60 = vunpack.c.l.bf16 %v6770_v17  ;;  %v6772_v23 = vcombine.high %v3916_v36, %v3916_v36  ;;  %v4768_v34 = vunpack.c.l.bf16 %v6776_v21 }
  0x73   : > { %v4720_v42 = vunpack.c.l.bf16 %v6759_v5  ;;  %6762 = vst [vmem:[#allocation114_spill] sm:$0xff] %v4731_v35  ;;  %6764 = vst [vmem:[#allocation115_spill] sm:$0xff] %v4736_v39  ;;  %v6766_v1 = vrot.slane %v6765_v58, %v3868_v7  ;;  %v4760_v58 = vunpack.c.l.bf16 %v3906_v31  ;;  %v6781_v36 = vrot.slane %v6780_v49, %v3868_v7  ;;  %v6786_v31 = vld [vmem:[#allocation6_spill] sm:$0xff] }
  0x74   : > { %6769 = vst [vmem:[#allocation117_spill] sm:$0xff] %v4747_v16  ;;  %6771 = vst [vmem:[#allocation118_spill] sm:$0xff] %v4752_v60  ;;  %v4757_v55 = vunpack.c.l.bf16 %v6772_v23  ;;  %v1825_v21 = vcombine.low %v6786_v31, %v6785_v22  ;;  %v1843_v49 = vcombine.low %v6792_v46, %v6791_v52  ;;  %v1877_v22 = vcombine.low %v4375_v38, %v4394_v27  ;;  %v6806_v38 = vld [vmem:[#allocation5_spill] sm:$0xff] }
  0x75   : > { %6760 = vst [vmem:[#allocation29_spill] sm:$0xff] %v4720_v42  ;;  %v4741_v5 = vunpack.c.l.bf16 %v6766_v1  ;;  %v4744_v42 = vunpack.c.l.bf16 %v3895_v25  ;;  %6774 = vst [vmem:[#allocation120_spill] sm:$0xff] %v4760_v58  ;;  %v4763_v1 = vunpack.c.l.bf16 %v3925_v41  ;;  %v6778_v25 = vcombine.high %v3925_v41, %v3925_v41  ;;  %v6789_v41 = vld [vmem:[#allocation15_spill] sm:$0xff] }
  0x76   : > { %6773 = vst [vmem:[#allocation119_spill] sm:$0xff] %v4757_v55  ;;  %6777 = vst [vmem:[#allocation122_spill] sm:$0xff] %v4768_v34  ;;  %v4778_v23 = vunpack.c.l.bf16 %v6781_v36  ;;  %v6793_v36 = vld [vmem:[#allocation38_spill] sm:$0xff]  ;;  %v6798_v52 = vcombine.high %v3945_v53, %v3945_v53  ;;  %v4821_v27 = vunpack.c.l.bf16 %v6802_v8  ;;  %v6807_v53 = vrot.slane %v6806_v38, %v3868_v7 }
  0x77   : > { %6767 = vst [vmem:[#allocation2_spill] sm:$0xff] %v4741_v5  ;;  %6768 = vst [vmem:[#allocation116_spill] sm:$0xff] %v4744_v42  ;;  %v4773_v17 = vunpack.c.l.bf16 %v6778_v25  ;;  %v6790_v25 = vld [vmem:[#allocation11_spill] sm:$0xff]  ;;  %v1859_v30 = vcombine.low %v6794_v56, %v6793_v36  ;;  %v4813_v36 = vunpack.c.l.bf16 %v3934_v47  ;;  %v4837_v56 = vrot.slane %v1825_v21, %v6810_v45 }
  0x78   : > { %6775 = vst [vmem:[#allocation121_spill] sm:$0xff] %v4763_v1  ;;  %6782 = vst [vmem:[#allocation4_spill] sm:$0xff] %v4778_v23  ;;  %v1842_v3 = vcombine.low %v6790_v25, %v6789_v41  ;;  %v4810_v46 = vunpack.c.l.bf16 %v6798_v52  ;;  %v4831_v52 = vunpack.c.l.bf16 %v6807_v53  ;;  %v4840_v47 = vrot.slane %v1826_v62, %v6810_v45 }
  0x79   : > { %6779 = vst [vmem:[#allocation123_spill] sm:$0xff] %v4773_v17  ;;  %6800 = vst [vmem:[#allocation128_spill] sm:$0xff] %v4813_v36  ;;  %v4846_v57 = vrot.slane %v1843_v49, %v6810_v45  ;;  %v4849_v43 = vrot.slane %v1859_v30, %v6810_v45  ;;  %v4852_v38 = vrot.slane %v1860_v19, %v6810_v45  ;;  %v4861_v62 = vunpack.c.l.bf16 %v3973_v4 }
  0x7a   : > { %6799 = vst [vmem:[#allocation127_spill] sm:$0xff] %v4810_v46  ;;  %6803 = vst [vmem:[#allocation130_spill] sm:$0xff] %v4821_v27  ;;  %v4843_v8 = vrot.slane %v1842_v3, %v6810_v45  ;;  %v4855_v53 = vrot.slane %v1876_v24, %v6810_v45  ;;  %v4858_v21 = vrot.slane %v1877_v22, %v6810_v45  ;;  %v4878_v22 = vunpack.c.l.bf16 %v3966_v0 }
  0x7b   : > { %6808 = vst [vmem:[#allocation5_spill] sm:$0xff] %v4831_v52  ;;  %6811 = vst [vmem:[#allocation3_spill] sm:$0xff] %v4861_v62  ;;  %v6812_v3 = vcombine.high %v3957_v59, %v3957_v59  ;;  %v1893_v30 = vcombine.low %v4405_v32, %v4416_v29  ;;  %v1894_v19 = vcombine.low %v4423_v26, %v4426_v13  ;;  %v4881_v25 = vunpack.c.l.bf16 %v3989_v11 }
  0x7c   : > { %v6814_v24 = vcombine.high %v3973_v4, %v3973_v4  ;;  %6816 = vst [vmem:[#allocation135_spill] sm:$0xff] %v4878_v22  ;;  %v1910_v59 = vcombine.low %v4433_v48, %v4438_v61  ;;  %v6820_v13 = vcombine.high %v3989_v11, %v3989_v11  ;;  %v1911_v31 = vcombine.low %v4441_v9, %v4446_v51 }
  0x7d   : > { %v4866_v49 = vunpack.c.l.bf16 %v6812_v3  ;;  %6817 = vst [vmem:[#allocation136_spill] sm:$0xff] %v4881_v25  ;;  %v6818_v3 = vcombine.high %v3966_v0, %v3966_v0  ;;  %v1841_v61 = vcombine.low %v4837_v56, %v4840_v47  ;;  %v1858_v0 = vcombine.low %v4843_v8, %v4846_v57 }
  0x7e   : > { %v4875_v41 = vunpack.c.l.bf16 %v6814_v24  ;;  %v4893_v4 = vunpack.c.l.bf16 %v6820_v13  ;;  %v6821_v24 = vld [vmem:[#allocation7_spill] sm:$0xff]  ;;  %v1892_v11 = vcombine.low %v4855_v53, %v4858_v21  ;;  %v4911_v13 = vrot.slane %v1893_v30, %v6810_v45 }
  0x7f   : > { %6813 = vst [vmem:[#allocation133_spill] sm:$0xff] %v4866_v49  ;;  %v4888_v29 = vunpack.c.l.bf16 %v6818_v3  ;;  %v6822_v26 = vrot.slane %v6821_v24, %v3868_v7  ;;  %v1875_v3 = vcombine.low %v4849_v43, %v4852_v38  ;;  %v1927_v24 = vcombine.low %v4451_v10, %v4456_v28 }
  0x80   : > { %6815 = vst [vmem:[#allocation134_spill] sm:$0xff] %v4875_v41  ;;  %v4921_v47 = vrot.slane %v1910_v59, %v6810_v45  ;;  %v1928_v8 = vcombine.low %v4461_v12, %v4464_v54  ;;  %v2386_v57 = vcombine.low %v4731_v35, %v4736_v39  ;;  %v2387_v43 = vcombine.low %v4741_v5, %v4744_v42 }
  0x81   : > { %6819 = vst [vmem:[#allocation137_spill] sm:$0xff] %v4888_v29  ;;  %v4898_v32 = vunpack.c.l.bf16 %v6822_v26  ;;  %v4914_v26 = vrot.slane %v1894_v19, %v6810_v45  ;;  %v4930_v38 = vrot.slane %v1911_v31, %v6810_v45  ;;  %v1944_v53 = vcombine.low %v4467_v44, %v4472_v2  ;;  %v6942_v44 = vld [vmem:[#allocation111_spill] sm:$0xff] }
  0x82   : > { %v2403_v21 = vcombine.low %v4747_v16, %v4752_v60  ;;  %v2404_v30 = vcombine.low %v4757_v55, %v4760_v58  ;;  %v4939_v19 = vrot.slane %v2386_v57, %v6810_v45  ;;  %v4942_v59 = vrot.slane %v2387_v43, %v6810_v45  ;;  %v6848_v16 = vld [vmem:[#allocation81_spill] sm:$0xff] }
  0x83   : > { %v2420_v56 = vcombine.low %v4763_v1, %v4768_v34  ;;  %v2421_v31 = vcombine.low %v4773_v17, %v4778_v23  ;;  %v1945_v42 = vcombine.low %v4477_v6, %v4480_v14  ;;  %v2437_v57 = vcombine.low %v4781_v40, %v4784_v50  ;;  %v6844_v40 = vld [vmem:[#allocation79_spill] sm:$0xff]  ;;  %v6934_v6 = vld [vmem:[#allocation25_spill] sm:$0xff] }
  0x84   : > { %6823 = vst [vmem:[#allocation7_spill] sm:$0xff] %v4939_v19  ;;  %6824 = vst [vmem:[#allocation138_spill] sm:$0xff] %v4942_v59  ;;  %v4951_v60 = vrot.slane %v2403_v21, %v6810_v45  ;;  %v4954_v58 = vrot.slane %v2404_v30, %v6810_v45  ;;  %v2438_v17 = vcombine.low %v4805_v33, %v4810_v46  ;;  %v6843_v33 = vld [vmem:[#allocation80_spill] sm:$0xff]  ;;  %v6845_v1 = vld [vmem:[#allocation39_spill] sm:$0xff] }
  0x85   : > { %v4961_v34 = vrot.slane %v2420_v56, %v6810_v45  ;;  %v4964_v23 = vrot.slane %v2421_v31, %v6810_v45  ;;  %v4971_v30 = vrot.slane %v2437_v57, %v6810_v45  ;;  %v2454_v50 = vcombine.low %v4813_v36, %v4816_v18  ;;  %v6917_v59 = vld [vmem:[#allocation51_spill] sm:$0xff] }
  0x86   : > { %6825 = vst [vmem:[#allocation139_spill] sm:$0xff] %v4951_v60  ;;  %6826 = vst [vmem:[#allocation140_spill] sm:$0xff] %v4954_v58  ;;  %v2455_v43 = vcombine.low %v4821_v27, %v4826_v63  ;;  %v4980_v31 = vrot.slane %v2438_v17, %v6810_v45  ;;  %v2471_v46 = vcombine.low %v4831_v52, %v4834_v15  ;;  %v6839_v52 = vld [vmem:[#allocation78_spill] sm:$0xff]  ;;  %v5034_v55 = vunpack.c.l.bf16 %v6845_v1  ;;  %v6878_v58 = vld [vmem:[#allocation12_spill] sm:$0xff] }
  0x87   : > { %6827 = vst [vmem:[#allocation141_spill] sm:$0xff] %v4961_v34  ;;  %6828 = vst [vmem:[#allocation142_spill] sm:$0xff] %v4964_v23  ;;  %v2472_v21 = vcombine.low %v4861_v62, %v4866_v49  ;;  %v4987_v57 = vrot.slane %v2454_v50, %v6810_v45  ;;  %v2488_v63 = vcombine.low %v4875_v41, %v4878_v22  ;;  %v6837_v41 = vld [vmem:[#allocation76_spill] sm:$0xff]  ;;  %v6879_v60 = vld [vmem:[#allocation95_spill] sm:$0xff]  ;;  %v5160_v19 = vunpack.c.l.bf16 %v6917_v59 }
  0x88   : > { %6829 = vst [vmem:[#allocation143_spill] sm:$0xff] %v4971_v30  ;;  %6830 = vst [vmem:[#allocation144_spill] sm:$0xff] %v4980_v31  ;;  %v4990_v18 = vrot.slane %v2455_v43, %v6810_v45  ;;  %v2489_v56 = vcombine.low %v4881_v25, %v4888_v29  ;;  %v4999_v15 = vrot.slane %v2471_v46, %v6810_v45  ;;  %v6863_v31 = vld [vmem:[#allocation90_spill] sm:$0xff]  ;;  %v6864_v30 = vld [vmem:[#allocation89_spill] sm:$0xff] }
  0x89   : > { %6831 = vst [vmem:[#allocation145_spill] sm:$0xff] %v4987_v57  ;;  %v5002_v49 = vrot.slane %v2472_v21, %v6810_v45  ;;  %v5009_v22 = vrot.slane %v2488_v63, %v6810_v45  ;;  %v2554_v25 = vadd.f32 %v1858_v0, %v1841_v61  ;;  %v1935_v17 = vrot.slane %v1927_v24, %v6810_v45  ;;  %v6838_v21 = vld [vmem:[#allocation75_spill] sm:$0xff]  ;;  %v6840_v63 = vld [vmem:[#allocation77_spill] sm:$0xff]  ;;  %v6841_v0 = vld [vmem:[#allocation36_spill] sm:$0xff] }
  0x8a   : > { %6832 = vst [vmem:[#allocation146_spill] sm:$0xff] %v4990_v18  ;;  %6833 = vst [vmem:[#allocation147_spill] sm:$0xff] %v4999_v15  ;;  %v5012_v29 = vrot.slane %v2489_v56, %v6810_v45  ;;  %v1942_v46 = vrot.slane %v1928_v8, %v6810_v45  ;;  %v1961_v62 = vcombine.low %v6838_v21, %v6837_v41  ;;  %v5027_v24 = vunpack.c.l.bf16 %v6841_v0  ;;  %v6859_v18 = vld [vmem:[#allocation40_spill] sm:$0xff] }
  0x8b   : > { %6834 = vst [vmem:[#allocation148_spill] sm:$0xff] %v5002_v49  ;;  %6835 = vst [vmem:[#allocation149_spill] sm:$0xff] %v5009_v22  ;;  %v1909_v43 = vcombine.low %v4911_v13, %v4914_v26  ;;  %v1962_v27 = vcombine.low %v6840_v63, %v6839_v52  ;;  %v2555_v61 = vadd.f32 %v2554_v25, %v1875_v3  ;;  %v6847_v26 = vld [vmem:[#allocation82_spill] sm:$0xff]  ;;  %v5060_v57 = vunpack.c.l.bf16 %v6859_v18  ;;  %v6905_v52 = vld [vmem:[#allocation101_spill] sm:$0xff] }
  0x8c   : > { %6836 = vst [vmem:[#allocation150_spill] sm:$0xff] %v5012_v29  ;;  %6842 = vst [vmem:[#allocation36_spill] sm:$0xff] %v5027_v24  ;;  %v1952_v8 = vrot.slane %v1944_v53, %v6810_v45  ;;  %v1959_v36 = vrot.slane %v1945_v42, %v6810_v45  ;;  %v1978_v50 = vcombine.low %v6844_v40, %v6843_v33  ;;  %v6855_v49 = vld [vmem:[#allocation86_spill] sm:$0xff] }
  0x8d   : > { %6846 = vst [vmem:[#allocation39_spill] sm:$0xff] %v5034_v55  ;;  %v1926_v13 = vcombine.low %v4921_v47, %v4930_v38  ;;  %v1979_v56 = vcombine.low %v6848_v16, %v6847_v26  ;;  %v2556_v25 = vadd.f32 %v2555_v61, %v1892_v11  ;;  %v6849_v3 = vcombine.high %v6841_v0, %v6841_v0  ;;  %v6853_v47 = vld [vmem:[#allocation84_spill] sm:$0xff]  ;;  %v6854_v38 = vld [vmem:[#allocation83_spill] sm:$0xff]  ;;  %v6856_v11 = vld [vmem:[#allocation85_spill] sm:$0xff] }
  0x8e   : > { %v6851_v42 = vcombine.high %v6845_v1, %v6845_v1  ;;  %v1943_v39 = vcombine.low %v1935_v17, %v1942_v46  ;;  %v1969_v35 = vrot.slane %v1961_v62, %v6810_v45  ;;  %v1976_v29 = vrot.slane %v1962_v27, %v6810_v45  ;;  %v6857_v0 = vld [vmem:[#allocation37_spill] sm:$0xff]  ;;  %6860 = vst [vmem:[#allocation40_spill] sm:$0xff] %v5060_v57  ;;  %v6861_v46 = vld [vmem:[#allocation88_spill] sm:$0xff]  ;;  %v6862_v27 = vld [vmem:[#allocation87_spill] sm:$0xff] }
  0x8f   : > { %v5043_v5 = vunpack.c.l.bf16 %v6849_v3  ;;  %v1995_v22 = vcombine.low %v6854_v38, %v6853_v47  ;;  %v1996_v61 = vcombine.low %v6856_v11, %v6855_v49  ;;  %v2557_v15 = vadd.f32 %v2556_v25, %v1909_v43  ;;  %v6871_v11 = vld [vmem:[#allocation94_spill] sm:$0xff]  ;;  %v6872_v47 = vld [vmem:[#allocation93_spill] sm:$0xff]  ;;  %v6885_v26 = vld [vmem:[#allocation96_spill] sm:$0xff]  ;;  %6918 = vst [vmem:[#allocation51_spill] sm:$0xff] %v5160_v19 }
  0x90   : > { %v5048_v53 = vunpack.c.l.bf16 %v6851_v42  ;;  %v5057_v3 = vunpack.c.l.bf16 %v6857_v0  ;;  %v1960_v1 = vcombine.low %v1952_v8, %v1959_v36  ;;  %v1986_v17 = vrot.slane %v1978_v50, %v6810_v45  ;;  %v6869_v50 = vld [vmem:[#allocation92_spill] sm:$0xff]  ;;  %v6870_v8 = vld [vmem:[#allocation91_spill] sm:$0xff]  ;;  %v6881_v38 = vld [vmem:[#allocation13_spill] sm:$0xff] }
  0x91   : > { %6850 = vst [vmem:[#allocation151_spill] sm:$0xff] %v5043_v5  ;;  %v1993_v62 = vrot.slane %v1979_v56, %v6810_v45  ;;  %v2012_v42 = vcombine.low %v6862_v27, %v6861_v46  ;;  %v2013_v23 = vcombine.low %v6864_v30, %v6863_v31  ;;  %v2558_v34 = vadd.f32 %v2557_v15, %v1926_v13  ;;  %v6897_v33 = vld [vmem:[#allocation14_spill] sm:$0xff] }
  0x92   : > { %6852 = vst [vmem:[#allocation152_spill] sm:$0xff] %v5048_v53  ;;  %6858 = vst [vmem:[#allocation37_spill] sm:$0xff] %v5057_v3  ;;  %v6865_v43 = vcombine.high %v6857_v0, %v6857_v0  ;;  %v6867_v49 = vcombine.high %v6859_v18, %v6859_v18  ;;  %v2029_v56 = vcombine.low %v6870_v8, %v6869_v50  ;;  %v6873_v0 = vld [vmem:[#allocation34_spill] sm:$0xff]  ;;  %v6880_v8 = vld [vmem:[#allocation16_spill] sm:$0xff] }
  0x93   : > { %v2030_v46 = vcombine.low %v6872_v47, %v6871_v11  ;;  %v1977_v27 = vcombine.low %v1969_v35, %v1976_v29  ;;  %v2003_v31 = vrot.slane %v1995_v22, %v6810_v45  ;;  %v2010_v15 = vrot.slane %v1996_v61, %v6810_v45  ;;  %v6876_v18 = vld [vmem:[#allocation42_spill] sm:$0xff]  ;;  %v6884_v47 = vld [vmem:[#allocation97_spill] sm:$0xff] }
  0x94   : > { %v5071_v25 = vunpack.c.l.bf16 %v6865_v43  ;;  %v5076_v36 = vunpack.c.l.bf16 %v6867_v49  ;;  %v2559_v13 = vadd.f32 %v2558_v34, %v1943_v39  ;;  %v6874_v43 = vrot.slane %v6873_v0, %v3868_v7  ;;  %v6882_v39 = vld [vmem:[#allocation44_spill] sm:$0xff]  ;;  %v6903_v40 = vld [vmem:[#allocation22_spill] sm:$0xff] }
  0x95   : > { %v5090_v49 = vunpack.c.l.bf16 %v6876_v18  ;;  %v2046_v50 = vcombine.low %v6879_v60, %v6878_v58  ;;  %v2047_v11 = vcombine.low %v6881_v38, %v6880_v8  ;;  %v1994_v29 = vcombine.low %v1986_v17, %v1993_v62  ;;  %v6888_v62 = vld [vmem:[#allocation19_spill] sm:$0xff] }
  0x96   : > { %6866 = vst [vmem:[#allocation153_spill] sm:$0xff] %v5071_v25  ;;  %6868 = vst [vmem:[#allocation154_spill] sm:$0xff] %v5076_v36  ;;  %v5087_v30 = vunpack.c.l.bf16 %v6874_v43  ;;  %v2020_v35 = vrot.slane %v2012_v42, %v6810_v45  ;;  %v2027_v22 = vrot.slane %v2013_v23, %v6810_v45  ;;  %v2560_v34 = vadd.f32 %v2559_v13, %v1960_v1  ;;  %v6889_v42 = vld [vmem:[#allocation17_spill] sm:$0xff] }
  0x97   : > { %6877 = vst [vmem:[#allocation42_spill] sm:$0xff] %v5090_v49  ;;  %v5099_v61 = vunpack.c.l.bf16 %v6882_v39  ;;  %v2037_v0 = vrot.slane %v2029_v56, %v6810_v45  ;;  %v2044_v43 = vrot.slane %v2030_v46, %v6810_v45  ;;  %v2063_v16 = vcombine.low %v6885_v26, %v6884_v47  ;;  %v6892_v47 = vld [vmem:[#allocation99_spill] sm:$0xff]  ;;  %v6893_v26 = vld [vmem:[#allocation98_spill] sm:$0xff] }
  0x98   : > { %6875 = vst [vmem:[#allocation34_spill] sm:$0xff] %v5087_v30  ;;  %v6886_v58 = vcombine.high %v6876_v18, %v6876_v18  ;;  %v2011_v17 = vcombine.low %v2003_v31, %v2010_v15  ;;  %v2064_v23 = vcombine.low %v6889_v42, %v6888_v62  ;;  %v2561_v1 = vadd.f32 %v2560_v34, %v1977_v27  ;;  %v6894_v18 = vld [vmem:[#allocation45_spill] sm:$0xff]  ;;  %v6896_v15 = vld [vmem:[#allocation20_spill] sm:$0xff]  ;;  %v6898_v34 = vld [vmem:[#allocation47_spill] sm:$0xff] }
  0x99   : > { %6883 = vst [vmem:[#allocation44_spill] sm:$0xff] %v5099_v61  ;;  %v6890_v13 = vcombine.high %v6882_v39, %v6882_v39  ;;  %v2054_v46 = vrot.slane %v2046_v50, %v6810_v45  ;;  %v2061_v56 = vrot.slane %v2047_v11, %v6810_v45  ;;  %v2080_v60 = vcombine.low %v6893_v26, %v6892_v47  ;;  %v6902_v26 = vld [vmem:[#allocation100_spill] sm:$0xff] }
  0x9a   : > { %v5108_v8 = vunpack.c.l.bf16 %v6886_v58  ;;  %v5122_v58 = vunpack.c.l.bf16 %v6894_v18  ;;  %v2028_v31 = vcombine.low %v2020_v35, %v2027_v22  ;;  %v2081_v62 = vcombine.low %v6897_v33, %v6896_v15  ;;  %v6904_v22 = vld [vmem:[#allocation23_spill] sm:$0xff] }
  0x9b   : > { %v5115_v38 = vunpack.c.l.bf16 %v6890_v13  ;;  %v2562_v27 = vadd.f32 %v2561_v1, %v1994_v29  ;;  %v5127_v42 = vunpack.c.l.bf16 %v6898_v34  ;;  %v6900_v39 = vcombine.high %v6894_v18, %v6894_v18  ;;  %v6908_v18 = vld [vmem:[#allocation43_spill] sm:$0xff] }
  0x9c   : > { %6887 = vst [vmem:[#allocation155_spill] sm:$0xff] %v5108_v8  ;;  %6895 = vst [vmem:[#allocation45_spill] sm:$0xff] %v5122_v58  ;;  %v2045_v11 = vcombine.low %v2037_v0, %v2044_v43  ;;  %v2071_v13 = vrot.slane %v2063_v16, %v6810_v45  ;;  %v2078_v47 = vrot.slane %v2064_v23, %v6810_v45 }
  0x9d   : > { %6891 = vst [vmem:[#allocation156_spill] sm:$0xff] %v5115_v38  ;;  %6899 = vst [vmem:[#allocation47_spill] sm:$0xff] %v5127_v42  ;;  %v5132_v50 = vunpack.c.l.bf16 %v6900_v39  ;;  %v2097_v35 = vcombine.low %v6903_v40, %v6902_v26  ;;  %v2098_v15 = vcombine.low %v6905_v52, %v6904_v22  ;;  %v2563_v29 = vadd.f32 %v2562_v27, %v2011_v17  ;;  %v6911_v26 = vld [vmem:[#allocation102_spill] sm:$0xff]  ;;  %v6912_v40 = vld [vmem:[#allocation24_spill] sm:$0xff] }
  0x9e   : > { %v6906_v1 = vcombine.high %v6898_v34, %v6898_v34  ;;  %v6909_v39 = vrot.slane %v6908_v18, %v3868_v7  ;;  %v2062_v16 = vcombine.low %v2054_v46, %v2061_v56  ;;  %v2088_v43 = vrot.slane %v2080_v60, %v6810_v45  ;;  %v6913_v22 = vld [vmem:[#allocation18_spill] sm:$0xff]  ;;  %v6914_v17 = vld [vmem:[#allocation103_spill] sm:$0xff]  ;;  %v6915_v34 = vld [vmem:[#allocation48_spill] sm:$0xff] }
  0x9f   : > { %6901 = vst [vmem:[#allocation157_spill] sm:$0xff] %v5132_v50  ;;  %v2095_v23 = vrot.slane %v2081_v62, %v6810_v45  ;;  %v2114_v63 = vcombine.low %v6912_v40, %v6911_v26  ;;  %v2115_v27 = vcombine.low %v6914_v17, %v6913_v22  ;;  %v2564_v52 = vadd.f32 %v2563_v29, %v2028_v31  ;;  %v6919_v18 = vld [vmem:[#allocation104_spill] sm:$0xff]  ;;  %v6921_v56 = vld [vmem:[#allocation106_spill] sm:$0xff]  ;;  %v6922_v60 = vld [vmem:[#allocation105_spill] sm:$0xff] }
  0xa0   : > { %v5143_v33 = vunpack.c.l.bf16 %v6906_v1  ;;  %v5148_v0 = vunpack.c.l.bf16 %v6909_v39  ;;  %v5157_v1 = vunpack.c.l.bf16 %v6915_v34  ;;  %v6920_v39 = vld [vmem:[#allocation26_spill] sm:$0xff]  ;;  %v2132_v41 = vcombine.low %v6922_v60, %v6921_v56  ;;  %v6929_v56 = vld [vmem:[#allocation109_spill] sm:$0xff] }
  0xa1   : > { %v2131_v46 = vcombine.low %v6920_v39, %v6919_v18  ;;  %v2079_v62 = vcombine.low %v2071_v13, %v2078_v47  ;;  %v2105_v21 = vrot.slane %v2097_v35, %v6810_v45  ;;  %v2112_v26 = vrot.slane %v2098_v15, %v6810_v45  ;;  %v6927_v18 = vld [vmem:[#allocation107_spill] sm:$0xff]  ;;  %v6928_v39 = vld [vmem:[#allocation28_spill] sm:$0xff] }
  0xa2   : > { %6907 = vst [vmem:[#allocation158_spill] sm:$0xff] %v5143_v33  ;;  %6910 = vst [vmem:[#allocation43_spill] sm:$0xff] %v5148_v0  ;;  %v2565_v40 = vadd.f32 %v2564_v52, %v2045_v11  ;;  %v6923_v31 = vcombine.high %v6915_v34, %v6915_v34  ;;  %v6925_v22 = vcombine.high %v6917_v59, %v6917_v59  ;;  %v6930_v47 = vld [vmem:[#allocation108_spill] sm:$0xff]  ;;  %v6931_v34 = vld [vmem:[#allocation49_spill] sm:$0xff] }
  0xa3   : > { %6916 = vst [vmem:[#allocation48_spill] sm:$0xff] %v5157_v1  ;;  %v2148_v14 = vcombine.low %v6928_v39, %v6927_v18  ;;  %v2149_v13 = vcombine.low %v6930_v47, %v6929_v56  ;;  %v2096_v35 = vcombine.low %v2088_v43, %v2095_v23  ;;  %v2122_v15 = vrot.slane %v2114_v63, %v6810_v45  ;;  %v6935_v18 = vld [vmem:[#allocation52_spill] sm:$0xff]  ;;  %v6937_v43 = vld [vmem:[#allocation110_spill] sm:$0xff] }
  0xa4   : > { %v5171_v29 = vunpack.c.l.bf16 %v6923_v31  ;;  %v5176_v17 = vunpack.c.l.bf16 %v6925_v22  ;;  %v2129_v52 = vrot.slane %v2115_v27, %v6810_v45  ;;  %v2566_v11 = vadd.f32 %v2565_v40, %v2062_v16  ;;  %v6933_v22 = vld [vmem:[#allocation30_spill] sm:$0xff]  ;;  %v6938_v23 = vld [vmem:[#allocation32_spill] sm:$0xff] }
  0xa5   : > { %v5185_v31 = vunpack.c.l.bf16 %v6931_v34  ;;  %v2139_v60 = vrot.slane %v2131_v46, %v6810_v45  ;;  %v2146_v59 = vrot.slane %v2132_v41, %v6810_v45  ;;  %v2165_v2 = vcombine.low %v6934_v6, %v6933_v22  ;;  %v6941_v46 = vld [vmem:[#allocation33_spill] sm:$0xff] }
  0xa6   : > { %6924 = vst [vmem:[#allocation159_spill] sm:$0xff] %v5171_v29  ;;  %6926 = vst [vmem:[#allocation160_spill] sm:$0xff] %v5176_v17  ;;  %v5192_v39 = vunpack.c.l.bf16 %v6935_v18  ;;  %v2113_v56 = vcombine.low %v2105_v21, %v2112_v26  ;;  %v2166_v63 = vcombine.low %v6938_v23, %v6937_v43  ;;  %v2567_v47 = vadd.f32 %v2566_v11, %v2079_v62  ;;  %v6945_v43 = vld [vmem:[#allocation112_spill] sm:$0xff]  ;;  %v6946_v62 = vld [vmem:[#allocation35_spill] sm:$0xff] }
  0xa7   : > { %6932 = vst [vmem:[#allocation49_spill] sm:$0xff] %v5185_v31  ;;  %v6939_v40 = vcombine.high %v6931_v34, %v6931_v34  ;;  %v2156_v27 = vrot.slane %v2148_v14, %v6810_v45  ;;  %v2163_v41 = vrot.slane %v2149_v13, %v6810_v45  ;;  %v2182_v22 = vcombine.low %v6942_v44, %v6941_v46  ;;  %v6947_v34 = vld [vmem:[#allocation50_spill] sm:$0xff]  ;;  %v6950_v14 = vld [vmem:[#allocation53_spill] sm:$0xff] }
  0xa8   : > { %6936 = vst [vmem:[#allocation52_spill] sm:$0xff] %v5192_v39  ;;  %v6943_v6 = vcombine.high %v6935_v18, %v6935_v18  ;;  %v2130_v26 = vcombine.low %v2122_v15, %v2129_v52  ;;  %v2183_v11 = vcombine.low %v6946_v62, %v6945_v43  ;;  %v2568_v23 = vadd.f32 %v2567_v47, %v2096_v35  ;;  %v6953_v44 = vld [vmem:[#allocation113_spill] sm:$0xff]  ;;  %v6954_v35 = vld [vmem:[#allocation54_spill] sm:$0xff] }
  0xa9   : > { %v5199_v16 = vunpack.c.l.bf16 %v6939_v40  ;;  %v6948_v40 = vrot.slane %v6947_v34, %v3868_v7  ;;  %v5218_v13 = vunpack.c.l.bf16 %v6950_v14  ;;  %v2147_v12 = vcombine.low %v2139_v60, %v2146_v59 }
  0xaa   : > { %v5208_v21 = vunpack.c.l.bf16 %v6943_v6  ;;  %v2173_v46 = vrot.slane %v2165_v2, %v6810_v45  ;;  %v2180_v18 = vrot.slane %v2166_v63, %v6810_v45  ;;  %v6952_v6 = vld [vmem:[#allocation29_spill] sm:$0xff]  ;;  %v2200_v52 = vcombine.low %v5027_v24, %v5034_v55 }
  0xab   : > { %6940 = vst [vmem:[#allocation161_spill] sm:$0xff] %v5199_v16  ;;  %v5215_v54 = vunpack.c.l.bf16 %v6948_v40  ;;  %6951 = vst [vmem:[#allocation53_spill] sm:$0xff] %v5218_v13  ;;  %v2199_v15 = vcombine.low %v6953_v44, %v6952_v6  ;;  %v2569_v47 = vadd.f32 %v2568_v23, %v2113_v56  ;;  %v5227_v43 = vunpack.c.l.bf16 %v6954_v35  ;;  %v7049_v6 = vld [vmem:[#allocation91_spill] sm:$0xff]  ;;  %v7150_v44 = vld [vmem:[#allocation124_spill] sm:$0xff] }
  0xac   : > { %6944 = vst [vmem:[#allocation162_spill] sm:$0xff] %v5208_v21  ;;  %v6956_v34 = vcombine.high %v6950_v14, %v6950_v14  ;;  %v2164_v60 = vcombine.low %v2156_v27, %v2163_v41  ;;  %v2190_v2 = vrot.slane %v2182_v22, %v6810_v45  ;;  %v2197_v59 = vrot.slane %v2183_v11, %v6810_v45  ;;  %v6960_v14 = vld [vmem:[#allocation55_spill] sm:$0xff] }
  0xad   : > { %6949 = vst [vmem:[#allocation50_spill] sm:$0xff] %v5215_v54  ;;  %6955 = vst [vmem:[#allocation54_spill] sm:$0xff] %v5227_v43  ;;  %v2216_v63 = vcombine.low %v5043_v5, %v5048_v53  ;;  %v2217_v55 = vcombine.low %v5057_v3, %v5060_v57  ;;  %v2570_v56 = vadd.f32 %v2569_v47, %v2130_v26  ;;  %v6962_v47 = vld [vmem:[#allocation57_spill] sm:$0xff]  ;;  %v7038_v53 = vld [vmem:[#allocation87_spill] sm:$0xff] }
  0xae   : > { %v5232_v40 = vunpack.c.l.bf16 %v6956_v34  ;;  %v6958_v23 = vcombine.high %v6954_v35, %v6954_v35  ;;  %v5246_v34 = vunpack.c.l.bf16 %v6960_v14  ;;  %v2233_v22 = vcombine.low %v5071_v25, %v5076_v36  ;;  %v7036_v25 = vld [vmem:[#allocation86_spill] sm:$0xff]  ;;  %v7040_v5 = vld [vmem:[#allocation88_spill] sm:$0xff] }
  0xaf   : > { %v2234_v27 = vcombine.low %v5087_v30, %v5090_v49  ;;  %v2181_v41 = vcombine.low %v2173_v46, %v2180_v18  ;;  %v2207_v11 = vrot.slane %v2199_v15, %v6810_v45  ;;  %v2214_v57 = vrot.slane %v2200_v52, %v6810_v45  ;;  %v7034_v30 = vld [vmem:[#allocation85_spill] sm:$0xff] }
  0xb0   : > { %6957 = vst [vmem:[#allocation163_spill] sm:$0xff] %v5232_v40  ;;  %v5243_v24 = vunpack.c.l.bf16 %v6958_v23  ;;  %6961 = vst [vmem:[#allocation55_spill] sm:$0xff] %v5246_v34  ;;  %v2571_v26 = vadd.f32 %v2570_v56, %v2147_v12  ;;  %v5255_v3 = vunpack.c.l.bf16 %v6962_v47  ;;  %v6964_v35 = vcombine.high %v6960_v14, %v6960_v14 }
  0xb1   : > { %v2250_v36 = vcombine.low %v5099_v61, %v5108_v8  ;;  %v2251_v49 = vcombine.low %v5115_v38, %v5122_v58  ;;  %v2198_v46 = vcombine.low %v2190_v2, %v2197_v59  ;;  %v2224_v18 = vrot.slane %v2216_v63, %v6810_v45  ;;  %v6968_v61 = vld [vmem:[#allocation56_spill] sm:$0xff] }
  0xb2   : > { %6959 = vst [vmem:[#allocation164_spill] sm:$0xff] %v5243_v24  ;;  %6963 = vst [vmem:[#allocation57_spill] sm:$0xff] %v5255_v3  ;;  %v5260_v23 = vunpack.c.l.bf16 %v6964_v35  ;;  %v2231_v15 = vrot.slane %v2217_v55, %v6810_v45  ;;  %v2572_v12 = vadd.f32 %v2571_v26, %v2164_v60  ;;  %v6966_v52 = vcombine.high %v6962_v47, %v6962_v47  ;;  %v7032_v38 = vld [vmem:[#allocation84_spill] sm:$0xff] }
  0xb3   : > { %v2241_v14 = vrot.slane %v2233_v22, %v6810_v45  ;;  %v2248_v35 = vrot.slane %v2234_v27, %v6810_v45  ;;  %v2267_v8 = vcombine.low %v5127_v42, %v5132_v50  ;;  %v6969_v2 = vrot.slane %v6968_v61, %v3868_v7  ;;  %v6973_v7 = vld [vmem:[#allocation59_spill] sm:$0xff]  ;;  %v7030_v42 = vld [vmem:[#allocation140_spill] sm:$0xff] }
  0xb4   : > { %6965 = vst [vmem:[#allocation165_spill] sm:$0xff] %v5260_v23  ;;  %v5271_v56 = vunpack.c.l.bf16 %v6966_v52  ;;  %v2215_v63 = vcombine.low %v2207_v11, %v2214_v57  ;;  %v2268_v55 = vcombine.low %v5143_v33, %v5148_v0  ;;  %v2573_v60 = vadd.f32 %v2572_v12, %v2181_v41  ;;  %v6971_v52 = vld [vmem:[#allocation58_spill] sm:$0xff]  ;;  %v7021_v0 = vld [vmem:[#allocation80_spill] sm:$0xff]  ;;  %v7023_v33 = vld [vmem:[#allocation81_spill] sm:$0xff] }
  0xb5   : > { %v5280_v59 = vunpack.c.l.bf16 %v6969_v2  ;;  %v2258_v26 = vrot.slane %v2250_v36, %v6810_v45  ;;  %v2265_v47 = vrot.slane %v2251_v49, %v6810_v45  ;;  %v2284_v22 = vcombine.low %v5157_v1, %v5160_v19  ;;  %v7019_v1 = vld [vmem:[#allocation79_spill] sm:$0xff] }
  0xb6   : > { %6967 = vst [vmem:[#allocation166_spill] sm:$0xff] %v5271_v56  ;;  %v2285_v27 = vcombine.low %v5171_v29, %v5176_v17  ;;  %v5291_v50 = vunpack.c.l.bf16 %v6971_v52  ;;  %v5294_v61 = vunpack.c.l.bf16 %v6973_v7  ;;  %v2232_v57 = vcombine.low %v2224_v18, %v2231_v15 }
  0xb7   : > { %6970 = vst [vmem:[#allocation56_spill] sm:$0xff] %v5280_v59  ;;  %v2574_v11 = vadd.f32 %v2573_v60, %v2198_v46  ;;  %v6975_v41 = vcombine.high %v6971_v52, %v6971_v52  ;;  %v6977_v49 = vcombine.high %v6973_v7, %v6973_v7  ;;  %v2249_v2 = vcombine.low %v2241_v14, %v2248_v35 }
  0xb8   : > { %6972 = vst [vmem:[#allocation58_spill] sm:$0xff] %v5291_v50  ;;  %6974 = vst [vmem:[#allocation59_spill] sm:$0xff] %v5294_v61  ;;  %v2275_v17 = vrot.slane %v2267_v8, %v6810_v45  ;;  %v2282_v29 = vrot.slane %v2268_v55, %v6810_v45  ;;  %v2301_v19 = vcombine.low %v5185_v31, %v5192_v39  ;;  %v7015_v39 = vld [vmem:[#allocation77_spill] sm:$0xff]  ;;  %v7017_v31 = vld [vmem:[#allocation78_spill] sm:$0xff] }
  0xb9   : > { %v5299_v36 = vunpack.c.l.bf16 %v6975_v41  ;;  %v5304_v12 = vunpack.c.l.bf16 %v6977_v49  ;;  %v2302_v46 = vcombine.low %v5199_v16, %v5208_v21  ;;  %v2575_v18 = vadd.f32 %v2574_v11, %v2215_v63  ;;  %v7013_v21 = vld [vmem:[#allocation138_spill] sm:$0xff] }
  0xba   : > { %v2266_v15 = vcombine.low %v2258_v26, %v2265_v47  ;;  %v2292_v60 = vrot.slane %v2284_v22, %v6810_v45  ;;  %v2299_v52 = vrot.slane %v2285_v27, %v6810_v45  ;;  %v2318_v7 = vcombine.low %v5215_v54, %v5218_v13  ;;  %v7007_v13 = vld [vmem:[#allocation74_spill] sm:$0xff]  ;;  %v7012_v54 = vld [vmem:[#allocation7_spill] sm:$0xff] }
  0xbb   : > { %6976 = vst [vmem:[#allocation167_spill] sm:$0xff] %v5299_v36  ;;  %6978 = vst [vmem:[#allocation168_spill] sm:$0xff] %v5304_v12  ;;  %v2319_v8 = vcombine.low %v5227_v43, %v5232_v40  ;;  %v2335_v14 = vcombine.low %v5243_v24, %v5246_v34  ;;  %v2336_v35 = vcombine.low %v5255_v3, %v5260_v23  ;;  %v7001_v23 = vld [vmem:[#allocation68_spill] sm:$0xff]  ;;  %v7003_v3 = vld [vmem:[#allocation70_spill] sm:$0xff] }
  0xbc   : > { %v2576_v55 = vadd.f32 %v2575_v18, %v2232_v57  ;;  %v2352_v63 = vcombine.low %v5271_v56, %v5280_v59  ;;  %v2353_v26 = vcombine.low %v5291_v50, %v5294_v61  ;;  %v2369_v47 = vcombine.low %v5299_v36, %v5304_v12  ;;  %v6998_v36 = vld [vmem:[#allocation65_spill] sm:$0xff]  ;;  %v7004_v24 = vld [vmem:[#allocation71_spill] sm:$0xff]  ;;  %v7005_v40 = vld [vmem:[#allocation72_spill] sm:$0xff] }
  0xbd   : > { %v2283_v22 = vcombine.low %v2275_v17, %v2282_v29  ;;  %v2309_v27 = vrot.slane %v2301_v19, %v6810_v45  ;;  %v2316_v11 = vrot.slane %v2302_v46, %v6810_v45  ;;  %v2300_v49 = vcombine.low %v2292_v60, %v2299_v52  ;;  %v7006_v43 = vld [vmem:[#allocation73_spill] sm:$0xff] }
  0xbe   : > { %v2577_v41 = vadd.f32 %v2576_v55, %v2249_v2  ;;  %v2326_v34 = vrot.slane %v2318_v7, %v6810_v45  ;;  %v2333_v57 = vrot.slane %v2319_v8, %v6810_v45  ;;  %v2343_v18 = vrot.slane %v2335_v14, %v6810_v45 }
  0xbf   : > { %v2350_v59 = vrot.slane %v2336_v35, %v6810_v45  ;;  %v2360_v61 = vrot.slane %v2352_v63, %v6810_v45  ;;  %v2367_v12 = vrot.slane %v2353_v26, %v6810_v45  ;;  %v2377_v17 = vrot.slane %v2369_v47, %v6810_v45  ;;  %v6981_v63 = vld [vmem:[#allocation6_spill] sm:$0xff]  ;;  %v6982_v47 = vld [vmem:[#allocation8_spill] sm:$0xff] }
  0xc0   : > { %v2578_v56 = vadd.f32 %v2577_v41, %v2266_v15  ;;  %v6979_v19 = vcombine.low %v4723_v20, %v4726_v37  ;;  %v2317_v2 = vcombine.low %v2309_v27, %v2316_v11  ;;  %v6980_v60 = vcombine.low %v4893_v4, %v4898_v32  ;;  %v6984_v11 = vld [vmem:[#allocation10_spill] sm:$0xff]  ;;  %v6986_v41 = vld [vmem:[#allocation15_spill] sm:$0xff] }
  0xc1   : > { %v2334_v7 = vcombine.low %v2326_v34, %v2333_v57  ;;  %v2351_v8 = vcombine.low %v2343_v18, %v2350_v59  ;;  %v2368_v14 = vcombine.low %v2360_v61, %v2367_v12  ;;  %v5347_v26 = vmul.f32 %v6981_v63, %v6981_v63  ;;  %v6985_v61 = vld [vmem:[#allocation11_spill] sm:$0xff]  ;;  %v6987_v18 = vld [vmem:[#allocation21_spill] sm:$0xff] }
  0xc2   : > { %v2384_v29 = vrot.slane %v6979_v19, %v6810_v45  ;;  %v2579_v46 = vadd.f32 %v2578_v56, %v2283_v22  ;;  %v2512_v52 = vrot.slane %v6980_v60, %v6810_v45  ;;  %v5351_v27 = vmul.f32 %v6982_v47, %v6982_v47  ;;  %v6983_v56 = vld [vmem:[#allocation9_spill] sm:$0xff]  ;;  %v6988_v19 = vld [vmem:[#allocation27_spill] sm:$0xff]  ;;  %v6990_v60 = vld [vmem:[#allocation38_spill] sm:$0xff] }
  0xc3   : > { %v5355_v22 = vmul.f32 %v6983_v56, %v6983_v56  ;;  %v5362_v59 = vmul.f32 %v6984_v11, %v6984_v11  ;;  %v5366_v12 = vmul.f32 %v6985_v61, %v6985_v61  ;;  %v6993_v47 = vld [vmem:[#allocation60_spill] sm:$0xff]  ;;  %v6994_v61 = vld [vmem:[#allocation61_spill] sm:$0xff] }
  0xc4   : > { %v2580_v15 = vadd.f32 %v2579_v46, %v2300_v49  ;;  %v2385_v35 = vcombine.low %v2377_v17, %v2384_v29  ;;  %v5358_v34 = vsel %vm2593_vm0, %v2512_v52, 0.0  ;;  %v5370_v49 = vmul.f32 %v6986_v41, %v6986_v41 }
  0xc5   : > { %v5374_v17 = vmul.f32 %v6987_v18, %v6987_v18  ;;  %v5378_v29 = vmul.f32 %v6988_v19, %v6988_v19  ;;  %v5386_v52 = vmul.f32 %v6990_v60, %v6990_v60  ;;  %v5398_v56 = vmul.f32 %v6993_v47, %v6993_v47  ;;  %v6995_v18 = vld [vmem:[#allocation62_spill] sm:$0xff] }
  0xc6   : > { %v2581_v55 = vadd.f32 %v2580_v15, %v2317_v2  ;;  %v6989_v2 = vld [vmem:[#allocation31_spill] sm:$0xff]  ;;  %v6991_v15 = vld [vmem:[#allocation41_spill] sm:$0xff]  ;;  %v5402_v41 = vmul.f32 %v6994_v61, %v6994_v61  ;;  %v5406_v19 = vmul.f32 %v6995_v18, %v6995_v18  ;;  %v5418_v47 = vmul.f32 %v6998_v36, %v6998_v36 }
  0xc7   : > { %v5382_v46 = vmul.f32 %v6989_v2, %v6989_v2  ;;  %v5390_v63 = vmul.f32 %v6991_v15, %v6991_v15  ;;  %v6996_v2 = vld [vmem:[#allocation63_spill] sm:$0xff]  ;;  %v6997_v15 = vld [vmem:[#allocation64_spill] sm:$0xff]  ;;  %v5438_v36 = vmul.f32 %v4441_v9, %v4441_v9  ;;  %v5458_v9 = vmul.f32 %v7003_v3, %v7003_v3 }
  0xc8   : > { %v2582_v57 = vadd.f32 %v2581_v55, %v2334_v7  ;;  %v6992_v7 = vld [vmem:[#allocation46_spill] sm:$0xff]  ;;  %v5410_v60 = vmul.f32 %v6996_v2, %v6996_v2  ;;  %v7000_v61 = vld [vmem:[#allocation67_spill] sm:$0xff]  ;;  %v5430_v2 = vmul.f32 %v4433_v48, %v4433_v48  ;;  %v5450_v48 = vmul.f32 %v4456_v28, %v4456_v28 }
  0xc9   : > { %v5394_v55 = vmul.f32 %v6992_v7, %v6992_v7  ;;  %v5414_v7 = vmul.f32 %v6997_v15, %v6997_v15  ;;  %v5426_v18 = vmul.f32 %v7000_v61, %v7000_v61  ;;  %v5434_v15 = vmul.f32 %v7001_v23, %v7001_v23 }
  0xca   : > { %v2583_v11 = vadd.f32 %v2582_v57, %v2351_v8  ;;  %v6999_v8 = vld [vmem:[#allocation66_spill] sm:$0xff]  ;;  %v5446_v61 = vmul.f32 %v4451_v10, %v4451_v10  ;;  %v5466_v10 = vmul.f32 %v7005_v40, %v7005_v40  ;;  %v5470_v28 = vmul.f32 %v7006_v43, %v7006_v43 }
  0xcb   : > { %v5422_v57 = vmul.f32 %v6999_v8, %v6999_v8  ;;  %v5442_v8 = vmul.f32 %v4446_v51, %v4446_v51  ;;  %v5462_v51 = vmul.f32 %v7004_v24, %v7004_v24  ;;  %v7014_v40 = vcombine.low %v7012_v54, %v7013_v21  ;;  %v7025_v21 = vld [vmem:[#allocation82_spill] sm:$0xff] }
  0xcc   : > { %v2584_v50 = vadd.f32 %v2583_v11, %v2368_v14  ;;  %v7002_v14 = vld [vmem:[#allocation69_spill] sm:$0xff]  ;;  %v5489_v43 = vmul.f32 %v7015_v39, %v7015_v39  ;;  %v5505_v54 = vmul.f32 %v7023_v33, %v7023_v33  ;;  %v5509_v39 = vmul.f32 %v7025_v21, %v7025_v21 }
  0xcd   : > { %v5454_v23 = vmul.f32 %v7002_v14, %v7002_v14  ;;  %v5474_v14 = vmul.f32 %v7007_v13, %v7007_v13  ;;  %v5493_v13 = vmul.f32 %v7017_v31, %v7017_v31  ;;  %v5524_v33 = vmul.f32 %v7034_v30, %v7034_v30 }
  0xce   : > { %v2585_v11 = vadd.f32 %v2584_v50, %v2385_v35  ;;  %v7008_v50 = vld [vmem:[#allocation75_spill] sm:$0xff]  ;;  %v7010_v35 = vld [vmem:[#allocation76_spill] sm:$0xff]  ;;  %7016 = vst [vmem:[#allocation9_spill] sm:$0xff] %v5489_v43  ;;  %7024 = vst [vmem:[#allocation21_spill] sm:$0xff] %v5505_v54  ;;  %v5528_v21 = vmul.f32 %v7036_v25, %v7036_v25  ;;  %v2961_v62 = vcombine.low %v5390_v63, %v5394_v55 }
  0xcf   : > { %v5478_v3 = vmul.f32 %v7008_v50, %v7008_v50  ;;  %v5482_v24 = vmul.f32 %v7010_v35, %v7010_v35  ;;  %7018 = vst [vmem:[#allocation10_spill] sm:$0xff] %v5493_v13  ;;  %v5497_v50 = vmul.f32 %v7019_v1, %v7019_v1  ;;  %v5501_v35 = vmul.f32 %v7021_v0, %v7021_v0  ;;  %v7151_v54 = vld [vmem:[#allocation125_spill] sm:$0xff]  ;;  %v7160_v55 = vld [vmem:[#allocation3_spill] sm:$0xff] }
  0xd0   : > { %v2586_v16 = vadd.f32 %v2585_v11, %v7014_v40  ;;  %7026 = vst [vmem:[#allocation27_spill] sm:$0xff] %v5509_v39  ;;  %v7027_v11 = vld [vmem:[#allocation83_spill] sm:$0xff]  ;;  %v5520_v0 = vmul.f32 %v7032_v38, %v7032_v38  ;;  %7035 = vst [vmem:[#allocation41_spill] sm:$0xff] %v5524_v33  ;;  %v7047_v33 = vld [vmem:[#allocation142_spill] sm:$0xff]  ;;  %v2978_v63 = vcombine.low %v5406_v19, %v5410_v60 }
  0xd1   : > { %7009 = vst [vmem:[#allocation6_spill] sm:$0xff] %v5478_v3  ;;  %7011 = vst [vmem:[#allocation8_spill] sm:$0xff] %v5482_v24  ;;  %v5513_v31 = vmul.f32 %v7027_v11, %v7027_v11  ;;  %v7029_v40 = vld [vmem:[#allocation139_spill] sm:$0xff]  ;;  %v5532_v11 = vmul.f32 %v7038_v53, %v7038_v53  ;;  %v5551_v53 = vmul.f32 %v7049_v6, %v7049_v6  ;;  %v7152_v39 = vld [vmem:[#allocation126_spill] sm:$0xff] }
  0xd2   : > { %7020 = vst [vmem:[#allocation11_spill] sm:$0xff] %v5497_v50  ;;  %7022 = vst [vmem:[#allocation15_spill] sm:$0xff] %v5501_v35  ;;  %v7031_v1 = vcombine.low %v7029_v40, %v7030_v42  ;;  %v5536_v42 = vmul.f32 %v7040_v5, %v7040_v5  ;;  %v7044_v40 = vld [vmem:[#allocation90_spill] sm:$0xff]  ;;  %v7153_v50 = vld [vmem:[#allocation127_spill] sm:$0xff]  ;;  %v2927_v35 = vcombine.low %v5355_v22, %v5362_v59 }
  0xd3   : > { %7028 = vst [vmem:[#allocation31_spill] sm:$0xff] %v5513_v31  ;;  %7033 = vst [vmem:[#allocation38_spill] sm:$0xff] %v5520_v0  ;;  %v5544_v30 = vmul.f32 %v7044_v40, %v7044_v40  ;;  %v7148_v31 = vld [vmem:[#allocation123_spill] sm:$0xff]  ;;  %v7149_v0 = vld [vmem:[#allocation4_spill] sm:$0xff]  ;;  %v5846_v19 = vrot.slane %v2961_v62, %v6810_v45  ;;  %v5862_v62 = vrot.slane %v2978_v63, %v6810_v45 }
  0xd4   : > { %v2587_v58 = vadd.f32 %v2586_v16, %v7031_v1  ;;  %7037 = vst [vmem:[#allocation46_spill] sm:$0xff] %v5528_v21  ;;  %7039 = vst [vmem:[#allocation60_spill] sm:$0xff] %v5532_v11  ;;  %v7042_v16 = vld [vmem:[#allocation89_spill] sm:$0xff]  ;;  %v7051_v11 = vld [vmem:[#allocation92_spill] sm:$0xff] }
  0xd5   : > { %7041 = vst [vmem:[#allocation61_spill] sm:$0xff] %v5536_v42  ;;  %v5540_v38 = vmul.f32 %v7042_v16, %v7042_v16  ;;  %7045 = vst [vmem:[#allocation63_spill] sm:$0xff] %v5544_v30  ;;  %v7046_v1 = vld [vmem:[#allocation141_spill] sm:$0xff]  ;;  %v5555_v5 = vmul.f32 %v7051_v11, %v7051_v11  ;;  %v7057_v30 = vld [vmem:[#allocation95_spill] sm:$0xff] }
  0xd6   : > { %v7048_v25 = vcombine.low %v7046_v1, %v7047_v33  ;;  %7050 = vst [vmem:[#allocation64_spill] sm:$0xff] %v5551_v53  ;;  %v7053_v42 = vld [vmem:[#allocation93_spill] sm:$0xff]  ;;  %v5567_v33 = vmul.f32 %v7057_v30, %v7057_v30  ;;  %v7064_v53 = vld [vmem:[#allocation144_spill] sm:$0xff]  ;;  %v7157_v59 = vld [vmem:[#allocation131_spill] sm:$0xff] }
  0xd7   : > { %7043 = vst [vmem:[#allocation62_spill] sm:$0xff] %v5540_v38  ;;  %7052 = vst [vmem:[#allocation65_spill] sm:$0xff] %v5555_v5  ;;  %v5559_v16 = vmul.f32 %v7053_v42, %v7053_v42  ;;  %v7055_v38 = vld [vmem:[#allocation94_spill] sm:$0xff]  ;;  %v7061_v1 = vld [vmem:[#allocation13_spill] sm:$0xff] }
  0xd8   : > { %v2588_v21 = vadd.f32 %v2587_v58, %v7048_v25  ;;  %v5563_v40 = vmul.f32 %v7055_v38, %v7055_v38  ;;  %7058 = vst [vmem:[#allocation68_spill] sm:$0xff] %v5567_v33  ;;  %v7059_v58 = vld [vmem:[#allocation12_spill] sm:$0xff]  ;;  %v5575_v11 = vmul.f32 %v7061_v1, %v7061_v1  ;;  %v7063_v25 = vld [vmem:[#allocation143_spill] sm:$0xff]  ;;  %v7070_v33 = vld [vmem:[#allocation97_spill] sm:$0xff] }
  0xd9   : > { %7054 = vst [vmem:[#allocation66_spill] sm:$0xff] %v5559_v16  ;;  %v5571_v6 = vmul.f32 %v7059_v58, %v7059_v58  ;;  %v7065_v42 = vcombine.low %v7063_v25, %v7064_v53  ;;  %v7066_v5 = vld [vmem:[#allocation16_spill] sm:$0xff]  ;;  %v5590_v58 = vmul.f32 %v7070_v33, %v7070_v33  ;;  %v7078_v25 = vld [vmem:[#allocation99_spill] sm:$0xff]  ;;  %v7155_v13 = vld [vmem:[#allocation129_spill] sm:$0xff] }
  0xda   : > { %7056 = vst [vmem:[#allocation67_spill] sm:$0xff] %v5563_v40  ;;  %7062 = vst [vmem:[#allocation70_spill] sm:$0xff] %v5575_v11  ;;  %v5582_v38 = vmul.f32 %v7066_v5, %v7066_v5  ;;  %v7068_v40 = vld [vmem:[#allocation96_spill] sm:$0xff]  ;;  %v7074_v11 = vld [vmem:[#allocation19_spill] sm:$0xff] }
  0xdb   : > { %7060 = vst [vmem:[#allocation69_spill] sm:$0xff] %v5571_v6  ;;  %v2589_v16 = vadd.f32 %v2588_v21, %v7065_v42  ;;  %v5586_v30 = vmul.f32 %v7068_v40, %v7068_v40  ;;  %7071 = vst [vmem:[#allocation73_spill] sm:$0xff] %v5590_v58  ;;  %v7072_v6 = vld [vmem:[#allocation17_spill] sm:$0xff]  ;;  %v5598_v53 = vmul.f32 %v7074_v11, %v7074_v11  ;;  %v7076_v21 = vld [vmem:[#allocation98_spill] sm:$0xff] }
  0xdc   : > { %7067 = vst [vmem:[#allocation71_spill] sm:$0xff] %v5582_v38  ;;  %v5594_v1 = vmul.f32 %v7072_v6, %v7072_v6  ;;  %v5602_v5 = vmul.f32 %v7076_v21, %v7076_v21  ;;  %v5606_v40 = vmul.f32 %v7078_v25, %v7078_v25  ;;  %v7080_v42 = vld [vmem:[#allocation145_spill] sm:$0xff]  ;;  %v7083_v38 = vld [vmem:[#allocation14_spill] sm:$0xff] }
  0xdd   : > { %7069 = vst [vmem:[#allocation72_spill] sm:$0xff] %v5586_v30  ;;  %7075 = vst [vmem:[#allocation75_spill] sm:$0xff] %v5598_v53  ;;  %v7081_v30 = vld [vmem:[#allocation146_spill] sm:$0xff]  ;;  %v5613_v6 = vmul.f32 %v7083_v38, %v7083_v38  ;;  %v7165_v24 = vld [vmem:[#allocation137_spill] sm:$0xff] }
  0xde   : > { %7073 = vst [vmem:[#allocation74_spill] sm:$0xff] %v5594_v1  ;;  %7077 = vst [vmem:[#allocation76_spill] sm:$0xff] %v5602_v5  ;;  %v7082_v33 = vcombine.low %v7080_v42, %v7081_v30  ;;  %v7085_v1 = vld [vmem:[#allocation20_spill] sm:$0xff]  ;;  %v7087_v53 = vld [vmem:[#allocation22_spill] sm:$0xff] }
  0xdf   : > { %7079 = vst [vmem:[#allocation7_spill] sm:$0xff] %v5606_v40  ;;  %7084 = vst [vmem:[#allocation138_spill] sm:$0xff] %v5613_v6  ;;  %v5617_v11 = vmul.f32 %v7085_v1, %v7085_v1  ;;  %v5621_v21 = vmul.f32 %v7087_v53, %v7087_v53  ;;  %v7089_v5 = vld [vmem:[#allocation100_spill] sm:$0xff]  ;;  %v7091_v40 = vld [vmem:[#allocation101_spill] sm:$0xff] }
  0xe0   : > { %v2590_v58 = vadd.f32 %v2589_v16, %v7082_v33  ;;  %v5625_v25 = vmul.f32 %v7089_v5, %v7089_v5  ;;  %v5629_v30 = vmul.f32 %v7091_v40, %v7091_v40  ;;  %v7093_v16 = vld [vmem:[#allocation23_spill] sm:$0xff]  ;;  %v7095_v42 = vld [vmem:[#allocation24_spill] sm:$0xff]  ;;  %v7162_v60 = vld [vmem:[#allocation134_spill] sm:$0xff] }
  0xe1   : > { %7086 = vst [vmem:[#allocation77_spill] sm:$0xff] %v5617_v11  ;;  %7088 = vst [vmem:[#allocation78_spill] sm:$0xff] %v5621_v21  ;;  %v5633_v38 = vmul.f32 %v7093_v16, %v7093_v16  ;;  %v5637_v1 = vmul.f32 %v7095_v42, %v7095_v42  ;;  %v7097_v33 = vld [vmem:[#allocation147_spill] sm:$0xff]  ;;  %v7098_v6 = vld [vmem:[#allocation148_spill] sm:$0xff] }
  0xe2   : > { %7090 = vst [vmem:[#allocation79_spill] sm:$0xff] %v5625_v25  ;;  %7092 = vst [vmem:[#allocation80_spill] sm:$0xff] %v5629_v30  ;;  %v7099_v53 = vcombine.low %v7097_v33, %v7098_v6  ;;  %v7100_v11 = vld [vmem:[#allocation102_spill] sm:$0xff]  ;;  %v7102_v25 = vld [vmem:[#allocation103_spill] sm:$0xff] }
  0xe3   : > { %7094 = vst [vmem:[#allocation81_spill] sm:$0xff] %v5633_v38  ;;  %7096 = vst [vmem:[#allocation82_spill] sm:$0xff] %v5637_v1  ;;  %v5644_v5 = vmul.f32 %v7100_v11, %v7100_v11  ;;  %v5648_v40 = vmul.f32 %v7102_v25, %v7102_v25  ;;  %v7104_v30 = vld [vmem:[#allocation18_spill] sm:$0xff]  ;;  %v7108_v1 = vld [vmem:[#allocation104_spill] sm:$0xff] }
  0xe4   : > { %v2591_v21 = vadd.f32 %v2590_v58, %v7099_v53  ;;  %v5652_v16 = vmul.f32 %v7104_v30, %v7104_v30  ;;  %v7106_v38 = vld [vmem:[#allocation26_spill] sm:$0xff]  ;;  %v5660_v6 = vmul.f32 %v7108_v1, %v7108_v1  ;;  %v7110_v58 = vld [vmem:[#allocation105_spill] sm:$0xff] }
  0xe5   : > { %7101 = vst [vmem:[#allocation83_spill] sm:$0xff] %v5644_v5  ;;  %7103 = vst [vmem:[#allocation139_spill] sm:$0xff] %v5648_v40  ;;  %v5656_v42 = vmul.f32 %v7106_v38, %v7106_v38  ;;  %v5664_v11 = vmul.f32 %v7110_v58, %v7110_v58  ;;  %v7112_v33 = vld [vmem:[#allocation106_spill] sm:$0xff]  ;;  %v7114_v53 = vld [vmem:[#allocation149_spill] sm:$0xff] }
  0xe6   : > { %7105 = vst [vmem:[#allocation140_spill] sm:$0xff] %v5652_v16  ;;  %7109 = vst [vmem:[#allocation85_spill] sm:$0xff] %v5660_v6  ;;  %v5668_v25 = vmul.f32 %v7112_v33, %v7112_v33  ;;  %v7115_v40 = vld [vmem:[#allocation150_spill] sm:$0xff]  ;;  %v7117_v5 = vld [vmem:[#allocation28_spill] sm:$0xff] }
  0xe7   : > { %7107 = vst [vmem:[#allocation84_spill] sm:$0xff] %v5656_v42  ;;  %7111 = vst [vmem:[#allocation86_spill] sm:$0xff] %v5664_v11  ;;  %v7116_v30 = vcombine.low %v7114_v53, %v7115_v40  ;;  %v5675_v38 = vmul.f32 %v7117_v5, %v7117_v5  ;;  %v7119_v42 = vld [vmem:[#allocation107_spill] sm:$0xff]  ;;  %v7121_v6 = vld [vmem:[#allocation108_spill] sm:$0xff] }
  0xe8   : > { %7113 = vst [vmem:[#allocation87_spill] sm:$0xff] %v5668_v25  ;;  %v5679_v1 = vmul.f32 %v7119_v42, %v7119_v42  ;;  %v5683_v58 = vmul.f32 %v7121_v6, %v7121_v6  ;;  %v7123_v11 = vld [vmem:[#allocation109_spill] sm:$0xff]  ;;  %v7129_v53 = vld [vmem:[#allocation32_spill] sm:$0xff]  ;;  %v7132_v6 = vld [vmem:[#allocation110_spill] sm:$0xff] }
  0xe9   : > { %v2592_v16 = vadd.f32 %v2591_v21, %v7116_v30  ;;  %7118 = vst [vmem:[#allocation88_spill] sm:$0xff] %v5675_v38  ;;  %v5687_v33 = vmul.f32 %v7123_v11, %v7123_v11  ;;  %v7125_v25 = vld [vmem:[#allocation25_spill] sm:$0xff]  ;;  %v7127_v21 = vld [vmem:[#allocation30_spill] sm:$0xff]  ;;  %v5699_v42 = vmul.f32 %v7129_v53, %v7129_v53  ;;  %v7134_v11 = vld [vmem:[#allocation111_spill] sm:$0xff] }
  0xea   : > { %7120 = vst [vmem:[#allocation89_spill] sm:$0xff] %v5679_v1  ;;  %7122 = vst [vmem:[#allocation90_spill] sm:$0xff] %v5683_v58  ;;  %v5691_v40 = vmul.f32 %v7125_v25, %v7125_v25  ;;  %v5695_v5 = vmul.f32 %v7127_v21, %v7127_v21  ;;  %v5706_v58 = vmul.f32 %v7132_v6, %v7132_v6  ;;  %v7136_v25 = vld [vmem:[#allocation33_spill] sm:$0xff]  ;;  %v7139_v6 = vld [vmem:[#allocation115_spill] sm:$0xff] }
  0xeb   : > { %7124 = vst [vmem:[#allocation141_spill] sm:$0xff] %v5687_v33  ;;  %7130 = vst [vmem:[#allocation92_spill] sm:$0xff] %v5699_v42  ;;  %v5702_v30 = vadd.f32 %v5358_v34, %v2592_v16  ;;  %v5710_v33 = vmul.f32 %v7134_v11, %v7134_v11  ;;  %v5718_v21 = vmul.f32 %v4723_v20, %v4723_v20  ;;  %v7138_v16 = vld [vmem:[#allocation114_spill] sm:$0xff]  ;;  %v7146_v38 = vld [vmem:[#allocation121_spill] sm:$0xff] }
  0xec   : > { %7126 = vst [vmem:[#allocation142_spill] sm:$0xff] %v5691_v40  ;;  %7128 = vst [vmem:[#allocation91_spill] sm:$0xff] %v5695_v5  ;;  %v5714_v40 = vmul.f32 %v7136_v25, %v7136_v25  ;;  %v5722_v34 = vmul.f32 %v4726_v37, %v4726_v37  ;;  %v5726_v53 = vmul.f32 %v7138_v16, %v7138_v16  ;;  %v7143_v42 = vld [vmem:[#allocation118_spill] sm:$0xff]  ;;  %v7145_v5 = vld [vmem:[#allocation120_spill] sm:$0xff] }
  0xed   : > { %7131 = vst [vmem:[#allocation93_spill] sm:$0xff] %v5702_v30  ;;  %7133 = vst [vmem:[#allocation94_spill] sm:$0xff] %v5706_v58  ;;  %v5730_v11 = vmul.f32 %v7139_v6, %v7139_v6  ;;  %v7140_v30 = vld [vmem:[#allocation2_spill] sm:$0xff]  ;;  %v5746_v16 = vmul.f32 %v7143_v42, %v7143_v42  ;;  %v7144_v58 = vld [vmem:[#allocation119_spill] sm:$0xff]  ;;  %v5766_v42 = vmul.f32 %v7148_v31, %v7148_v31 }
  0xee   : > { %7135 = vst [vmem:[#allocation95_spill] sm:$0xff] %v5710_v33  ;;  %7137 = vst [vmem:[#allocation12_spill] sm:$0xff] %v5714_v40  ;;  %v5734_v25 = vmul.f32 %v7140_v30, %v7140_v30  ;;  %v7141_v33 = vld [vmem:[#allocation116_spill] sm:$0xff]  ;;  %v7142_v40 = vld [vmem:[#allocation117_spill] sm:$0xff]  ;;  %v5750_v6 = vmul.f32 %v7144_v58, %v7144_v58  ;;  %v5754_v30 = vmul.f32 %v7145_v5, %v7145_v5 }
  0xef   : > { %v5738_v20 = vmul.f32 %v7141_v33, %v7141_v33  ;;  %v5742_v37 = vmul.f32 %v7142_v40, %v7142_v40  ;;  %v5758_v33 = vmul.f32 %v7146_v38, %v7146_v38  ;;  %v7147_v1 = vld [vmem:[#allocation122_spill] sm:$0xff]  ;;  %v5770_v58 = vmul.f32 %v7149_v0, %v7149_v0 }
  0xf0   : > { %v5762_v40 = vmul.f32 %v7147_v1, %v7147_v1  ;;  %v5774_v5 = vmul.f32 %v7150_v44, %v7150_v44  ;;  %v5778_v38 = vmul.f32 %v7151_v54, %v7151_v54  ;;  %v5782_v1 = vmul.f32 %v7152_v39, %v7152_v39 }
  0xf1   : > { %v5786_v31 = vmul.f32 %v7153_v50, %v7153_v50  ;;  %v2926_v0 = vcombine.low %v5347_v26, %v5351_v27  ;;  %v2943_v44 = vcombine.low %v5366_v12, %v5370_v49  ;;  %v2944_v54 = vcombine.low %v5374_v17, %v5378_v29  ;;  %v7154_v50 = vld [vmem:[#allocation128_spill] sm:$0xff]  ;;  %v7156_v27 = vld [vmem:[#allocation130_spill] sm:$0xff]  ;;  %v7158_v49 = vld [vmem:[#allocation5_spill] sm:$0xff] }
  0xf2   : > { %v2960_v39 = vcombine.low %v5382_v46, %v5386_v52  ;;  %v2750_v43 = vmul.f32 %v7154_v50, %v7154_v50  ;;  %v2751_v26 = vmul.f32 %v7155_v13, %v7155_v13  ;;  %v5806_v22 = vmul.f32 %v7156_v27, %v7156_v27  ;;  %v7159_v29 = vld [vmem:[#allocation132_spill] sm:$0xff]  ;;  %v7161_v50 = vld [vmem:[#allocation133_spill] sm:$0xff] }
  0xf3   : > { %v5810_v12 = vmul.f32 %v7157_v59, %v7157_v59  ;;  %v5814_v17 = vmul.f32 %v7158_v49, %v7158_v49  ;;  %v5818_v46 = vmul.f32 %v7159_v29, %v7159_v29  ;;  %v2977_v52 = vcombine.low %v5398_v56, %v5402_v41 }
  0xf4   : > { %v5826_v13 = vmul.f32 %v7160_v55, %v7160_v55  ;;  %v2757_v27 = vmul.f32 %v7161_v50, %v7161_v50  ;;  %v5831_v59 = vrot.slane %v2926_v0, %v6810_v45  ;;  %v5834_v49 = vrot.slane %v2927_v35, %v6810_v45  ;;  %v7163_v0 = vld [vmem:[#allocation135_spill] sm:$0xff] }
  0xf5   : > { %v5837_v29 = vrot.slane %v2943_v44, %v6810_v45  ;;  %v5840_v56 = vrot.slane %v2944_v54, %v6810_v45  ;;  %v5843_v41 = vrot.slane %v2960_v39, %v6810_v45  ;;  %v2758_v55 = vmul.f32 %v7162_v60, %v7162_v60  ;;  %v7164_v54 = vld [vmem:[#allocation136_spill] sm:$0xff] }
  0xf6   : > { %v2759_v50 = vmul.f32 %v7163_v0, %v7163_v0  ;;  %v2994_v35 = vcombine.low %v5414_v7, %v5418_v47  ;;  %v2995_v44 = vcombine.low %v5422_v57, %v5426_v18  ;;  %v2760_v3 = vmul.f32 %v7164_v54, %v7164_v54  ;;  %v7175_v54 = vld [vmem:[#allocation9_spill] sm:$0xff] }
  0xf7   : > { %v5859_v39 = vrot.slane %v2977_v52, %v6810_v45  ;;  %v3011_v60 = vcombine.low %v5430_v2, %v5434_v15  ;;  %v2761_v0 = vmul.f32 %v7165_v24, %v7165_v24  ;;  %v5870_v7 = vmul.f32 %v4893_v4, %v4893_v4  ;;  %v7235_v4 = vld [vmem:[#allocation86_spill] sm:$0xff] }
  0xf8   : > { %v5874_v47 = vmul.f32 %v4898_v32, %v4898_v32  ;;  %v3012_v57 = vcombine.low %v5438_v36, %v5442_v8  ;;  %v2942_v18 = vcombine.low %v5831_v59, %v5834_v49  ;;  %v2959_v2 = vcombine.low %v5837_v29, %v5840_v56 }
  0xf9   : > { %v2976_v15 = vcombine.low %v5843_v41, %v5846_v19  ;;  %v5887_v24 = vrot.slane %v2994_v35, %v6810_v45  ;;  %v5890_v32 = vrot.slane %v2995_v44, %v6810_v45  ;;  %v3028_v36 = vcombine.low %v5446_v61, %v5450_v48  ;;  %v7174_v44 = vld [vmem:[#allocation10_spill] sm:$0xff] }
  0xfa   : > { %v3487_v8 = vcombine.low %v5726_v53, %v5730_v11  ;;  %v2993_v52 = vcombine.low %v5859_v39, %v5862_v62  ;;  %v5899_v63 = vrot.slane %v3011_v60, %v6810_v45  ;;  %v3029_v59 = vcombine.low %v5454_v23, %v5458_v9 }
  0xfb   : > { %v3488_v49 = vcombine.low %v5734_v25, %v5738_v20  ;;  %v5906_v29 = vrot.slane %v3012_v57, %v6810_v45  ;;  %v3504_v48 = vcombine.low %v5742_v37, %v5746_v16  ;;  %v3505_v53 = vcombine.low %v5750_v6, %v5754_v30  ;;  %v7229_v30 = vld [vmem:[#allocation139_spill] sm:$0xff] }
  0xfc   : > { %v5909_v61 = vrot.slane %v3487_v8, %v6810_v45  ;;  %v3045_v11 = vcombine.low %v5462_v51, %v5466_v10  ;;  %v3046_v23 = vcombine.low %v5470_v28, %v5474_v14  ;;  %v3521_v25 = vcombine.low %v5758_v33, %v5762_v40  ;;  %v7233_v10 = vld [vmem:[#allocation84_spill] sm:$0xff] }
  0xfd   : > { %v5920_v9 = vrot.slane %v3488_v49, %v6810_v45  ;;  %v5925_v20 = vrot.slane %v3504_v48, %v6810_v45  ;;  %v5928_v37 = vrot.slane %v3505_v53, %v6810_v45  ;;  %v3522_v16 = vcombine.low %v5766_v42, %v5770_v58  ;;  %v7178_v49 = vld [vmem:[#allocation15_spill] sm:$0xff] }
  0xfe   : > { %v3538_v51 = vcombine.low %v5774_v5, %v5778_v38  ;;  %v5937_v28 = vrot.slane %v3521_v25, %v6810_v45  ;;  %v3539_v14 = vcombine.low %v5782_v1, %v5786_v31  ;;  %v3555_v6 = vcombine.low %v2750_v43, %v2751_v26  ;;  %v7179_v48 = vld [vmem:[#allocation11_spill] sm:$0xff]  ;;  %v7226_v1 = vld [vmem:[#allocation82_spill] sm:$0xff] }
  0xff   : > { %v5944_v33 = vrot.slane %v3522_v16, %v6810_v45  ;;  %v3556_v42 = vcombine.low %v5806_v22, %v5810_v12  ;;  %v3572_v43 = vcombine.low %v5814_v17, %v5818_v46  ;;  %v3573_v38 = vcombine.low %v5826_v13, %v2757_v27  ;;  %v7180_v25 = vld [vmem:[#allocation27_spill] sm:$0xff]  ;;  %v7181_v16 = vld [vmem:[#allocation21_spill] sm:$0xff]  ;;  %v7215_v46 = vld [vmem:[#allocation76_spill] sm:$0xff] }
 0x100   : > { %v5947_v40 = vrot.slane %v3538_v51, %v6810_v45  ;;  %v5952_v58 = vrot.slane %v3539_v14, %v6810_v45  ;;  %v5955_v5 = vrot.slane %v3555_v6, %v6810_v45  ;;  %v3589_v26 = vcombine.low %v2758_v55, %v2759_v50  ;;  %v7172_v55 = vld [vmem:[#allocation8_spill] sm:$0xff]  ;;  %v7173_v50 = vld [vmem:[#allocation6_spill] sm:$0xff]  ;;  %v7182_v6 = vld [vmem:[#allocation113_spill] sm:$0xff] }
 0x101   : > { %v5963_v31 = vrot.slane %v3556_v42, %v6810_v45  ;;  %v3590_v56 = vcombine.low %v2760_v3, %v2761_v0  ;;  %v5968_v12 = vrot.slane %v3572_v43, %v6810_v45  ;;  %v5971_v41 = vrot.slane %v3573_v38, %v6810_v45  ;;  %v7217_v17 = vld [vmem:[#allocation138_spill] sm:$0xff] }
 0x102   : > { %7166 = vst [vmem:[#allocation13_spill] sm:$0xff] %v5955_v5  ;;  %v5978_v13 = vrot.slane %v3589_v26, %v6810_v45  ;;  %v3655_v27 = vadd.f32 %v2959_v2, %v2942_v18  ;;  %v3010_v19 = vcombine.low %v5887_v24, %v5890_v32  ;;  %v3062_v35 = vcombine.low %v7173_v50, %v7172_v55  ;;  %v7176_v2 = vld [vmem:[#allocation35_spill] sm:$0xff]  ;;  %v7177_v32 = vld [vmem:[#allocation112_spill] sm:$0xff]  ;;  %v7183_v26 = vld [vmem:[#allocation38_spill] sm:$0xff] }
 0x103   : > { %7167 = vst [vmem:[#allocation143_spill] sm:$0xff] %v5963_v31  ;;  %7168 = vst [vmem:[#allocation144_spill] sm:$0xff] %v5968_v12  ;;  %v5981_v3 = vrot.slane %v3590_v56, %v6810_v45  ;;  %v3063_v39 = vcombine.low %v7175_v54, %v7174_v44  ;;  %v3036_v60 = vrot.slane %v3028_v36, %v6810_v45  ;;  %v7184_v56 = vld [vmem:[#allocation31_spill] sm:$0xff]  ;;  %v7185_v55 = vld [vmem:[#allocation29_spill] sm:$0xff] }
 0x104   : > { %7169 = vst [vmem:[#allocation16_spill] sm:$0xff] %v5971_v41  ;;  %7170 = vst [vmem:[#allocation96_spill] sm:$0xff] %v5978_v13  ;;  %v3043_v0 = vrot.slane %v3029_v59, %v6810_v45  ;;  %v3656_v18 = vadd.f32 %v3655_v27, %v2976_v15  ;;  %v5997_v24 = vmul.f32 %v7176_v2, %v7176_v2  ;;  %v7188_v44 = vld [vmem:[#allocation36_spill] sm:$0xff]  ;;  %v7220_v22 = vld [vmem:[#allocation78_spill] sm:$0xff] }
 0x105   : > { %7171 = vst [vmem:[#allocation97_spill] sm:$0xff] %v5981_v3  ;;  %v6001_v8 = vmul.f32 %v7177_v32, %v7177_v32  ;;  %v3079_v53 = vcombine.low %v7179_v48, %v7178_v49  ;;  %v3080_v36 = vcombine.low %v7181_v16, %v7180_v25  ;;  %v3027_v59 = vcombine.low %v5899_v63, %v5906_v29  ;;  %v7186_v29 = vld [vmem:[#allocation46_spill] sm:$0xff]  ;;  %v7190_v2 = vld [vmem:[#allocation60_spill] sm:$0xff]  ;;  %v7191_v49 = vld [vmem:[#allocation39_spill] sm:$0xff] }
 0x106   : > { %v3053_v51 = vrot.slane %v3045_v11, %v6810_v45  ;;  %v3060_v15 = vrot.slane %v3046_v23, %v6810_v45  ;;  %v3657_v14 = vadd.f32 %v3656_v18, %v2993_v52  ;;  %v6013_v42 = vmul.f32 %v7182_v6, %v7182_v6  ;;  %v7187_v11 = vld [vmem:[#allocation41_spill] sm:$0xff]  ;;  %v7193_v25 = vld [vmem:[#allocation62_spill] sm:$0xff]  ;;  %v7239_v3 = vld [vmem:[#allocation88_spill] sm:$0xff] }
 0x107   : > { %v3070_v43 = vrot.slane %v3062_v35, %v6810_v45  ;;  %v3077_v38 = vrot.slane %v3063_v39, %v6810_v45  ;;  %v3096_v27 = vcombine.low %v7184_v56, %v7183_v26  ;;  %v6021_v50 = vmul.f32 %v7185_v55, %v7185_v55  ;;  %v7189_v18 = vld [vmem:[#allocation61_spill] sm:$0xff]  ;;  %v7195_v26 = vld [vmem:[#allocation152_spill] sm:$0xff]  ;;  %v7241_v13 = vld [vmem:[#allocation90_spill] sm:$0xff] }
 0x108   : > { %v3044_v63 = vcombine.low %v3036_v60, %v3043_v0  ;;  %v3097_v23 = vcombine.low %v7187_v11, %v7186_v29  ;;  %v3658_v52 = vadd.f32 %v3657_v14, %v3010_v19  ;;  %v6027_v54 = vmul.f32 %v7188_v44, %v7188_v44  ;;  %v7192_v0 = vld [vmem:[#allocation63_spill] sm:$0xff]  ;;  %v7196_v29 = vld [vmem:[#allocation65_spill] sm:$0xff]  ;;  %v7197_v11 = vld [vmem:[#allocation64_spill] sm:$0xff] }
 0x109   : > { %v3087_v35 = vrot.slane %v3079_v53, %v6810_v45  ;;  %v3094_v39 = vrot.slane %v3080_v36, %v6810_v45  ;;  %v3113_v32 = vcombine.low %v7190_v2, %v7189_v18  ;;  %v6035_v48 = vmul.f32 %v7191_v49, %v7191_v49  ;;  %v7194_v14 = vld [vmem:[#allocation151_spill] sm:$0xff]  ;;  %v7199_v44 = vld [vmem:[#allocation66_spill] sm:$0xff]  ;;  %v7201_v49 = vld [vmem:[#allocation40_spill] sm:$0xff] }
 0x10a   : > { %v3061_v60 = vcombine.low %v3053_v51, %v3060_v15  ;;  %v3114_v16 = vcombine.low %v7193_v25, %v7192_v0  ;;  %v3659_v19 = vadd.f32 %v3658_v52, %v3027_v59  ;;  %v6041_v6 = vmul.f32 %v7194_v14, %v7194_v14  ;;  %v7198_v15 = vld [vmem:[#allocation67_spill] sm:$0xff]  ;;  %v7200_v52 = vld [vmem:[#allocation37_spill] sm:$0xff]  ;;  %v7203_v25 = vld [vmem:[#allocation68_spill] sm:$0xff] }
 0x10b   : > { %v6045_v53 = vmul.f32 %v7195_v26, %v7195_v26  ;;  %v3078_v36 = vcombine.low %v3070_v43, %v3077_v38  ;;  %v3104_v56 = vrot.slane %v3096_v27, %v6810_v45  ;;  %v3111_v55 = vrot.slane %v3097_v23, %v6810_v45  ;;  %v7202_v23 = vld [vmem:[#allocation69_spill] sm:$0xff]  ;;  %v7204_v26 = vld [vmem:[#allocation71_spill] sm:$0xff]  ;;  %v7246_v41 = vld [vmem:[#allocation94_spill] sm:$0xff] }
 0x10c   : > { %v3130_v51 = vcombine.low %v7197_v11, %v7196_v29  ;;  %v3131_v18 = vcombine.low %v7199_v44, %v7198_v15  ;;  %v3660_v59 = vadd.f32 %v3659_v19, %v3044_v63  ;;  %v6055_v2 = vmul.f32 %v7200_v52, %v7200_v52  ;;  %v7205_v29 = vld [vmem:[#allocation70_spill] sm:$0xff]  ;;  %v7206_v19 = vld [vmem:[#allocation153_spill] sm:$0xff]  ;;  %v7251_v5 = vld [vmem:[#allocation95_spill] sm:$0xff] }
 0x10d   : > { %v6059_v0 = vmul.f32 %v7201_v49, %v7201_v49  ;;  %v3095_v43 = vcombine.low %v3087_v35, %v3094_v39  ;;  %v3121_v38 = vrot.slane %v3113_v32, %v6810_v45  ;;  %v3128_v27 = vrot.slane %v3114_v16, %v6810_v45  ;;  %v7207_v44 = vld [vmem:[#allocation154_spill] sm:$0xff]  ;;  %v7208_v35 = vld [vmem:[#allocation73_spill] sm:$0xff]  ;;  %v7209_v39 = vld [vmem:[#allocation72_spill] sm:$0xff] }
 0x10e   : > { %v3147_v14 = vcombine.low %v7203_v25, %v7202_v23  ;;  %v3148_v11 = vcombine.low %v7205_v29, %v7204_v26  ;;  %v3661_v63 = vadd.f32 %v3660_v59, %v3061_v60  ;;  %v6069_v15 = vmul.f32 %v7206_v19, %v7206_v19  ;;  %v7210_v49 = vld [vmem:[#allocation75_spill] sm:$0xff]  ;;  %v7211_v16 = vld [vmem:[#allocation74_spill] sm:$0xff] }
 0x10f   : > { %v6073_v52 = vmul.f32 %v7207_v44, %v7207_v44  ;;  %v3164_v32 = vcombine.low %v7209_v39, %v7208_v35  ;;  %v3165_v57 = vcombine.low %v7211_v16, %v7210_v49  ;;  %v3112_v62 = vcombine.low %v3104_v56, %v3111_v55  ;;  %v7212_v59 = vld [vmem:[#allocation34_spill] sm:$0xff]  ;;  %v7214_v44 = vld [vmem:[#allocation7_spill] sm:$0xff]  ;;  %v7216_v39 = vld [vmem:[#allocation77_spill] sm:$0xff] }
 0x110   : > { %v3138_v23 = vrot.slane %v3130_v51, %v6810_v45  ;;  %v3145_v25 = vrot.slane %v3131_v18, %v6810_v45  ;;  %v3662_v60 = vadd.f32 %v3661_v63, %v3078_v36  ;;  %v6083_v26 = vmul.f32 %v7212_v59, %v7212_v59  ;;  %v7213_v29 = vld [vmem:[#allocation42_spill] sm:$0xff]  ;;  %v7218_v18 = vld [vmem:[#allocation44_spill] sm:$0xff] }
 0x111   : > { %v6087_v19 = vmul.f32 %v7213_v29, %v7213_v29  ;;  %v3181_v35 = vcombine.low %v7215_v46, %v7214_v44  ;;  %v3182_v49 = vcombine.low %v7217_v17, %v7216_v39  ;;  %v3129_v56 = vcombine.low %v3121_v38, %v3128_v27  ;;  %v7219_v29 = vld [vmem:[#allocation79_spill] sm:$0xff]  ;;  %v7222_v27 = vld [vmem:[#allocation81_spill] sm:$0xff] }
 0x112   : > { %v3155_v55 = vrot.slane %v3147_v14, %v6810_v45  ;;  %v3162_v51 = vrot.slane %v3148_v11, %v6810_v45  ;;  %v3663_v36 = vadd.f32 %v3662_v60, %v3095_v43  ;;  %v6097_v63 = vmul.f32 %v7218_v18, %v7218_v18  ;;  %v7221_v44 = vld [vmem:[#allocation155_spill] sm:$0xff]  ;;  %v7223_v14 = vld [vmem:[#allocation80_spill] sm:$0xff] }
 0x113   : > { %v3172_v16 = vrot.slane %v3164_v32, %v6810_v45  ;;  %v3179_v59 = vrot.slane %v3165_v57, %v6810_v45  ;;  %v3198_v46 = vcombine.low %v7220_v22, %v7219_v29  ;;  %v6105_v17 = vmul.f32 %v7221_v44, %v7221_v44  ;;  %v7224_v60 = vld [vmem:[#allocation156_spill] sm:$0xff]  ;;  %v7225_v18 = vld [vmem:[#allocation83_spill] sm:$0xff]  ;;  %v7227_v29 = vld [vmem:[#allocation45_spill] sm:$0xff] }
 0x114   : > { %v3146_v38 = vcombine.low %v3138_v23, %v3145_v25  ;;  %v3199_v11 = vcombine.low %v7223_v14, %v7222_v27  ;;  %v3664_v43 = vadd.f32 %v3663_v36, %v3112_v62  ;;  %v6111_v39 = vmul.f32 %v7224_v60, %v7224_v60  ;;  %v7228_v25 = vld [vmem:[#allocation140_spill] sm:$0xff]  ;;  %v7230_v36 = vld [vmem:[#allocation47_spill] sm:$0xff]  ;;  %v7231_v60 = vld [vmem:[#allocation157_spill] sm:$0xff] }
 0x115   : > { %v3189_v32 = vrot.slane %v3181_v35, %v6810_v45  ;;  %v3196_v57 = vrot.slane %v3182_v49, %v6810_v45  ;;  %v3215_v22 = vcombine.low %v7226_v1, %v7225_v18  ;;  %v6119_v44 = vmul.f32 %v7227_v29, %v7227_v29  ;;  %v7232_v29 = vld [vmem:[#allocation85_spill] sm:$0xff] }
 0x116   : > { %v3163_v23 = vcombine.low %v3155_v55, %v3162_v51  ;;  %v3216_v27 = vcombine.low %v7229_v30, %v7228_v25  ;;  %v3665_v62 = vadd.f32 %v3664_v43, %v3129_v56  ;;  %v6125_v14 = vmul.f32 %v7230_v36, %v7230_v36  ;;  %v7234_v51 = vld [vmem:[#allocation87_spill] sm:$0xff]  ;;  %v7236_v43 = vld [vmem:[#allocation158_spill] sm:$0xff] }
 0x117   : > { %v6129_v35 = vmul.f32 %v7231_v60, %v7231_v60  ;;  %v3180_v49 = vcombine.low %v3172_v16, %v3179_v59  ;;  %v3206_v1 = vrot.slane %v3198_v46, %v6810_v45  ;;  %v3213_v18 = vrot.slane %v3199_v11, %v6810_v45  ;;  %v7237_v36 = vld [vmem:[#allocation43_spill] sm:$0xff]  ;;  %v7238_v11 = vld [vmem:[#allocation89_spill] sm:$0xff] }
 0x118   : > { %v3232_v55 = vcombine.low %v7233_v10, %v7232_v29  ;;  %v3233_v30 = vcombine.low %v7235_v4, %v7234_v51  ;;  %v3666_v56 = vadd.f32 %v3665_v62, %v3146_v38  ;;  %v6139_v25 = vmul.f32 %v7236_v43, %v7236_v43  ;;  %v7240_v29 = vld [vmem:[#allocation141_spill] sm:$0xff]  ;;  %v7242_v62 = vld [vmem:[#allocation48_spill] sm:$0xff]  ;;  %v7243_v43 = vld [vmem:[#allocation51_spill] sm:$0xff] }
 0x119   : > { %v6143_v60 = vmul.f32 %v7237_v36, %v7237_v36  ;;  %v3197_v16 = vcombine.low %v3189_v32, %v3196_v57  ;;  %v3223_v59 = vrot.slane %v3215_v22, %v6810_v45  ;;  %v3230_v46 = vrot.slane %v3216_v27, %v6810_v45  ;;  %v7244_v32 = vld [vmem:[#allocation91_spill] sm:$0xff]  ;;  %v7245_v57 = vld [vmem:[#allocation142_spill] sm:$0xff]  ;;  %v7247_v27 = vld [vmem:[#allocation92_spill] sm:$0xff] }
 0x11a   : > { %v3249_v10 = vcombine.low %v7239_v3, %v7238_v11  ;;  %v3250_v4 = vcombine.low %v7241_v13, %v7240_v29  ;;  %v3667_v38 = vadd.f32 %v3666_v56, %v3163_v23  ;;  %v6153_v51 = vmul.f32 %v7242_v62, %v7242_v62  ;;  %v7248_v56 = vld [vmem:[#allocation159_spill] sm:$0xff]  ;;  %v7249_v29 = vld [vmem:[#allocation160_spill] sm:$0xff] }
 0x11b   : > { %v6157_v36 = vmul.f32 %v7243_v43, %v7243_v43  ;;  %v3266_v22 = vcombine.low %v7245_v57, %v7244_v32  ;;  %v3267_v12 = vcombine.low %v7247_v27, %v7246_v41  ;;  %v3214_v31 = vcombine.low %v3206_v1, %v3213_v18  ;;  %v7250_v43 = vld [vmem:[#allocation12_spill] sm:$0xff] }
 0x11c   : > { %v3240_v3 = vrot.slane %v3232_v55, %v6810_v45  ;;  %v3247_v13 = vrot.slane %v3233_v30, %v6810_v45  ;;  %v3668_v23 = vadd.f32 %v3667_v38, %v3180_v49  ;;  %v6167_v11 = vmul.f32 %v7248_v56, %v7248_v56  ;;  %v7252_v30 = vld [vmem:[#allocation49_spill] sm:$0xff]  ;;  %v7253_v56 = vld [vmem:[#allocation52_spill] sm:$0xff] }
 0x11d   : > { %v6171_v62 = vmul.f32 %v7249_v29, %v7249_v29  ;;  %v3283_v32 = vcombine.low %v7251_v5, %v7250_v43  ;;  %v3284_v41 = vcombine.low %v5997_v24, %v6001_v8  ;;  %v3231_v1 = vcombine.low %v3223_v59, %v3230_v46  ;;  %v7254_v46 = vld [vmem:[#allocation161_spill] sm:$0xff] }
 0x11e   : > { %v3257_v18 = vrot.slane %v3249_v10, %v6810_v45  ;;  %v3264_v55 = vrot.slane %v3250_v4, %v6810_v45  ;;  %v3669_v49 = vadd.f32 %v3668_v23, %v3197_v16  ;;  %v6181_v38 = vmul.f32 %v7252_v30, %v7252_v30 }
 0x11f   : > { %v3274_v57 = vrot.slane %v3266_v22, %v6810_v45  ;;  %v3281_v27 = vrot.slane %v3267_v12, %v6810_v45  ;;  %v3300_v5 = vcombine.low %v6013_v42, %v6021_v50  ;;  %v6189_v24 = vmul.f32 %v7253_v56, %v7253_v56  ;;  %v7255_v42 = vld [vmem:[#allocation162_spill] sm:$0xff] }
 0x120   : > { %v3248_v8 = vcombine.low %v3240_v3, %v3247_v13  ;;  %v3301_v59 = vcombine.low %v6027_v54, %v6035_v48  ;;  %v3670_v16 = vadd.f32 %v3669_v49, %v3214_v31  ;;  %v2716_v10 = vmul.f32 %v7254_v46, %v7254_v46  ;;  %v7256_v54 = vld [vmem:[#allocation50_spill] sm:$0xff]  ;;  %v7257_v48 = vld [vmem:[#allocation53_spill] sm:$0xff] }
 0x121   : > { %v3291_v4 = vrot.slane %v3283_v32, %v6810_v45  ;;  %v3298_v22 = vrot.slane %v3284_v41, %v6810_v45  ;;  %v3317_v12 = vcombine.low %v6041_v6, %v6045_v53  ;;  %v2717_v50 = vmul.f32 %v7255_v42, %v7255_v42 }
 0x122   : > { %v3265_v23 = vcombine.low %v3257_v18, %v3264_v55  ;;  %v3318_v3 = vcombine.low %v6055_v2, %v6059_v0  ;;  %v3671_v13 = vadd.f32 %v3670_v16, %v3231_v1  ;;  %v2718_v31 = vmul.f32 %v7256_v54, %v7256_v54  ;;  %v7258_v2 = vld [vmem:[#allocation54_spill] sm:$0xff]  ;;  %v7259_v1 = vld [vmem:[#allocation163_spill] sm:$0xff] }
 0x123   : > { %v2719_v29 = vmul.f32 %v7257_v48, %v7257_v48  ;;  %v3282_v43 = vcombine.low %v3274_v57, %v3281_v27  ;;  %v3308_v32 = vrot.slane %v3300_v5, %v6810_v45  ;;  %v3315_v41 = vrot.slane %v3301_v59, %v6810_v45  ;;  %v7261_v5 = vld [vmem:[#allocation55_spill] sm:$0xff] }
 0x124   : > { %v3334_v6 = vcombine.low %v6069_v15, %v6073_v52  ;;  %v3335_v53 = vcombine.low %v6083_v26, %v6087_v19  ;;  %v3672_v18 = vadd.f32 %v3671_v13, %v3248_v8  ;;  %v2720_v0 = vmul.f32 %v7258_v2, %v7258_v2  ;;  %v7260_v26 = vld [vmem:[#allocation164_spill] sm:$0xff]  ;;  %v7267_v2 = vld [vmem:[#allocation59_spill] sm:$0xff] }
 0x125   : > { %v2721_v55 = vmul.f32 %v7259_v1, %v7259_v1  ;;  %v3299_v49 = vcombine.low %v3291_v4, %v3298_v22  ;;  %v3325_v30 = vrot.slane %v3317_v12, %v6810_v45  ;;  %v3332_v57 = vrot.slane %v3318_v3, %v6810_v45  ;;  %v7263_v4 = vld [vmem:[#allocation165_spill] sm:$0xff]  ;;  %v7265_v13 = vld [vmem:[#allocation56_spill] sm:$0xff] }
 0x126   : > { %v3351_v27 = vcombine.low %v6097_v63, %v6105_v17  ;;  %v3352_v15 = vcombine.low %v6111_v39, %v6119_v44  ;;  %v3673_v52 = vadd.f32 %v3672_v18, %v3265_v23  ;;  %v2722_v19 = vmul.f32 %v7260_v26, %v7260_v26  ;;  %v7262_v39 = vld [vmem:[#allocation57_spill] sm:$0xff]  ;;  %v7264_v23 = vld [vmem:[#allocation166_spill] sm:$0xff] }
 0x127   : > { %v2723_v56 = vmul.f32 %v7261_v5, %v7261_v5  ;;  %v3368_v8 = vcombine.low %v6125_v14, %v6129_v35  ;;  %v3369_v59 = vcombine.low %v6139_v25, %v6143_v60  ;;  %v3316_v16 = vcombine.low %v3308_v32, %v3315_v41  ;;  %v7266_v32 = vld [vmem:[#allocation58_spill] sm:$0xff] }
 0x128   : > { %v3342_v46 = vrot.slane %v3334_v6, %v6810_v45  ;;  %v3349_v63 = vrot.slane %v3335_v53, %v6810_v45  ;;  %v3674_v17 = vadd.f32 %v3673_v52, %v3282_v43  ;;  %v2724_v44 = vmul.f32 %v7262_v39, %v7262_v39 }
 0x129   : > { %v2725_v22 = vmul.f32 %v7263_v4, %v7263_v4  ;;  %v3385_v12 = vcombine.low %v6153_v51, %v6157_v36  ;;  %v3386_v14 = vcombine.low %v6167_v11, %v6171_v62  ;;  %v3333_v35 = vcombine.low %v3325_v30, %v3332_v57 }
 0x12a   : > { %v3359_v25 = vrot.slane %v3351_v27, %v6810_v45  ;;  %v3366_v60 = vrot.slane %v3352_v15, %v6810_v45  ;;  %v3675_v42 = vadd.f32 %v3674_v17, %v3299_v49  ;;  %v2726_v3 = vmul.f32 %v7264_v23, %v7264_v23  ;;  %v7268_v27 = vld [vmem:[#allocation167_spill] sm:$0xff] }
 0x12b   : > { %v2727_v54 = vmul.f32 %v7265_v13, %v7265_v13  ;;  %v3376_v48 = vrot.slane %v3368_v8, %v6810_v45  ;;  %v3383_v43 = vrot.slane %v3369_v59, %v6810_v45  ;;  %v3350_v51 = vcombine.low %v3342_v46, %v3349_v63 }
 0x12c   : > { %v3402_v36 = vcombine.low %v6181_v38, %v6189_v24  ;;  %v3403_v11 = vcombine.low %v2716_v10, %v2717_v50  ;;  %v3676_v62 = vadd.f32 %v3675_v42, %v3316_v16  ;;  %v2728_v41 = vmul.f32 %v7266_v32, %v7266_v32  ;;  %v7269_v38 = vld [vmem:[#allocation168_spill] sm:$0xff] }
 0x12d   : > { %v3393_v6 = vrot.slane %v3385_v12, %v6810_v45  ;;  %v3400_v53 = vrot.slane %v3386_v14, %v6810_v45  ;;  %v3419_v18 = vcombine.low %v2718_v31, %v2719_v29  ;;  %v2729_v1 = vmul.f32 %v7267_v2, %v7267_v2 }
 0x12e   : > { %v3367_v49 = vcombine.low %v3359_v25, %v3366_v60  ;;  %v3420_v30 = vcombine.low %v2720_v0, %v2721_v55  ;;  %v3677_v57 = vadd.f32 %v3676_v62, %v3333_v35  ;;  %v2730_v15 = vmul.f32 %v7268_v27, %v7268_v27  ;;  %v7273_v62 = vld [vmem:[#allocation93_spill] sm:$0xff] }
 0x12f   : > { %v2731_v24 = vmul.f32 %v7269_v38, %v7269_v38  ;;  %v3384_v10 = vcombine.low %v3376_v48, %v3383_v43  ;;  %v3436_v50 = vcombine.low %v2722_v19, %v2723_v56  ;;  %v3410_v52 = vrot.slane %v3402_v36, %v6810_v45 }
 0x130   : > { %v3417_v26 = vrot.slane %v3403_v11, %v6810_v45  ;;  %v3437_v5 = vcombine.low %v2724_v44, %v2725_v22  ;;  %v3678_v31 = vadd.f32 %v3677_v57, %v3350_v51  ;;  %v3401_v29 = vcombine.low %v3393_v6, %v3400_v53  ;;  %v7284_v57 = vld [vmem:[#allocation97_spill] sm:$0xff] }
 0x131   : > { %v3427_v8 = vrot.slane %v3419_v18, %v6810_v45  ;;  %v3434_v0 = vrot.slane %v3420_v30, %v6810_v45  ;;  %v3453_v55 = vcombine.low %v2726_v3, %v2727_v54  ;;  %v3454_v59 = vcombine.low %v2728_v41, %v2729_v1  ;;  %v7280_v1 = vld [vmem:[#allocation144_spill] sm:$0xff] }
 0x132   : > { %v3679_v16 = vadd.f32 %v3678_v31, %v3367_v49  ;;  %v3444_v46 = vrot.slane %v3436_v50, %v6810_v45  ;;  %v3418_v63 = vcombine.low %v3410_v52, %v3417_v26  ;;  %v3451_v17 = vrot.slane %v3437_v5, %v6810_v45  ;;  %v7281_v49 = vld [vmem:[#allocation16_spill] sm:$0xff] }
 0x133   : > { %v3470_v19 = vcombine.low %v2730_v15, %v2731_v24  ;;  %v3435_v39 = vcombine.low %v3427_v8, %v3434_v0  ;;  %v3461_v4 = vrot.slane %v3453_v55, %v6810_v45  ;;  %v3468_v44 = vrot.slane %v3454_v59, %v6810_v45 }
 0x134   : > { %v3680_v56 = vadd.f32 %v3679_v16, %v3384_v10  ;;  %v3452_v12 = vcombine.low %v3444_v46, %v3451_v17  ;;  %v7270_v35 = vcombine.low %v5718_v21, %v5722_v34  ;;  %v7271_v43 = vcombine.low %v5909_v61, %v5920_v9 }
 0x135   : > { %v3478_v14 = vrot.slane %v3470_v19, %v6810_v45  ;;  %v3469_v42 = vcombine.low %v3461_v4, %v3468_v44  ;;  %v7272_v36 = vcombine.low %v5925_v20, %v5928_v37  ;;  %v2596_v32 = vrot.slane %v7273_v62, 4  ;;  %v7277_v20 = vld [vmem:[#allocation13_spill] sm:$0xff]  ;;  %v7278_v37 = vld [vmem:[#allocation143_spill] sm:$0xff] }
 0x136   : > { %v3681_v22 = vadd.f32 %v3680_v56, %v3401_v29  ;;  %v3485_v25 = vrot.slane %v7270_v35, %v6810_v45  ;;  %v7274_v21 = vcombine.low %v5937_v28, %v5944_v33  ;;  %v7275_v41 = vcombine.low %v5947_v40, %v5952_v58  ;;  %v7283_v58 = vld [vmem:[#allocation96_spill] sm:$0xff] }
 0x137   : > { %v7276_v61 = vcombine.low %v5870_v7, %v5874_v47  ;;  %v2597_v53 = vadd.f32 %v2596_v32, %v7273_v62  ;;  %v7279_v18 = vcombine.low %v7277_v20, %v7278_v37  ;;  %v7282_v28 = vcombine.low %v7280_v1, %v7281_v49 }
 0x138   : > { %v3682_v60 = vadd.f32 %v3681_v22, %v3418_v63  ;;  %v3486_v3 = vcombine.low %v3478_v14, %v3485_v25  ;;  %v7285_v27 = vcombine.low %v7283_v58, %v7284_v57 }
 0x139   : > { %v3613_v9 = vrot.slane %v7276_v61, %v6810_v45  ;;  %v2598_v40 = vrot.slane %v2597_v53, 2 }
 0x13a   : > { %v3683_v23 = vadd.f32 %v3682_v60, %v3435_v39 }
 0x13b   : > { %v3694_v30 = vsel %vm2593_vm0, %v3613_v9, 0.0  ;;  %v2599_v7 = vadd.f32 %v2598_v40, %v2597_v53 }
 0x13c   : > { %v3684_v13 = vadd.f32 %v3683_v23, %v3452_v12 }
 0x13d   : > { %v2600_v24 = vrot.slane %v2599_v7, 1 }
 0x13e   : > { %v3685_v54 = vadd.f32 %v3684_v13, %v3469_v42 }
 0x13f   : > { %v2601_v52 = vadd.f32 %v2600_v24, %v2599_v7 }
 0x140   : > { %v3686_v48 = vadd.f32 %v3685_v54, %v3486_v3 }
 0x142   : > { %v3687_v51 = vadd.f32 %v3686_v48, %v7271_v43 }
 0x144   : > { %v3688_v11 = vadd.f32 %v3687_v51, %v7272_v36 }
 0x146   : > { %v3689_v34 = vadd.f32 %v3688_v11, %v7274_v21 }
 0x148   : > { %v3690_v6 = vadd.f32 %v3689_v34, %v7275_v41 }
 0x14a   : > { %v3691_v2 = vadd.f32 %v3690_v6, %v7279_v18 }
 0x14c   : > { %v3692_v33 = vadd.f32 %v3691_v2, %v7282_v28 }
 0x14e   : > { %v3693_v15 = vadd.f32 %v3692_v33, %v7285_v27 }
 0x150   : > { %v3695_v38 = vadd.f32 %v3694_v30, %v3693_v15 }
 0x152   : > { %v3696_v45 = vrot.slane %v3695_v38, 4 }
 0x154   : > { %v3697_v47 = vadd.f32 %v3696_v45, %v3695_v38 }
 0x156   : > { %v3698_v10 = vrot.slane %v3697_v47, 2 }
 0x158   : > { %v3699_v50 = vadd.f32 %v3698_v10, %v3697_v47 }
 0x15a   : > { %v3700_v26 = vrot.slane %v3699_v50, 1 }
 0x15c   : > { %v3701_v5 = vadd.f32 %v3700_v26, %v3699_v50 }
 0x15e   : > { %v3703_v31 = vsel %vm3702_vm1, %v2601_v52, %v3701_v5 }
 0x15f   : > { %3704 = vst [vmem:[%s114_s15] sm:$0x3] %v3703_v31 }
 0x160 PF: > { %s11_s6 = sadd.s32 1, %s3838_s6  }
 0x161   : > { %p8_p4 = scmp.ge.s32.totalorder %s11_s6, 4  }
 0x163   :  { %10 = sbr.rel (!%p8_p4) target bundleno = 1 (0x1), region = 54 }

// kernel: residual_block_forward.5
= control target key start
LH: loop header
LB: loop body
LE: loop exit
PB: predicated region body
PF: predicated region fallthrough
CT: control target
= control target key end

     0   :  { %s5091_s18 = smov 0   ;;  %s6618_s0 = inlined_call_operand.vmem [shape: bf16[2,18,18,128], index: 0, kind: input, shape index: {}]   ;;  %s6619_s1 = inlined_call_operand.vmem [shape: bf16[2,18,18,128], index: 1, kind: input, shape index: {}]   ;;  %s6620_s2 = inlined_call_operand.vmem [shape: f32[2,128], index: 2, kind: input, shape index: {}]   ;;  %s6621_s3 = inlined_call_operand.vmem [shape: bf16[3,384,128], index: 3, kind: input, shape index: {}]   ;;  %s6622_s4 = inlined_call_operand.vmem [shape: bf16[128,128], index: 4, kind: input, shape index: {}]   ;;  %s6623_s5 = inlined_call_operand.vmem [shape: bf16[2,16,16,128], index: 5, kind: output, shape index: {}]  }
   0x1 LB: > { %s3553_s19 = sadd.s32 4294967295, %s5056_s18   ;;  %p3557_p0 = scmp.ge.s32.totalorder %s5056_s18, 1  ;;  %s5056_s18 = sphi %s5091_s18, %s15_s18  }
   0x2   : > { %p197_p1 = scmp.lt.s32.totalorder %s5056_s18, 3 }
   0x4   : > { %p198_p2 = pnand %p3557_p0, %p197_p1 }
   0x6   : > { %201 = sbr.rel (%p198_p2) target bundleno = 608 (0x260), region = 40 }
   0xd   : > { %v4970_v0 = vld [vmem:[%s6621_s3 + $0x40] sm:$0xff]   ;;  %v4973_v3 = vld [vmem:[%s6621_s3 + $0x48] sm:$0xff]   ;;  %v4976_v6 = vld [vmem:[%s6621_s3 + $0x50] sm:$0xff]   ;;  %p230_p3 = scmp.lt.s32.totalorder %s3553_s19, 1  ;;  %v807_v13 = vlaneseq  ;;  %vm295_vm1 = vsmask.f32 3328 }
   0xe   : > { %v4971_v1 = vld [vmem:[%s6622_s4] sm:$0xff]   ;;  %4142 = vmatprep.subr.bf16.mxu0 %v4970_v0  ;;  %v4974_v4 = vld [vmem:[%s6622_s4 + $0x8] sm:$0xff]   ;;  %v4977_v7 = vld [vmem:[%s6622_s4 + $0x10] sm:$0xff]   ;;  %vm296_vm2 = vsmask.f32 7440  ;;  %vm5058_vm4 = vmmov 1  }
   0xf   : > { %v4972_v2 = vld [vmem:[%s6621_s3] sm:$0xff]   ;;  %4622 = vmatprep.subr.bf16.mxu1 %v4971_v1  ;;  %v4975_v5 = vld [vmem:[%s6621_s3 + $0x8] sm:$0xff]   ;;  %v4978_v8 = vld [vmem:[%s6621_s3 + $0x10] sm:$0xff]   ;;  %s6698_s19 = smov (!%p230_p3, %s3553_s19), 1  ;;  %v5153_v17 = vshrl.u32 %v807_v13, 7  ;;  %vm2706_vm8 = vcmask 1046528  }
  0x10   : > { %4143 = vmatpush3.bf16.msra.mxu0 %v4972_v2  ;;  %4623 = vmatpush3.bf16.msra.mxu1 %v4971_v1  ;;  %v4979_v9 = vld [vmem:[%s6621_s3 + $0x58] sm:$0xff]   ;;  %v4982_v12 = vld [vmem:[%s6621_s3 + $0x60] sm:$0xff]   ;;  %v4985_v16 = vld [vmem:[%s6621_s3 + $0x68] sm:$0xff]   ;;  %s4958_s6 = smul.u32 216, %s6698_s19  ;;  %vm1888_vm7 = vsmask.f32 7424 }
  0x11   : > { %4144 = vmatprep.subr.bf16.mxu0 %v4973_v3  ;;  %4624 = vmatprep.subr.bf16.mxu1 %v4974_v4  ;;  %v4980_v10 = vld [vmem:[%s6622_s4 + $0x18] sm:$0xff]   ;;  %v4983_v14 = vld [vmem:[%s6622_s4 + $0x20] sm:$0xff]   ;;  %v4986_v18 = vld [vmem:[%s6622_s4 + $0x28] sm:$0xff]   ;;  %v809_v21 = vsub.s32 0, %v5153_v17  ;;  %v867_v23 = vsub.s32 1, %v5153_v17  ;;  %vm981_vm0 = vcmp.ge.s32.totalorder %v5153_v17, 1 }
  0x12   : > { %v4981_v11 = vld [vmem:[%s6621_s3 + $0x18] sm:$0xff]   ;;  %v4984_v15 = vld [vmem:[%s6621_s3 + $0x20] sm:$0xff]   ;;  %v4987_v19 = vld [vmem:[%s6621_s3 + $0x28] sm:$0xff]   ;;  %s5172_s15 = scalar_lea.vmem %s6618_s0, %s4958_s6  ;;  %s5181_s22 = scalar_lea.vmem %s6619_s1, %s4958_s6 }
  0x13   : > { %v4988_v20 = vld [vmem:[%s6621_s3 + $0x70] sm:$0xff]   ;;  %v4991_v25 = vld [vmem:[%s6621_s3 + $0x78] sm:$0xff]   ;;  %v806_v28 = vld [vmem:[%s6620_s2] sm:$0x3]  ;;  %s3974_s7 = sshll.u32 %s6698_s19, 7 }
  0x14   : > { %4145 = vmatpush3.bf16.msra.mxu0 %v4975_v5  ;;  %4625 = vmatpush3.bf16.msra.mxu1 %v4974_v4  ;;  %v4989_v22 = vld [vmem:[%s6622_s4 + $0x30] sm:$0xff]   ;;  %v4992_v26 = vld [vmem:[%s6622_s4 + $0x38] sm:$0xff]   ;;  %v5194_v31 = vrot.slane %v806_v28, %v809_v21  ;;  %v5196_v32 = vrot.slane %v806_v28, %v867_v23  ;;  %v3562_v33 = vld [vmem:[%s5181_s22 + $0xc] sm:$0xf]  ;;  %s6542_s9 = scalar_lea.vmem %s6623_s5, %s3974_s7 }
  0x15   : > { %4146 = vmatprep.subr.bf16.mxu0 %v4976_v6  ;;  %4626 = vmatprep.subr.bf16.mxu1 %v4977_v7  ;;  %v4990_v24 = vld [vmem:[%s6621_s3 + $0x30] sm:$0xff]   ;;  %v4993_v36 = vld [vmem:[%s6621_s3 + $0x38] sm:$0xff]   ;;  %v299_v37 = vshrl.u32 %v3562_v33, 16  ;;  %v302_v38 = vshll.u32 %v3562_v33, 16  ;;  %v4994_v44 = vld [vmem:[%s6621_s3 + $0x80] sm:$0xff]  }
  0x16   : > { %v701_v27 = vld [vmem:[%s5172_s15 + $0xc] sm:$0xff]   ;;  %v3564_v35 = vld [vmem:[%s5181_s22 + $0x14] sm:$0x1]  ;;  %v3565_v48 = vld [vmem:[%s5181_s22 + $0x18] sm:$0xf] }
  0x17   : > { %v755_v29 = vunpack.c.l.bf16 %v701_v27  ;;  %v756_v30 = vunpack.c.h.bf16 %v701_v27  ;;  %v3563_v34 = vld [vmem:[%s5181_s22 + $0x10] sm:$0xf]  ;;  %v318_v43 = vshll.u32 %v3564_v35, 16  ;;  %v301_v45 = vrot.slane %v299_v37, 4  ;;  %v5213_v49 = vld [vmem:[%s6621_s3 + $0x140] sm:$0xff]   ;;  %vm5221_vm3 = vmor %vm295_vm1, %vm296_vm2 }
  0x18   : > { %4147 = vmatpush3.bf16.msra.mxu0 %v4978_v8  ;;  %4627 = vmatpush3.bf16.msra.mxu1 %v4977_v7  ;;  %v308_v39 = vshll.u32 %v3563_v34, 16  ;;  %v312_v42 = vshrl.u32 %v3563_v34, 16  ;;  %v304_v46 = vrot.slane %v302_v38, 5  ;;  %v3566_v54 = vld [vmem:[%s5181_s22 + $0x1c] sm:$0xf]  ;;  %v323_v57 = vshrl.u32 %v3565_v48, 16  ;;  %vm5227_vm5 = vmpackc.low %vm5058_vm4, %vm981_vm0 }
  0x19   : > { %4148 = vmatprep.subr.bf16.mxu0 %v4979_v9  ;;  %4628 = vmatprep.subr.bf16.mxu1 %v4980_v10  ;;  %v814_v40 = vmul.f32 %v5194_v31, %v755_v29  ;;  %v815_v41 = vmul.f32 %v5194_v31, %v756_v30  ;;  %v320_v53 = vrot.slane %v318_v43, 5  ;;  %v3567_v55 = vld [vmem:[%s5181_s22 + $0x20] sm:$0x1]  ;;  %v326_v58 = vshll.u32 %v3565_v48, 16  ;;  %v4119_v6 = vld [vmem:[%s5172_s15 + $0x18] sm:$0xff]  }
  0x1a   : > { %v310_v47 = vrot.slane %v308_v39, 5  ;;  %v314_v52 = vrot.slane %v312_v42, 4  ;;  %v305_v56 = vor.u32 %v304_v46, %v301_v45  ;;  %v332_v59 = vshll.u32 %v3566_v54, 16  ;;  %v3570_v33 = vld [vmem:[%s5181_s22 + $0x2c] sm:$0x1] }
  0x1b   : > { %v872_v50 = vadd.f32 %v5196_v32, %v814_v40  ;;  %v873_v51 = vadd.f32 %v5196_v32, %v815_v41  ;;  %v336_v0 = vshrl.u32 %v3566_v54, 16  ;;  %v325_v3 = vrot.slane %v323_v57, 4  ;;  %v3571_v35 = vld [vmem:[%s5181_s22 + $0x30] sm:$0xf]  ;;  %v3572_v40 = vld [vmem:[%s5181_s22 + $0x34] sm:$0xf] }
  0x1c   : > { %4149 = vmatpush3.bf16.msra.mxu0 %v4981_v11  ;;  %4629 = vmatpush3.bf16.msra.mxu1 %v4980_v10  ;;  %v315_v63 = vor.u32 %v314_v52, %v310_v47  ;;  %v306_v2 = vrot.slane %v305_v56, 4  ;;  %v328_v4 = vrot.slane %v326_v58, 5  ;;  %v334_v5 = vrot.slane %v332_v59, 5  ;;  %v3568_v11 = vld [vmem:[%s5181_s22 + $0x24] sm:$0xf]  ;;  %v5000_v56 = vld [vmem:[%s6621_s3 + $0x90] sm:$0xff]  }
  0x1d   : > { %4150 = vmatprep.subr.bf16.mxu0 %v4982_v12  ;;  %4630 = vmatprep.subr.bf16.mxu1 %v4983_v14  ;;  %v926_v60 = vmax.f32 %v872_v50, 0.0  ;;  %v927_v61 = vmax.f32 %v873_v51, 0.0  ;;  %v338_v10 = vrot.slane %v336_v0, 4  ;;  %v4010_v21 = vunpack.c.h.bf16 %v4119_v6  ;;  %v4996_v50 = vld [vmem:[%s6621_s3 + $0x148] sm:$0xff]   ;;  %v3573_v54 = vld [vmem:[%s5181_s22 + $0x38] sm:$0x1] }
  0x1e   : > { %v316_v9 = vrot.slane %v315_v63, 4  ;;  %v311_v13 = vsel %vm5221_vm3, %v306_v2, %v310_v47  ;;  %v347_v27 = vshrl.u32 %v3568_v11, 16  ;;  %v350_v34 = vshll.u32 %v3568_v11, 16  ;;  %v3574_v63 = vld [vmem:[%s5181_s22 + $0x3c] sm:$0xf] }
  0x1f   : > { %v1014_v7 = vsel %vm981_vm0, %v926_v60, 0.0  ;;  %v5234_v8 = vpack.c.bf16 %v927_v61, %v926_v60  ;;  %v818_v30 = vmul.f32 %v4010_v21, %v5194_v31  ;;  %v366_v48 = vshll.u32 %v3570_v33, 16  ;;  %v5003_v33 = vld [vmem:[%s6621_s3 + $0x98] sm:$0xff]  }
  0x20   : > { %4151 = vmatpush3.bf16.msra.mxu0 %v4984_v15  ;;  %4631 = vmatpush3.bf16.msra.mxu1 %v4983_v14  ;;  %v5238_v12 = vpack.c.bf16 %v927_v61, %v1014_v7  ;;  %v329_v14 = vor.u32 %v328_v4, %v325_v3  ;;  %v342_v15 = vshll.u32 %v3567_v55, 16  ;;  %v349_v37 = vrot.slane %v347_v27, 4  ;;  %v707_v61 = vld [vmem:[%s5172_s15 + $0x24] sm:$0xff]   ;;  %v4999_v27 = vld [vmem:[%s6621_s3 + $0x158] sm:$0xff]  }
  0x21   : > { %4152 = vmatprep.subr.bf16.mxu0 %v4985_v16  ;;  %4632 = vmatprep.subr.bf16.mxu1 %v4986_v18  ;;  %v4997_v16 = vld [vmem:[%s6621_s3 + $0x88] sm:$0xff]   ;;  %v876_v43 = vadd.f32 %v5196_v32, %v818_v30  ;;  %v371_v55 = vshrl.u32 %v3571_v35, 16  ;;  %v368_v58 = vrot.slane %v366_v48, 5  ;;  %v374_v59 = vshll.u32 %v3571_v35, 16 }
  0x22   : > { %3636 = vmatprep.mubr.msk.bf16.mxu0 %vm5227_vm5, %v5234_v8  ;;  %v380_v60 = vshll.u32 %v3572_v40, 16  ;;  %v384_v11 = vshrl.u32 %v3572_v40, 16  ;;  %v398_v30 = vshll.u32 %v3574_v63, 16 }
  0x23   : > { %v930_v52 = vmax.f32 %v876_v43, 0.0  ;;  %v373_v4 = vrot.slane %v371_v55, 4  ;;  %v376_v7 = vrot.slane %v374_v59, 5  ;;  %v3578_v43 = vld [vmem:[%s5181_s22 + $0x4c] sm:$0xf]  ;;  %v5001_v59 = vld [vmem:[%s6621_s3 + $0x160] sm:$0xff]  }
  0x24   : > { %4153 = vmatpush3.bf16.msra.mxu0 %v4987_v19  ;;  %4633 = vmatpush3.bf16.msra.mxu1 %v4986_v18  ;;  %v321_v18 = vsel %vm5221_vm3, %v316_v9, %v320_v53  ;;  %v339_v19 = vor.u32 %v338_v10, %v334_v5  ;;  %v382_v9 = vrot.slane %v380_v60, 5  ;;  %v4998_v10 = vld [vmem:[%s6621_s3 + $0x150] sm:$0xff]  }
  0x25   : > { %4154 = vmatprep.subr.bf16.mxu0 %v4988_v20  ;;  %4634 = vmatprep.subr.bf16.mxu1 %v4989_v22  ;;  %v4009_v20 = vunpack.c.l.bf16 %v4119_v6  ;;  %v3772_v23 = vcombine.low %v311_v13, %v321_v18  ;;  %v390_v13 = vshll.u32 %v3573_v54, 16  ;;  %v762_v18 = vunpack.c.h.bf16 %v707_v61 }
  0x26   : > { %v340_v28 = vrot.slane %v339_v19, 4  ;;  %v3575_v19 = vld [vmem:[%s5181_s22 + $0x40] sm:$0xf] }
  0x27   : > { %v817_v29 = vmul.f32 %v4009_v20, %v5194_v31  ;;  %4638 = vmatprep.mubr.bf16.mxu1 %v3772_v23  ;;  %v395_v20 = vshrl.u32 %v3574_v63, 16  ;;  %v392_v23 = vrot.slane %v390_v13, 5  ;;  %v3580_v13 = vld [vmem:[%s5181_s22 + $0x54] sm:$0xf] }
  0x28   : > { %4155 = vmatpush3.bf16.msra.mxu0 %v4990_v24  ;;  %4635 = vmatpush3.bf16.msra.mxu1 %v4989_v22  ;;  %v3569_v22 = vld [vmem:[%s5181_s22 + $0x28] sm:$0xf]  ;;  %v6624_v24 = vmov 0.0|0.0  }
  0x29   : > { %4156 = vmatprep.subr.bf16.mxu0 %v4991_v25  ;;  %4636 = vmatprep.subr.bf16.mxu1 %v4992_v26  ;;  %v330_v25 = vrot.slane %v329_v14, 4  ;;  %v356_v38 = vshll.u32 %v3569_v22, 16  ;;  %v360_v39 = vshrl.u32 %v3569_v22, 16  ;;  %v875_v42 = vadd.f32 %v5196_v32, %v817_v29 }
  0x2a   : > { %v761_v14 = vunpack.c.l.bf16 %v707_v61  ;;  %v386_v22 = vrot.slane %v384_v11, 4  ;;  %v397_v29 = vrot.slane %v395_v20, 4  ;;  %v3581_v20 = vld [vmem:[%s5181_s22 + $0x58] sm:$0xf] }
  0x2b   : > { %v358_v46 = vrot.slane %v356_v38, 5  ;;  %v362_v47 = vrot.slane %v360_v39, 4  ;;  %v929_v51 = vmax.f32 %v875_v42, 0.0  ;;  %v3577_v38 = vld [vmem:[%s5181_s22 + $0x48] sm:$0xf] }
  0x2c   : > { %4157 = vmatpush3.bf16.msra.mxu0 %v4993_v36  ;;  %4637 = vmatpush3.bf16.msra.mxu1 %v4992_v26  ;;  %v344_v26 = vrot.slane %v342_v15, 5  ;;  %v335_v36 = vsel %vm5221_vm3, %v330_v25, %v334_v5  ;;  %v820_v25 = vmul.f32 %v5194_v31, %v761_v14  ;;  %v5002_v14 = vld [vmem:[%s6621_s3 + $0x168] sm:$0xff]  }
  0x2d   : > { %4574 = vmatprep.subr.bf16.mxu0 %v4994_v44  ;;  %4670 = vmatprep.subr.bf16.mxu1 %v5213_v49  ;;  %v363_v57 = vor.u32 %v362_v47, %v358_v46  ;;  %v1017_v0 = vsel %vm981_vm0, %v929_v51, 0.0  ;;  %v5274_v2 = vpack.c.bf16 %v930_v52, %v929_v51 }
  0x2e   : > { %v345_v41 = vsel %vm5221_vm3, %v340_v28, %v344_v26  ;;  %v5277_v5 = vpack.c.bf16 %v930_v52, %v1017_v0  ;;  %v3576_v26 = vld [vmem:[%s5181_s22 + $0x44] sm:$0x1]  ;;  %v878_v35 = vadd.f32 %v5196_v32, %v820_v25  ;;  %v419_v52 = vshrl.u32 %v3577_v38, 16 }
  0x2f   : > { %1326 = vmatmul.mubr.bf16.vlgmr.msra.gmra.mrb[0].mxu0 %v6624_v24  ;;  %v3773_v45 = vcombine.low %v335_v36, %v345_v41  ;;  %v364_v6 = vrot.slane %v363_v57, 4  ;;  %v404_v36 = vshll.u32 %v3575_v19, 16  ;;  %v400_v41 = vrot.slane %v398_v30, 5 }
  0x30   : > { %4575 = vmatpush3.bf16.msra.mxu0 %v4994_v44  ;;  %v352_v44 = vrot.slane %v350_v34, 5  ;;  %3639 = vmatprep.mubr.msk.bf16.mxu0 %vm5227_vm5, %v5274_v2  ;;  %v387_v34 = vor.u32 %v386_v22, %v382_v9  ;;  %v414_v42 = vshll.u32 %v3576_v26, 16  ;;  %v422_v57 = vshll.u32 %v3577_v38, 16  ;;  %v3582_v26 = vld [vmem:[%s5181_s22 + $0x5c] sm:$0x1] }
  0x31   : > { %4576 = vmatprep.subr.bf16.mxu0 %v4997_v16  ;;  %4639 = vmatmul.mubr.bf16.vlgmr.msra.gmra.mrb[0].mxu1 %v3773_v45  ;;  %v369_v15 = vsel %vm5221_vm3, %v364_v6, %v368_v58  ;;  %v932_v45 = vmax.f32 %v878_v35, 0.0  ;;  %v4120_v58 = vld [vmem:[%s5172_s15 + $0x30] sm:$0xff]   ;;  %v446_v30 = vshll.u32 %v3580_v13, 16  ;;  %v452_v35 = vshll.u32 %v3581_v20, 16 }
  0x32   : > { %v353_v53 = vor.u32 %v352_v44, %v349_v37  ;;  %4671 = vmatpush3.bf16.msra.mxu1 %v5213_v49  ;;  %v408_v37 = vshrl.u32 %v3575_v19, 16  ;;  %v388_v44 = vrot.slane %v387_v34, 4  ;;  %v416_v51 = vrot.slane %v414_v42, 5 }
  0x33   : > { %4672 = vmatprep.subr.bf16.mxu1 %v4996_v50  ;;  %v1020_v54 = vsel %vm981_vm0, %v932_v45, 0.0  ;;  %v424_v6 = vrot.slane %v422_v57, 5  ;;  %v4013_v11 = vunpack.c.l.bf16 %v4120_v58  ;;  %v4014_v19 = vunpack.c.h.bf16 %v4120_v58 }
  0x34   : > { %4577 = vmatpush3.bf16.msra.mxu0 %v4997_v16  ;;  %v354_v3 = vrot.slane %v353_v53, 4  ;;  %v377_v16 = vor.u32 %v376_v7, %v373_v4  ;;  %v410_v47 = vrot.slane %v408_v37, 4  ;;  %v393_v53 = vsel %vm5221_vm3, %v388_v44, %v392_v23  ;;  %v5004_v37 = vld [vmem:[%s6621_s3 + $0x170] sm:$0xff]  }
  0x35   : > { %4578 = vmatprep.subr.bf16.mxu0 %v5000_v56  ;;  %v421_v4 = vrot.slane %v419_v52, 4  ;;  %v428_v7 = vshll.u32 %v3578_v43, 16  ;;  %v823_v25 = vmul.f32 %v4013_v11, %v5194_v31  ;;  %v454_v44 = vrot.slane %v452_v35, 5 }
  0x36   : > { %v359_v49 = vsel %vm5221_vm3, %v354_v3, %v358_v46  ;;  %4673 = vmatpush3.bf16.msra.mxu1 %v4996_v50  ;;  %v378_v28 = vrot.slane %v377_v16, 4  ;;  %v406_v46 = vrot.slane %v404_v36, 5  ;;  %v401_v50 = vor.u32 %v400_v41, %v397_v29 }
  0x37   : > { %3642 = vmatmul.mubr.msk.bf16.gmra.mrb[4].mxu0 %vm5227_vm5, %v5234_v8  ;;  %v3774_v21 = vcombine.low %v359_v49, %v369_v15  ;;  %v821_v8 = vmul.f32 %v5194_v31, %v762_v18  ;;  %4674 = vmatprep.subr.bf16.mxu1 %v4998_v10  ;;  %v425_v16 = vor.u32 %v424_v6, %v421_v4  ;;  %v430_v18 = vrot.slane %v428_v7, 5  ;;  %v5005_v4 = vld [vmem:[%s6621_s3 + $0x178] sm:$0xff]  }
  0x38   : > { %4579 = vmatpush3.bf16.msra.mxu0 %v5000_v56  ;;  %v383_v39 = vsel %vm5221_vm3, %v378_v28, %v382_v9  ;;  %v411_v55 = vor.u32 %v410_v47, %v406_v46  ;;  %v3579_v56 = vld [vmem:[%s5181_s22 + $0x50] sm:$0x1]  ;;  %v402_v0 = vrot.slane %v401_v50, 4  ;;  %v443_v29 = vshrl.u32 %v3580_v13, 16 }
  0x39   : > { %4642 = vmatprep.mubr.bf16.mxu1 %v3774_v21  ;;  %v879_v40 = vadd.f32 %v5196_v32, %v821_v8  ;;  %4580 = vmatprep.subr.bf16.mxu0 %v5003_v33  ;;  %v3775_v60 = vcombine.low %v383_v39, %v393_v53  ;;  %v438_v49 = vshll.u32 %v3579_v56, 16  ;;  %v426_v28 = vrot.slane %v425_v16, 4  ;;  %v3585_v56 = vld [vmem:[%s5181_s22 + $0x68] sm:$0x1] }
  0x3a   : > { %4675 = vmatpush3.bf16.msra.mxu1 %v4998_v10  ;;  %v412_v3 = vrot.slane %v411_v55, 4  ;;  %v407_v9 = vsel %vm5221_vm3, %v402_v0, %v406_v46  ;;  %v432_v10 = vshrl.u32 %v3578_v43, 16  ;;  %v824_v8 = vmul.f32 %v4014_v19, %v5194_v31  ;;  %v3584_v55 = vld [vmem:[%s5181_s22 + $0x64] sm:$0xf] }
  0x3b   : > { %v933_v48 = vmax.f32 %v879_v40, 0.0  ;;  %4676 = vmatprep.subr.bf16.mxu1 %v4999_v27  ;;  %4643 = vmatmul.mubr.bf16.gmra.mrb[4].mxu1 %v3775_v60  ;;  %v440_v23 = vrot.slane %v438_v49, 5  ;;  %v881_v34 = vadd.f32 %v5196_v32, %v823_v25  ;;  %v456_v36 = vshrl.u32 %v3581_v20, 16 }
  0x3c   : > { %4581 = vmatpush3.bf16.msra.mxu0 %v5003_v33  ;;  %v417_v15 = vsel %vm5221_vm3, %v412_v3, %v416_v51  ;;  %v434_v22 = vrot.slane %v432_v10, 4  ;;  %v431_v38 = vsel %vm5221_vm3, %v426_v28, %v430_v18  ;;  %v882_v39 = vadd.f32 %v5196_v32, %v824_v8  ;;  %v5006_v51 = vld [vmem:[%s6621_s3 + $0xa0] sm:$0xff]  }
  0x3d   : > { %v5317_v61 = vpack.c.bf16 %v933_v48, %v1020_v54  ;;  %v5319_v63 = vpack.c.bf16 %v933_v48, %v932_v45  ;;  %v3776_v21 = vcombine.low %v407_v9, %v417_v15  ;;  %v445_v40 = vrot.slane %v443_v29, 4  ;;  %v713_v3 = vld [vmem:[%s5172_s15 + $0x3c] sm:$0xff]   ;;  %4582 = vmatprep.subr.bf16.mxu0 %v5006_v51  ;;  %v3586_v15 = vld [vmem:[%s5181_s22 + $0x6c] sm:$0xf] }
  0x3e   : > { %4677 = vmatpush3.bf16.msra.mxu1 %v4999_v27  ;;  %v3583_v27 = vld [vmem:[%s5181_s22 + $0x60] sm:$0xf]  ;;  %v435_v33 = vor.u32 %v434_v22, %v430_v18  ;;  %v448_v41 = vrot.slane %v446_v30, 5  ;;  %v935_v43 = vmax.f32 %v881_v34, 0.0  ;;  %v458_v45 = vrot.slane %v456_v36, 4 }
  0x3f   : > { %3645 = vmatprep.mubr.msk.bf16.mxu0 %vm5227_vm5, %v5319_v63  ;;  %4678 = vmatprep.subr.bf16.mxu1 %v5001_v59  ;;  %v936_v46 = vmax.f32 %v882_v39, 0.0  ;;  %v462_v48 = vshll.u32 %v3582_v26, 16  ;;  %v467_v50 = vshrl.u32 %v3583_v27, 16  ;;  %v470_v57 = vshll.u32 %v3583_v27, 16  ;;  %v3588_v27 = vld [vmem:[%s5181_s22 + $0x74] sm:$0x1] }
  0x40   : > { %3648 = vmatmul.mubr.msk.bf16.gmra.mrb[8].mxu0 %vm5227_vm5, %v5274_v2  ;;  %4646 = vmatprep.mubr.bf16.mxu1 %v3776_v21  ;;  %v436_v42 = vrot.slane %v435_v33, 4  ;;  %v449_v47 = vor.u32 %v448_v41, %v445_v40  ;;  %v1023_v53 = vsel %vm981_vm0, %v935_v43, 0.0  ;;  %v459_v54 = vor.u32 %v458_v45, %v454_v44  ;;  %v3587_v21 = vld [vmem:[%s5181_s22 + $0x70] sm:$0xf]  ;;  %v5007_v28 = vld [vmem:[%s6621_s3 + $0x1c0] sm:$0xff]  }
  0x41   : > { %v5358_v60 = vpack.c.bf16 %v936_v46, %v935_v43  ;;  %v464_v7 = vrot.slane %v462_v48, 5  ;;  %v469_v9 = vrot.slane %v467_v50, 4  ;;  %v472_v10 = vrot.slane %v470_v57, 5  ;;  %4583 = vmatpush3.bf16.msra.mxu0 %v5006_v51  ;;  %v3589_v34 = vld [vmem:[%s5181_s22 + $0x78] sm:$0xf] }
  0x42   : > { %4679 = vmatpush3.bf16.msra.mxu1 %v5001_v59  ;;  %v441_v52 = vsel %vm5221_vm3, %v436_v42, %v440_v23  ;;  %v5356_v59 = vpack.c.bf16 %v936_v46, %v1023_v53  ;;  %v450_v0 = vrot.slane %v449_v47, 4  ;;  %v460_v6 = vrot.slane %v459_v54, 4  ;;  %v3590_v47 = vld [vmem:[%s5181_s22 + $0x7c] sm:$0xf] }
  0x43   : > { %4680 = vmatprep.subr.bf16.mxu1 %v5002_v14  ;;  %v3777_v58 = vcombine.low %v431_v38, %v441_v52  ;;  %3651 = vmatprep.mubr.msk.bf16.mxu0 %vm5227_vm5, %v5358_v60  ;;  %v476_v11 = vshll.u32 %v3584_v55, 16  ;;  %v480_v13 = vshrl.u32 %v3584_v55, 16  ;;  %v473_v18 = vor.u32 %v472_v10, %v469_v9  ;;  %v3591_v52 = vld [vmem:[%s5181_s22 + $0x80] sm:$0x1] }
  0x44   : > { %v455_v49 = vsel %vm5221_vm3, %v450_v0, %v454_v44  ;;  %v465_v16 = vsel %vm5221_vm3, %v460_v6, %v464_v7  ;;  %v767_v19 = vunpack.c.l.bf16 %v713_v3  ;;  %v768_v20 = vunpack.c.h.bf16 %v713_v3  ;;  %v4121_v6 = vld [vmem:[%s5172_s15 + $0x48] sm:$0xff]  }
  0x45   : > { %4647 = vmatmul.mubr.bf16.gmra.mrb[8].mxu1 %v3777_v58  ;;  %v3778_v22 = vcombine.low %v455_v49, %v465_v16  ;;  %v478_v23 = vrot.slane %v476_v11, 5  ;;  %v482_v25 = vrot.slane %v480_v13, 4  ;;  %v474_v8 = vrot.slane %v473_v18, 4  ;;  %v5011_v49 = vld [vmem:[%s6621_s3 + $0xa8] sm:$0xff]   ;;  %v3592_v16 = vld [vmem:[%s5181_s22 + $0x84] sm:$0xf] }
  0x46   : > { %4681 = vmatpush3.bf16.msra.mxu1 %v5002_v14  ;;  %v486_v14 = vshll.u32 %v3585_v56, 16  ;;  %v826_v29 = vmul.f32 %v5194_v31, %v767_v19  ;;  %v827_v30 = vmul.f32 %v5194_v31, %v768_v20  ;;  %v491_v33 = vshrl.u32 %v3586_v15, 16  ;;  %4584 = vmatprep.subr.bf16.mxu0 %v5011_v49 }
  0x47   : > { %4682 = vmatprep.subr.bf16.mxu1 %v5004_v37  ;;  %4650 = vmatprep.mubr.bf16.mxu1 %v3778_v22  ;;  %v483_v35 = vor.u32 %v482_v25, %v478_v23  ;;  %v494_v36 = vshll.u32 %v3586_v15, 16  ;;  %v504_v38 = vshrl.u32 %v3587_v21, 16  ;;  %v479_v39 = vsel %vm5221_vm3, %v474_v8, %v478_v23  ;;  %v3593_v22 = vld [vmem:[%s5181_s22 + $0x88] sm:$0xf] }
  0x48   : > { %3654 = vmatmul.mubr.msk.bf16.gmra.mrb[12].mxu0 %vm5227_vm5, %v5319_v63  ;;  %v488_v26 = vrot.slane %v486_v14, 5  ;;  %v884_v40 = vadd.f32 %v5196_v32, %v826_v29  ;;  %v5387_v41 = vadd.f32 %v5196_v32, %v827_v30  ;;  %v493_v42 = vrot.slane %v491_v33, 4 }
  0x49   : > { %v484_v43 = vrot.slane %v483_v35, 4  ;;  %v496_v44 = vrot.slane %v494_v36, 5  ;;  %v506_v46 = vrot.slane %v504_v38, 4  ;;  %v510_v51 = vshll.u32 %v3588_v27, 16  ;;  %4585 = vmatpush3.bf16.msra.mxu0 %v5011_v49  ;;  %v3595_v38 = vld [vmem:[%s5181_s22 + $0x90] sm:$0xf] }
  0x4a   : > { %4683 = vmatpush3.bf16.msra.mxu1 %v5004_v37  ;;  %v500_v37 = vshll.u32 %v3587_v21, 16  ;;  %v938_v48 = vmax.f32 %v884_v40, 0.0  ;;  %v939_v50 = vmax.f32 %v5387_v41, 0.0  ;;  %v515_v53 = vshrl.u32 %v3589_v34, 16 }
  0x4b   : > { %4684 = vmatprep.subr.bf16.mxu1 %v5005_v4  ;;  %v489_v54 = vsel %vm5221_vm3, %v484_v43, %v488_v26  ;;  %v497_v55 = vor.u32 %v496_v44, %v493_v42  ;;  %v518_v57 = vshll.u32 %v3589_v34, 16  ;;  %v524_v13 = vshll.u32 %v3590_v47, 16 }
  0x4c   : > { %v502_v45 = vrot.slane %v500_v37, 5  ;;  %v3779_v58 = vcombine.low %v479_v39, %v489_v54  ;;  %v1026_v0 = vsel %vm981_vm0, %v938_v48, 0.0  ;;  %v5398_v3 = vpack.c.bf16 %v939_v50, %v938_v48 }
  0x4d   : > { %v498_v7 = vrot.slane %v497_v55, 4  ;;  %v517_v10 = vrot.slane %v515_v53, 4  ;;  %v520_v11 = vrot.slane %v518_v57, 5  ;;  %v528_v14 = vshrl.u32 %v3590_v47, 16 }
  0x4e   : > { %4685 = vmatpush3.bf16.msra.mxu1 %v5005_v4  ;;  %v507_v56 = vor.u32 %v506_v46, %v502_v45  ;;  %v512_v4 = vrot.slane %v510_v51, 5  ;;  %3657 = vmatprep.mubr.msk.bf16.mxu0 %vm5227_vm5, %v5398_v3  ;;  %v534_v15 = vshll.u32 %v3591_v52, 16  ;;  %v4017_v20 = vunpack.c.l.bf16 %v4121_v6 }
  0x4f   : > { %4438 = vmatprep.subr.bf16.mxu1 %v5007_v28  ;;  %4651 = vmatmul.mubr.bf16.gmra.mrb[12].mxu1 %v3779_v58  ;;  %v503_v18 = vsel %vm5221_vm3, %v498_v7, %v502_v45  ;;  %v4018_v21 = vunpack.c.h.bf16 %v4121_v6  ;;  %v521_v25 = vor.u32 %v520_v11, %v517_v10  ;;  %v526_v26 = vrot.slane %v524_v13, 5  ;;  %v3594_v28 = vld [vmem:[%s5181_s22 + $0x8c] sm:$0x1]  ;;  %v719_v10 = vld [vmem:[%s5172_s15 + $0x54] sm:$0xff]  }
  0x50   : > { %v508_v9 = vrot.slane %v507_v56, 4  ;;  %3660 = vmatmul.mubr.msk.bf16.gmra.mrb[16].mxu0 %vm5227_vm5, %v5358_v60  ;;  %v530_v27 = vrot.slane %v528_v14, 4  ;;  %v536_v8 = vrot.slane %v534_v15, 5  ;;  %v829_v29 = vmul.f32 %v4017_v20, %v5194_v31  ;;  %v3596_v56 = vld [vmem:[%s5181_s22 + $0x94] sm:$0xf] }
  0x51   : > { %v830_v30 = vmul.f32 %v4018_v21, %v5194_v31  ;;  %v539_v33 = vshrl.u32 %v3592_v16, 16  ;;  %v522_v34 = vrot.slane %v521_v25, 4  ;;  %v542_v36 = vshll.u32 %v3592_v16, 16  ;;  %v3598_v16 = vld [vmem:[%s5181_s22 + $0x9c] sm:$0xf]  ;;  %v5016_v25 = vld [vmem:[%s6621_s3 + $0xb0] sm:$0xff]  }
  0x52   : > { %v513_v19 = vsel %vm5221_vm3, %v508_v9, %v512_v4  ;;  %v531_v35 = vor.u32 %v530_v27, %v526_v26  ;;  %v548_v37 = vshll.u32 %v3593_v22, 16  ;;  %v5421_v39 = vadd.f32 %v5196_v32, %v829_v29  ;;  %v3597_v9 = vld [vmem:[%s5181_s22 + $0x98] sm:$0x1]  ;;  %4586 = vmatprep.subr.bf16.mxu0 %v5016_v25 }
  0x53   : > { %v3780_v23 = vcombine.low %v503_v18, %v513_v19  ;;  %v5424_v40 = vadd.f32 %v5196_v32, %v830_v30  ;;  %v541_v42 = vrot.slane %v539_v33, 4  ;;  %v552_v43 = vshrl.u32 %v3593_v22, 16  ;;  %v3599_v22 = vld [vmem:[%s5181_s22 + $0xa0] sm:$0xf]  ;;  %4587 = vmatpush3.bf16.msra.mxu0 %v5016_v25 }
  0x54   : > { %v527_v44 = vsel %vm5221_vm3, %v522_v34, %v526_v26  ;;  %v532_v45 = vrot.slane %v531_v35, 4  ;;  %v544_v46 = vrot.slane %v542_v36, 5  ;;  %v550_v47 = vrot.slane %v548_v37, 5  ;;  %v3600_v35 = vld [vmem:[%s5181_s22 + $0xa4] sm:$0x1] }
  0x55   : > { %4654 = vmatprep.mubr.bf16.mxu1 %v3780_v23  ;;  %v941_v48 = vmax.f32 %v5421_v39, 0.0  ;;  %v942_v51 = vmax.f32 %v5424_v40, 0.0  ;;  %v554_v52 = vrot.slane %v552_v43, 4  ;;  %v558_v53 = vshll.u32 %v3594_v28, 16 }
  0x56   : > { %v537_v54 = vsel %vm5221_vm3, %v532_v45, %v536_v8  ;;  %v545_v55 = vor.u32 %v544_v46, %v541_v42  ;;  %v563_v57 = vshrl.u32 %v3595_v38, 16  ;;  %v566_v58 = vshll.u32 %v3595_v38, 16 }
  0x57   : > { %v3781_v4 = vcombine.low %v527_v44, %v537_v54  ;;  %v5437_v6 = vpack.c.bf16 %v942_v51, %v941_v48  ;;  %v555_v7 = vor.u32 %v554_v52, %v550_v47  ;;  %v5442_v49 = vadd.s32 16, %v5153_v17 }
  0x58   : > { %v5446_v11 = vpack.c.bf16 %v939_v50, %v1026_v0  ;;  %v546_v13 = vrot.slane %v545_v55, 4  ;;  %v560_v14 = vrot.slane %v558_v53, 5  ;;  %v565_v15 = vrot.slane %v563_v57, 4 }
  0x59   : > { %4655 = vmatmul.mubr.bf16.gmra.mrb[16].mxu1 %v3781_v4  ;;  %3663 = vmatprep.mubr.msk.bf16.mxu0 %vm5227_vm5, %v5437_v6  ;;  %v556_v18 = vrot.slane %v555_v7, 4  ;;  %v568_v19 = vrot.slane %v566_v58, 5  ;;  %v572_v20 = vshll.u32 %v3596_v56, 16  ;;  %v576_v21 = vshrl.u32 %v3596_v56, 16  ;;  %v3602_v7 = vld [vmem:[%s5181_s22 + $0xac] sm:$0xf] }
  0x5a   : > { %v551_v41 = vsel %vm5221_vm3, %v546_v13, %v550_v47  ;;  %3666 = vmatmul.mubr.msk.bf16.gmra.mrb[20].mxu0 %vm5227_vm5, %v5398_v3  ;;  %v582_v50 = vshll.u32 %v3597_v9, 16  ;;  %v773_v0 = vunpack.c.l.bf16 %v719_v10  ;;  %v774_v23 = vunpack.c.h.bf16 %v719_v10  ;;  %v3601_v47 = vld [vmem:[%s5181_s22 + $0xa8] sm:$0xf] }
  0x5b   : > { %v561_v26 = vsel %vm5221_vm3, %v556_v18, %v560_v14  ;;  %v569_v27 = vor.u32 %v568_v19, %v565_v15  ;;  %v574_v28 = vrot.slane %v572_v20, 5  ;;  %v578_v8 = vrot.slane %v576_v21, 4  ;;  %v3603_v20 = vld [vmem:[%s5181_s22 + $0xb0] sm:$0x1]  ;;  %v4122_v21 = vld [vmem:[%s5172_s15 + $0x60] sm:$0xff]  }
  0x5c   : > { %v3782_v29 = vcombine.low %v551_v41, %v561_v26  ;;  %v584_v30 = vrot.slane %v582_v50, 5  ;;  %v832_v33 = vmul.f32 %v5194_v31, %v773_v0  ;;  %v833_v34 = vmul.f32 %v5194_v31, %v774_v23  ;;  %v3604_v23 = vld [vmem:[%s5181_s22 + $0xb4] sm:$0xf] }
  0x5d   : > { %v570_v36 = vrot.slane %v569_v27, 4  ;;  %v579_v37 = vor.u32 %v578_v8, %v574_v28  ;;  %v587_v38 = vshrl.u32 %v3598_v16, 16  ;;  %v590_v42 = vshll.u32 %v3598_v16, 16 }
  0x5e   : > { %4658 = vmatprep.mubr.bf16.mxu1 %v3782_v29  ;;  %v890_v43 = vadd.f32 %v5196_v32, %v832_v33  ;;  %v5468_v44 = vadd.f32 %v5196_v32, %v833_v34  ;;  %v596_v45 = vshll.u32 %v3599_v22, 16  ;;  %v600_v46 = vshrl.u32 %v3599_v22, 16 }
  0x5f   : > { %v575_v52 = vsel %vm5221_vm3, %v570_v36, %v574_v28  ;;  %v580_v53 = vrot.slane %v579_v37, 4  ;;  %v589_v54 = vrot.slane %v587_v38, 4  ;;  %v592_v55 = vrot.slane %v590_v42, 5  ;;  %v3605_v37 = vld [vmem:[%s5181_s22 + $0xb8] sm:$0xf] }
  0x60   : > { %v944_v56 = vmax.f32 %v890_v43, 0.0  ;;  %v945_v57 = vmax.f32 %v5468_v44, 0.0  ;;  %v598_v58 = vrot.slane %v596_v45, 5  ;;  %v602_v4 = vrot.slane %v600_v46, 4 }
  0x61   : > { %v585_v9 = vsel %vm5221_vm3, %v580_v53, %v584_v30  ;;  %v593_v10 = vor.u32 %v592_v55, %v589_v54  ;;  %v606_v13 = vshll.u32 %v3600_v35, 16  ;;  %v611_v14 = vshrl.u32 %v3601_v47, 16  ;;  %v5021_v30 = vld [vmem:[%s6621_s3 + $0xb8] sm:$0xff]  }
  0x62   : > { %v1029_v15 = vsel %vm981_vm0, %v941_v48, 0.0  ;;  %v3783_v16 = vcombine.low %v575_v52, %v585_v9  ;;  %v5483_v18 = vpack.c.bf16 %v945_v57, %v944_v56  ;;  %v603_v19 = vor.u32 %v602_v4, %v598_v58  ;;  %4588 = vmatprep.subr.bf16.mxu0 %v5021_v30  ;;  %v3606_v52 = vld [vmem:[%s5181_s22 + $0xbc] sm:$0x1] }
  0x63   : > { %v1032_v22 = vsel %vm981_vm0, %v944_v56, 0.0  ;;  %v594_v41 = vrot.slane %v593_v10, 4  ;;  %v608_v50 = vrot.slane %v606_v13, 5  ;;  %v613_v0 = vrot.slane %v611_v14, 4  ;;  %4589 = vmatpush3.bf16.msra.mxu0 %v5021_v30 }
  0x64   : > { %4659 = vmatmul.mubr.bf16.gmra.mrb[20].mxu1 %v3783_v16  ;;  %3669 = vmatprep.mubr.msk.bf16.mxu0 %vm5227_vm5, %v5483_v18  ;;  %v604_v39 = vrot.slane %v603_v19, 4  ;;  %v614_v48 = vshll.u32 %v3601_v47, 16  ;;  %v620_v25 = vshll.u32 %v3602_v7, 16  ;;  %v624_v26 = vshrl.u32 %v3602_v7, 16  ;;  %v3607_v7 = vld [vmem:[%s5181_s22 + $0xc0] sm:$0xf] }
  0x65   : > { %v599_v27 = vsel %vm5221_vm3, %v594_v41, %v598_v58  ;;  %3672 = vmatmul.mubr.msk.bf16.gmra.mrb[24].mxu0 %vm5227_vm5, %v5437_v6  ;;  %v630_v28 = vshll.u32 %v3603_v20, 16  ;;  %v4021_v8 = vunpack.c.l.bf16 %v4122_v21  ;;  %v4022_v29 = vunpack.c.h.bf16 %v4122_v21  ;;  %v3608_v16 = vld [vmem:[%s5181_s22 + $0xc4] sm:$0xf] }
  0x66   : > { %v609_v33 = vsel %vm5221_vm3, %v604_v39, %v608_v50  ;;  %v616_v34 = vrot.slane %v614_v48, 5  ;;  %v622_v35 = vrot.slane %v620_v25, 5  ;;  %v626_v36 = vrot.slane %v624_v26, 4  ;;  %v725_v48 = vld [vmem:[%s5172_s15 + $0x6c] sm:$0xff]  }
  0x67   : > { %v3784_v38 = vcombine.low %v599_v27, %v609_v33  ;;  %v632_v42 = vrot.slane %v630_v28, 5  ;;  %v835_v43 = vmul.f32 %v4021_v8, %v5194_v31  ;;  %v836_v45 = vmul.f32 %v4022_v29, %v5194_v31  ;;  %v3609_v8 = vld [vmem:[%s5181_s22 + $0xc8] sm:$0x1]  ;;  %v5026_v29 = vld [vmem:[%s6621_s3 + $0x100] sm:$0xff]  }
  0x68   : > { %v617_v46 = vor.u32 %v616_v34, %v613_v0  ;;  %v627_v47 = vor.u32 %v626_v36, %v622_v35  ;;  %v635_v53 = vshrl.u32 %v3604_v23, 16  ;;  %v638_v54 = vshll.u32 %v3604_v23, 16  ;;  %4302 = vmatprep.subr.bf16.mxu0 %v5026_v29 }
  0x69   : > { %4662 = vmatprep.mubr.bf16.mxu1 %v3784_v38  ;;  %v893_v55 = vadd.f32 %v5196_v32, %v835_v43  ;;  %v5509_v56 = vadd.f32 %v5196_v32, %v836_v45  ;;  %v644_v58 = vshll.u32 %v3605_v37, 16  ;;  %v648_v4 = vshrl.u32 %v3605_v37, 16 }
  0x6a   : > { %v618_v9 = vrot.slane %v617_v46, 4  ;;  %v628_v10 = vrot.slane %v627_v47, 4  ;;  %v637_v13 = vrot.slane %v635_v53, 4  ;;  %v640_v14 = vrot.slane %v638_v54, 5 }
  0x6b   : > { %v947_v19 = vmax.f32 %v893_v55, 0.0  ;;  %v948_v20 = vmax.f32 %v5509_v56, 0.0  ;;  %v646_v21 = vrot.slane %v644_v58, 5  ;;  %v650_v41 = vrot.slane %v648_v4, 4  ;;  %v715_v56 = vld [vmem:[%s5172_s15 + $0x44] sm:$0x1] }
  0x6c   : > { %v623_v50 = vsel %vm5221_vm3, %v618_v9, %v622_v35  ;;  %v633_v0 = vsel %vm5221_vm3, %v628_v10, %v632_v42  ;;  %v641_v23 = vor.u32 %v640_v14, %v637_v13  ;;  %v654_v39 = vshll.u32 %v3606_v52, 16  ;;  %v709_v42 = vld [vmem:[%s5172_s15 + $0x2c] sm:$0x1] }
  0x6d   : > { %v5521_v25 = vpack.c.bf16 %v942_v51, %v1029_v15  ;;  %v3785_v26 = vcombine.low %v623_v50, %v633_v0  ;;  %v5525_v27 = vpack.c.bf16 %v948_v20, %v947_v19  ;;  %v651_v28 = vor.u32 %v650_v41, %v646_v21  ;;  %v706_v15 = vld [vmem:[%s5172_s15 + $0x20] sm:$0x1] }
  0x6e   : > { %v5533_v30 = vpack.c.bf16 %v945_v57, %v1032_v22  ;;  %v642_v33 = vrot.slane %v641_v23, 4  ;;  %v656_v40 = vrot.slane %v654_v39, 5  ;;  %v659_v51 = vshrl.u32 %v3607_v7, 16 }
  0x6f   : > { %6660 = vst [vmem:[#allocation2_spill] sm:$0xff] %v5525_v27  ;;  %4663 = vmatmul.mubr.bf16.gmra.mrb[24].mxu1 %v3785_v26  ;;  %3675 = vmatprep.mubr.msk.bf16.mxu0 %vm5227_vm5, %v5525_v27  ;;  %v652_v34 = vrot.slane %v651_v28, 4  ;;  %v662_v35 = vshll.u32 %v3607_v7, 16  ;;  %v668_v36 = vshll.u32 %v3608_v16, 16  ;;  %v672_v37 = vshrl.u32 %v3608_v16, 16  ;;  %v4123_v26 = vld [vmem:[%s5172_s15 + $0x78] sm:$0xff]  }
  0x70   : > { %v647_v38 = vsel %vm5221_vm3, %v642_v33, %v646_v21  ;;  %3678 = vmatmul.mubr.msk.bf16.gmra.mrb[28].mxu0 %vm5227_vm5, %v5483_v18  ;;  %v661_v44 = vrot.slane %v659_v51, 4  ;;  %v678_v57 = vshll.u32 %v3609_v8, 16  ;;  %v779_v22 = vunpack.c.l.bf16 %v725_v48 }
  0x71   : > { %vm992_vm6 = vcmp.le.s32.totalorder %v5442_v49, 16  ;;  %v657_v43 = vsel %vm5221_vm3, %v652_v34, %v656_v40  ;;  %v664_v45 = vrot.slane %v662_v35, 5  ;;  %v670_v46 = vrot.slane %v668_v36, 5  ;;  %v712_v40 = vld [vmem:[%s5172_s15 + $0x38] sm:$0x1] }
  0x72   : > { %v674_v47 = vrot.slane %v672_v37, 4  ;;  %v1035_v52 = vsel %vm981_vm0, %v947_v19, 0.0  ;;  %v3786_v53 = vcombine.low %v647_v38, %v657_v43  ;;  %v780_v54 = vunpack.c.h.bf16 %v725_v48 }
  0x73   : > { %v838_v55 = vmul.f32 %v5194_v31, %v779_v22  ;;  %v665_v58 = vor.u32 %v664_v45, %v661_v44  ;;  %v680_v7 = vrot.slane %v678_v57, 5  ;;  %v760_v9 = vunpack.c.l.bf16 %v706_v15 }
  0x74   : > { %v675_v4 = vor.u32 %v674_v47, %v670_v46  ;;  %4666 = vmatprep.mubr.bf16.mxu1 %v3786_v53  ;;  %v839_v10 = vmul.f32 %v5194_v31, %v780_v54  ;;  %v1914_v14 = vshrl.u32 %v5277_v5, 16  ;;  %v1916_v16 = vshll.u32 %v5277_v5, 16 }
  0x75   : > { %v896_v13 = vadd.f32 %v5196_v32, %v838_v55  ;;  %v666_v19 = vrot.slane %v665_v58, 4  ;;  %v819_v41 = vmul.f32 %v5194_v31, %v760_v9  ;;  %v763_v50 = vunpack.c.l.bf16 %v709_v42 }
  0x76   : > { %v676_v21 = vrot.slane %v675_v4, 4  ;;  %v897_v0 = vadd.f32 %v5196_v32, %v839_v10  ;;  %v1918_v39 = vrot.slane %v1916_v16, 1  ;;  %v1926_v48 = vshrl.u32 %v5317_v61, 16 }
  0x77   : > { %v950_v23 = vmax.f32 %v896_v13, 0.0  ;;  %v671_v28 = vsel %vm5221_vm3, %v666_v19, %v670_v46  ;;  %v877_v29 = vadd.f32 %v5196_v32, %v819_v41  ;;  %v822_v33 = vmul.f32 %v5194_v31, %v763_v50  ;;  %v731_v50 = vld [vmem:[%s5172_s15 + $0x84] sm:$0xff]  }
  0x78   : > { %v681_v8 = vsel %vm5221_vm3, %v676_v21, %v680_v7  ;;  %v5568_v51 = vpack.c.bf16 %v948_v20, %v1035_v52  ;;  %v951_v34 = vmax.f32 %v897_v0, 0.0  ;;  %v1928_v37 = vshll.u32 %v5317_v61, 16  ;;  %v718_v0 = vld [vmem:[%s5172_s15 + $0x50] sm:$0x1] }
  0x79   : > { %v3787_v15 = vcombine.low %v671_v28, %v681_v8  ;;  %v1038_v35 = vsel %vm981_vm0, %v950_v23, 0.0  ;;  %v931_v36 = vmax.f32 %v877_v29, 0.0  ;;  %v880_v62 = vadd.f32 %v5196_v32, %v822_v33  ;;  %v5008_v28 = vld [vmem:[%s6621_s3 + $0x180] sm:$0xff]  }
  0x7a   : > { %v4025_v38 = vunpack.c.l.bf16 %v4123_v26  ;;  %v5574_v44 = vpack.c.bf16 %v951_v34, %v950_v23  ;;  %v1919_v57 = vor.u32 %v1918_v39, %v1914_v14  ;;  %v4026_v22 = vunpack.c.h.bf16 %v4123_v26 }
  0x7b   : > { %4667 = vmatmul.mubr.bf16.gmra.mrb[28].mxu1 %v3787_v15  ;;  %v766_v42 = vunpack.c.l.bf16 %v712_v40  ;;  %v1019_v20 = vsel %vm992_vm6, %v931_v36, 0.0  ;;  %v934_v43 = vmax.f32 %v880_v62, 0.0  ;;  %v1930_v45 = vrot.slane %v1928_v37, 1 }
  0x7c   : > { %6661 = vst [vmem:[#allocation3_spill] sm:$0xff] %v5574_v44  ;;  %v841_v46 = vmul.f32 %v4025_v38, %v5194_v31  ;;  %3681 = vmatprep.mubr.msk.bf16.mxu0 %vm5227_vm5, %v5574_v44  ;;  %v5583_v47 = vpack.c.bf16 %v1019_v20, %v1019_v20  ;;  %v842_v52 = vmul.f32 %v4026_v22, %v5194_v31  ;;  %v1938_v54 = vshrl.u32 %v5356_v59, 16 }
  0x7d   : > { %v825_v53 = vmul.f32 %v5194_v31, %v766_v42  ;;  %3684 = vmatmul.mubr.msk.bf16.gmra.mrb[32].mxu0 %vm5227_vm5, %v5525_v27  ;;  %v1022_v55 = vsel %vm992_vm6, %v934_v43, 0.0  ;;  %v1931_v58 = vor.u32 %v1930_v45, %v1926_v48  ;;  %v1940_v7 = vshll.u32 %v5356_v59, 16  ;;  %v721_v45 = vld [vmem:[%s5172_s15 + $0x5c] sm:$0x1] }
  0x7e   : > { %v899_v4 = vadd.f32 %v5196_v32, %v841_v46  ;;  %v1921_v9 = vshll.u32 %v5583_v47, 16  ;;  %v5596_v10 = vpack.c.bf16 %v1022_v55, %v1022_v55  ;;  %v5599_v13 = vadd.f32 %v5196_v32, %v842_v52  ;;  %v5010_v55 = vld [vmem:[%s6621_s3 + $0x188] sm:$0xff]  }
  0x7f   : > { %v883_v14 = vadd.f32 %v5196_v32, %v825_v53  ;;  %v1942_v19 = vrot.slane %v1940_v7, 1  ;;  %v769_v21 = vunpack.c.l.bf16 %v715_v56  ;;  %v1950_v41 = vshrl.u32 %v5446_v11, 16 }
  0x80   : > { %v953_v16 = vmax.f32 %v899_v4, 0.0  ;;  %v1923_v23 = vrot.slane %v1921_v9, 1  ;;  %v1933_v39 = vshll.u32 %v5596_v10, 16  ;;  %v954_v48 = vmax.f32 %v5599_v13, 0.0 }
  0x81   : > { %v937_v26 = vmax.f32 %v883_v14, 0.0  ;;  %v5610_v8 = vpack.c.bf16 %v951_v34, %v1038_v35  ;;  %v828_v33 = vmul.f32 %v5194_v31, %v769_v21  ;;  %v1952_v40 = vshll.u32 %v5446_v11, 16  ;;  %v5009_v34 = vld [vmem:[%s6621_s3 + $0x1c8] sm:$0xff]  }
  0x82   : > { %v1041_v29 = vsel %vm981_vm0, %v953_v16, 0.0  ;;  %v5617_v15 = vsel %vm1888_vm7, %v1919_v57, %v1923_v23  ;;  %v1935_v36 = vrot.slane %v1933_v39, 1  ;;  %v5619_v62 = vpack.c.bf16 %v954_v48, %v953_v16 }
  0x83   : > { %6662 = vst [vmem:[#allocation4_spill] sm:$0xff] %v5617_v15  ;;  %v1943_v37 = vor.u32 %v1942_v19, %v1938_v54  ;;  %4686 = vmatprep.mubr.bf16.mxu1 %v5617_v15  ;;  %v1025_v35 = vsel %vm992_vm6, %v937_v26, 0.0  ;;  %v886_v38 = vadd.f32 %v5196_v32, %v828_v33  ;;  %v1954_v22 = vrot.slane %v1952_v40, 1  ;;  %v4124_v40 = vld [vmem:[%s5172_s15 + $0x90] sm:$0xff]  }
  0x84   : > { %6663 = vst [vmem:[#allocation5_spill] sm:$0xff] %v5619_v62  ;;  %v785_v42 = vunpack.c.l.bf16 %v731_v50  ;;  %v5629_v57 = vsel %vm1888_vm7, %v1931_v58, %v1935_v36  ;;  %3687 = vmatprep.mubr.msk.bf16.mxu0 %vm5227_vm5, %v5619_v62  ;;  %v5634_v56 = vpack.c.bf16 %v1025_v35, %v1025_v35  ;;  %v786_v20 = vunpack.c.h.bf16 %v731_v50  ;;  %v5012_v58 = vld [vmem:[%s6621_s3 + $0x1d0] sm:$0xff]  }
  0x85   : > { %6664 = vst [vmem:[#allocation6_spill] sm:$0xff] %v5629_v57  ;;  %v772_v43 = vunpack.c.l.bf16 %v718_v0  ;;  %4687 = vmatmul.mubr.bf16.vlgmr.msra.gmra.mrb[0].mxu1 %v5629_v57  ;;  %3690 = vmatmul.mubr.msk.bf16.gmra.mrb[36].mxu0 %vm5227_vm5, %v5574_v44  ;;  %v940_v46 = vmax.f32 %v886_v38, 0.0  ;;  %v1955_v52 = vor.u32 %v1954_v22, %v1950_v41  ;;  %v1962_v54 = vshrl.u32 %v5521_v25, 16  ;;  %v5013_v22 = vld [vmem:[%s6621_s3 + $0x190] sm:$0xff]  }
  0x86   : > { %v844_v53 = vmul.f32 %v5194_v31, %v785_v42  ;;  %v1945_v4 = vshll.u32 %v5634_v56, 16  ;;  %4439 = vmatpush3.bf16.msra.mxu1 %v5008_v28  ;;  %v845_v7 = vmul.f32 %v5194_v31, %v786_v20  ;;  %v1964_v13 = vshll.u32 %v5521_v25, 16  ;;  %v743_v57 = vld [vmem:[%s5172_s15 + $0xb4] sm:$0xff]  }
  0x87   : > { %v831_v9 = vmul.f32 %v5194_v31, %v772_v43  ;;  %v1028_v14 = vsel %vm992_vm6, %v940_v46, 0.0  ;;  %4440 = vmatprep.subr.bf16.mxu1 %v5009_v34  ;;  %v775_v19 = vunpack.c.l.bf16 %v721_v45  ;;  %v1974_v21 = vshrl.u32 %v5533_v30, 16  ;;  %v724_v45 = vld [vmem:[%s5172_s15 + $0x68] sm:$0x1] }
  0x88   : > { %v902_v16 = vadd.f32 %v5196_v32, %v844_v53  ;;  %v1947_v41 = vrot.slane %v1945_v4, 1  ;;  %v5657_v50 = vpack.c.bf16 %v1028_v14, %v1028_v14  ;;  %v903_v0 = vadd.f32 %v5196_v32, %v845_v7  ;;  %v727_v14 = vld [vmem:[%s5172_s15 + $0x74] sm:$0x1] }
  0x89   : > { %v889_v23 = vadd.f32 %v5196_v32, %v831_v9  ;;  %v1966_v26 = vrot.slane %v1964_v13, 1  ;;  %v834_v28 = vmul.f32 %v5194_v31, %v775_v19  ;;  %v1976_v33 = vshll.u32 %v5533_v30, 16 }
  0x8a   : > { %v956_v39 = vmax.f32 %v902_v16, 0.0  ;;  %v5665_v36 = vsel %vm1888_vm7, %v1943_v37, %v1947_v41  ;;  %v1957_v34 = vshll.u32 %v5657_v50, 16  ;;  %v957_v35 = vmax.f32 %v903_v0, 0.0  ;;  %4441 = vmatpush3.bf16.msra.mxu1 %v5010_v55  ;;  %v5015_v41 = vld [vmem:[%s6621_s3 + $0x198] sm:$0xff]  }
  0x8b   : > { %6665 = vst [vmem:[#allocation7_spill] sm:$0xff] %v5665_v36  ;;  %v943_v38 = vmax.f32 %v889_v23, 0.0  ;;  %v5671_v42 = vpack.c.bf16 %v954_v48, %v1041_v29  ;;  %4690 = vmatprep.mubr.bf16.mxu1 %v5665_v36  ;;  %v892_v37 = vadd.f32 %v5196_v32, %v834_v28  ;;  %v1978_v43 = vrot.slane %v1976_v33, 1  ;;  %4442 = vmatprep.subr.bf16.mxu1 %v5012_v58  ;;  %v5014_v48 = vld [vmem:[%s6621_s3 + $0x1d8] sm:$0xff]  }
  0x8c   : > { %v1044_v20 = vsel %vm981_vm0, %v956_v39, 0.0  ;;  %v1959_v46 = vrot.slane %v1957_v34, 1  ;;  %v5678_v53 = vpack.c.bf16 %v957_v35, %v956_v39  ;;  %v1967_v4 = vor.u32 %v1966_v26, %v1962_v54  ;;  %v5017_v39 = vld [vmem:[%s6621_s3 + $0x1e0] sm:$0xff]  }
  0x8d   : > { %v1031_v55 = vsel %vm992_vm6, %v943_v38, 0.0  ;;  %v5685_v29 = vpack.c.bf16 %v957_v35, %v1044_v20  ;;  %v946_v9 = vmax.f32 %v892_v37, 0.0  ;;  %v4029_v13 = vunpack.c.l.bf16 %v4124_v40 }
  0x8e   : > { %6666 = vst [vmem:[#allocation8_spill] sm:$0xff] %v5678_v53  ;;  %v5687_v7 = vpack.c.bf16 %v1031_v55, %v1031_v55  ;;  %v5691_v58 = vsel %vm1888_vm7, %v1955_v52, %v1959_v46  ;;  %3693 = vmatprep.mubr.msk.bf16.mxu0 %vm5227_vm5, %v5678_v53  ;;  %v1979_v16 = vor.u32 %v1978_v43, %v1974_v21  ;;  %v4030_v54 = vunpack.c.h.bf16 %v4124_v40  ;;  %v737_v46 = vld [vmem:[%s5172_s15 + $0x9c] sm:$0xff]  }
  0x8f   : > { %6667 = vst [vmem:[#allocation9_spill] sm:$0xff] %v5691_v58  ;;  %v778_v19 = vunpack.c.l.bf16 %v724_v45  ;;  %4443 = vmatpush3.bf16.msra.mxu1 %v5013_v22  ;;  %3696 = vmatmul.mubr.msk.bf16.gmra.mrb[40].mxu0 %vm5227_vm5, %v5619_v62  ;;  %v1034_v52 = vsel %vm992_vm6, %v946_v9, 0.0  ;;  %v847_v21 = vmul.f32 %v4029_v13, %v5194_v31  ;;  %v1988_v23 = vshll.u32 %v5568_v51, 16  ;;  %v5018_v55 = vld [vmem:[%s6621_s3 + $0x1a0] sm:$0xff]  }
  0x90   : > { %4691 = vmatmul.mubr.bf16.gmra.mrb[4].mxu1 %v5691_v58  ;;  %v1969_v0 = vshll.u32 %v5687_v7, 16  ;;  %v5711_v26 = vpack.c.bf16 %v1034_v52, %v1034_v52  ;;  %v848_v28 = vmul.f32 %v4030_v54, %v5194_v31  ;;  %v781_v40 = vunpack.c.l.bf16 %v727_v14  ;;  %4444 = vmatprep.subr.bf16.mxu1 %v5014_v48  ;;  %v5019_v54 = vld [vmem:[%s6621_s3 + $0x1e8] sm:$0xff]  }
  0x91   : > { %v837_v33 = vmul.f32 %v5194_v31, %v778_v19  ;;  %v905_v35 = vadd.f32 %v5196_v32, %v847_v21  ;;  %v1986_v38 = vshrl.u32 %v5568_v51, 16  ;;  %v1990_v22 = vrot.slane %v1988_v23, 1 }
  0x92   : > { %v1971_v34 = vrot.slane %v1969_v0, 1  ;;  %v1981_v20 = vshll.u32 %v5711_v26, 16  ;;  %v906_v37 = vadd.f32 %v5196_v32, %v848_v28  ;;  %v840_v45 = vmul.f32 %v5194_v31, %v781_v40 }
  0x93   : > { %v895_v43 = vadd.f32 %v5196_v32, %v837_v33  ;;  %4445 = vmatpush3.bf16.msra.mxu1 %v5015_v41  ;;  %v959_v9 = vmax.f32 %v905_v35, 0.0  ;;  %v1998_v13 = vshrl.u32 %v5610_v8, 16  ;;  %v2000_v14 = vshll.u32 %v5610_v8, 16  ;;  %v730_v33 = vld [vmem:[%s5172_s15 + $0x80] sm:$0x1] }
  0x94   : > { %v5726_v48 = vsel %vm1888_vm7, %v1967_v4, %v1971_v34  ;;  %4446 = vmatprep.subr.bf16.mxu1 %v5017_v39  ;;  %v1983_v19 = vrot.slane %v1981_v20, 1  ;;  %v960_v41 = vmax.f32 %v906_v37, 0.0  ;;  %v898_v52 = vadd.f32 %v5196_v32, %v840_v45  ;;  %v733_v20 = vld [vmem:[%s5172_s15 + $0x8c] sm:$0x1]  ;;  %v5022_v45 = vld [vmem:[%s6621_s3 + $0x1f0] sm:$0xff]  }
  0x95   : > { %6668 = vst [vmem:[#allocation10_spill] sm:$0xff] %v5726_v48  ;;  %4694 = vmatprep.mubr.bf16.mxu1 %v5726_v48  ;;  %v949_v0 = vmax.f32 %v895_v43, 0.0  ;;  %v1047_v4 = vsel %vm981_vm0, %v959_v9, 0.0  ;;  %v1991_v21 = vor.u32 %v1990_v22, %v1986_v38  ;;  %v791_v23 = vunpack.c.l.bf16 %v737_v46  ;;  %v5020_v37 = vld [vmem:[%s6621_s3 + $0x1a8] sm:$0xff]  }
  0x96   : > { %v792_v28 = vunpack.c.h.bf16 %v737_v46  ;;  %v5739_v39 = vsel %vm1888_vm7, %v1979_v16, %v1983_v19  ;;  %v5741_v40 = vpack.c.bf16 %v960_v41, %v959_v9  ;;  %v2002_v35 = vrot.slane %v2000_v14, 1 }
  0x97   : > { %6669 = vst [vmem:[#allocation11_spill] sm:$0xff] %v5739_v39  ;;  %v1037_v34 = vsel %vm992_vm6, %v949_v0, 0.0  ;;  %4447 = vmatpush3.bf16.msra.mxu1 %v5018_v55  ;;  %v5750_v38 = vpack.c.bf16 %v960_v41, %v1047_v4  ;;  %v952_v16 = vmax.f32 %v898_v52, 0.0  ;;  %v850_v43 = vmul.f32 %v5194_v31, %v791_v23 }
  0x98   : > { %6670 = vst [vmem:[#allocation12_spill] sm:$0xff] %v5741_v40  ;;  %4695 = vmatmul.mubr.bf16.gmra.mrb[8].mxu1 %v5739_v39  ;;  %v5752_v22 = vpack.c.bf16 %v1037_v34, %v1037_v34  ;;  %4448 = vmatprep.subr.bf16.mxu1 %v5019_v54  ;;  %v851_v46 = vmul.f32 %v5194_v31, %v792_v28  ;;  %v784_v55 = vunpack.c.l.bf16 %v730_v33  ;;  %v2010_v9 = vshrl.u32 %v5671_v42, 16  ;;  %v5023_v33 = vld [vmem:[%s6621_s3 + $0x1b0] sm:$0xff]  }
  0x99   : > { %3699 = vmatprep.mubr.msk.bf16.mxu0 %vm5227_vm5, %v5741_v40  ;;  %v2012_v14 = vshll.u32 %v5671_v42, 16  ;;  %v1040_v54 = vsel %vm992_vm6, %v952_v16, 0.0  ;;  %v908_v41 = vadd.f32 %v5196_v32, %v850_v43  ;;  %v787_v0 = vunpack.c.l.bf16 %v733_v20  ;;  %v5024_v20 = vld [vmem:[%s6621_s3 + $0x1f8] sm:$0xff]  }
  0x9a   : > { %v1993_v19 = vshll.u32 %v5752_v22, 16  ;;  %3702 = vmatmul.mubr.msk.bf16.gmra.mrb[44].mxu0 %vm5227_vm5, %v5678_v53  ;;  %v5771_v52 = vpack.c.bf16 %v1040_v54, %v1040_v54  ;;  %v909_v4 = vadd.f32 %v5196_v32, %v851_v46  ;;  %v843_v23 = vmul.f32 %v5194_v31, %v784_v55  ;;  %v4125_v54 = vld [vmem:[%s5172_s15 + $0xa8] sm:$0xff]  }
  0x9b   : > { %v2014_v28 = vrot.slane %v2012_v14, 1  ;;  %4449 = vmatpush3.bf16.msra.mxu1 %v5020_v37  ;;  %v2003_v24 = vor.u32 %v2002_v35, %v1998_v13  ;;  %v962_v16 = vmax.f32 %v908_v41, 0.0  ;;  %v846_v43 = vmul.f32 %v5194_v31, %v787_v0 }
  0x9c   : > { %v1995_v34 = vrot.slane %v1993_v19, 1  ;;  %4450 = vmatprep.subr.bf16.mxu1 %v5022_v45  ;;  %v2005_v46 = vshll.u32 %v5771_v52, 16  ;;  %v963_v55 = vmax.f32 %v909_v4, 0.0  ;;  %v901_v37 = vadd.f32 %v5196_v32, %v843_v23  ;;  %v736_v19 = vld [vmem:[%s5172_s15 + $0x98] sm:$0x1] }
  0x9d   : > { %v2022_v14 = vshrl.u32 %v5685_v29, 16  ;;  %v1050_v13 = vsel %vm981_vm0, %v962_v16, 0.0  ;;  %v904_v35 = vadd.f32 %v5196_v32, %v846_v43  ;;  %v2024_v45 = vshll.u32 %v5685_v29, 16 }
  0x9e   : > { %v5787_v39 = vsel %vm1888_vm7, %v1991_v21, %v1995_v34  ;;  %v2007_v41 = vrot.slane %v2005_v46, 1  ;;  %v5795_v0 = vpack.c.bf16 %v963_v55, %v962_v16  ;;  %v955_v4 = vmax.f32 %v901_v37, 0.0  ;;  %v5025_v21 = vld [vmem:[%s6621_s3 + $0x1b8] sm:$0xff]  }
  0x9f   : > { %6671 = vst [vmem:[#allocation13_spill] sm:$0xff] %v5787_v39  ;;  %4698 = vmatprep.mubr.bf16.mxu1 %v5787_v39  ;;  %v2015_v23 = vor.u32 %v2014_v28, %v2010_v9  ;;  %4451 = vmatpush3.bf16.msra.mxu1 %v5023_v33  ;;  %v958_v34 = vmax.f32 %v904_v35, 0.0  ;;  %v2026_v48 = vrot.slane %v2024_v45, 1  ;;  %v4033_v58 = vunpack.c.l.bf16 %v4125_v54  ;;  %v5803_v39 = vld [vmem:[%s6621_s3 + $0x200] sm:$0xff]  }
  0xa0   : > { %6672 = vst [vmem:[#allocation14_spill] sm:$0xff] %v5795_v0  ;;  %v4034_v43 = vunpack.c.h.bf16 %v4125_v54  ;;  %4452 = vmatprep.subr.bf16.mxu1 %v5024_v20  ;;  %v5806_v16 = vsel %vm1888_vm7, %v2003_v24, %v2007_v41  ;;  %v5808_v46 = vpack.c.bf16 %v963_v55, %v1050_v13  ;;  %3705 = vmatprep.mubr.msk.bf16.mxu0 %vm5227_vm5, %v5795_v0  ;;  %v1043_v9 = vsel %vm992_vm6, %v955_v4, 0.0  ;;  %v739_v33 = vld [vmem:[%s5172_s15 + $0xa4] sm:$0x1] }
  0xa1   : > { %6673 = vst [vmem:[#allocation15_spill] sm:$0xff] %v5806_v16  ;;  %v790_v28 = vunpack.c.l.bf16 %v736_v19  ;;  %4699 = vmatmul.mubr.bf16.gmra.mrb[12].mxu1 %v5806_v16  ;;  %v5817_v20 = vpack.c.bf16 %v1043_v9, %v1043_v9  ;;  %v1046_v24 = vsel %vm992_vm6, %v958_v34, 0.0  ;;  %v853_v55 = vmul.f32 %v4033_v58, %v5194_v31 }
  0xa2   : > { %3708 = vmatmul.mubr.msk.bf16.gmra.mrb[48].mxu0 %vm5227_vm5, %v5741_v40  ;;  %v2034_v37 = vshrl.u32 %v5750_v38, 16  ;;  %v5826_v54 = vpack.c.bf16 %v1046_v24, %v1046_v24  ;;  %v854_v13 = vmul.f32 %v4034_v43, %v5194_v31  ;;  %v2036_v45 = vshll.u32 %v5750_v38, 16 }
  0xa3   : > { %v849_v35 = vmul.f32 %v5194_v31, %v790_v28  ;;  %4453 = vmatpush3.bf16.msra.mxu1 %v5025_v21  ;;  %v2017_v19 = vshll.u32 %v5817_v20, 16  ;;  %v2027_v41 = vor.u32 %v2026_v48, %v2022_v14  ;;  %v911_v4 = vadd.f32 %v5196_v32, %v853_v55 }
  0xa4   : > { %v793_v34 = vunpack.c.l.bf16 %v739_v33  ;;  %4718 = vmatprep.subr.bf16.mxu1 %v5803_v39  ;;  %v2029_v58 = vshll.u32 %v5826_v54, 16  ;;  %v912_v9 = vadd.f32 %v5196_v32, %v854_v13  ;;  %v2038_v28 = vrot.slane %v2036_v45, 1 }
  0xa5   : > { %v907_v43 = vadd.f32 %v5196_v32, %v849_v35  ;;  %v2019_v24 = vrot.slane %v2017_v19, 1  ;;  %v965_v16 = vmax.f32 %v911_v4, 0.0  ;;  %v2048_v48 = vshll.u32 %v5808_v46, 16  ;;  %v742_v19 = vld [vmem:[%s5172_s15 + $0xb0] sm:$0x1] }
  0xa6   : > { %v852_v21 = vmul.f32 %v5194_v31, %v793_v34  ;;  %v2031_v14 = vrot.slane %v2029_v58, 1  ;;  %v966_v55 = vmax.f32 %v912_v9, 0.0  ;;  %v2046_v36 = vshrl.u32 %v5808_v46, 16  ;;  %v745_v9 = vld [vmem:[%s5172_s15 + $0xbc] sm:$0x1] }
  0xa7   : > { %v961_v33 = vmax.f32 %v907_v43, 0.0  ;;  %v5842_v15 = vsel %vm1888_vm7, %v2015_v23, %v2019_v24  ;;  %v1053_v13 = vsel %vm981_vm0, %v965_v16, 0.0  ;;  %v2050_v45 = vrot.slane %v2048_v48, 1 }
  0xa8   : > { %6674 = vst [vmem:[#allocation16_spill] sm:$0xff] %v5842_v15  ;;  %v910_v35 = vadd.f32 %v5196_v32, %v852_v21  ;;  %4702 = vmatprep.mubr.bf16.mxu1 %v5842_v15  ;;  %v5850_v4 = vsel %vm1888_vm7, %v2027_v41, %v2031_v14  ;;  %v5852_v34 = vpack.c.bf16 %v966_v55, %v1053_v13  ;;  %v797_v48 = vunpack.c.l.bf16 %v743_v57 }
  0xa9   : > { %6675 = vst [vmem:[#allocation17_spill] sm:$0xff] %v5850_v4  ;;  %v5854_v58 = vpack.c.bf16 %v966_v55, %v965_v16  ;;  %v1049_v23 = vsel %vm992_vm6, %v961_v33, 0.0  ;;  %4703 = vmatmul.mubr.bf16.gmra.mrb[16].mxu1 %v5850_v4  ;;  %v2039_v24 = vor.u32 %v2038_v28, %v2034_v37  ;;  %v2051_v41 = vor.u32 %v2050_v45, %v2046_v36  ;;  %v4126_v55 = vld [vmem:[%s5172_s15 + $0xc0] sm:$0xff]  }
  0xaa   : > { %v5860_v43 = vpack.c.bf16 %v1049_v23, %v1049_v23  ;;  %v964_v21 = vmax.f32 %v910_v35, 0.0  ;;  %v798_v14 = vunpack.c.h.bf16 %v743_v57  ;;  %v796_v13 = vunpack.c.l.bf16 %v742_v19 }
  0xab   : > { %3711 = vmatprep.mubr.msk.bf16.mxu0 %vm5227_vm5, %v5854_v58  ;;  %v2060_v16 = vshll.u32 %v5852_v34, 16  ;;  %v856_v28 = vmul.f32 %v5194_v31, %v797_v48  ;;  %v799_v35 = vunpack.c.l.bf16 %v745_v9  ;;  %v2058_v45 = vshrl.u32 %v5852_v34, 16 }
  0xac   : > { %v2041_v33 = vshll.u32 %v5860_v43, 16  ;;  %3714 = vmatmul.mubr.msk.bf16.gmra.mrb[52].mxu0 %vm5227_vm5, %v5795_v0  ;;  %v1052_v37 = vsel %vm992_vm6, %v964_v21, 0.0  ;;  %v857_v57 = vmul.f32 %v5194_v31, %v798_v14  ;;  %v855_v36 = vmul.f32 %v5194_v31, %v796_v13 }
  0xad   : > { %v5874_v23 = vpack.c.bf16 %v1052_v37, %v1052_v37  ;;  %v914_v4 = vadd.f32 %v5196_v32, %v856_v28  ;;  %v858_v15 = vmul.f32 %v5194_v31, %v799_v35  ;;  %v4037_v0 = vunpack.c.l.bf16 %v4126_v55  ;;  %v748_v37 = vld [vmem:[%s5172_s15 + $0xc8] sm:$0x1] }
  0xae   : > { %v2043_v19 = vrot.slane %v2041_v33, 1  ;;  %v915_v21 = vadd.f32 %v5196_v32, %v857_v57  ;;  %v913_v9 = vadd.f32 %v5196_v32, %v855_v36  ;;  %v2062_v48 = vrot.slane %v2060_v16, 1 }
  0xaf   : > { %v2053_v40 = vshll.u32 %v5874_v23, 16  ;;  %v968_v13 = vmax.f32 %v914_v4, 0.0  ;;  %v916_v53 = vadd.f32 %v5196_v32, %v858_v15  ;;  %v4038_v33 = vunpack.c.h.bf16 %v4126_v55 }
  0xb0   : > { %v5886_v14 = vsel %vm1888_vm7, %v2039_v24, %v2043_v19  ;;  %v969_v35 = vmax.f32 %v915_v21, 0.0  ;;  %v967_v62 = vmax.f32 %v913_v9, 0.0  ;;  %v859_v44 = vmul.f32 %v4037_v0, %v5194_v31 }
  0xb1   : > { %6676 = vst [vmem:[#allocation18_spill] sm:$0xff] %v5886_v14  ;;  %4706 = vmatprep.mubr.bf16.mxu1 %v5886_v14  ;;  %v2055_v28 = vrot.slane %v2053_v40, 1  ;;  %v1056_v57 = vsel %vm981_vm0, %v968_v13, 0.0  ;;  %v970_v36 = vmax.f32 %v916_v53, 0.0  ;;  %v860_v16 = vmul.f32 %v4038_v33, %v5194_v31 }
  0xb2   : > { %v802_v24 = vunpack.c.l.bf16 %v748_v37  ;;  %v5897_v15 = vpack.c.bf16 %v969_v35, %v1056_v57  ;;  %v5899_v55 = vpack.c.bf16 %v969_v35, %v968_v13  ;;  %v1055_v40 = vsel %vm992_vm6, %v967_v62, 0.0  ;;  %v703_v13 = vld [vmem:[%s5172_s15 + $0x14] sm:$0x1] }
  0xb3   : > { %v5895_v4 = vsel %vm1888_vm7, %v2051_v41, %v2055_v28  ;;  %v5904_v0 = vpack.c.bf16 %v1055_v40, %v1055_v40  ;;  %v1058_v53 = vsel %vm992_vm6, %v970_v36, 0.0  ;;  %v917_v19 = vadd.f32 %v5196_v32, %v859_v44 }
  0xb4   : > { %6677 = vst [vmem:[#allocation19_spill] sm:$0xff] %v5895_v4  ;;  %4707 = vmatmul.mubr.bf16.gmra.mrb[20].mxu1 %v5895_v4  ;;  %v918_v21 = vadd.f32 %v5196_v32, %v860_v16  ;;  %3717 = vmatprep.mubr.msk.bf16.mxu0 %vm5227_vm5, %v5899_v55  ;;  %v5913_v41 = vpack.c.bf16 %v1058_v53, %v1058_v53  ;;  %v2070_v9 = vshrl.u32 %v5897_v15, 16  ;;  %v2072_v62 = vshll.u32 %v5897_v15, 16 }
  0xb5   : > { %v861_v37 = vmul.f32 %v5194_v31, %v802_v24  ;;  %v2063_v33 = vor.u32 %v2062_v48, %v2058_v45  ;;  %v2065_v28 = vshll.u32 %v5904_v0, 16  ;;  %3720 = vmatmul.mubr.msk.bf16.gmra.mrb[56].mxu0 %vm5227_vm5, %v5854_v58  ;;  %v971_v44 = vmax.f32 %v917_v19, 0.0 }
  0xb6   : > { %v972_v35 = vmax.f32 %v918_v21, 0.0  ;;  %v2074_v57 = vrot.slane %v2072_v62, 1  ;;  %v2077_v36 = vshll.u32 %v5913_v41, 16  ;;  %v757_v45 = vunpack.c.l.bf16 %v703_v13 }
  0xb7   : > { %v919_v16 = vadd.f32 %v5196_v32, %v861_v37  ;;  %v2067_v40 = vrot.slane %v2065_v28, 1  ;;  %v1059_v53 = vsel %vm981_vm0, %v971_v44, 0.0  ;;  %v2729_v49 = vrot.slane %v5711_v26, 1 }
  0xb8   : > { %v5927_v24 = vpack.c.bf16 %v972_v35, %v971_v44  ;;  %v2075_v48 = vor.u32 %v2074_v57, %v2070_v9  ;;  %v2079_v4 = vrot.slane %v2077_v36, 1  ;;  %v5929_v14 = vpack.c.bf16 %v972_v35, %v1059_v53 }
  0xb9   : > { %v973_v27 = vmax.f32 %v919_v16, 0.0  ;;  %v5932_v19 = vsel %vm1888_vm7, %v2063_v33, %v2067_v40  ;;  %v816_v21 = vmul.f32 %v5194_v31, %v757_v45  ;;  %v5060_v31 = vmov 0  }
  0xba   : > { %3723 = vmatprep.mubr.msk.bf16.mxu0 %vm5227_vm5, %v5927_v24  ;;  %4710 = vmatprep.mubr.bf16.mxu1 %v5932_v19  ;;  %v5940_v17 = vsel %vm1888_vm7, %v2075_v48, %v2079_v4  ;;  %v2082_v62 = vshrl.u32 %v5929_v14, 16  ;;  %v2084_v37 = vshll.u32 %v5929_v14, 16  ;;  %v5950_v44 = vrot.slane %v5060_v31, 1 }
  0xbb   : > { %v1061_v9 = vsel %vm992_vm6, %v973_v27, 0.0  ;;  %v874_v33 = vadd.f32 %v5196_v32, %v816_v21  ;;  %v2719_v4 = vrot.slane %v5356_v59, 1  ;;  %v2720_v57 = vrot.slane %v5634_v56, 1 }
  0xbc   : > { %4711 = vmatmul.mubr.bf16.gmra.mrb[24].mxu1 %v5940_v17  ;;  %v5947_v13 = vpack.c.bf16 %v1061_v9, %v1061_v9  ;;  %v2086_v28 = vrot.slane %v2084_v37, 1  ;;  %v2710_v32 = vrot.slane %v5238_v12, 1  ;;  %v2722_v16 = vrot.slane %v5446_v11, 1  ;;  %v5027_v37 = vld [vmem:[%s6621_s3 + $0xc0] sm:$0xff]  }
  0xbd   : > { %3726 = vmatmul.mubr.msk.bf16.gmra.mrb[60].mxu0 %vm5227_vm5, %v5899_v55  ;;  %v928_v27 = vmax.f32 %v874_v33, 0.0  ;;  %v2723_v59 = vrot.slane %v5657_v50, 1  ;;  %v5967_v45 = vsel %vm2706_vm8, %v2719_v4, %v2720_v57  ;;  %v2725_v56 = vrot.slane %v5521_v25, 1 }
  0xbe   : > { %v2089_v35 = vshll.u32 %v5947_v13, 16  ;;  %v2087_v36 = vor.u32 %v2086_v28, %v2082_v62  ;;  %4590 = vmatprep.mubr.msk.bf16.mxu0 %vm5227_vm5, %v5274_v2  ;;  %v2726_v2 = vrot.slane %v5687_v7, 1  ;;  %v2728_v11 = vrot.slane %v5533_v30, 1 }
  0xbf   : > { %v1016_v53 = vsel %vm992_vm6, %v928_v27, 0.0  ;;  %v5973_v21 = vsel %vm2706_vm8, %v2722_v16, %v2723_v59  ;;  %v2731_v9 = vrot.slane %v5568_v51, 1  ;;  %v2732_v62 = vrot.slane %v5752_v22, 1  ;;  %v5029_v51 = vld [vmem:[%s6621_s3 + $0x108] sm:$0xff]  }
  0xc0   : > { %v2091_v40 = vrot.slane %v2089_v35, 1  ;;  %v5970_v48 = vpack.c.bf16 %v1016_v53, %v1016_v53  ;;  %v5989_v7 = vsel %vm2706_vm8, %v2725_v56, %v2726_v2  ;;  %v2713_v30 = vrot.slane %v5277_v5, 1 }
  0xc1   : > { %v5997_v26 = vsel %vm2706_vm8, %v2728_v11, %v2729_v49  ;;  %v6000_v22 = vsel %vm2706_vm8, %v2731_v9, %v2732_v62  ;;  %v2734_v33 = vrot.slane %v5610_v8, 1  ;;  %v2714_v31 = vrot.slane %v5583_v47, 1  ;;  %v5030_v47 = vld [vmem:[%s6621_s3 + $0xc8] sm:$0xff]   ;;  %v5038_v49 = vld [vmem:[%s6621_s3 + $0x210] sm:$0xff]   ;;  %v5046_v62 = vld [vmem:[%s6621_s3 + $0x220] sm:$0xff]  }
  0xc2   : > { %v5978_v50 = vsel %vm1888_vm7, %v2087_v36, %v2091_v40  ;;  %v2711_v25 = vrot.slane %v5970_v48, 1  ;;  %v2735_v4 = vrot.slane %v5771_v52, 1  ;;  %v2737_v5 = vrot.slane %v5671_v42, 1  ;;  %v5031_v52 = vld [vmem:[%s6621_s3 + $0x110] sm:$0xff]   ;;  %v5033_v40 = vld [vmem:[%s6621_s3 + $0x208] sm:$0xff]  }
  0xc3   : > { %4714 = vmatprep.mubr.bf16.mxu1 %v5978_v50  ;;  %v2738_v35 = vrot.slane %v5817_v20, 1  ;;  %v2740_v27 = vrot.slane %v5685_v29, 1  ;;  %v2741_v57 = vrot.slane %v5826_v54, 1  ;;  %v6678_v8 = vmov 0.0|0.0   ;;  %v5039_v9 = vld [vmem:[%s6621_s3 + $0x128] sm:$0xff]  }
  0xc4   : > { %4715 = vmatmul.mubr.bf16.gmra.mrb[28].mxu1 %v5950_v44  ;;  %v2712_v28 = vsel %vm2706_vm8, %v2710_v32, %v2711_v25  ;;  %v6014_v36 = vrot.slane %v6678_v8, 1  ;;  %v2743_v42 = vrot.slane %v5750_v38, 1  ;;  %v2744_v29 = vrot.slane %v5860_v43, 1  ;;  %v6679_v25 = vld [vmem:[#allocation2_spill] sm:$0xff] }
  0xc5   : > { %3004 = vmatprep.mubr.bf16.mxu1 %v2712_v28  ;;  %4591 = vmatmul.mubr.msk.bf16.vlgmr.msra.gmra.mrb[64].mxu0 %vm5227_vm5, %v5319_v63  ;;  %v6023_v63 = vsel %vm2706_vm8, %v2734_v33, %v2735_v4  ;;  %v6031_v20 = vsel %vm2706_vm8, %v2737_v5, %v2738_v35  ;;  %v2746_v54 = vrot.slane %v5808_v46, 1  ;;  %v2747_v32 = vrot.slane %v5874_v23, 1  ;;  %v5044_v33 = vld [vmem:[%s6621_s3 + $0x138] sm:$0xff]   ;;  %v6681_v4 = vld [vmem:[#allocation5_spill] sm:$0xff] }
  0xc6   : > { %4303 = vmatpush3.bf16.msra.mxu0 %v5027_v37  ;;  %4594 = vmatprep.mubr.msk.bf16.mxu0 %vm5227_vm5, %v5358_v60  ;;  %v6034_v60 = vsel %vm2706_vm8, %v2740_v27, %v2741_v57  ;;  %v6039_v16 = vsel %vm2706_vm8, %v2713_v30, %v2714_v31  ;;  %v6042_v38 = vsel %vm2706_vm8, %v2743_v42, %v2744_v29  ;;  %v2749_v43 = vrot.slane %v5852_v34, 1  ;;  %v5032_v34 = vld [vmem:[%s6621_s3 + $0xd0] sm:$0xff]   ;;  %v5040_v37 = vld [vmem:[%s6621_s3 + $0xe8] sm:$0xff]   ;;  %v5045_v5 = vld [vmem:[%s6621_s3 + $0xf8] sm:$0xff]  }
  0xc7   : > { %4304 = vmatprep.subr.bf16.mxu0 %v5029_v51  ;;  %v2750_v59 = vrot.slane %v5904_v0, 1  ;;  %v6050_v53 = vsel %vm2706_vm8, %v2746_v54, %v2747_v32  ;;  %v2752_v46 = vrot.slane %v5897_v15, 1  ;;  %v2753_v23 = vrot.slane %v5913_v41, 1  ;;  %v5034_v15 = vld [vmem:[%s6621_s3 + $0x118] sm:$0xff]   ;;  %v5041_v30 = vld [vmem:[%s6621_s3 + $0x130] sm:$0xff]   ;;  %v6682_v27 = vld [vmem:[#allocation8_spill] sm:$0xff] }
  0xc8   : > { %v2755_v56 = vrot.slane %v5929_v14, 1  ;;  %v2756_v2 = vrot.slane %v5947_v13, 1  ;;  %v2716_v13 = vrot.slane %v5317_v61, 1  ;;  %v2717_v11 = vrot.slane %v5596_v10, 1  ;;  %v5036_v61 = vld [vmem:[%s6621_s3 + $0x120] sm:$0xff]   ;;  %v5043_v10 = vld [vmem:[%s6621_s3 + $0x218] sm:$0xff]  }
  0xc9   : > { %v6059_v0 = vsel %vm2706_vm8, %v2749_v43, %v2750_v59  ;;  %v6067_v41 = vsel %vm2706_vm8, %v2752_v46, %v2753_v23  ;;  %v5042_v51 = vld [vmem:[%s6621_s3 + $0xf0] sm:$0xff]   ;;  %v5049_v35 = vld [vmem:[%s6621_s3 + $0x238] sm:$0xff]   ;;  %v6683_v57 = vld [vmem:[#allocation12_spill] sm:$0xff]  ;;  %v1904_v42 = vshll.u32 %v5238_v12, 16  ;;  %v1902_v29 = vshrl.u32 %v5238_v12, 16 }
  0xca   : > { %4305 = vmatpush3.bf16.msra.mxu0 %v5030_v47  ;;  %v6072_v14 = vsel %vm2706_vm8, %v2755_v56, %v2756_v2  ;;  %v5048_v31 = vld [vmem:[%s6621_s3 + $0x230] sm:$0xff]   ;;  %v1909_v54 = vshll.u32 %v5970_v48, 16 }
  0xcb   : > { %4306 = vmatprep.subr.bf16.mxu0 %v5031_v52  ;;  %v6684_v47 = vld [vmem:[#allocation14_spill] sm:$0xff]  ;;  %v1906_v52 = vrot.slane %v1904_v42, 1 }
  0xcc   : > { %3005 = vmatmul.mubr.bf16.vlgmr.msra.gmra.mrb[32].mxu1 %v6014_v36  ;;  %v1911_v32 = vrot.slane %v1909_v54, 1 }
  0xcd   : > { %3012 = vmatprep.mubr.bf16.mxu1 %v6039_v16  ;;  %4719 = vmatpush3.bf16.msra.mxu1 %v5803_v39  ;;  %v5035_v39 = vld [vmem:[%s6621_s3 + $0xd8] sm:$0xff]  }
  0xce   : > { %4595 = vmatmul.mubr.msk.bf16.gmra.mrb[68].mxu0 %vm5227_vm5, %v5398_v3  ;;  %4720 = vmatprep.subr.bf16.mxu1 %v5033_v40  ;;  %v6092_v3 = vsel %vm2706_vm8, %v2716_v13, %v2717_v11  ;;  %v6686_v11 = vld [vmem:[#allocation6_spill] sm:$0xff] }
  0xcf   : > { %4598 = vmatprep.mubr.msk.bf16.mxu0 %vm5227_vm5, %v5437_v6  ;;  %4307 = vmatpush3.bf16.msra.mxu0 %v5032_v34  ;;  %v5037_v6 = vld [vmem:[%s6621_s3 + $0xe0] sm:$0xff]  }
  0xd0   : > { %4308 = vmatprep.subr.bf16.mxu0 %v5034_v15  ;;  %v6685_v15 = vld [vmem:[#allocation4_spill] sm:$0xff] }
  0xd1   : > { %4721 = vmatpush3.bf16.msra.mxu1 %v5033_v40 }
  0xd2   : > { %4722 = vmatprep.subr.bf16.mxu1 %v5038_v49 }
  0xd3   : > { %4309 = vmatpush3.bf16.msra.mxu0 %v5035_v39 }
  0xd4   : > { %3013 = vmatmul.mubr.bf16.gmra.mrb[36].mxu1 %v2712_v28  ;;  %4310 = vmatprep.subr.bf16.mxu0 %v5036_v61  ;;  %v6680_v28 = vld [vmem:[#allocation3_spill] sm:$0xff] }
  0xd5   : > { %3020 = vmatprep.mubr.bf16.mxu1 %v6092_v3  ;;  %4723 = vmatpush3.bf16.msra.mxu1 %v5038_v49 }
  0xd6   : > { %4599 = vmatmul.mubr.msk.bf16.gmra.mrb[72].mxu0 %vm5227_vm5, %v5483_v18  ;;  %4724 = vmatprep.subr.bf16.mxu1 %v5043_v10  ;;  %v5047_v18 = vld [vmem:[%s6621_s3 + $0x228] sm:$0xff]  }
  0xd7   : > { %4602 = vmatprep.mubr.msk.bf16.mxu0 %vm5227_vm5, %v6679_v25  ;;  %4311 = vmatpush3.bf16.msra.mxu0 %v5037_v6 }
  0xd8   : > { %4312 = vmatprep.subr.bf16.mxu0 %v5039_v9 }
  0xd9   : > { %4725 = vmatpush3.bf16.msra.mxu1 %v5043_v10 }
  0xda   : > { %4726 = vmatprep.subr.bf16.mxu1 %v5046_v62 }
  0xdb   : > { %4313 = vmatpush3.bf16.msra.mxu0 %v5040_v37 }
  0xdc   : > { %3021 = vmatmul.mubr.bf16.gmra.mrb[40].mxu1 %v6039_v16  ;;  %4314 = vmatprep.subr.bf16.mxu0 %v5041_v30 }
  0xdd   : > { %3028 = vmatprep.mubr.bf16.mxu1 %v5967_v45  ;;  %4727 = vmatpush3.bf16.msra.mxu1 %v5046_v62 }
  0xde   : > { %4603 = vmatmul.mubr.msk.bf16.gmra.mrb[76].mxu0 %vm5227_vm5, %v6680_v28  ;;  %4728 = vmatprep.subr.bf16.mxu1 %v5047_v18 }
  0xdf   : > { %4606 = vmatprep.mubr.msk.bf16.mxu0 %vm5227_vm5, %v6681_v4  ;;  %4315 = vmatpush3.bf16.msra.mxu0 %v5042_v51 }
  0xe0   : > { %4316 = vmatprep.subr.bf16.mxu0 %v5044_v33 }
  0xe1   : > { %4729 = vmatpush3.bf16.msra.mxu1 %v5047_v18  ;;  %v6688_v18 = vld [vmem:[#allocation9_spill] sm:$0xff] }
  0xe2   : > { %4730 = vmatprep.subr.bf16.mxu1 %v5048_v31 }
  0xe3   : > { %4317 = vmatpush3.bf16.msra.mxu0 %v5045_v5  ;;  %v6689_v5 = vld [vmem:[#allocation10_spill] sm:$0xff] }
  0xe4   : > { %3029 = vmatmul.mubr.bf16.gmra.mrb[44].mxu1 %v6092_v3 }
  0xe5   : > { %3036 = vmatprep.mubr.bf16.mxu1 %v5973_v21  ;;  %4731 = vmatpush3.bf16.msra.mxu1 %v5048_v31 }
  0xe6   : > { %4607 = vmatmul.mubr.msk.bf16.gmra.mrb[80].mxu0 %vm5227_vm5, %v6682_v27  ;;  %4732 = vmatprep.subr.bf16.mxu1 %v5049_v35 }
  0xe7   : > { %4610 = vmatprep.mubr.msk.bf16.mxu0 %vm5227_vm5, %v6683_v57  ;;  %v6690_v57 = vld [vmem:[#allocation11_spill] sm:$0xff] }
  0xe9   : > { %4733 = vmatpush3.bf16.msra.mxu1 %v5049_v35 }
  0xec   : > { %3037 = vmatmul.mubr.bf16.gmra.mrb[48].mxu1 %v5967_v45 }
  0xed   : > { %3044 = vmatprep.mubr.bf16.mxu1 %v5989_v7 }
  0xee   : > { %4611 = vmatmul.mubr.msk.bf16.gmra.mrb[84].mxu0 %vm5227_vm5, %v6684_v47 }
  0xef   : > { %4614 = vmatprep.mubr.msk.bf16.mxu0 %vm5227_vm5, %v5854_v58  ;;  %v1907_v58 = vor.u32 %v1906_v52, %v1902_v29 }
  0xf1   : > { %v1912_v48 = vsel %vm1888_vm7, %v1907_v58, %v1911_v32  ;;  %v6691_v58 = vld [vmem:[#allocation13_spill] sm:$0xff] }
  0xf4   : > { %3045 = vmatmul.mubr.bf16.gmra.mrb[52].mxu1 %v5973_v21 }
  0xf5   : > { %3052 = vmatprep.mubr.bf16.mxu1 %v5997_v26 }
  0xf6   : > { %4615 = vmatmul.mubr.msk.bf16.gmra.mrb[88].mxu0 %vm5227_vm5, %v5899_v55 }
  0xf7   : > { %4618 = vmatprep.mubr.msk.bf16.mxu0 %vm5227_vm5, %v5927_v24 }
  0xfc   : > { %3053 = vmatmul.mubr.bf16.gmra.mrb[56].mxu1 %v5989_v7 }
  0xfd   : > { %3060 = vmatprep.mubr.bf16.mxu1 %v6000_v22 }
  0xfe   : > { %4619 = vmatmul.mubr.bf16.gmra.mrb[92].mxu0 %v6678_v8 }
  0xff   : > { %2348 = vmatprep.mubr.bf16.mxu0 %v1912_v48 }
 0x102   : > { %v4158_v43 = vpop.f32.mrb[0].mxu0 }
 0x103   : > { %v4159_v59 = vpop.f32.mrb[1].mxu0 }
 0x104   : > { %v6172_v40 = vadd.f32 %v4159_v59, %v4158_v43  ;;  %v4161_v12 = vpop.f32.mrb[2].mxu0  ;;  %3061 = vmatmul.mubr.bf16.gmra.mrb[60].mxu1 %v5997_v26 }
 0x105   : > { %v4162_v46 = vpop.f32.mrb[3].mxu0  ;;  %3068 = vmatprep.mubr.bf16.mxu1 %v6023_v63 }
 0x106   : > { %v6176_v23 = vadd.f32 %v4162_v46, %v4161_v12  ;;  %2349 = vmatmul.mubr.bf16.vlgmr.msra.gmra.mrb[96].mxu0 %v5950_v44  ;;  %v6687_v44 = vld [vmem:[#allocation7_spill] sm:$0xff] }
 0x107   : > { %2356 = vmatprep.mubr.bf16.mxu0 %v6685_v15 }
 0x10a   : > { %v4164_v1 = vpop.f32.mrb[4].mxu0 }
 0x10b   : > { %v4165_v55 = vpop.f32.mrb[5].mxu0 }
 0x10c   : > { %v6181_v24 = vadd.f32 %v4165_v55, %v4164_v1  ;;  %v4167_v56 = vpop.f32.mrb[6].mxu0  ;;  %3069 = vmatmul.mubr.bf16.gmra.mrb[64].mxu1 %v6000_v22  ;;  %v6692_v1 = vld [vmem:[#allocation15_spill] sm:$0xff] }
 0x10d   : > { %v4168_v34 = vpop.f32.mrb[7].mxu0  ;;  %3076 = vmatprep.mubr.bf16.mxu1 %v6031_v20 }
 0x10e   : > { %v6185_v2 = vadd.f32 %v4168_v34, %v4167_v56  ;;  %2357 = vmatmul.mubr.bf16.gmra.mrb[100].mxu0 %v1912_v48 }
 0x10f   : > { %2364 = vmatprep.mubr.bf16.mxu0 %v6686_v11 }
 0x113   : > { %v4170_v8 = vpop.f32.mrb[8].mxu0 }
 0x114   : > { %v4171_v13 = vpop.f32.mrb[9].mxu0  ;;  %3077 = vmatmul.mubr.bf16.gmra.mrb[68].mxu1 %v6023_v63 }
 0x115   : > { %v6191_v49 = vadd.f32 %v4171_v13, %v4170_v8  ;;  %v4173_v39 = vpop.f32.mrb[10].mxu0  ;;  %3084 = vmatprep.mubr.bf16.mxu1 %v6034_v60  ;;  %v6693_v8 = vld [vmem:[#allocation16_spill] sm:$0xff] }
 0x116   : > { %v4174_v61 = vpop.f32.mrb[11].mxu0  ;;  %2365 = vmatmul.mubr.bf16.gmra.mrb[104].mxu0 %v6685_v15 }
 0x117   : > { %v6193_v10 = vadd.f32 %v4174_v61, %v4173_v39  ;;  %2372 = vmatprep.mubr.bf16.mxu0 %v6687_v44  ;;  %v6694_v39 = vld [vmem:[#allocation17_spill] sm:$0xff] }
 0x11b   : > { %v4176_v6 = vpop.f32.mrb[12].mxu0 }
 0x11c   : > { %v4177_v9 = vpop.f32.mrb[13].mxu0  ;;  %3085 = vmatmul.mubr.bf16.gmra.mrb[72].mxu1 %v6031_v20 }
 0x11d   : > { %v6199_v62 = vadd.f32 %v4177_v9, %v4176_v6  ;;  %v4179_v25 = vpop.f32.mrb[14].mxu0  ;;  %3092 = vmatprep.mubr.bf16.mxu1 %v6042_v38 }
 0x11e   : > { %v4180_v37 = vpop.f32.mrb[15].mxu0  ;;  %2373 = vmatmul.mubr.bf16.gmra.mrb[108].mxu0 %v6686_v11 }
 0x11f   : > { %v6202_v30 = vadd.f32 %v4180_v37, %v4179_v25  ;;  %2380 = vmatprep.mubr.bf16.mxu0 %v6688_v18 }
 0x123   : > { %v4182_v51 = vpop.f32.mrb[16].mxu0 }
 0x124   : > { %3093 = vmatmul.mubr.bf16.gmra.mrb[76].mxu1 %v6034_v60  ;;  %v4183_v33 = vpop.f32.mrb[17].mxu0 }
 0x125   : > { %3100 = vmatprep.mubr.bf16.mxu1 %v6050_v53  ;;  %v6209_v28 = vadd.f32 %v4183_v33, %v4182_v51  ;;  %v4185_v31 = vpop.f32.mrb[18].mxu0 }
 0x126   : > { %2381 = vmatmul.mubr.bf16.gmra.mrb[112].mxu0 %v6687_v44  ;;  %v4186_v4 = vpop.f32.mrb[19].mxu0 }
 0x127   : > { %2388 = vmatprep.mubr.bf16.mxu0 %v6689_v5  ;;  %v6213_v35 = vadd.f32 %v4186_v4, %v4185_v31 }
 0x12c   : > { %3101 = vmatmul.mubr.bf16.gmra.mrb[80].mxu1 %v6042_v38 }
 0x12d   : > { %3108 = vmatprep.mubr.bf16.mxu1 %v6059_v0  ;;  %v4188_v27 = vpop.f32.mrb[20].mxu0 }
 0x12e   : > { %2389 = vmatmul.mubr.bf16.gmra.mrb[116].mxu0 %v6688_v18  ;;  %v4189_v47 = vpop.f32.mrb[21].mxu0 }
 0x12f   : > { %2396 = vmatprep.mubr.bf16.mxu0 %v6690_v57  ;;  %v6219_v42 = vadd.f32 %v4189_v47, %v4188_v27  ;;  %v4191_v29 = vpop.f32.mrb[22].mxu0 }
 0x130   : > { %v4192_v52 = vpop.f32.mrb[23].mxu0 }
 0x131   : > { %v6221_v54 = vadd.f32 %v4192_v52, %v4191_v29 }
 0x134   : > { %3109 = vmatmul.mubr.bf16.gmra.mrb[84].mxu1 %v6050_v53 }
 0x135   : > { %3116 = vmatprep.mubr.bf16.mxu1 %v6067_v41 }
 0x136   : > { %2397 = vmatmul.mubr.bf16.gmra.mrb[120].mxu0 %v6689_v5 }
 0x137   : > { %2404 = vmatprep.mubr.bf16.mxu0 %v6691_v58 }
 0x138   : > { %v4194_v32 = vpop.f32.mrb[24].mxu0 }
 0x139   : > { %v4195_v43 = vpop.f32.mrb[25].mxu0 }
 0x13a   : > { %v6227_v59 = vadd.f32 %v4195_v43, %v4194_v32  ;;  %v4197_v12 = vpop.f32.mrb[26].mxu0 }
 0x13b   : > { %v4198_v46 = vpop.f32.mrb[27].mxu0 }
 0x13c   : > { %3117 = vmatmul.mubr.bf16.gmra.mrb[88].mxu1 %v6059_v0  ;;  %v6231_v48 = vadd.f32 %v4198_v46, %v4197_v12 }
 0x13d   : > { %3124 = vmatprep.mubr.bf16.mxu1 %v6072_v14 }
 0x13e   : > { %2405 = vmatmul.mubr.bf16.gmra.mrb[124].mxu0 %v6690_v57 }
 0x13f   : > { %2412 = vmatprep.mubr.bf16.mxu0 %v6692_v1 }
 0x143   : > { %v4200_v55 = vpop.f32.mrb[28].mxu0 }
 0x144   : > { %3125 = vmatmul.mubr.bf16.gmra.mrb[92].mxu1 %v6067_v41  ;;  %v4201_v56 = vpop.f32.mrb[29].mxu0 }
 0x145   : > { %4734 = vmatprep.mubr.bf16.mxu1 %v6039_v16  ;;  %v6238_v34 = vadd.f32 %v4201_v56, %v4200_v55  ;;  %v4203_v15 = vpop.f32.mrb[30].mxu0 }
 0x146   : > { %2413 = vmatmul.mubr.bf16.gmra.mrb[128].mxu0 %v6691_v58  ;;  %v4204_v13 = vpop.f32.mrb[31].mxu0 }
 0x147   : > { %2420 = vmatprep.mubr.bf16.mxu0 %v6693_v8  ;;  %v6241_v11 = vadd.f32 %v4204_v13, %v4203_v15 }
 0x14c   : > { %4735 = vmatmul.mubr.bf16.vlgmr.msra.gmra.mrb[0].mxu1 %v6092_v3  ;;  %v6695_v3 = vld [vmem:[#allocation18_spill] sm:$0xff] }
 0x14d   : > { %4738 = vmatprep.mubr.bf16.mxu1 %v5967_v45 }
 0x14e   : > { %2421 = vmatmul.mubr.bf16.gmra.mrb[132].mxu0 %v6692_v1 }
 0x14f   : > { %2428 = vmatprep.mubr.bf16.mxu0 %v6694_v39 }
 0x150   : > { %v4206_v16 = vpop.f32.mrb[32].mxu0 }
 0x151   : > { %v4207_v61 = vpop.f32.mrb[33].mxu0 }
 0x152   : > { %v6247_v44 = vadd.f32 %v4207_v61, %v4206_v16  ;;  %v4209_v6 = vpop.f32.mrb[34].mxu0 }
 0x153   : > { %v4210_v9 = vpop.f32.mrb[35].mxu0 }
 0x154   : > { %4739 = vmatmul.mubr.bf16.gmra.mrb[4].mxu1 %v5973_v21  ;;  %v6251_v25 = vadd.f32 %v4210_v9, %v4209_v6 }
 0x155   : > { %4742 = vmatprep.mubr.bf16.mxu1 %v5989_v7  ;;  %v6696_v7 = vld [vmem:[#allocation19_spill] sm:$0xff] }
 0x156   : > { %2429 = vmatmul.mubr.bf16.gmra.mrb[136].mxu0 %v6693_v8 }
 0x157   : > { %2436 = vmatprep.mubr.bf16.mxu0 %v6695_v3 }
 0x158   : > { %v4212_v45 = vpop.f32.mrb[36].mxu0 }
 0x159   : > { %v4213_v37 = vpop.f32.mrb[37].mxu0 }
 0x15a   : > { %v6255_v18 = vadd.f32 %v4213_v37, %v4212_v45  ;;  %v4215_v51 = vpop.f32.mrb[38].mxu0 }
 0x15b   : > { %v4216_v33 = vpop.f32.mrb[39].mxu0 }
 0x15c   : > { %4743 = vmatmul.mubr.bf16.gmra.mrb[8].mxu1 %v5997_v26  ;;  %v6259_v21 = vadd.f32 %v4216_v33, %v4215_v51 }
 0x15d   : > { %4746 = vmatprep.mubr.bf16.mxu1 %v6000_v22 }
 0x15e   : > { %2437 = vmatmul.mubr.bf16.gmra.mrb[140].mxu0 %v6694_v39 }
 0x15f   : > { %2444 = vmatprep.mubr.bf16.mxu0 %v6696_v7 }
 0x162   : > { %v4218_v31 = vpop.f32.mrb[40].mxu0 }
 0x163   : > { %v4219_v4 = vpop.f32.mrb[41].mxu0 }
 0x164   : > { %4747 = vmatmul.mubr.bf16.gmra.mrb[12].mxu1 %v6023_v63  ;;  %v6265_v5 = vadd.f32 %v4219_v4, %v4218_v31  ;;  %v4221_v27 = vpop.f32.mrb[42].mxu0 }
 0x165   : > { %4750 = vmatprep.mubr.bf16.mxu1 %v6031_v20  ;;  %v4222_v26 = vpop.f32.mrb[43].mxu0 }
 0x166   : > { %2445 = vmatmul.mubr.bf16.gmra.mrb[144].mxu0 %v6695_v3  ;;  %v6268_v57 = vadd.f32 %v4222_v26, %v4221_v27 }
 0x167   : > { %2452 = vmatprep.mubr.bf16.mxu0 %v5932_v19 }
 0x16c   : > { %4751 = vmatmul.mubr.bf16.gmra.mrb[16].mxu1 %v6034_v60 }
 0x16d   : > { %4754 = vmatprep.mubr.bf16.mxu1 %v6042_v38  ;;  %v4224_v22 = vpop.f32.mrb[44].mxu0 }
 0x16e   : > { %2453 = vmatmul.mubr.bf16.gmra.mrb[148].mxu0 %v6696_v7  ;;  %v4225_v63 = vpop.f32.mrb[45].mxu0 }
 0x16f   : > { %v6274_v47 = vadd.f32 %v4225_v63, %v4224_v22  ;;  %v4227_v20 = vpop.f32.mrb[46].mxu0  ;;  %2460 = vmatprep.mubr.bf16.mxu0 %v5940_v17 }
 0x170   : > { %v4228_v29 = vpop.f32.mrb[47].mxu0 }
 0x171   : > { %v6277_v52 = vadd.f32 %v4228_v29, %v4227_v20 }
 0x174   : > { %4755 = vmatmul.mubr.bf16.gmra.mrb[20].mxu1 %v6050_v53 }
 0x175   : > { %4758 = vmatprep.mubr.bf16.mxu1 %v6059_v0  ;;  %v4230_v58 = vpop.f32.mrb[48].mxu0 }
 0x176   : > { %2461 = vmatmul.mubr.bf16.gmra.mrb[152].mxu0 %v5932_v19  ;;  %v4231_v60 = vpop.f32.mrb[49].mxu0 }
 0x177   : > { %v6282_v38 = vadd.f32 %v4231_v60, %v4230_v58  ;;  %v4233_v32 = vpop.f32.mrb[50].mxu0  ;;  %2468 = vmatprep.mubr.bf16.mxu0 %v5978_v50 }
 0x178   : > { %v4234_v43 = vpop.f32.mrb[51].mxu0 }
 0x179   : > { %v6285_v12 = vadd.f32 %v4234_v43, %v4233_v32 }
 0x17c   : > { %4759 = vmatmul.mubr.bf16.gmra.mrb[24].mxu1 %v6067_v41 }
 0x17d   : > { %4762 = vmatprep.mubr.bf16.mxu1 %v6072_v14 }
 0x17e   : > { %2469 = vmatmul.mubr.bf16.gmra.mrb[156].mxu0 %v5940_v17 }
 0x17f   : > { %v4236_v53 = vpop.f32.mrb[52].mxu0 }
 0x180   : > { %v4237_v0 = vpop.f32.mrb[53].mxu0 }
 0x181   : > { %v6290_v46 = vadd.f32 %v4237_v0, %v4236_v53  ;;  %v4239_v19 = vpop.f32.mrb[54].mxu0 }
 0x182   : > { %v4240_v1 = vpop.f32.mrb[55].mxu0 }
 0x183   : > { %v6292_v55 = vadd.f32 %v4240_v1, %v4239_v19 }
 0x184   : > { %4763 = vmatmul.mubr.bf16.gmra.mrb[28].mxu1 %v6014_v36 }
 0x188   : > { %v4242_v50 = vpop.f32.mrb[56].mxu0 }
 0x189   : > { %v4243_v56 = vpop.f32.mrb[57].mxu0 }
 0x18a   : > { %v6295_v15 = vadd.f32 %v4243_v56, %v4242_v50  ;;  %v4245_v8 = vpop.f32.mrb[58].mxu0 }
 0x18b   : > { %v4246_v41 = vpop.f32.mrb[59].mxu0 }
 0x18c   : > { %v6297_v13 = vadd.f32 %v4246_v41, %v4245_v8 }
 0x190   : > { %v4248_v14 = vpop.f32.mrb[60].mxu0 }
 0x191   : > { %v4249_v17 = vpop.f32.mrb[61].mxu0 }
 0x192   : > { %v6299_v39 = vadd.f32 %v4249_v17, %v4248_v14  ;;  %v4251_v16 = vpop.f32.mrb[62].mxu0 }
 0x193   : > { %v4252_v61 = vpop.f32.mrb[63].mxu0 }
 0x194   : > { %v6301_v6 = vadd.f32 %v4252_v61, %v4251_v16 }
 0x198   : > { %v4592_v9 = vpop.f32.mrb[64].mxu0 }
 0x199   : > { %v6304_v3 = vadd.f32 %v4592_v9, %v6181_v24  ;;  %v1488_v36 = vpop.f32.mrb[65].mxu0 }
 0x19a   : > { %v6307_v45 = vadd.f32 %v6172_v40, %v1488_v36  ;;  %v4593_v37 = vpop.f32.mrb[66].mxu0 }
 0x19b   : > { %v6310_v51 = vadd.f32 %v4593_v37, %v6185_v2  ;;  %v1491_v33 = vpop.f32.mrb[67].mxu0 }
 0x19c   : > { %v6313_v7 = vadd.f32 %v6176_v23, %v1491_v33 }
 0x19f   : > { %v4454_v31 = vpop.f32.mrb[32].mxu1 }
 0x1a0   : > { %v4455_v4 = vpop.f32.mrb[33].mxu1 }
 0x1a1   : > { %v6315_v27 = vadd.f32 %v4455_v4, %v4454_v31  ;;  %v4457_v26 = vpop.f32.mrb[34].mxu1  ;;  %v4596_v22 = vpop.f32.mrb[68].mxu0 }
 0x1a2   : > { %v4458_v24 = vpop.f32.mrb[35].mxu1  ;;  %v6318_v63 = vadd.f32 %v4596_v22, %v6199_v62  ;;  %v1504_v40 = vpop.f32.mrb[69].mxu0 }
 0x1a3   : > { %v6320_v20 = vadd.f32 %v4458_v24, %v4457_v26  ;;  %v6323_v2 = vadd.f32 %v6191_v49, %v1504_v40  ;;  %v4597_v29 = vpop.f32.mrb[70].mxu0 }
 0x1a4   : > { %v6326_v23 = vadd.f32 %v4597_v29, %v6202_v30  ;;  %v1507_v58 = vpop.f32.mrb[71].mxu0 }
 0x1a5   : > { %v6329_v60 = vadd.f32 %v6193_v10, %v1507_v58 }
 0x1a7   : > { %v4460_v32 = vpop.f32.mrb[36].mxu1 }
 0x1a8   : > { %v4461_v43 = vpop.f32.mrb[37].mxu1 }
 0x1a9   : > { %v6331_v53 = vadd.f32 %v4461_v43, %v4460_v32  ;;  %v4463_v62 = vpop.f32.mrb[38].mxu1  ;;  %v4600_v0 = vpop.f32.mrb[72].mxu0 }
 0x1aa   : > { %v4464_v19 = vpop.f32.mrb[39].mxu1  ;;  %v6334_v1 = vadd.f32 %v4600_v0, %v6219_v42  ;;  %v1520_v49 = vpop.f32.mrb[73].mxu0 }
 0x1ab   : > { %v6336_v50 = vadd.f32 %v4464_v19, %v4463_v62  ;;  %v6339_v30 = vadd.f32 %v6209_v28, %v1520_v49  ;;  %v4601_v56 = vpop.f32.mrb[74].mxu0 }
 0x1ac   : > { %v6342_v10 = vadd.f32 %v4601_v56, %v6221_v54  ;;  %v1523_v8 = vpop.f32.mrb[75].mxu0 }
 0x1ad   : > { %v6345_v41 = vadd.f32 %v6213_v35, %v1523_v8 }
 0x1af   : > { %v4466_v14 = vpop.f32.mrb[40].mxu1 }
 0x1b0   : > { %v4467_v17 = vpop.f32.mrb[41].mxu1 }
 0x1b1   : > { %v6347_v16 = vadd.f32 %v4467_v17, %v4466_v14  ;;  %v4469_v42 = vpop.f32.mrb[42].mxu1  ;;  %v4604_v61 = vpop.f32.mrb[76].mxu0 }
 0x1b2   : > { %v4470_v9 = vpop.f32.mrb[43].mxu1  ;;  %v6350_v36 = vadd.f32 %v4604_v61, %v6238_v34  ;;  %v1536_v28 = vpop.f32.mrb[77].mxu0 }
 0x1b3   : > { %v6352_v37 = vadd.f32 %v4470_v9, %v4469_v42  ;;  %v6355_v54 = vadd.f32 %v6227_v59, %v1536_v28  ;;  %v4605_v33 = vpop.f32.mrb[78].mxu0 }
 0x1b4   : > { %v6358_v35 = vadd.f32 %v4605_v33, %v6241_v11  ;;  %v1539_v31 = vpop.f32.mrb[79].mxu0 }
 0x1b5   : > { %v6361_v4 = vadd.f32 %v6231_v48, %v1539_v31 }
 0x1b7   : > { %v4472_v26 = vpop.f32.mrb[44].mxu1 }
 0x1b8   : > { %v4473_v22 = vpop.f32.mrb[45].mxu1 }
 0x1b9   : > { %v6363_v24 = vadd.f32 %v4473_v22, %v4472_v26  ;;  %v4475_v34 = vpop.f32.mrb[46].mxu1  ;;  %v4608_v40 = vpop.f32.mrb[80].mxu0 }
 0x1ba   : > { %v4476_v29 = vpop.f32.mrb[47].mxu1  ;;  %v6366_v58 = vadd.f32 %v4608_v40, %v6255_v18  ;;  %v1552_v59 = vpop.f32.mrb[81].mxu0 }
 0x1bb   : > { %v6368_v32 = vadd.f32 %v4476_v29, %v4475_v34  ;;  %v6371_v11 = vadd.f32 %v6247_v44, %v1552_v59  ;;  %v4609_v43 = vpop.f32.mrb[82].mxu0 }
 0x1bc   : > { %v6374_v48 = vadd.f32 %v4609_v43, %v6259_v21  ;;  %v1555_v62 = vpop.f32.mrb[83].mxu0 }
 0x1bd   : > { %v6377_v0 = vadd.f32 %v6251_v25, %v1555_v62 }
 0x1bf   : > { %v4478_v19 = vpop.f32.mrb[48].mxu1 }
 0x1c0   : > { %v4479_v49 = vpop.f32.mrb[49].mxu1 }
 0x1c1   : > { %v6379_v56 = vadd.f32 %v4479_v49, %v4478_v19  ;;  %v4481_v18 = vpop.f32.mrb[50].mxu1  ;;  %v4612_v8 = vpop.f32.mrb[84].mxu0 }
 0x1c2   : > { %v4482_v14 = vpop.f32.mrb[51].mxu1  ;;  %v6382_v17 = vadd.f32 %v4612_v8, %v6274_v47  ;;  %v1568_v44 = vpop.f32.mrb[85].mxu0 }
 0x1c3   : > { %v6384_v42 = vadd.f32 %v4482_v14, %v4481_v18  ;;  %v6387_v21 = vadd.f32 %v6265_v5, %v1568_v44  ;;  %v4613_v61 = vpop.f32.mrb[86].mxu0 }
 0x1c4   : > { %v6390_v25 = vadd.f32 %v4613_v61, %v6277_v52  ;;  %v1571_v9 = vpop.f32.mrb[87].mxu0 }
 0x1c5   : > { %v6393_v28 = vadd.f32 %v6268_v57, %v1571_v9 }
 0x1c7   : > { %v4484_v33 = vpop.f32.mrb[52].mxu1 }
 0x1c8   : > { %v4485_v31 = vpop.f32.mrb[53].mxu1 }
 0x1c9   : > { %v6395_v26 = vadd.f32 %v4485_v31, %v4484_v33  ;;  %v4487_v47 = vpop.f32.mrb[54].mxu1  ;;  %v4616_v22 = vpop.f32.mrb[88].mxu0 }
 0x1ca   : > { %v4488_v34 = vpop.f32.mrb[55].mxu1  ;;  %v6398_v40 = vadd.f32 %v4616_v22, %v6290_v46  ;;  %v1584_v5 = vpop.f32.mrb[89].mxu0 }
 0x1cb   : > { %v6400_v29 = vadd.f32 %v4488_v34, %v4487_v47  ;;  %v6403_v52 = vadd.f32 %v6282_v38, %v1584_v5  ;;  %v4617_v59 = vpop.f32.mrb[90].mxu0 }
 0x1cc   : > { %v6406_v57 = vadd.f32 %v4617_v59, %v6292_v55  ;;  %v1587_v43 = vpop.f32.mrb[91].mxu0 }
 0x1cd   : > { %v6409_v62 = vadd.f32 %v6285_v12, %v1587_v43 }
 0x1cf   : > { %v4490_v19 = vpop.f32.mrb[56].mxu1 }
 0x1d0   : > { %v4491_v49 = vpop.f32.mrb[57].mxu1 }
 0x1d1   : > { %v6411_v18 = vadd.f32 %v4491_v49, %v4490_v19  ;;  %v4493_v46 = vpop.f32.mrb[58].mxu1  ;;  %v4620_v8 = vpop.f32.mrb[92].mxu0 }
 0x1d2   : > { %v4494_v14 = vpop.f32.mrb[59].mxu1  ;;  %v6414_v44 = vadd.f32 %v4620_v8, %v6299_v39  ;;  %v1600_v38 = vpop.f32.mrb[93].mxu0 }
 0x1d3   : > { %v6416_v61 = vadd.f32 %v4494_v14, %v4493_v46  ;;  %v6419_v55 = vadd.f32 %v6295_v15, %v1600_v38  ;;  %v4621_v9 = vpop.f32.mrb[94].mxu0 }
 0x1d4   : > { %v6422_v12 = vadd.f32 %v4621_v9, %v6301_v6  ;;  %v1603_v33 = vpop.f32.mrb[95].mxu0 }
 0x1d5   : > { %v6425_v31 = vadd.f32 %v6297_v13, %v1603_v33 }
 0x1d7   : > { %v4496_v47 = vpop.f32.mrb[60].mxu1 }
 0x1d8   : > { %v4497_v22 = vpop.f32.mrb[61].mxu1 }
 0x1d9   : > { %v6427_v34 = vadd.f32 %v4497_v22, %v4496_v47  ;;  %v4499_v39 = vpop.f32.mrb[62].mxu1  ;;  %v4318_v5 = vpop.f32.mrb[96].mxu0 }
 0x1da   : > { %v4500_v59 = vpop.f32.mrb[63].mxu1  ;;  %v4319_v43 = vpop.f32.mrb[97].mxu0 }
 0x1db   : > { %v6429_v19 = vadd.f32 %v4500_v59, %v4499_v39  ;;  %v4320_v15 = vadd.f32 %v4319_v43, %v4318_v5  ;;  %v4321_v49 = vpop.f32.mrb[98].mxu0 }
 0x1dc   : > { %v4322_v46 = vpop.f32.mrb[99].mxu0 }
 0x1dd   : > { %v4771_v6 = vadd.f32 %v4320_v15, %v6307_v45  ;;  %v4323_v8 = vadd.f32 %v4322_v46, %v4321_v49 }
 0x1df   : > { %v4779_v14 = vadd.f32 %v4323_v8, %v6313_v7  ;;  %v4502_v13 = vpop.f32.mrb[64].mxu1  ;;  %v6434_v38 = vadd.f32 %v4771_v6, %v6315_v27 }
 0x1e0   : > { %v4503_v9 = vpop.f32.mrb[65].mxu1 }
 0x1e1   : > { %v6436_v33 = vadd.f32 %v4503_v9, %v4502_v13  ;;  %v4505_v47 = vpop.f32.mrb[66].mxu1  ;;  %v4324_v22 = vpop.f32.mrb[100].mxu0  ;;  %v6439_v39 = vadd.f32 %v4779_v14, %v6320_v20 }
 0x1e2   : > { %v4506_v5 = vpop.f32.mrb[67].mxu1  ;;  %v4325_v59 = vpop.f32.mrb[101].mxu0 }
 0x1e3   : > { %v6441_v43 = vadd.f32 %v4506_v5, %v4505_v47  ;;  %v4326_v45 = vadd.f32 %v4325_v59, %v4324_v22  ;;  %v4327_v15 = vpop.f32.mrb[102].mxu0 }
 0x1e4   : > { %v4328_v49 = vpop.f32.mrb[103].mxu0 }
 0x1e5   : > { %v4767_v7 = vadd.f32 %v4326_v45, %v6304_v3  ;;  %v4329_v46 = vadd.f32 %v4328_v49, %v4327_v15 }
 0x1e7   : > { %v4775_v27 = vadd.f32 %v4329_v46, %v6310_v51  ;;  %v4508_v6 = vpop.f32.mrb[68].mxu1  ;;  %v6446_v8 = vadd.f32 %v4767_v7, %v6331_v53 }
 0x1e8   : > { %v4509_v13 = vpop.f32.mrb[69].mxu1 }
 0x1e9   : > { %v6448_v9 = vadd.f32 %v4509_v13, %v4508_v6  ;;  %v4511_v20 = vpop.f32.mrb[70].mxu1  ;;  %v4330_v14 = vpop.f32.mrb[104].mxu0  ;;  %v6451_v47 = vadd.f32 %v4775_v27, %v6336_v50 }
 0x1ea   : > { %v4512_v22 = vpop.f32.mrb[71].mxu1  ;;  %v4331_v5 = vpop.f32.mrb[105].mxu0 }
 0x1eb   : > { %v6453_v59 = vadd.f32 %v4512_v22, %v4511_v20  ;;  %v4332_v3 = vadd.f32 %v4331_v5, %v4330_v14  ;;  %v4333_v45 = vpop.f32.mrb[106].mxu0 }
 0x1ec   : > { %v4334_v15 = vpop.f32.mrb[107].mxu0 }
 0x1ed   : > { %v4787_v51 = vadd.f32 %v4332_v3, %v6323_v2  ;;  %v4335_v49 = vadd.f32 %v4334_v15, %v4333_v45 }
 0x1ef   : > { %v4795_v53 = vadd.f32 %v4335_v49, %v6329_v60  ;;  %v4514_v7 = vpop.f32.mrb[72].mxu1  ;;  %v6458_v46 = vadd.f32 %v4787_v51, %v6347_v16 }
 0x1f0   : > { %v4515_v6 = vpop.f32.mrb[73].mxu1 }
 0x1f1   : > { %v6460_v13 = vadd.f32 %v4515_v6, %v4514_v7  ;;  %v4517_v50 = vpop.f32.mrb[74].mxu1  ;;  %v4336_v27 = vpop.f32.mrb[108].mxu0  ;;  %v6463_v20 = vadd.f32 %v4795_v53, %v6352_v37 }
 0x1f2   : > { %v4518_v14 = vpop.f32.mrb[75].mxu1  ;;  %v4337_v22 = vpop.f32.mrb[109].mxu0 }
 0x1f3   : > { %v6465_v5 = vadd.f32 %v4518_v14, %v4517_v50  ;;  %v4338_v2 = vadd.f32 %v4337_v22, %v4336_v27  ;;  %v4339_v3 = vpop.f32.mrb[110].mxu0 }
 0x1f4   : > { %v4340_v45 = vpop.f32.mrb[111].mxu0 }
 0x1f5   : > { %v4783_v60 = vadd.f32 %v4338_v2, %v6318_v63  ;;  %v4341_v15 = vadd.f32 %v4340_v45, %v4339_v3 }
 0x1f7   : > { %v4791_v16 = vadd.f32 %v4341_v15, %v6326_v23  ;;  %v4520_v51 = vpop.f32.mrb[76].mxu1  ;;  %v6470_v49 = vadd.f32 %v4783_v60, %v6363_v24 }
 0x1f8   : > { %v4521_v7 = vpop.f32.mrb[77].mxu1 }
 0x1f9   : > { %v6472_v6 = vadd.f32 %v4521_v7, %v4520_v51  ;;  %v4523_v37 = vpop.f32.mrb[78].mxu1  ;;  %v4342_v53 = vpop.f32.mrb[112].mxu0  ;;  %v6475_v50 = vadd.f32 %v4791_v16, %v6368_v32 }
 0x1fa   : > { %v4524_v27 = vpop.f32.mrb[79].mxu1  ;;  %v4343_v14 = vpop.f32.mrb[113].mxu0 }
 0x1fb   : > { %v6477_v22 = vadd.f32 %v4524_v27, %v4523_v37  ;;  %v4344_v63 = vadd.f32 %v4343_v14, %v4342_v53  ;;  %v4345_v2 = vpop.f32.mrb[114].mxu0 }
 0x1fc   : > { %v4346_v3 = vpop.f32.mrb[115].mxu0 }
 0x1fd   : > { %v4803_v23 = vadd.f32 %v4344_v63, %v6339_v30  ;;  %v4347_v45 = vadd.f32 %v4346_v3, %v4345_v2 }
 0x1ff   : > { %v4811_v24 = vadd.f32 %v4347_v45, %v6345_v41  ;;  %v4526_v60 = vpop.f32.mrb[80].mxu1  ;;  %v6482_v15 = vadd.f32 %v4803_v23, %v6379_v56 }
 0x200   : > { %v4527_v51 = vpop.f32.mrb[81].mxu1 }
 0x201   : > { %v6484_v7 = vadd.f32 %v4527_v51, %v4526_v60  ;;  %v4529_v32 = vpop.f32.mrb[82].mxu1  ;;  %v4348_v16 = vpop.f32.mrb[116].mxu0  ;;  %v6487_v37 = vadd.f32 %v4811_v24, %v6384_v42 }
 0x202   : > { %v4530_v53 = vpop.f32.mrb[83].mxu1  ;;  %v4349_v27 = vpop.f32.mrb[117].mxu0 }
 0x203   : > { %v6489_v14 = vadd.f32 %v4530_v53, %v4529_v32  ;;  %v4350_v30 = vadd.f32 %v4349_v27, %v4348_v16  ;;  %v4351_v63 = vpop.f32.mrb[118].mxu0 }
 0x204   : > { %v4352_v2 = vpop.f32.mrb[119].mxu0 }
 0x205   : > { %v4799_v41 = vadd.f32 %v4350_v30, %v6334_v1  ;;  %v4353_v3 = vadd.f32 %v4352_v2, %v4351_v63 }
 0x207   : > { %v4807_v56 = vadd.f32 %v4353_v3, %v6342_v10  ;;  %v4532_v23 = vpop.f32.mrb[84].mxu1  ;;  %v6494_v45 = vadd.f32 %v4799_v41, %v6395_v26 }
 0x208   : > { %v4533_v60 = vpop.f32.mrb[85].mxu1 }
 0x209   : > { %v6496_v51 = vadd.f32 %v4533_v60, %v4532_v23  ;;  %v4535_v42 = vpop.f32.mrb[86].mxu1  ;;  %v4354_v24 = vpop.f32.mrb[120].mxu0  ;;  %v6499_v32 = vadd.f32 %v4807_v56, %v6400_v29 }
 0x20a   : > { %v4536_v16 = vpop.f32.mrb[87].mxu1  ;;  %v4355_v53 = vpop.f32.mrb[121].mxu0 }
 0x20b   : > { %v6501_v27 = vadd.f32 %v4536_v16, %v4535_v42  ;;  %v4356_v1 = vadd.f32 %v4355_v53, %v4354_v24  ;;  %v4357_v30 = vpop.f32.mrb[122].mxu0 }
 0x20c   : > { %v4358_v63 = vpop.f32.mrb[123].mxu0 }
 0x20d   : > { %v4819_v10 = vadd.f32 %v4356_v1, %v6355_v54  ;;  %v4359_v2 = vadd.f32 %v4358_v63, %v4357_v30 }
 0x20f   : > { %v4827_v26 = vadd.f32 %v4359_v2, %v6361_v4  ;;  %v4538_v41 = vpop.f32.mrb[88].mxu1  ;;  %v6506_v3 = vadd.f32 %v4819_v10, %v6411_v18 }
 0x210   : > { %v4539_v23 = vpop.f32.mrb[89].mxu1 }
 0x211   : > { %v6508_v60 = vadd.f32 %v4539_v23, %v4538_v41  ;;  %v4541_v29 = vpop.f32.mrb[90].mxu1  ;;  %v4360_v56 = vpop.f32.mrb[124].mxu0  ;;  %v6511_v42 = vadd.f32 %v4827_v26, %v6416_v61 }
 0x212   : > { %v4542_v24 = vpop.f32.mrb[91].mxu1  ;;  %v4361_v16 = vpop.f32.mrb[125].mxu0 }
 0x213   : > { %v6513_v53 = vadd.f32 %v4542_v24, %v4541_v29  ;;  %v4362_v54 = vadd.f32 %v4361_v16, %v4360_v56  ;;  %v4363_v1 = vpop.f32.mrb[126].mxu0 }
 0x214   : > { %v4364_v30 = vpop.f32.mrb[127].mxu0 }
 0x215   : > { %v4815_v4 = vadd.f32 %v4362_v54, %v6350_v36  ;;  %v4365_v63 = vadd.f32 %v4364_v30, %v4363_v1 }
 0x217   : > { %v4823_v18 = vadd.f32 %v4365_v63, %v6358_v35  ;;  %v4544_v10 = vpop.f32.mrb[92].mxu1  ;;  %v6518_v2 = vadd.f32 %v4815_v4, %v6427_v34 }
 0x218   : > { %v4545_v41 = vpop.f32.mrb[93].mxu1 }
 0x219   : > { %v6520_v23 = vadd.f32 %v4545_v41, %v4544_v10  ;;  %v4547_v61 = vpop.f32.mrb[94].mxu1  ;;  %v4366_v26 = vpop.f32.mrb[128].mxu0  ;;  %v6523_v29 = vadd.f32 %v4823_v18, %v6429_v19 }
 0x21a   : > { %v4548_v56 = vpop.f32.mrb[95].mxu1  ;;  %v4367_v24 = vpop.f32.mrb[129].mxu0 }
 0x21b   : > { %v6525_v16 = vadd.f32 %v4548_v56, %v4547_v61  ;;  %v4368_v36 = vadd.f32 %v4367_v24, %v4366_v26  ;;  %v4369_v54 = vpop.f32.mrb[130].mxu0 }
 0x21c   : > { %v4370_v35 = vpop.f32.mrb[131].mxu0 }
 0x21d   : > { %v4835_v1 = vadd.f32 %v4368_v36, %v6371_v11  ;;  %v4371_v34 = vadd.f32 %v4370_v35, %v4369_v54 }
 0x21f   : > { %v4736_v30 = vpop.f32.mrb[0].mxu1  ;;  %v4843_v4 = vadd.f32 %v4371_v34, %v6377_v0  ;;  %v6530_v63 = vadd.f32 %v4835_v1, %v6436_v33 }
 0x220   : > { %v4769_v10 = vadd.f32 %v6446_v8, %v4736_v30  ;;  %v3167_v19 = vpop.f32.mrb[1].mxu1 }
 0x221   : > { %v4773_v18 = vadd.f32 %v6434_v38, %v3167_v19  ;;  %v4737_v41 = vpop.f32.mrb[2].mxu1  ;;  %v4372_v61 = vpop.f32.mrb[132].mxu0  ;;  %v6536_v26 = vadd.f32 %v4843_v4, %v6441_v43 }
 0x222   : > { %v4777_v11 = vadd.f32 %v6451_v47, %v4737_v41  ;;  %v3170_v56 = vpop.f32.mrb[3].mxu1  ;;  %v4373_v24 = vpop.f32.mrb[133].mxu0 }
 0x223   : > { %v4781_v0 = vadd.f32 %v6439_v39, %v3170_v56  ;;  %v4374_v33 = vadd.f32 %v4373_v24, %v4372_v61  ;;  %v4375_v38 = vpop.f32.mrb[134].mxu0 }
 0x224   : > { %v4047_v8 = vpack.c.bf16 %v4777_v11, %v4769_v10  ;;  %v4376_v36 = vpop.f32.mrb[135].mxu0 }
 0x225   : > { %v4042_v54 = vpack.c.bf16 %v4781_v0, %v4773_v18  ;;  %v4831_v43 = vadd.f32 %v4374_v33, %v6366_v58  ;;  %v4377_v35 = vadd.f32 %v4376_v36, %v4375_v38 }
 0x226   : > { %4127 = vst [vmem:[%s6542_s9 + $0x8] sm:$0xff] %v4047_v8  }
 0x227   : > { %4043 = vst [vmem:[%s6542_s9] sm:$0xff] %v4042_v54   ;;  %v4740_v47 = vpop.f32.mrb[4].mxu1  ;;  %v4839_v1 = vadd.f32 %v4377_v35, %v6374_v48  ;;  %v6550_v34 = vadd.f32 %v4831_v43, %v6448_v9 }
 0x228   : > { %v4785_v30 = vadd.f32 %v6470_v49, %v4740_v47  ;;  %v3183_v4 = vpop.f32.mrb[5].mxu1 }
 0x229   : > { %v4789_v39 = vadd.f32 %v6458_v46, %v3183_v4  ;;  %v4741_v10 = vpop.f32.mrb[6].mxu1  ;;  %v4378_v19 = vpop.f32.mrb[136].mxu0  ;;  %v6555_v58 = vadd.f32 %v4839_v1, %v6453_v59 }
 0x22a   : > { %v4793_v18 = vadd.f32 %v6475_v50, %v4741_v10  ;;  %v3186_v41 = vpop.f32.mrb[7].mxu1  ;;  %v4379_v61 = vpop.f32.mrb[137].mxu0 }
 0x22b   : > { %v4797_v48 = vadd.f32 %v6463_v20, %v3186_v41  ;;  %v4380_v9 = vadd.f32 %v4379_v61, %v4378_v19  ;;  %v4381_v11 = vpop.f32.mrb[138].mxu0 }
 0x22c   : > { %v4057_v56 = vpack.c.bf16 %v4793_v18, %v4785_v30  ;;  %v4382_v49 = vpop.f32.mrb[139].mxu0 }
 0x22d   : > { %v4052_v24 = vpack.c.bf16 %v4797_v48, %v4789_v39  ;;  %v4851_v0 = vadd.f32 %v4380_v9, %v6387_v21  ;;  %v4383_v46 = vadd.f32 %v4382_v49, %v4381_v11 }
 0x22e   : > { %4129 = vst [vmem:[%s6542_s9 + $0x18] sm:$0xff] %v4057_v56  }
 0x22f   : > { %4128 = vst [vmem:[%s6542_s9 + $0x10] sm:$0xff] %v4052_v24   ;;  %v4744_v33 = vpop.f32.mrb[8].mxu1  ;;  %v4859_v59 = vadd.f32 %v4383_v46, %v6393_v28  ;;  %v6564_v38 = vadd.f32 %v4851_v0, %v6460_v13 }
 0x230   : > { %v4801_v50 = vadd.f32 %v6494_v45, %v4744_v33  ;;  %v3199_v8 = vpop.f32.mrb[9].mxu1 }
 0x231   : > { %v4805_v20 = vadd.f32 %v6482_v15, %v3199_v8  ;;  %v4745_v36 = vpop.f32.mrb[10].mxu1  ;;  %v4384_v54 = vpop.f32.mrb[140].mxu0  ;;  %v6569_v21 = vadd.f32 %v4859_v59, %v6465_v5 }
 0x232   : > { %v4809_v43 = vadd.f32 %v6499_v32, %v4745_v36  ;;  %v3202_v35 = vpop.f32.mrb[11].mxu1  ;;  %v4385_v47 = vpop.f32.mrb[141].mxu0 }
 0x233   : > { %v4813_v28 = vadd.f32 %v6487_v37, %v3202_v35  ;;  %v4386_v13 = vadd.f32 %v4385_v47, %v4384_v54  ;;  %v4387_v1 = vpop.f32.mrb[142].mxu0 }
 0x234   : > { %v4067_v30 = vpack.c.bf16 %v4809_v43, %v4801_v50  ;;  %v4388_v45 = vpop.f32.mrb[143].mxu0 }
 0x235   : > { %v4062_v4 = vpack.c.bf16 %v4813_v28, %v4805_v20  ;;  %v4847_v39 = vadd.f32 %v4386_v13, %v6382_v17  ;;  %v4389_v15 = vadd.f32 %v4388_v45, %v4387_v1 }
 0x236   : > { %4131 = vst [vmem:[%s6542_s9 + $0x28] sm:$0xff] %v4067_v30  }
 0x237   : > { %4130 = vst [vmem:[%s6542_s9 + $0x20] sm:$0xff] %v4062_v4   ;;  %v4748_v10 = vpop.f32.mrb[12].mxu1  ;;  %v4855_v5 = vadd.f32 %v4389_v15, %v6390_v25  ;;  %v4848_v19 = vadd.f32 %v4847_v39, %v6472_v6 }
 0x238   : > { %v4817_v32 = vadd.f32 %v6518_v2, %v4748_v10  ;;  %v3215_v18 = vpop.f32.mrb[13].mxu1 }
 0x239   : > { %v4821_v37 = vadd.f32 %v6506_v3, %v3215_v18  ;;  %v4749_v41 = vpop.f32.mrb[14].mxu1  ;;  %v4390_v61 = vpop.f32.mrb[144].mxu0  ;;  %v4856_v48 = vadd.f32 %v4855_v5, %v6477_v22 }
 0x23a   : > { %v4825_v17 = vadd.f32 %v6523_v29, %v4749_v41  ;;  %v3218_v9 = vpop.f32.mrb[15].mxu1  ;;  %v4391_v11 = vpop.f32.mrb[145].mxu0 }
 0x23b   : > { %v4829_v56 = vadd.f32 %v6511_v42, %v3218_v9  ;;  %v4392_v25 = vadd.f32 %v4391_v11, %v4390_v61  ;;  %v4393_v49 = vpop.f32.mrb[146].mxu0 }
 0x23c   : > { %v4077_v6 = vpack.c.bf16 %v4825_v17, %v4817_v32  ;;  %v4394_v24 = vpop.f32.mrb[147].mxu0 }
 0x23d   : > { %v4072_v2 = vpack.c.bf16 %v4829_v56, %v4821_v37  ;;  %v4867_v0 = vadd.f32 %v4392_v25, %v6403_v52  ;;  %v4395_v46 = vadd.f32 %v4394_v24, %v4393_v49 }
 0x23e   : > { %4133 = vst [vmem:[%s6542_s9 + $0x38] sm:$0xff] %v4077_v6  }
 0x23f   : > { %4132 = vst [vmem:[%s6542_s9 + $0x30] sm:$0xff] %v4072_v2   ;;  %v4752_v3 = vpop.f32.mrb[16].mxu1  ;;  %v4875_v33 = vadd.f32 %v4395_v46, %v6409_v62  ;;  %v4868_v22 = vadd.f32 %v4867_v0, %v6484_v7 }
 0x240   : > { %v4833_v29 = vadd.f32 %v6550_v34, %v4752_v3  ;;  %v3231_v59 = vpop.f32.mrb[17].mxu1 }
 0x241   : > { %v4837_v42 = vadd.f32 %v6530_v63, %v3231_v59  ;;  %v4753_v50 = vpop.f32.mrb[18].mxu1  ;;  %v4396_v8 = vpop.f32.mrb[148].mxu0  ;;  %v4876_v20 = vadd.f32 %v4875_v33, %v6489_v14 }
 0x242   : > { %v4841_v52 = vadd.f32 %v6555_v58, %v4753_v50  ;;  %v3234_v36 = vpop.f32.mrb[19].mxu1  ;;  %v4397_v54 = vpop.f32.mrb[149].mxu0 }
 0x243   : > { %v4845_v43 = vadd.f32 %v6536_v26, %v3234_v36  ;;  %v4398_v62 = vadd.f32 %v4397_v54, %v4396_v8  ;;  %v4399_v35 = vpop.f32.mrb[150].mxu0 }
 0x244   : > { %v4087_v7 = vpack.c.bf16 %v4841_v52, %v4833_v29  ;;  %v4400_v47 = vpop.f32.mrb[151].mxu0 }
 0x245   : > { %v4082_v34 = vpack.c.bf16 %v4845_v43, %v4837_v42  ;;  %v4863_v28 = vadd.f32 %v4398_v62, %v6398_v40  ;;  %v4401_v13 = vadd.f32 %v4400_v47, %v4399_v35 }
 0x246   : > { %4135 = vst [vmem:[%s6542_s9 + $0x48] sm:$0xff] %v4087_v7  }
 0x247   : > { %4134 = vst [vmem:[%s6542_s9 + $0x40] sm:$0xff] %v4082_v34   ;;  %v4756_v63 = vpop.f32.mrb[20].mxu1  ;;  %v4871_v1 = vadd.f32 %v4401_v13, %v6406_v57  ;;  %v4864_v14 = vadd.f32 %v4863_v28, %v6496_v51 }
 0x248   : > { %v4849_v58 = vadd.f32 %v4848_v19, %v4756_v63  ;;  %v3247_v30 = vpop.f32.mrb[21].mxu1 }
 0x249   : > { %v4853_v26 = vadd.f32 %v6564_v38, %v3247_v30  ;;  %v4757_v45 = vpop.f32.mrb[22].mxu1  ;;  %v4402_v4 = vpop.f32.mrb[152].mxu0  ;;  %v4872_v39 = vadd.f32 %v4871_v1, %v6501_v27 }
 0x24a   : > { %v4857_v15 = vadd.f32 %v4856_v48, %v4757_v45  ;;  %v3250_v40 = vpop.f32.mrb[23].mxu1  ;;  %v4403_v10 = vpop.f32.mrb[153].mxu0 }
 0x24b   : > { %v4861_v5 = vadd.f32 %v6569_v21, %v3250_v40  ;;  %v4404_v32 = vadd.f32 %v4403_v10, %v4402_v4  ;;  %v4405_v18 = vpop.f32.mrb[154].mxu0 }
 0x24c   : > { %v4097_v57 = vpack.c.bf16 %v4857_v15, %v4849_v58  ;;  %v4406_v37 = vpop.f32.mrb[155].mxu0 }
 0x24d   : > { %v4092_v51 = vpack.c.bf16 %v4861_v5, %v4853_v26  ;;  %v4883_v19 = vadd.f32 %v4404_v32, %v6419_v55  ;;  %v4407_v41 = vadd.f32 %v4406_v37, %v4405_v18 }
 0x24e   : > { %4137 = vst [vmem:[%s6542_s9 + $0x58] sm:$0xff] %v4097_v57  }
 0x24f   : > { %4136 = vst [vmem:[%s6542_s9 + $0x50] sm:$0xff] %v4092_v51   ;;  %v4760_v38 = vpop.f32.mrb[24].mxu1  ;;  %v4891_v61 = vadd.f32 %v4407_v41, %v6425_v31  ;;  %v4884_v27 = vadd.f32 %v4883_v19, %v6508_v60 }
 0x250   : > { %v4865_v48 = vadd.f32 %v4864_v14, %v4760_v38  ;;  %v3263_v17 = vpop.f32.mrb[25].mxu1 }
 0x251   : > { %v4869_v9 = vadd.f32 %v4868_v22, %v3263_v17  ;;  %v4761_v21 = vpop.f32.mrb[26].mxu1  ;;  %v4408_v11 = vpop.f32.mrb[156].mxu0  ;;  %v4892_v56 = vadd.f32 %v4891_v61, %v6513_v53 }
 0x252   : > { %v4873_v25 = vadd.f32 %v4872_v39, %v4761_v21  ;;  %v3266_v49 = vpop.f32.mrb[27].mxu1  ;;  %v4409_v55 = vpop.f32.mrb[157].mxu0 }
 0x253   : > { %v4877_v6 = vadd.f32 %v4876_v20, %v3266_v49  ;;  %v4410_v24 = vadd.f32 %v4409_v55, %v4408_v11  ;;  %v4411_v2 = vpop.f32.mrb[158].mxu0 }
 0x254   : > { %v4107_v0 = vpack.c.bf16 %v4873_v25, %v4865_v48  ;;  %v4412_v46 = vpop.f32.mrb[159].mxu0 }
 0x255   : > { %v4102_v31 = vpack.c.bf16 %v4877_v6, %v4869_v9  ;;  %v4879_v60 = vadd.f32 %v4410_v24, %v6414_v44  ;;  %v4413_v3 = vadd.f32 %v4412_v46, %v4411_v2 }
 0x256   : > { %4139 = vst [vmem:[%s6542_s9 + $0x68] sm:$0xff] %v4107_v0  }
 0x257   : > { %4138 = vst [vmem:[%s6542_s9 + $0x60] sm:$0xff] %v4102_v31   ;;  %v4764_v33 = vpop.f32.mrb[28].mxu1  ;;  %v4880_v22 = vadd.f32 %v4879_v60, %v6520_v23  ;;  %v4887_v53 = vadd.f32 %v4413_v3, %v6422_v12 }
 0x258   : > { %v3279_v29 = vpop.f32.mrb[29].mxu1 }
 0x259   : > { %v4881_v59 = vadd.f32 %v4880_v22, %v4764_v33  ;;  %v4885_v42 = vadd.f32 %v4884_v27, %v3279_v29  ;;  %v4765_v50 = vpop.f32.mrb[30].mxu1  ;;  %v4888_v8 = vadd.f32 %v4887_v53, %v6525_v16 }
 0x25a   : > { %v3282_v20 = vpop.f32.mrb[31].mxu1 }
 0x25b   : > { %v4889_v52 = vadd.f32 %v4888_v8, %v4765_v50  ;;  %v4893_v36 = vadd.f32 %v4892_v56, %v3282_v20 }
 0x25d   : > { %v4117_v44 = vpack.c.bf16 %v4889_v52, %v4881_v59  ;;  %v4112_v54 = vpack.c.bf16 %v4893_v36, %v4885_v42 }
 0x25f   : > { %4141 = vst [vmem:[%s6542_s9 + $0x78] sm:$0xff] %v4117_v44   ;;  %4140 = vst [vmem:[%s6542_s9 + $0x70] sm:$0xff] %v4112_v54  }
 0x260 PF: > { %s15_s18 = sadd.s32 1, %s5056_s18  }
 0x261   : > { %p12_p4 = scmp.ge.s32.totalorder %s15_s18, 4  }
 0x263   :  { %14 = sbr.rel (!%p12_p4) target bundleno = 1 (0x1), region = 76 }

// kernel: residual_block_forward.4
= control target key start
LH: loop header
LB: loop body
LE: loop exit
PB: predicated region body
PF: predicated region fallthrough
CT: control target
= control target key end

     0   :  { %s4699_s15 = smov 0   ;;  %s6711_s0 = inlined_call_operand.vmem [shape: bf16[2,18,18,128], index: 0, kind: input, shape index: {}]   ;;  %s6712_s1 = inlined_call_operand.vmem [shape: f32[2,128], index: 1, kind: input, shape index: {}]   ;;  %s6713_s2 = inlined_call_operand.vmem [shape: bf16[3,384,128], index: 2, kind: input, shape index: {}]   ;;  %s6714_s3 = inlined_call_operand.vmem [shape: bf16[2,18,18,128], index: 3, kind: output, shape index: {0}]   ;;  %s6715_s4 = inlined_call_operand.vmem [shape: f32[2,2,128], index: 4, kind: output, shape index: {1}]  }
   0x1 LB: > { %s3351_s16 = sadd.s32 4294967295, %s4669_s15   ;;  %p3355_p0 = scmp.ge.s32.totalorder %s4669_s15, 1  ;;  %s4669_s15 = sphi %s4699_s15, %s15_s15  }
   0x2   : > { %p165_p1 = scmp.lt.s32.totalorder %s4669_s15, 3 }
   0x4   : > { %p166_p2 = pnand %p3355_p0, %p165_p1 }
   0x6   : > { %169 = sbr.rel (%p166_p2) target bundleno = 653 (0x28d), region = 32 }
   0xd   : > { %v4591_v0 = vld [vmem:[%s6713_s2 + $0x100] sm:$0xff]   ;;  %p195_p3 = scmp.lt.s32.totalorder %s3351_s16, 1  ;;  %v4594_v3 = vld [vmem:[%s6713_s2 + $0x108] sm:$0xff]   ;;  %v4597_v6 = vld [vmem:[%s6713_s2 + $0x110] sm:$0xff]   ;;  %v4671_v12 = vmov 0   ;;  %v319_v15 = vlaneseq  ;;  %vm4672_vm3 = vmmov 1  }
   0xe   : > { %v4713_v1 = vld [vmem:[%s6713_s2 + $0x140] sm:$0xff]   ;;  %3851 = vmatprep.subr.bf16.mxu0 %v4591_v0  ;;  %v4728_v4 = vld [vmem:[%s6713_s2 + $0x148] sm:$0xff]   ;;  %v4741_v7 = vld [vmem:[%s6713_s2 + $0x150] sm:$0xff]   ;;  %v4954_v41 = vrot.slane %v4671_v12, 1  ;;  %vm661_vm2 = vsmask.f32 7424 }
   0xf   : > { %v4593_v2 = vld [vmem:[%s6713_s2 + $0xc0] sm:$0xff]   ;;  %s6894_s16 = smov (!%p195_p3, %s3351_s16), 1  ;;  %4403 = vmatprep.subr.bf16.mxu1 %v4713_v1  ;;  %v4596_v5 = vld [vmem:[%s6713_s2 + $0xc8] sm:$0xff]   ;;  %v4599_v8 = vld [vmem:[%s6713_s2 + $0xd0] sm:$0xff]   ;;  %v4900_v19 = vshrl.u32 %v319_v15, 7  ;;  %vm1913_vm5 = vcmask 1046528  }
  0x10   : > { %3852 = vmatpush3.bf16.msra.mxu0 %v4593_v2  ;;  %4411 = vmatpush3.bf16.msra.mxu1 %v4713_v1  ;;  %s4579_s5 = smul.u32 216, %s6894_s16  ;;  %v4600_v9 = vld [vmem:[%s6713_s2 + $0x118] sm:$0xff]   ;;  %v4603_v13 = vld [vmem:[%s6713_s2 + $0x120] sm:$0xff]   ;;  %v4606_v17 = vld [vmem:[%s6713_s2 + $0x128] sm:$0xff]   ;;  %vm3007_vm6 = vcmask 1043456   ;;  %vm3014_vm9 = vcmask 1040384  }
  0x11   : > { %3853 = vmatprep.subr.bf16.mxu0 %v4594_v3  ;;  %4404 = vmatprep.subr.bf16.mxu1 %v4728_v4  ;;  %v4761_v10 = vld [vmem:[%s6713_s2 + $0x158] sm:$0xff]   ;;  %v4884_v14 = vld [vmem:[%s6713_s2 + $0x160] sm:$0xff]   ;;  %v4898_v18 = vld [vmem:[%s6713_s2 + $0x168] sm:$0xff]   ;;  %v4910_v22 = vadd.s32 16, %v4900_v19  ;;  %v321_v24 = vsub.s32 0, %v4900_v19  ;;  %v379_v26 = vsub.s32 1, %v4900_v19 }
  0x12   : > { %s4752_s12 = scalar_lea.vmem %s6714_s3, %s4579_s5  ;;  %v4766_v11 = vld [vmem:[%s6713_s2 + $0xd8] sm:$0xff]   ;;  %v4605_v16 = vld [vmem:[%s6713_s2 + $0xe0] sm:$0xff]   ;;  %v4608_v20 = vld [vmem:[%s6713_s2 + $0xe8] sm:$0xff]   ;;  %s4923_s17 = scalar_lea.vmem %s6711_s0, %s4579_s5  ;;  %vm493_vm0 = vcmp.ge.s32.totalorder %v4900_v19, 1  ;;  %vm3008_vm7 = vsmask.f32 7938 }
  0x13   : > { %2549 = vst [vmem:[%s4752_s12] sm:$0xf] %v4671_v12  ;;  %2550 = vst [vmem:[%s4752_s12 + $0x4] sm:$0xf] %v4671_v12  ;;  %v4609_v21 = vld [vmem:[%s6713_s2 + $0x130] sm:$0xff]   ;;  %v4612_v27 = vld [vmem:[%s6713_s2 + $0x138] sm:$0xff]   ;;  %vm504_vm1 = vcmp.le.s32.totalorder %v4910_v22, 16 }
  0x14   : > { %3854 = vmatpush3.bf16.msra.mxu0 %v4596_v5  ;;  %4412 = vmatpush3.bf16.msra.mxu1 %v4728_v4  ;;  %2551 = vst [vmem:[%s4752_s12 + $0x8] sm:$0x1] %v4671_v12  ;;  %2552 = vst [vmem:[%s4752_s12 + $0xc] sm:$0xf] %v4671_v12  ;;  %v4916_v23 = vld [vmem:[%s6713_s2 + $0x170] sm:$0xff]   ;;  %v4945_v31 = vld [vmem:[%s6713_s2 + $0x178] sm:$0xff]  }
  0x15   : > { %3855 = vmatprep.subr.bf16.mxu0 %v4597_v6  ;;  %4405 = vmatprep.subr.bf16.mxu1 %v4741_v7  ;;  %2553 = vst [vmem:[%s4752_s12 + $0x10] sm:$0xf] %v4671_v12  ;;  %2554 = vst [vmem:[%s4752_s12 + $0x14] sm:$0x1] %v4671_v12  ;;  %v4611_v25 = vld [vmem:[%s6713_s2 + $0xf0] sm:$0xff]   ;;  %v3847_v36 = vld [vmem:[%s4923_s17 + $0x78] sm:$0xff]  }
  0x16   : > { %2555 = vst [vmem:[%s4752_s12 + $0x18] sm:$0xf] %v4671_v12  ;;  %2556 = vst [vmem:[%s4752_s12 + $0x1c] sm:$0xf] %v4671_v12  ;;  %v213_v28 = vld [vmem:[%s4923_s17 + $0xc] sm:$0xff]   ;;  %v3829_v39 = vunpack.c.l.bf16 %v3847_v36  ;;  %v3830_v40 = vunpack.c.h.bf16 %v3847_v36  ;;  %v243_v42 = vld [vmem:[%s4923_s17 + $0x84] sm:$0xff]  }
  0x17   : > { %2557 = vst [vmem:[%s4752_s12 + $0x20] sm:$0x1] %v4671_v12  ;;  %2558 = vst [vmem:[%s4752_s12 + $0x24] sm:$0xf] %v4671_v12  ;;  %v215_v29 = vld [vmem:[%s4923_s17 + $0x14] sm:$0x1]  ;;  %v267_v32 = vunpack.c.l.bf16 %v213_v28  ;;  %v268_v33 = vunpack.c.h.bf16 %v213_v28  ;;  %v297_v51 = vunpack.c.l.bf16 %v243_v42  ;;  %v298_v52 = vunpack.c.h.bf16 %v243_v42 }
  0x18   : > { %2559 = vst [vmem:[%s4752_s12 + $0x28] sm:$0xf] %v4671_v12  ;;  %2560 = vst [vmem:[%s4752_s12 + $0x2c] sm:$0x1] %v4671_v12  ;;  %3856 = vmatpush3.bf16.msra.mxu0 %v4599_v8  ;;  %4413 = vmatpush3.bf16.msra.mxu1 %v4741_v7  ;;  %v318_v30 = vld [vmem:[%s6712_s1] sm:$0x3]  ;;  %v269_v34 = vunpack.c.l.bf16 %v215_v29 }
  0x19   : > { %2561 = vst [vmem:[%s4752_s12 + $0x30] sm:$0xf] %v4671_v12  ;;  %2562 = vst [vmem:[%s4752_s12 + $0x34] sm:$0xf] %v4671_v12  ;;  %3857 = vmatprep.subr.bf16.mxu0 %v4600_v9  ;;  %4406 = vmatprep.subr.bf16.mxu1 %v4761_v10  ;;  %v4947_v35 = vrot.slane %v318_v30, %v321_v24  ;;  %v242_v37 = vld [vmem:[%s4923_s17 + $0x80] sm:$0x1]  ;;  %v4951_v38 = vrot.slane %v318_v30, %v379_v26 }
  0x1a   : > { %2563 = vst [vmem:[%s4752_s12 + $0x38] sm:$0x1] %v4671_v12  ;;  %2564 = vst [vmem:[%s4752_s12 + $0x3c] sm:$0xf] %v4671_v12  ;;  %v245_v43 = vld [vmem:[%s4923_s17 + $0x8c] sm:$0x1]  ;;  %v296_v47 = vunpack.c.l.bf16 %v242_v37 }
  0x1b   : > { %2565 = vst [vmem:[%s4752_s12 + $0x40] sm:$0xf] %v4671_v12  ;;  %2566 = vst [vmem:[%s4752_s12 + $0x44] sm:$0x1] %v4671_v12  ;;  %v326_v44 = vmul.f32 %v4947_v35, %v267_v32  ;;  %v327_v45 = vmul.f32 %v4947_v35, %v268_v33  ;;  %v328_v46 = vmul.f32 %v4947_v35, %v269_v34  ;;  %v4614_v48 = vld [vmem:[%s6713_s2 + $0xf8] sm:$0xff]   ;;  %v299_v56 = vunpack.c.l.bf16 %v245_v43  ;;  %v4615_v57 = vld [vmem:[%s6713_s2 + $0x40] sm:$0xff]  }
  0x1c   : > { %2567 = vst [vmem:[%s4752_s12 + $0x48] sm:$0xf] %v4671_v12  ;;  %2568 = vst [vmem:[%s4752_s12 + $0x4c] sm:$0xf] %v4671_v12  ;;  %3858 = vmatpush3.bf16.msra.mxu0 %v4766_v11  ;;  %4414 = vmatpush3.bf16.msra.mxu1 %v4761_v10  ;;  %v353_v49 = vmul.f32 %v3829_v39, %v4947_v35  ;;  %v354_v50 = vmul.f32 %v3830_v40, %v4947_v35  ;;  %v3843_v15 = vld [vmem:[%s4923_s17 + $0x18] sm:$0xff]   ;;  %s3358_s7 = sshll.u32 %s6894_s16, 1 }
  0x1d   : > { %2569 = vst [vmem:[%s4752_s12 + $0x50] sm:$0x1] %v4671_v12  ;;  %2570 = vst [vmem:[%s4752_s12 + $0x54] sm:$0xf] %v4671_v12  ;;  %3859 = vmatprep.subr.bf16.mxu0 %v4603_v13  ;;  %4407 = vmatprep.subr.bf16.mxu1 %v4884_v14  ;;  %v4969_v53 = vadd.f32 %v4951_v38, %v326_v44  ;;  %v4972_v54 = vadd.f32 %v4951_v38, %v327_v45  ;;  %v218_v28 = vld [vmem:[%s4923_s17 + $0x20] sm:$0x1]  ;;  %v3813_v44 = vunpack.c.l.bf16 %v3843_v15  ;;  %s208_s9 = scalar_lea.vmem %s6715_s4, %s3358_s7 }
  0x1e   : > { %2571 = vst [vmem:[%s4752_s12 + $0x58] sm:$0xf] %v4671_v12  ;;  %2572 = vst [vmem:[%s4752_s12 + $0x5c] sm:$0x1] %v4671_v12  ;;  %v386_v55 = vadd.f32 %v4951_v38, %v328_v46  ;;  %v355_v58 = vmul.f32 %v4947_v35, %v296_v47  ;;  %v4980_v59 = vadd.f32 %v4951_v38, %v353_v49  ;;  %vm2683_vm8 = vsmask.f32 256 }
  0x1f   : > { %2573 = vst [vmem:[%s4752_s12 + $0x60] sm:$0xf] %v4671_v12  ;;  %2574 = vst [vmem:[%s4752_s12 + $0x64] sm:$0xf] %v4671_v12  ;;  %v4983_v60 = vadd.f32 %v4951_v38, %v354_v50  ;;  %v356_v61 = vmul.f32 %v4947_v35, %v297_v51  ;;  %v6730_v62 = vmax.f32 %v4969_v53, 0.0  ;;  %v6729_v63 = vmax.f32 %v4972_v54, 0.0 }
  0x20   : > { %2575 = vst [vmem:[%s4752_s12 + $0x68] sm:$0x1] %v4671_v12  ;;  %2576 = vst [vmem:[%s4752_s12 + $0x6c] sm:$0xf] %v4671_v12  ;;  %3860 = vmatpush3.bf16.msra.mxu0 %v4605_v16  ;;  %4415 = vmatpush3.bf16.msra.mxu1 %v4884_v14  ;;  %v440_v0 = vmax.f32 %v386_v55, 0.0  ;;  %v357_v2 = vmul.f32 %v4947_v35, %v298_v52  ;;  %v413_v3 = vadd.f32 %v4951_v38, %v355_v58  ;;  %v3848_v55 = vld [vmem:[%s4923_s17 + $0x90] sm:$0xff]  }
  0x21   : > { %2577 = vst [vmem:[%s4752_s12 + $0x70] sm:$0xf] %v4671_v12  ;;  %2578 = vst [vmem:[%s4752_s12 + $0x74] sm:$0x1] %v4671_v12  ;;  %3861 = vmatprep.subr.bf16.mxu0 %v4606_v17  ;;  %4408 = vmatprep.subr.bf16.mxu1 %v4898_v18  ;;  %v6721_v5 = vmax.f32 %v4980_v59, 0.0  ;;  %v6720_v6 = vmax.f32 %v4983_v60, 0.0  ;;  %v358_v8 = vmul.f32 %v4947_v35, %v299_v56  ;;  %v3814_v51 = vunpack.c.h.bf16 %v3843_v15 }
  0x22   : > { %2579 = vst [vmem:[%s4752_s12 + $0x78] sm:$0xf] %v4671_v12  ;;  %2580 = vst [vmem:[%s4752_s12 + $0x7c] sm:$0xf] %v4671_v12  ;;  %v526_v9 = vsel %vm493_vm0, %v6730_v62, 0.0  ;;  %v528_v11 = vsel %vm504_vm1, %v440_v0, 0.0  ;;  %v5005_v13 = vadd.f32 %v4951_v38, %v357_v2  ;;  %v272_v52 = vunpack.c.l.bf16 %v218_v28 }
  0x23   : > { %2581 = vst [vmem:[%s4752_s12 + $0x80] sm:$0x1] %v4671_v12  ;;  %2582 = vst [vmem:[%s4752_s12 + $0x84] sm:$0xf] %v4671_v12  ;;  %v5010_v16 = vpack.c.bf16 %v6729_v63, %v526_v9  ;;  %v5012_v17 = vpack.c.bf16 %v528_v11, %v528_v11  ;;  %v248_v0 = vld [vmem:[%s4923_s17 + $0x98] sm:$0x1]  ;;  %v330_v9 = vmul.f32 %v3814_v51, %v4947_v35 }
  0x24   : > { %2583 = vst [vmem:[%s4752_s12 + $0x88] sm:$0xf] %v4671_v12  ;;  %2584 = vst [vmem:[%s4752_s12 + $0x8c] sm:$0x1] %v4671_v12  ;;  %3862 = vmatpush3.bf16.msra.mxu0 %v4608_v20  ;;  %4416 = vmatpush3.bf16.msra.mxu1 %v4898_v18  ;;  %v467_v20 = vmax.f32 %v413_v3, 0.0 }
  0x25   : > { %2585 = vst [vmem:[%s4752_s12 + $0x90] sm:$0xf] %v4671_v12  ;;  %2586 = vst [vmem:[%s4752_s12 + $0x94] sm:$0xf] %v4671_v12  ;;  %3863 = vmatprep.subr.bf16.mxu0 %v4609_v21  ;;  %4409 = vmatprep.subr.bf16.mxu1 %v4916_v23  ;;  %v553_v21 = vsel %vm493_vm0, %v6721_v5, 0.0  ;;  %v675_v29 = vshrl.u32 %v5010_v16, 16 }
  0x26   : > { %2587 = vst [vmem:[%s4752_s12 + $0x98] sm:$0x1] %v4671_v12  ;;  %2588 = vst [vmem:[%s4752_s12 + $0x9c] sm:$0xf] %v4671_v12  ;;  %v5020_v24 = vpack.c.bf16 %v6720_v6, %v553_v21  ;;  %v677_v30 = vshll.u32 %v5010_v16, 16  ;;  %v682_v32 = vshll.u32 %v5012_v17, 16  ;;  %v3833_v21 = vunpack.c.l.bf16 %v3848_v55 }
  0x27   : > { %2589 = vst [vmem:[%s4752_s12 + $0xa0] sm:$0xf] %v4671_v12  ;;  %2590 = vst [vmem:[%s4752_s12 + $0xa4] sm:$0x1] %v4671_v12  ;;  %v555_v33 = vsel %vm504_vm1, %v467_v20, 0.0  ;;  %v331_v20 = vmul.f32 %v4947_v35, %v272_v52 }
  0x28   : > { %2591 = vst [vmem:[%s4752_s12 + $0xa8] sm:$0xf] %v4671_v12  ;;  %2592 = vst [vmem:[%s4752_s12 + $0xac] sm:$0xf] %v4671_v12  ;;  %3864 = vmatpush3.bf16.msra.mxu0 %v4611_v25  ;;  %4417 = vmatpush3.bf16.msra.mxu1 %v4916_v23  ;;  %v416_v25 = vadd.f32 %v4951_v38, %v358_v8  ;;  %v5031_v34 = vpack.c.bf16 %v555_v33, %v555_v33  ;;  %v783_v36 = vshrl.u32 %v5020_v24, 16 }
  0x29   : > { %2593 = vst [vmem:[%s4752_s12 + $0xb0] sm:$0x1] %v4671_v12  ;;  %2594 = vst [vmem:[%s4752_s12 + $0xb4] sm:$0xf] %v4671_v12  ;;  %3865 = vmatprep.subr.bf16.mxu0 %v4612_v27  ;;  %4410 = vmatprep.subr.bf16.mxu1 %v4945_v31  ;;  %v6718_v27 = vmax.f32 %v5005_v13, 0.0  ;;  %v785_v37 = vshll.u32 %v5020_v24, 16  ;;  %v329_v8 = vmul.f32 %v3813_v44, %v4947_v35  ;;  %v3834_v33 = vunpack.c.h.bf16 %v3848_v55 }
  0x2a   : > { %2595 = vst [vmem:[%s4752_s12 + $0xb8] sm:$0xf] %v4671_v12  ;;  %2596 = vst [vmem:[%s4752_s12 + $0xbc] sm:$0x1] %v4671_v12  ;;  %v470_v39 = vmax.f32 %v416_v25, 0.0  ;;  %v679_v40 = vrot.slane %v677_v30, 1 }
  0x2b   : > { %2597 = vst [vmem:[%s4752_s12 + $0xc0] sm:$0xf] %v4671_v12  ;;  %2598 = vst [vmem:[%s4752_s12 + $0xc4] sm:$0xf] %v4671_v12  ;;  %v684_v42 = vrot.slane %v682_v32, 1  ;;  %v787_v45 = vrot.slane %v785_v37, 1  ;;  %v5070_v30 = vadd.f32 %v4951_v38, %v329_v8  ;;  %v5073_v32 = vadd.f32 %v4951_v38, %v330_v9 }
  0x2c   : > { %2599 = vst [vmem:[%s4752_s12 + $0xc8] sm:$0x1] %v4671_v12  ;;  %2600 = vst [vmem:[%s4752_s12 + $0xcc] sm:$0xf] %v4671_v12  ;;  %3866 = vmatpush3.bf16.msra.mxu0 %v4614_v48  ;;  %4418 = vmatpush3.bf16.msra.mxu1 %v4945_v31  ;;  %v790_v46 = vshll.u32 %v5031_v34, 16  ;;  %v558_v47 = vsel %vm504_vm1, %v470_v39, 0.0  ;;  %v680_v49 = vor.u32 %v679_v40, %v675_v29  ;;  %v302_v39 = vunpack.c.l.bf16 %v248_v0 }
  0x2d   : > { %2601 = vst [vmem:[%s4752_s12 + $0xd0] sm:$0xf] %v4671_v12  ;;  %2602 = vst [vmem:[%s4752_s12 + $0xd4] sm:$0x1] %v4671_v12  ;;  %4259 = vmatprep.subr.bf16.mxu0 %v4713_v1  ;;  %v5002_v12 = vadd.f32 %v4951_v38, %v356_v61  ;;  %3987 = vmatprep.subr.bf16.mxu1 %v4615_v57  ;;  %v5046_v50 = vpack.c.bf16 %v558_v47, %v558_v47  ;;  %v249_v25 = vld [vmem:[%s4923_s17 + $0x9c] sm:$0xff]   ;;  %v6727_v44 = vmax.f32 %v5070_v30, 0.0 }
  0x2e   : > { %6776 = vst [vmem:[#allocation3_spill] sm:$0xff] %v5005_v13  ;;  %6777 = vst [vmem:[#allocation4_spill] sm:$0xff] %v5010_v16  ;;  %v788_v56 = vor.u32 %v787_v45, %v783_v36  ;;  %v792_v57 = vrot.slane %v790_v46, 1  ;;  %v5053_v2 = vsel %vm661_vm2, %v680_v49, %v684_v42  ;;  %v4616_v29 = vld [vmem:[%s6713_s2] sm:$0xff]   ;;  %v389_v37 = vadd.f32 %v4951_v38, %v331_v20  ;;  %v4618_v49 = vld [vmem:[%s6713_s2 + $0x8] sm:$0xff]  }
  0x2f   : > { %6775 = vst [vmem:[#allocation2_spill] sm:$0xff] %v5002_v12  ;;  %6778 = vst [vmem:[#allocation5_spill] sm:$0xff] %v5012_v17  ;;  %v6719_v26 = vmax.f32 %v5002_v12, 0.0  ;;  %v802_v3 = vshll.u32 %v5046_v50, 16  ;;  %1121 = vmatprep.mubr.bf16.mxu0 %v5053_v2  ;;  %v359_v40 = vmul.f32 %v3833_v21, %v4947_v35  ;;  %v251_v42 = vld [vmem:[%s4923_s17 + $0xa4] sm:$0x1]  ;;  %v360_v46 = vmul.f32 %v3834_v33, %v4947_v35 }
  0x30   : > { %6779 = vst [vmem:[#allocation6_spill] sm:$0xff] %v5020_v24  ;;  %6780 = vst [vmem:[#allocation7_spill] sm:$0xff] %v5031_v34  ;;  %v5060_v11 = vsel %vm661_vm2, %v788_v56, %v792_v57  ;;  %1122 = vmatmul.mubr.bf16.vlgmr.msra.gmra.mrb[0].mxu0 %v4954_v41  ;;  %v6726_v45 = vmax.f32 %v5073_v32, 0.0  ;;  %v303_v47 = vunpack.c.l.bf16 %v249_v25  ;;  %v443_v51 = vmax.f32 %v389_v37, 0.0  ;;  %v4619_v0 = vld [vmem:[%s6713_s2 + $0x50] sm:$0xff]   ;;  %v3846_v16 = vld [vmem:[%s4923_s17 + $0x60] sm:$0xff]  }
  0x31   : > { %v556_v43 = vsel %vm493_vm0, %v6719_v26, 0.0  ;;  %6782 = vst [vmem:[#allocation9_spill] sm:$0xff] %v5046_v50  ;;  %4291 = vmatprep.mubr.bf16.mxu1 %v5060_v11  ;;  %v804_v28 = vrot.slane %v802_v3, 1  ;;  %4260 = vmatpush3.bf16.msra.mxu0 %v4713_v1  ;;  %v361_v52 = vmul.f32 %v4947_v35, %v302_v39  ;;  %v5094_v55 = vadd.f32 %v4951_v38, %v359_v40  ;;  %v230_v50 = vld [vmem:[%s4923_s17 + $0x50] sm:$0x1]  ;;  %vm5436_vm4 = vmpackc.low %vm4672_vm3, %vm493_vm0 }
  0x32   : > { %v5044_v48 = vpack.c.bf16 %v6718_v27, %v556_v43  ;;  %v4617_v43 = vld [vmem:[%s6713_s2 + $0x48] sm:$0xff]   ;;  %4261 = vmatprep.subr.bf16.mxu0 %v4728_v4  ;;  %v529_v56 = vsel %vm493_vm0, %v6727_v44, 0.0  ;;  %v5102_v57 = vadd.f32 %v4951_v38, %v360_v46  ;;  %v531_v3 = vsel %vm504_vm1, %v443_v51, 0.0  ;;  %v4620_v46 = vld [vmem:[%s6713_s2 + $0x10] sm:$0xff]   ;;  %vm6257_vm11 = vmand %vm3007_vm6, %vm3008_vm7 }
  0x33   : > { %6783 = vst [vmem:[#allocation10_spill] sm:$0xff] %v5094_v55  ;;  %v5111_v8 = vpack.c.bf16 %v6726_v45, %v529_v56  ;;  %v419_v9 = vadd.f32 %v4951_v38, %v361_v52  ;;  %v5116_v20 = vpack.c.bf16 %v531_v3, %v531_v3  ;;  %v221_v56 = vld [vmem:[%s4923_s17 + $0x2c] sm:$0x1]  ;;  %vm2684_vm10 = vsmask.f32 4368  ;;  %vm6266_vm12 = vmand %vm3014_vm9, %vm2683_vm8 }
  0x34   : > { %6781 = vst [vmem:[#allocation8_spill] sm:$0xff] %v5044_v48  ;;  %v795_v58 = vshrl.u32 %v5044_v48, 16  ;;  %v797_v61 = vshll.u32 %v5044_v48, 16  ;;  %6784 = vst [vmem:[#allocation11_spill] sm:$0xff] %v5102_v57  ;;  %v6716_v21 = vmax.f32 %v5102_v57, 0.0  ;;  %v6766_v57 = vmov 0.0|0.0  }
  0x35   : > { %6785 = vst [vmem:[#allocation12_spill] sm:$0xff] %v5111_v8  ;;  %4262 = vmatpush3.bf16.msra.mxu0 %v4728_v4  ;;  %6786 = vst [vmem:[#allocation13_spill] sm:$0xff] %v5116_v20  ;;  %v687_v33 = vshrl.u32 %v5111_v8, 16  ;;  %v473_v37 = vmax.f32 %v419_v9, 0.0  ;;  %v694_v39 = vshll.u32 %v5116_v20, 16  ;;  %v6804_v20 = vmax.f32 %v4972_v54, 0.0 }
  0x36   : > { %v799_v15 = vrot.slane %v797_v61, 1  ;;  %v305_v61 = vunpack.c.l.bf16 %v251_v42  ;;  %4263 = vmatprep.subr.bf16.mxu0 %v4741_v7  ;;  %v233_v54 = vld [vmem:[%s4923_s17 + $0x5c] sm:$0x1]  ;;  %vm6272_vm13 = vmor %vm2683_vm8, %vm2684_vm10 }
  0x37   : > { %v561_v51 = vsel %vm504_vm1, %v473_v37, 0.0 }
  0x38   : > { %v800_v36 = vor.u32 %v799_v15, %v795_v58  ;;  %v304_v58 = vunpack.c.h.bf16 %v249_v25  ;;  %v6717_v15 = vmax.f32 %v5094_v55, 0.0  ;;  %v362_v25 = vmul.f32 %v4947_v35, %v303_v47 }
  0x39   : > { %v364_v42 = vmul.f32 %v4947_v35, %v305_v61  ;;  %4264 = vmatpush3.bf16.msra.mxu0 %v4741_v7  ;;  %v696_v61 = vrot.slane %v694_v39, 1  ;;  %v5148_v3 = vpack.c.bf16 %v561_v51, %v561_v51 }
  0x3a   : > { %v5087_v1 = vsel %vm661_vm2, %v800_v36, %v804_v28  ;;  %v363_v28 = vmul.f32 %v4947_v35, %v304_v58  ;;  %v689_v36 = vshll.u32 %v5111_v8, 16  ;;  %v559_v4 = vsel %vm493_vm0, %v6717_v15, 0.0  ;;  %4265 = vmatprep.subr.bf16.mxu0 %v4761_v10 }
  0x3b   : > { %4292 = vmatmul.mubr.bf16.vlgmr.msra.gmra.mrb[0].mxu1 %v5087_v1  ;;  %v5132_v40 = vpack.c.bf16 %v6716_v21, %v559_v4  ;;  %6788 = vst [vmem:[#allocation15_spill] sm:$0xff] %v5148_v3  ;;  %v814_v39 = vshll.u32 %v5148_v3, 16  ;;  %v275_v21 = vunpack.c.l.bf16 %v221_v56  ;;  %v227_v3 = vld [vmem:[%s4923_s17 + $0x44] sm:$0x1] }
  0x3c   : > { %3988 = vmatpush3.bf16.msra.mxu1 %v4616_v29  ;;  %v219_v29 = vld [vmem:[%s4923_s17 + $0x24] sm:$0xff]   ;;  %v691_v47 = vrot.slane %v689_v36, 1  ;;  %v5144_v52 = vadd.f32 %v4951_v38, %v363_v28  ;;  %v422_v36 = vadd.f32 %v4951_v38, %v364_v42  ;;  %v4622_v42 = vld [vmem:[%s6713_s2 + $0x18] sm:$0xff]  }
  0x3d   : > { %3989 = vmatprep.subr.bf16.mxu1 %v4617_v43  ;;  %6787 = vst [vmem:[#allocation14_spill] sm:$0xff] %v5132_v40  ;;  %v5136_v43 = vadd.f32 %v4951_v38, %v362_v25  ;;  %v273_v58 = vunpack.c.l.bf16 %v219_v29  ;;  %v807_v9 = vshrl.u32 %v5132_v40, 16  ;;  %v809_v25 = vshll.u32 %v5132_v40, 16  ;;  %4266 = vmatpush3.bf16.msra.mxu0 %v4761_v10 }
  0x3e   : > { %v692_v28 = vor.u32 %v691_v47, %v687_v33  ;;  %v6722_v37 = vmax.f32 %v5144_v52, 0.0  ;;  %v274_v51 = vunpack.c.h.bf16 %v219_v29  ;;  %v476_v27 = vmax.f32 %v422_v36, 0.0  ;;  %4267 = vmatprep.subr.bf16.mxu0 %v4884_v14 }
  0x3f   : > { %v6723_v7 = vmax.f32 %v5136_v43, 0.0  ;;  %v811_v4 = vrot.slane %v809_v25, 1  ;;  %v332_v47 = vmul.f32 %v4947_v35, %v273_v58  ;;  %v816_v56 = vrot.slane %v814_v39, 1  ;;  %v254_v25 = vld [vmem:[%s4923_s17 + $0xb0] sm:$0x1] }
  0x40   : > { %3990 = vmatpush3.bf16.msra.mxu1 %v4618_v49  ;;  %v4621_v49 = vld [vmem:[%s6713_s2 + $0x58] sm:$0xff]   ;;  %v5162_v15 = vsel %vm661_vm2, %v692_v28, %v696_v61  ;;  %v4623_v28 = vld [vmem:[%s6713_s2 + $0x60] sm:$0xff]   ;;  %v564_v10 = vsel %vm504_vm1, %v476_v27, 0.0  ;;  %v334_v58 = vmul.f32 %v4947_v35, %v275_v21  ;;  %v308_v6 = vunpack.c.l.bf16 %v254_v25 }
  0x41   : > { %3991 = vmatprep.subr.bf16.mxu1 %v4619_v0  ;;  %v3849_v0 = vld [vmem:[%s4923_s17 + $0xa8] sm:$0xff]   ;;  %6789 = vst [vmem:[#allocation16_spill] sm:$0xff] %v5162_v15  ;;  %v562_v33 = vsel %vm493_vm0, %v6723_v7, 0.0  ;;  %1129 = vmatprep.mubr.bf16.mxu0 %v5162_v15  ;;  %v812_v29 = vor.u32 %v811_v4, %v807_v9  ;;  %v5188_v9 = vadd.f32 %v4951_v38, %v332_v47  ;;  %v255_v21 = vld [vmem:[%s4923_s17 + $0xb4] sm:$0xff]   ;;  %v6816_v19 = vmax.f32 %v5136_v43, 0.0 }
  0x42   : > { %v5176_v61 = vpack.c.bf16 %v6722_v37, %v562_v33  ;;  %1130 = vmatmul.mubr.bf16.gmra.mrb[4].mxu0 %v5053_v2  ;;  %v3837_v36 = vunpack.c.l.bf16 %v3849_v0  ;;  %v5197_v39 = vpack.c.bf16 %v564_v10, %v564_v10  ;;  %v392_v33 = vadd.f32 %v4951_v38, %v334_v58  ;;  %v257_v37 = vld [vmem:[%s4923_s17 + $0xbc] sm:$0x1] }
  0x43   : > { %v5195_v4 = vsel %vm661_vm2, %v812_v29, %v816_v56  ;;  %v6725_v47 = vmax.f32 %v5188_v9, 0.0  ;;  %v3838_v29 = vunpack.c.h.bf16 %v3849_v0  ;;  %v4625_v56 = vld [vmem:[%s6713_s2 + $0x68] sm:$0xff]   ;;  %4268 = vmatpush3.bf16.msra.mxu0 %v4884_v14 }
  0x44   : > { %3992 = vmatpush3.bf16.msra.mxu1 %v4620_v46  ;;  %6790 = vst [vmem:[#allocation17_spill] sm:$0xff] %v5176_v61  ;;  %v333_v46 = vmul.f32 %v4947_v35, %v274_v51  ;;  %6791 = vst [vmem:[#allocation18_spill] sm:$0xff] %v5197_v39  ;;  %v819_v2 = vshrl.u32 %v5176_v61, 16  ;;  %v821_v27 = vshll.u32 %v5176_v61, 16  ;;  %4295 = vmatprep.mubr.bf16.mxu1 %v5195_v4  ;;  %v826_v26 = vshll.u32 %v5197_v39, 16 }
  0x45   : > { %3993 = vmatprep.subr.bf16.mxu1 %v4621_v49  ;;  %v4624_v49 = vld [vmem:[%s6713_s2 + $0x20] sm:$0xff]   ;;  %v365_v5 = vmul.f32 %v3837_v36, %v4947_v35  ;;  %v532_v0 = vsel %vm493_vm0, %v6725_v47, 0.0  ;;  %v366_v58 = vmul.f32 %v3838_v29, %v4947_v35  ;;  %4269 = vmatprep.subr.bf16.mxu0 %v4898_v18  ;;  %v367_v36 = vmul.f32 %v4947_v35, %v308_v6  ;;  %v4626_v6 = vld [vmem:[%s6713_s2 + $0x28] sm:$0xff]   ;;  %v4628_v47 = vld [vmem:[%s6713_s2 + $0x30] sm:$0xff]  }
  0x46   : > { %v5204_v51 = vadd.f32 %v4951_v38, %v333_v46  ;;  %v823_v10 = vrot.slane %v821_v27, 1  ;;  %v446_v46 = vmax.f32 %v392_v33, 0.0  ;;  %v828_v25 = vrot.slane %v826_v26, 1 }
  0x47   : > { %v5233_v7 = vadd.f32 %v4951_v38, %v366_v58  ;;  %v309_v29 = vunpack.c.l.bf16 %v255_v21  ;;  %4270 = vmatpush3.bf16.msra.mxu0 %v4898_v18 }
  0x48   : > { %3994 = vmatpush3.bf16.msra.mxu1 %v4622_v42  ;;  %v6724_v42 = vmax.f32 %v5204_v51, 0.0  ;;  %v824_v27 = vor.u32 %v823_v10, %v819_v2  ;;  %v534_v14 = vsel %vm504_vm1, %v446_v46, 0.0  ;;  %v425_v2 = vadd.f32 %v4951_v38, %v367_v36  ;;  %v4627_v46 = vld [vmem:[%s6713_s2 + $0x70] sm:$0xff]   ;;  %4271 = vmatprep.subr.bf16.mxu0 %v4916_v23 }
  0x49   : > { %3995 = vmatprep.subr.bf16.mxu1 %v4623_v28  ;;  %v5224_v28 = vadd.f32 %v4951_v38, %v365_v5  ;;  %v5241_v26 = vpack.c.bf16 %v534_v14, %v534_v14  ;;  %v6731_v58 = vmax.f32 %v5233_v7, 0.0  ;;  %v311_v14 = vunpack.c.l.bf16 %v257_v37 }
  0x4a   : > { %v5230_v33 = vpack.c.bf16 %v6724_v42, %v532_v0  ;;  %v5239_v5 = vsel %vm661_vm2, %v824_v27, %v828_v25  ;;  %v310_v27 = vunpack.c.h.bf16 %v255_v21  ;;  %v3844_v25 = vld [vmem:[%s4923_s17 + $0x30] sm:$0xff]   ;;  %v479_v36 = vmax.f32 %v425_v2, 0.0  ;;  %v224_v42 = vld [vmem:[%s4923_s17 + $0x38] sm:$0x1] }
  0x4b   : > { %v6728_v10 = vmax.f32 %v5224_v28, 0.0  ;;  %4296 = vmatmul.mubr.bf16.gmra.mrb[4].mxu1 %v5239_v5  ;;  %v368_v44 = vmul.f32 %v4947_v35, %v309_v29  ;;  %v370_v62 = vmul.f32 %v4947_v35, %v311_v14  ;;  %4272 = vmatpush3.bf16.msra.mxu0 %v4916_v23  ;;  %v3818_v14 = vunpack.c.h.bf16 %v3844_v25 }
  0x4c   : > { %3996 = vmatpush3.bf16.msra.mxu1 %v4624_v49  ;;  %v699_v49 = vshrl.u32 %v5230_v33, 16  ;;  %v701_v0 = vshll.u32 %v5230_v33, 16  ;;  %v369_v2 = vmul.f32 %v4947_v35, %v310_v27  ;;  %v567_v63 = vsel %vm504_vm1, %v479_v36, 0.0  ;;  %4273 = vmatprep.subr.bf16.mxu0 %v4945_v31 }
  0x4d   : > { %3997 = vmatprep.subr.bf16.mxu1 %v4625_v56  ;;  %v706_v56 = vshll.u32 %v5241_v26, 16  ;;  %v565_v18 = vsel %vm493_vm0, %v6728_v10, 0.0  ;;  %v4629_v10 = vld [vmem:[%s6713_s2 + $0x78] sm:$0xff]  }
  0x4e   : > { %v703_v45 = vrot.slane %v701_v0, 1  ;;  %v5266_v21 = vpack.c.bf16 %v6731_v58, %v565_v18  ;;  %v3817_v0 = vunpack.c.l.bf16 %v3844_v25  ;;  %v5277_v18 = vpack.c.bf16 %v567_v63, %v567_v63  ;;  %v3850_v58 = vld [vmem:[%s4923_s17 + $0xc0] sm:$0xff]  }
  0x4f   : > { %v708_v37 = vrot.slane %v706_v56, 1  ;;  %v5283_v56 = vadd.f32 %v4951_v38, %v368_v44  ;;  %v5286_v36 = vadd.f32 %v4951_v38, %v369_v2  ;;  %v4630_v44 = vld [vmem:[%s6713_s2 + $0x38] sm:$0xff]   ;;  %4274 = vmatpush3.bf16.msra.mxu0 %v4945_v31 }
  0x50   : > { %6792 = vst [vmem:[#allocation19_spill] sm:$0xff] %v5266_v21  ;;  %3998 = vmatpush3.bf16.msra.mxu1 %v4626_v6  ;;  %v704_v29 = vor.u32 %v703_v45, %v699_v49  ;;  %6793 = vst [vmem:[#allocation20_spill] sm:$0xff] %v5277_v18  ;;  %v831_v6 = vshrl.u32 %v5266_v21, 16  ;;  %v833_v27 = vshll.u32 %v5266_v21, 16  ;;  %v838_v45 = vshll.u32 %v5277_v18, 16 }
  0x51   : > { %3999 = vmatprep.subr.bf16.mxu1 %v4627_v46  ;;  %v428_v46 = vadd.f32 %v4951_v38, %v370_v62  ;;  %v278_v49 = vunpack.c.l.bf16 %v224_v42  ;;  %v260_v21 = vld [vmem:[%s4923_s17 + $0xc8] sm:$0x1]  ;;  %v6734_v2 = vmax.f32 %v5283_v56, 0.0  ;;  %v6736_v62 = vmax.f32 %v5286_v36, 0.0  ;;  %v5305_v42 = vld [vmem:[%s6713_s2 + $0x80] sm:$0xff]  }
  0x52   : > { %v5290_v23 = vsel %vm661_vm2, %v704_v29, %v708_v37  ;;  %v835_v63 = vrot.slane %v833_v27, 1  ;;  %v335_v37 = vmul.f32 %v3817_v0, %v4947_v35  ;;  %v840_v29 = vrot.slane %v838_v45, 1 }
  0x53   : > { %6794 = vst [vmem:[#allocation21_spill] sm:$0xff] %v5290_v23  ;;  %1137 = vmatprep.mubr.bf16.mxu0 %v5290_v23  ;;  %v482_v25 = vmax.f32 %v428_v46, 0.0  ;;  %v336_v27 = vmul.f32 %v3818_v14, %v4947_v35  ;;  %v337_v18 = vmul.f32 %v4947_v35, %v278_v49  ;;  %v4638_v46 = vld [vmem:[%s6713_s2 + $0x1c0] sm:$0xff]   ;;  %v314_v39 = vunpack.c.l.bf16 %v260_v21 }
  0x54   : > { %4000 = vmatpush3.bf16.msra.mxu1 %v4628_v47  ;;  %v836_v47 = vor.u32 %v835_v63, %v831_v6  ;;  %1138 = vmatmul.mubr.bf16.gmra.mrb[8].mxu0 %v5162_v15  ;;  %v5320_v6 = vadd.f32 %v4951_v38, %v335_v37  ;;  %v3841_v63 = vunpack.c.l.bf16 %v3850_v58  ;;  %v3842_v37 = vunpack.c.h.bf16 %v3850_v58 }
  0x55   : > { %4001 = vmatprep.subr.bf16.mxu1 %v4629_v10  ;;  %v568_v10 = vsel %vm493_vm0, %v6734_v2, 0.0  ;;  %v570_v0 = vsel %vm504_vm1, %v482_v25, 0.0  ;;  %v5333_v2 = vadd.f32 %v4951_v38, %v336_v27  ;;  %v395_v25 = vadd.f32 %v4951_v38, %v337_v18  ;;  %4123 = vmatprep.subr.bf16.mxu0 %v4638_v46 }
  0x56   : > { %v5324_v14 = vsel %vm661_vm2, %v836_v47, %v840_v29  ;;  %v5328_v45 = vpack.c.bf16 %v6736_v62, %v568_v10  ;;  %v5330_v49 = vpack.c.bf16 %v570_v0, %v570_v0  ;;  %v6741_v31 = vmax.f32 %v5320_v6, 0.0 }
  0x57   : > { %6795 = vst [vmem:[#allocation22_spill] sm:$0xff] %v5324_v14  ;;  %4299 = vmatprep.mubr.bf16.mxu1 %v5324_v14  ;;  %v6742_v27 = vmax.f32 %v5333_v2, 0.0  ;;  %v449_v0 = vmax.f32 %v395_v25, 0.0  ;;  %v371_v21 = vmul.f32 %v3841_v63, %v4947_v35  ;;  %v372_v18 = vmul.f32 %v3842_v37, %v4947_v35 }
  0x58   : > { %6796 = vst [vmem:[#allocation23_spill] sm:$0xff] %v5328_v45  ;;  %6797 = vst [vmem:[#allocation24_spill] sm:$0xff] %v5330_v49  ;;  %4002 = vmatpush3.bf16.msra.mxu1 %v4630_v44  ;;  %v843_v47 = vshrl.u32 %v5328_v45, 16  ;;  %v845_v29 = vshll.u32 %v5328_v45, 16  ;;  %v850_v10 = vshll.u32 %v5330_v49, 16  ;;  %v225_v44 = vld [vmem:[%s4923_s17 + $0x3c] sm:$0xff]   ;;  %v373_v49 = vmul.f32 %v4947_v35, %v314_v39 }
  0x59   : > { %4307 = vmatprep.subr.bf16.mxu1 %v5305_v42  ;;  %v535_v58 = vsel %vm493_vm0, %v6741_v31, 0.0  ;;  %v537_v46 = vsel %vm504_vm1, %v449_v0, 0.0  ;;  %v5359_v25 = vadd.f32 %v4951_v38, %v371_v21  ;;  %v5362_v31 = vadd.f32 %v4951_v38, %v372_v18 }
  0x5a   : > { %v847_v62 = vrot.slane %v845_v29, 1  ;;  %v852_v61 = vrot.slane %v850_v10, 1  ;;  %v5352_v45 = vpack.c.bf16 %v6742_v27, %v535_v58  ;;  %v279_v63 = vunpack.c.l.bf16 %v225_v44 }
  0x5b   : > { %v5364_v29 = vpack.c.bf16 %v537_v46, %v537_v46  ;;  %v431_v39 = vadd.f32 %v4951_v38, %v373_v49  ;;  %v6747_v27 = vmax.f32 %v5359_v25, 0.0  ;;  %v280_v21 = vunpack.c.h.bf16 %v225_v44 }
  0x5c   : > { %v848_v37 = vor.u32 %v847_v62, %v843_v47  ;;  %v711_v10 = vshrl.u32 %v5352_v45, 16  ;;  %v713_v58 = vshll.u32 %v5352_v45, 16  ;;  %v281_v47 = vunpack.c.l.bf16 %v227_v3 }
  0x5d   : > { %v718_v62 = vshll.u32 %v5364_v29, 16  ;;  %v485_v46 = vmax.f32 %v431_v39, 0.0  ;;  %v571_v49 = vsel %vm493_vm0, %v6747_v27, 0.0  ;;  %v338_v0 = vmul.f32 %v4947_v35, %v279_v63  ;;  %v3845_v39 = vld [vmem:[%s4923_s17 + $0x48] sm:$0xff]  }
  0x5e   : > { %v5372_v18 = vsel %vm661_vm2, %v848_v37, %v852_v61  ;;  %v715_v40 = vrot.slane %v713_v58, 1  ;;  %v339_v44 = vmul.f32 %v4947_v35, %v280_v21  ;;  %v6799_v58 = vmax.f32 %v5362_v31, 0.0 }
  0x5f   : > { %6798 = vst [vmem:[#allocation25_spill] sm:$0xff] %v5372_v18  ;;  %4300 = vmatmul.mubr.bf16.gmra.mrb[8].mxu1 %v5372_v18  ;;  %v720_v37 = vrot.slane %v718_v62, 1  ;;  %v340_v3 = vmul.f32 %v4947_v35, %v281_v47  ;;  %v573_v34 = vsel %vm504_vm1, %v485_v46, 0.0  ;;  %v5392_v27 = vadd.f32 %v4951_v38, %v338_v0  ;;  %v231_v47 = vld [vmem:[%s4923_s17 + $0x54] sm:$0xff]  }
  0x60   : > { %v716_v61 = vor.u32 %v715_v40, %v711_v10  ;;  %v5385_v48 = vpack.c.bf16 %v6799_v58, %v571_v49  ;;  %v5395_v63 = vadd.f32 %v4951_v38, %v339_v44  ;;  %v5400_v40 = vpack.c.bf16 %v573_v34, %v573_v34 }
  0x61   : > { %v398_v46 = vadd.f32 %v4951_v38, %v340_v3  ;;  %v6754_v0 = vmax.f32 %v5392_v27, 0.0  ;;  %v3821_v44 = vunpack.c.l.bf16 %v3845_v39  ;;  %v3822_v34 = vunpack.c.h.bf16 %v3845_v39 }
  0x62   : > { %6800 = vst [vmem:[#allocation26_spill] sm:$0xff] %v5385_v48  ;;  %v5398_v21 = vsel %vm661_vm2, %v716_v61, %v720_v37  ;;  %6802 = vst [vmem:[#allocation28_spill] sm:$0xff] %v5400_v40  ;;  %v855_v10 = vshrl.u32 %v5385_v48, 16  ;;  %v857_v62 = vshll.u32 %v5385_v48, 16  ;;  %v862_v61 = vshll.u32 %v5400_v40, 16 }
  0x63   : > { %6801 = vst [vmem:[#allocation27_spill] sm:$0xff] %v5398_v21  ;;  %1145 = vmatprep.mubr.bf16.mxu0 %v5398_v21  ;;  %v284_v37 = vunpack.c.l.bf16 %v230_v50  ;;  %v452_v24 = vmax.f32 %v398_v46, 0.0  ;;  %v538_v48 = vsel %vm493_vm0, %v6754_v0, 0.0  ;;  %v6803_v3 = vmax.f32 %v4969_v53, 0.0 }
  0x64   : > { %v859_v58 = vrot.slane %v857_v62, 1  ;;  %1146 = vmatmul.mubr.bf16.gmra.mrb[12].mxu0 %v5290_v23  ;;  %v341_v62 = vmul.f32 %v3821_v44, %v4947_v35  ;;  %v864_v40 = vrot.slane %v862_v61, 1  ;;  %v6805_v17 = vmax.f32 %v5395_v63, 0.0 }
  0x65   : > { %v5419_v49 = vpack.c.bf16 %v6804_v20, %v6803_v3  ;;  %v342_v50 = vmul.f32 %v3822_v34, %v4947_v35  ;;  %v540_v46 = vsel %vm504_vm1, %v452_v24, 0.0  ;;  %v343_v0 = vmul.f32 %v4947_v35, %v284_v37 }
  0x66   : > { %v860_v8 = vor.u32 %v859_v58, %v855_v10  ;;  %v5424_v39 = vpack.c.bf16 %v6805_v17, %v538_v48  ;;  %v5431_v53 = vadd.f32 %v4951_v38, %v341_v62  ;;  %v285_v20 = vunpack.c.l.bf16 %v231_v47 }
  0x67   : > { %v5443_v48 = vpack.c.bf16 %v540_v46, %v540_v46  ;;  %v5449_v58 = vadd.f32 %v4951_v38, %v342_v50  ;;  %v401_v61 = vadd.f32 %v4951_v38, %v343_v0  ;;  %v286_v37 = vunpack.c.h.bf16 %v231_v47 }
  0x68   : > { %v5441_v17 = vsel %vm661_vm2, %v860_v8, %v864_v40  ;;  %v723_v24 = vshrl.u32 %v5424_v39, 16  ;;  %v725_v44 = vshll.u32 %v5424_v39, 16  ;;  %v6758_v34 = vmax.f32 %v5431_v53, 0.0 }
  0x69   : > { %6808 = vst [vmem:[#allocation29_spill] sm:$0xff] %v5441_v17  ;;  %4303 = vmatprep.mubr.bf16.mxu1 %v5441_v17  ;;  %v730_v40 = vshll.u32 %v5443_v48, 16  ;;  %v287_v3 = vunpack.c.l.bf16 %v233_v54  ;;  %v344_v62 = vmul.f32 %v4947_v35, %v285_v20  ;;  %v455_v46 = vmax.f32 %v401_v61, 0.0 }
  0x6a   : > { %4304 = vmatmul.mubr.bf16.gmra.mrb[12].mxu1 %v4954_v41  ;;  %v727_v8 = vrot.slane %v725_v44, 1  ;;  %v541_v47 = vsel %vm493_vm0, %v6758_v34, 0.0  ;;  %v345_v41 = vmul.f32 %v4947_v35, %v286_v37  ;;  %v6809_v61 = vmax.f32 %v5449_v58, 0.0 }
  0x6b   : > { %3457 = vmatprep.mubr.msk.bf16.mxu1 %vm5436_vm4, %v5419_v49  ;;  %v732_v44 = vrot.slane %v730_v40, 1  ;;  %v346_v54 = vmul.f32 %v4947_v35, %v287_v3  ;;  %v5467_v20 = vadd.f32 %v4951_v38, %v344_v62  ;;  %v543_v50 = vsel %vm504_vm1, %v455_v46, 0.0  ;;  %v236_v46 = vld [vmem:[%s4923_s17 + $0x68] sm:$0x1] }
  0x6c   : > { %v728_v0 = vor.u32 %v727_v8, %v723_v24  ;;  %v5474_v23 = vpack.c.bf16 %v6809_v61, %v541_v47  ;;  %v6810_v15 = vmax.f32 %v5070_v30, 0.0  ;;  %v6811_v34 = vmax.f32 %v5073_v32, 0.0 }
  0x6d   : > { %v5483_v24 = vadd.f32 %v4951_v38, %v345_v41  ;;  %v5488_v40 = vpack.c.bf16 %v543_v50, %v543_v50  ;;  %v404_v3 = vadd.f32 %v4951_v38, %v346_v54  ;;  %v6763_v62 = vmax.f32 %v5467_v20, 0.0 }
  0x6e   : > { %v5480_v37 = vpack.c.bf16 %v6811_v34, %v6810_v15  ;;  %v5486_v8 = vsel %vm661_vm2, %v728_v0, %v732_v44  ;;  %v735_v30 = vshrl.u32 %v5474_v23, 16  ;;  %v737_v32 = vshll.u32 %v5474_v23, 16  ;;  %v4632_v0 = vld [vmem:[%s6713_s2 + $0x88] sm:$0xff]  }
  0x6f   : > { %1153 = vmatprep.mubr.bf16.mxu0 %v5486_v8  ;;  %v6768_v15 = vmax.f32 %v5483_v24, 0.0  ;;  %v3825_v34 = vunpack.c.l.bf16 %v3846_v16  ;;  %v742_v50 = vshll.u32 %v5488_v40, 16  ;;  %v458_v47 = vmax.f32 %v404_v3, 0.0  ;;  %v237_v3 = vld [vmem:[%s4923_s17 + $0x6c] sm:$0xff]  }
  0x70   : > { %1154 = vmatmul.mubr.bf16.gmra.mrb[16].mxu0 %v5398_v21  ;;  %v544_v41 = vsel %vm493_vm0, %v6763_v62, 0.0  ;;  %v3826_v44 = vunpack.c.h.bf16 %v3846_v16  ;;  %v739_v54 = vrot.slane %v737_v32, 1  ;;  %v290_v21 = vunpack.c.l.bf16 %v236_v46 }
  0x71   : > { %v5508_v61 = vpack.c.bf16 %v6768_v15, %v544_v41  ;;  %v347_v17 = vmul.f32 %v3825_v34, %v4947_v35  ;;  %v744_v55 = vrot.slane %v742_v50, 1  ;;  %v546_v62 = vsel %vm504_vm1, %v458_v47, 0.0 }
  0x72   : > { %1588 = vmatmul.mubr.bf16.vlgmr.msra.gmra.mrb[16].mxu1 %v6766_v57  ;;  %v6812_v18 = vmax.f32 %v5188_v9, 0.0  ;;  %v6813_v16 = vmax.f32 %v5204_v51, 0.0  ;;  %v348_v41 = vmul.f32 %v3826_v44, %v4947_v35  ;;  %v740_v46 = vor.u32 %v739_v54, %v735_v30  ;;  %v239_v9 = vld [vmem:[%s4923_s17 + $0x74] sm:$0x1] }
  0x73   : > { %4308 = vmatpush3.bf16.msra.mxu1 %v5305_v42  ;;  %3460 = vmatprep.mubr.msk.bf16.mxu1 %vm5436_vm4, %v5480_v37  ;;  %v5526_v34 = vpack.c.bf16 %v546_v62, %v546_v62  ;;  %v747_v50 = vshrl.u32 %v5508_v61, 16  ;;  %v749_v47 = vshll.u32 %v5508_v61, 16  ;;  %v349_v51 = vmul.f32 %v4947_v35, %v290_v21  ;;  %v4633_v62 = vld [vmem:[%s6713_s2 + $0x90] sm:$0xff]  }
  0x74   : > { %v5519_v32 = vpack.c.bf16 %v6813_v16, %v6812_v18  ;;  %4309 = vmatprep.subr.bf16.mxu1 %v4632_v0  ;;  %v5533_v18 = vadd.f32 %v4951_v38, %v347_v17  ;;  %v5536_v42 = vadd.f32 %v4951_v38, %v348_v41  ;;  %v291_v30 = vunpack.c.l.bf16 %v237_v3 }
  0x75   : > { %v5542_v44 = vsel %vm661_vm2, %v740_v46, %v744_v55  ;;  %v751_v54 = vrot.slane %v749_v47, 1  ;;  %v754_v16 = vshll.u32 %v5526_v34, 16  ;;  %v292_v57 = vunpack.c.h.bf16 %v237_v3 }
  0x76   : > { %1161 = vmatprep.mubr.bf16.mxu0 %v5542_v44  ;;  %v407_v21 = vadd.f32 %v4951_v38, %v349_v51  ;;  %v459_v17 = vmax.f32 %v5533_v18, 0.0  ;;  %v6773_v41 = vmax.f32 %v5536_v42, 0.0  ;;  %v293_v15 = vunpack.c.l.bf16 %v239_v9 }
  0x77   : > { %v752_v13 = vor.u32 %v751_v54, %v747_v50  ;;  %v756_v12 = vrot.slane %v754_v16, 1  ;;  %4310 = vmatpush3.bf16.msra.mxu1 %v4632_v0  ;;  %v350_v14 = vmul.f32 %v4947_v35, %v291_v30  ;;  %v351_v55 = vmul.f32 %v4947_v35, %v292_v57  ;;  %v4634_v50 = vld [vmem:[%s6713_s2 + $0x98] sm:$0xff]  }
  0x78   : > { %1162 = vmatmul.mubr.bf16.gmra.mrb[20].mxu0 %v5486_v8  ;;  %v461_v46 = vmax.f32 %v407_v21, 0.0  ;;  %v547_v3 = vsel %vm493_vm0, %v459_v17, 0.0  ;;  %v352_v47 = vmul.f32 %v4947_v35, %v293_v15  ;;  %4311 = vmatprep.subr.bf16.mxu1 %v4633_v62 }
  0x79   : > { %v5561_v0 = vsel %vm661_vm2, %v752_v13, %v756_v12  ;;  %v5565_v57 = vpack.c.bf16 %v6773_v41, %v547_v3  ;;  %v5568_v9 = vadd.f32 %v4951_v38, %v350_v14  ;;  %v5571_v51 = vadd.f32 %v4951_v38, %v351_v55 }
  0x7a   : > { %3463 = vmatmul.mubr.msk.bf16.gmra.mrb[20].mxu1 %vm5436_vm4, %v5419_v49  ;;  %1169 = vmatprep.mubr.bf16.mxu0 %v5561_v0  ;;  %v549_v35 = vsel %vm504_vm1, %v461_v46, 0.0  ;;  %v410_v12 = vadd.f32 %v4951_v38, %v352_v47  ;;  %v4635_v38 = vld [vmem:[%s6713_s2 + $0xa0] sm:$0xff]   ;;  %v6814_v46 = vmax.f32 %v5320_v6, 0.0  ;;  %v6817_v6 = vmax.f32 %v5144_v52, 0.0 }
  0x7b   : > { %3466 = vmatprep.mubr.msk.bf16.mxu1 %vm5436_vm4, %v5519_v32  ;;  %v5583_v13 = vpack.c.bf16 %v549_v35, %v549_v35  ;;  %v759_v14 = vshrl.u32 %v5565_v57, 16  ;;  %v761_v15 = vshll.u32 %v5565_v57, 16  ;;  %v6774_v30 = vmax.f32 %v5568_v9, 0.0  ;;  %4312 = vmatpush3.bf16.msra.mxu1 %v4633_v62 }
  0x7c   : > { %v463_v49 = vmax.f32 %v5571_v51, 0.0  ;;  %v464_v54 = vmax.f32 %v410_v12, 0.0  ;;  %4313 = vmatprep.subr.bf16.mxu1 %v4634_v50  ;;  %v6815_v62 = vmax.f32 %v5333_v2, 0.0  ;;  %v6820_v52 = vmax.f32 %v5283_v56, 0.0 }
  0x7d   : > { %v763_v16 = vrot.slane %v761_v15, 1  ;;  %v766_v21 = vshll.u32 %v5583_v13, 16  ;;  %v550_v55 = vsel %vm493_vm0, %v6774_v30, 0.0  ;;  %v5615_v30 = vpack.c.bf16 %v6817_v6, %v6816_v19 }
  0x7e   : > { %v5601_v3 = vpack.c.bf16 %v6815_v62, %v6814_v46  ;;  %v552_v47 = vsel %vm504_vm1, %v464_v54, 0.0  ;;  %v5607_v35 = vpack.c.bf16 %v463_v49, %v550_v55  ;;  %v6818_v54 = vmax.f32 %v5224_v28, 0.0 }
  0x7f   : > { %v764_v12 = vor.u32 %v763_v16, %v759_v14  ;;  %v768_v15 = vrot.slane %v766_v21, 1  ;;  %v5609_v41 = vpack.c.bf16 %v552_v47, %v552_v47  ;;  %4314 = vmatpush3.bf16.msra.mxu1 %v4634_v50  ;;  %v4636_v14 = vld [vmem:[%s6713_s2 + $0xa8] sm:$0xff]   ;;  %v6819_v50 = vmax.f32 %v5233_v7, 0.0 }
  0x80   : > { %1170 = vmatmul.mubr.bf16.gmra.mrb[24].mxu0 %v5542_v44  ;;  %v771_v22 = vshrl.u32 %v5607_v35, 16  ;;  %v773_v2 = vshll.u32 %v5607_v35, 16  ;;  %4315 = vmatprep.subr.bf16.mxu1 %v4635_v38  ;;  %v6821_v16 = vmax.f32 %v5286_v36, 0.0  ;;  %v6822_v62 = vmax.f32 %v5359_v25, 0.0 }
  0x81   : > { %v5627_v43 = vpack.c.bf16 %v6819_v50, %v6818_v54  ;;  %v5636_v55 = vsel %vm661_vm2, %v764_v12, %v768_v15  ;;  %v778_v46 = vshll.u32 %v5609_v41, 16  ;;  %v6823_v47 = vmax.f32 %v5362_v31, 0.0  ;;  %v4637_v12 = vld [vmem:[%s6713_s2 + $0xb0] sm:$0xff]  }
  0x82   : > { %v5633_v21 = vpack.c.bf16 %v6821_v16, %v6820_v52  ;;  %3469 = vmatmul.mubr.msk.bf16.gmra.mrb[24].mxu1 %vm5436_vm4, %v5480_v37  ;;  %1177 = vmatprep.mubr.bf16.mxu0 %v5636_v55  ;;  %v775_v7 = vrot.slane %v773_v2, 1  ;;  %v1923_v36 = vrot.slane %v5230_v33, 1  ;;  %v1924_v25 = vrot.slane %v5241_v26, 1 }
  0x83   : > { %v5643_v28 = vpack.c.bf16 %v6823_v47, %v6822_v62  ;;  %3472 = vmatprep.mubr.msk.bf16.mxu1 %vm5436_vm4, %v5601_v3  ;;  %v780_v56 = vrot.slane %v778_v46, 1  ;;  %4316 = vmatpush3.bf16.msra.mxu1 %v4635_v38  ;;  %v1926_v15 = vrot.slane %v5352_v45, 1  ;;  %v1927_v19 = vrot.slane %v5364_v29, 1  ;;  %v4646_v45 = vld [vmem:[%s6713_s2 + $0xb8] sm:$0xff]  }
  0x84   : > { %v776_v31 = vor.u32 %v775_v7, %v771_v22  ;;  %4317 = vmatprep.subr.bf16.mxu1 %v4636_v14  ;;  %v5660_v6 = vsel %vm1913_vm5, %v1923_v36, %v1924_v25  ;;  %v6824_v26 = vmax.f32 %v5392_v27, 0.0  ;;  %v6825_v22 = vmax.f32 %v5395_v63, 0.0  ;;  %v5690_v63 = vld [vmem:[%s6713_s2 + $0x200] sm:$0xff]   ;;  %v6837_v47 = vld [vmem:[#allocation3_spill] sm:$0xff] }
  0x85   : > { %v5666_v33 = vsel %vm1913_vm5, %v1926_v15, %v1927_v19  ;;  %v1929_v27 = vrot.slane %v5424_v39, 1  ;;  %v1930_v29 = vrot.slane %v5443_v48, 1  ;;  %v6826_v54 = vmax.f32 %v5431_v53, 0.0  ;;  %v6842_v36 = vld [vmem:[#allocation11_spill] sm:$0xff]  ;;  %v4639_v15 = vld [vmem:[%s6713_s2 + $0x180] sm:$0xff]   ;;  %v4640_v19 = vld [vmem:[%s6713_s2 + $0x1c8] sm:$0xff]  }
  0x86   : > { %v5663_v38 = vsel %vm661_vm2, %v776_v31, %v780_v56  ;;  %v5672_v2 = vpack.c.bf16 %v6825_v22, %v6824_v26  ;;  %v6827_v50 = vmax.f32 %v5449_v58, 0.0  ;;  %v1932_v39 = vrot.slane %v5474_v23, 1  ;;  %v6846_v26 = vld [vmem:[#allocation21_spill] sm:$0xff] }
  0x87   : > { %4318 = vmatpush3.bf16.msra.mxu1 %v4636_v14  ;;  %v5693_v14 = vsel %vm1913_vm5, %v1929_v27, %v1930_v29  ;;  %v1933_v53 = vrot.slane %v5488_v40, 1  ;;  %v6828_v58 = vmax.f32 %v5467_v20, 0.0  ;;  %v6829_v16 = vmax.f32 %v5483_v24, 0.0  ;;  %v4641_v22 = vld [vmem:[%s6713_s2 + $0x188] sm:$0xff]   ;;  %v4642_v27 = vld [vmem:[%s6713_s2 + $0x1d0] sm:$0xff]  }
  0x88   : > { %1178 = vmatmul.mubr.bf16.gmra.mrb[28].mxu0 %v5561_v0  ;;  %4319 = vmatprep.subr.bf16.mxu1 %v4637_v12  ;;  %v5699_v52 = vpack.c.bf16 %v6827_v50, %v6826_v54  ;;  %v1935_v23 = vrot.slane %v5508_v61, 1  ;;  %v1936_v20 = vrot.slane %v5526_v34, 1  ;;  %v6830_v40 = vmax.f32 %v5536_v42, 0.0  ;;  %v4643_v29 = vld [vmem:[%s6713_s2 + $0x190] sm:$0xff]   ;;  %v4644_v54 = vld [vmem:[%s6713_s2 + $0x1d8] sm:$0xff]  }
  0x89   : > { %1185 = vmatprep.mubr.bf16.mxu0 %v5663_v38  ;;  %v5713_v48 = vsel %vm1913_vm5, %v1932_v39, %v1933_v53  ;;  %v5719_v46 = vpack.c.bf16 %v6829_v16, %v6828_v58  ;;  %v1938_v61 = vrot.slane %v5565_v57, 1  ;;  %v1939_v34 = vrot.slane %v5583_v13, 1  ;;  %v4645_v50 = vld [vmem:[%s6713_s2 + $0x198] sm:$0xff]   ;;  %v4647_v39 = vld [vmem:[%s6713_s2 + $0x1e0] sm:$0xff]   ;;  %v4650_v53 = vld [vmem:[%s6713_s2 + $0x1a8] sm:$0xff]  }
  0x8a   : > { %3475 = vmatmul.mubr.msk.bf16.gmra.mrb[28].mxu1 %vm5436_vm4, %v5519_v32  ;;  %v5732_v24 = vsel %vm1913_vm5, %v1935_v23, %v1936_v20  ;;  %v5738_v62 = vpack.c.bf16 %v6830_v40, %v459_v17  ;;  %v6831_v42 = vmax.f32 %v5568_v9, 0.0  ;;  %v1941_v17 = vrot.slane %v5607_v35, 1  ;;  %v4651_v58 = vld [vmem:[%s6713_s2 + $0x1f0] sm:$0xff]   ;;  %v6848_v16 = vld [vmem:[#allocation4_spill] sm:$0xff]  ;;  %v6849_v20 = vld [vmem:[#allocation5_spill] sm:$0xff] }
  0x8b   : > { %3478 = vmatprep.mubr.msk.bf16.mxu1 %vm5436_vm4, %v5672_v2  ;;  %4320 = vmatpush3.bf16.msra.mxu1 %v4637_v12  ;;  %v5751_v18 = vsel %vm1913_vm5, %v1938_v61, %v1939_v34  ;;  %v1942_v57 = vrot.slane %v5609_v41, 1  ;;  %v6832_v51 = vmax.f32 %v4980_v59, 0.0  ;;  %v6835_v41 = vld [vmem:[#allocation2_spill] sm:$0xff]  ;;  %v6838_v59 = vmax.f32 %v6837_v47, 0.0  ;;  %v6844_v12 = vld [vmem:[#allocation29_spill] sm:$0xff]  ;;  %v4653_v40 = vld [vmem:[%s6713_s2 + $0x1f8] sm:$0xff]  }
  0x8c   : > { %4321 = vmatprep.subr.bf16.mxu1 %v4646_v45  ;;  %v6836_v35 = vmax.f32 %v6835_v41, 0.0  ;;  %v6843_v25 = vmax.f32 %v6842_v36, 0.0  ;;  %v1917_v23 = vrot.slane %v6848_v16, 1  ;;  %v4654_v34 = vld [vmem:[%s6713_s2 + $0x1b8] sm:$0xff]   ;;  %v4656_v41 = vld [vmem:[%s6713_s2 + $0x208] sm:$0xff]  }
  0x8d   : > { %v5770_v9 = vsel %vm1913_vm5, %v1941_v17, %v1942_v57  ;;  %v6851_v57 = vld [vmem:[#allocation13_spill] sm:$0xff] }
  0x8e   : > { %v5790_v7 = vpack.c.bf16 %v6838_v59, %v6836_v35  ;;  %v4658_v35 = vld [vmem:[%s6713_s2 + $0x218] sm:$0xff]  }
  0x8f   : > { %4322 = vmatpush3.bf16.msra.mxu1 %v4646_v45  ;;  %v6847_v45 = vld [vmem:[#allocation27_spill] sm:$0xff] }
  0x90   : > { %1186 = vmatmul.mubr.bf16.gmra.mrb[32].mxu0 %v5636_v55  ;;  %4355 = vmatprep.subr.bf16.mxu1 %v5690_v63 }
  0x91   : > { %1193 = vmatprep.mubr.bf16.mxu0 %v5060_v11 }
  0x92   : > { %3481 = vmatmul.mubr.msk.bf16.gmra.mrb[32].mxu1 %vm5436_vm4, %v5601_v3 }
  0x93   : > { %3484 = vmatprep.mubr.msk.bf16.mxu1 %vm5436_vm4, %v5699_v52 }
  0x98   : > { %1194 = vmatmul.mubr.bf16.gmra.mrb[36].mxu0 %v5663_v38 }
  0x99   : > { %1201 = vmatprep.mubr.bf16.mxu0 %v5087_v1 }
  0x9a   : > { %3487 = vmatmul.mubr.msk.bf16.gmra.mrb[36].mxu1 %vm5436_vm4, %v5672_v2 }
  0x9b   : > { %3490 = vmatprep.mubr.msk.bf16.mxu1 %vm5436_vm4, %v5719_v46 }
  0xa0   : > { %1202 = vmatmul.mubr.bf16.gmra.mrb[40].mxu0 %v5060_v11  ;;  %v5757_v11 = vpack.c.bf16 %v463_v49, %v6831_v42  ;;  %v6834_v49 = vld [vmem:[#allocation22_spill] sm:$0xff]  ;;  %v6850_v42 = vld [vmem:[#allocation12_spill] sm:$0xff] }
  0xa1   : > { %1209 = vmatprep.mubr.bf16.mxu0 %v5195_v4  ;;  %v1920_v17 = vrot.slane %v6850_v42, 1 }
  0xa2   : > { %3493 = vmatmul.mubr.msk.bf16.gmra.mrb[40].mxu1 %vm5436_vm4, %v5699_v52 }
  0xa3   : > { %3496 = vmatprep.mubr.msk.bf16.mxu1 %vm5436_vm4, %v5738_v62 }
  0xa8   : > { %1210 = vmatmul.mubr.bf16.gmra.mrb[44].mxu0 %v5087_v1  ;;  %v6833_v1 = vmax.f32 %v4983_v60, 0.0  ;;  %v6839_v60 = vld [vmem:[#allocation25_spill] sm:$0xff] }
  0xa9   : > { %1217 = vmatprep.mubr.bf16.mxu0 %v5239_v5 }
  0xaa   : > { %3499 = vmatmul.mubr.msk.bf16.gmra.mrb[44].mxu1 %vm5436_vm4, %v5719_v46  ;;  %v5776_v13 = vpack.c.bf16 %v6833_v1, %v6832_v51  ;;  %v1921_v51 = vrot.slane %v6851_v57, 1 }
  0xab   : > { %3502 = vmatprep.mubr.msk.bf16.mxu1 %vm5436_vm4, %v5757_v11 }
  0xb0   : > { %1218 = vmatmul.mubr.bf16.gmra.mrb[48].mxu0 %v5195_v4  ;;  %v6840_v4 = vld [vmem:[#allocation10_spill] sm:$0xff] }
  0xb1   : > { %1225 = vmatprep.mubr.bf16.mxu0 %v6834_v49  ;;  %v6841_v56 = vmax.f32 %v6840_v4, 0.0 }
  0xb2   : > { %3505 = vmatmul.mubr.msk.bf16.gmra.mrb[48].mxu1 %vm5436_vm4, %v5738_v62 }
  0xb3   : > { %3508 = vmatprep.mubr.msk.bf16.mxu1 %vm5436_vm4, %v5776_v13  ;;  %v5804_v31 = vpack.c.bf16 %v6843_v25, %v6841_v56 }
  0xb8   : > { %1226 = vmatmul.mubr.bf16.gmra.mrb[52].mxu0 %v5239_v5  ;;  %v6845_v5 = vld [vmem:[#allocation16_spill] sm:$0xff] }
  0xb9   : > { %1233 = vmatprep.mubr.bf16.mxu0 %v6839_v60 }
  0xba   : > { %3511 = vmatmul.mubr.msk.bf16.gmra.mrb[52].mxu1 %vm5436_vm4, %v5757_v11 }
  0xbb   : > { %3514 = vmatprep.mubr.msk.bf16.mxu1 %vm5436_vm4, %v5790_v7 }
  0xc0   : > { %1234 = vmatmul.mubr.bf16.gmra.mrb[56].mxu0 %v6834_v49  ;;  %v5907_v49 = vsel %vm1913_vm5, %v1920_v17, %v1921_v51 }
  0xc1   : > { %1241 = vmatprep.mubr.bf16.mxu0 %v6844_v12 }
  0xc2   : > { %3517 = vmatmul.mubr.msk.bf16.gmra.mrb[56].mxu1 %vm5436_vm4, %v5776_v13 }
  0xc3   : > { %3520 = vmatprep.mubr.msk.bf16.mxu1 %vm5436_vm4, %v5804_v31 }
  0xc8   : > { %1242 = vmatmul.mubr.bf16.gmra.mrb[60].mxu0 %v6839_v60 }
  0xc9   : > { %4275 = vmatprep.mubr.bf16.mxu0 %v6845_v5  ;;  %v6853_v5 = vld [vmem:[#allocation6_spill] sm:$0xff] }
  0xca   : > { %3523 = vmatmul.mubr.msk.bf16.gmra.mrb[60].mxu1 %vm5436_vm4, %v5790_v7 }
  0xcb   : > { %3526 = vmatprep.mubr.msk.bf16.mxu1 %vm5436_vm4, %v5615_v30 }
  0xd0   : > { %4276 = vmatmul.mubr.bf16.vlgmr.msra.gmra.mrb[64].mxu0 %v6846_v26  ;;  %v6855_v26 = vld [vmem:[#allocation8_spill] sm:$0xff] }
  0xd1   : > { %4124 = vmatpush3.bf16.msra.mxu0 %v4639_v15  ;;  %4279 = vmatprep.mubr.bf16.mxu0 %v6847_v45  ;;  %v1944_v15 = vrot.slane %v6853_v5, 1  ;;  %v6856_v45 = vld [vmem:[#allocation9_spill] sm:$0xff]  ;;  %v6864_v5 = vld [vmem:[#allocation24_spill] sm:$0xff] }
  0xd2   : > { %3529 = vmatmul.mubr.msk.bf16.gmra.mrb[64].mxu1 %vm5436_vm4, %v5804_v31  ;;  %4125 = vmatprep.subr.bf16.mxu0 %v4640_v19  ;;  %v6854_v19 = vld [vmem:[#allocation7_spill] sm:$0xff] }
  0xd3   : > { %3532 = vmatprep.mubr.msk.bf16.mxu1 %vm5436_vm4, %v5627_v43 }
  0xd5   : > { %4126 = vmatpush3.bf16.msra.mxu0 %v4641_v22  ;;  %v1947_v22 = vrot.slane %v6855_v26, 1 }
  0xd6   : > { %4127 = vmatprep.subr.bf16.mxu0 %v4642_v27  ;;  %v1948_v27 = vrot.slane %v6856_v45, 1 }
  0xd8   : > { %4280 = vmatmul.mubr.bf16.gmra.mrb[68].mxu0 %v5486_v8  ;;  %v4648_v8 = vld [vmem:[%s6713_s2 + $0x1a0] sm:$0xff]  }
  0xd9   : > { %4128 = vmatpush3.bf16.msra.mxu0 %v4643_v29  ;;  %4283 = vmatprep.mubr.bf16.mxu0 %v5542_v44  ;;  %v4649_v44 = vld [vmem:[%s6713_s2 + $0x1e8] sm:$0xff]   ;;  %v1949_v29 = vsel %vm1913_vm5, %v1947_v22, %v1948_v27 }
  0xda   : > { %3535 = vmatmul.mubr.msk.bf16.gmra.mrb[68].mxu1 %vm5436_vm4, %v5615_v30  ;;  %4129 = vmatprep.subr.bf16.mxu0 %v4644_v54 }
  0xdb   : > { %3538 = vmatprep.mubr.msk.bf16.mxu1 %vm5436_vm4, %v5633_v21 }
  0xdd   : > { %4130 = vmatpush3.bf16.msra.mxu0 %v4645_v50 }
  0xde   : > { %4131 = vmatprep.subr.bf16.mxu0 %v4647_v39 }
  0xe0   : > { %4284 = vmatmul.mubr.bf16.gmra.mrb[72].mxu0 %v5561_v0  ;;  %v1918_v0 = vrot.slane %v6849_v20, 1  ;;  %v6859_v20 = vld [vmem:[#allocation17_spill] sm:$0xff] }
  0xe1   : > { %4132 = vmatpush3.bf16.msra.mxu0 %v4648_v8  ;;  %4287 = vmatprep.mubr.bf16.mxu0 %v5636_v55  ;;  %v4652_v55 = vld [vmem:[%s6713_s2 + $0x1b0] sm:$0xff]  }
  0xe2   : > { %3541 = vmatmul.mubr.msk.bf16.gmra.mrb[72].mxu1 %vm5436_vm4, %v5627_v43  ;;  %4133 = vmatprep.subr.bf16.mxu0 %v4649_v44  ;;  %v1919_v61 = vsel %vm1913_vm5, %v1917_v23, %v1918_v0  ;;  %v1953_v0 = vrot.slane %v6859_v20, 1 }
  0xe3   : > { %3544 = vmatprep.mubr.msk.bf16.mxu1 %vm5436_vm4, %v5643_v28 }
  0xe5   : > { %4134 = vmatpush3.bf16.msra.mxu0 %v4650_v53 }
  0xe6   : > { %4135 = vmatprep.subr.bf16.mxu0 %v4651_v58  ;;  %v6858_v58 = vld [vmem:[#allocation15_spill] sm:$0xff] }
  0xe7   : > { %v1951_v16 = vrot.slane %v6858_v58, 1 }
  0xe8   : > { %4288 = vmatmul.mubr.bf16.gmra.mrb[76].mxu0 %v5663_v38  ;;  %v6852_v38 = vmov 0.0|0.0  }
  0xe9   : > { %4136 = vmatpush3.bf16.msra.mxu0 %v4652_v55  ;;  %2211 = vmatprep.mubr.bf16.mxu0 %v1919_v61  ;;  %v5904_v1 = vrot.slane %v6852_v38, 1  ;;  %v6860_v55 = vld [vmem:[#allocation18_spill] sm:$0xff] }
  0xea   : > { %3547 = vmatmul.mubr.msk.bf16.gmra.mrb[76].mxu1 %vm5436_vm4, %v5633_v21  ;;  %4137 = vmatprep.subr.bf16.mxu0 %v4653_v40  ;;  %v1954_v40 = vrot.slane %v6860_v55, 1 }
  0xeb   : > { %4323 = vmatprep.mubr.msk.bf16.mxu1 %vm5436_vm4, %v5480_v37  ;;  %v4657_v37 = vld [vmem:[%s6713_s2 + $0x210] sm:$0xff]  }
  0xec   : > { %v1955_v51 = vsel %vm1913_vm5, %v1953_v0, %v1954_v40 }
  0xed   : > { %4138 = vmatpush3.bf16.msra.mxu0 %v4654_v34 }
  0xf0   : > { %2212 = vmatmul.mubr.bf16.vlgmr.msra.gmra.mrb[80].mxu0 %v5904_v1 }
  0xf1   : > { %2219 = vmatprep.mubr.bf16.mxu0 %v5907_v49 }
  0xf2   : > { %4324 = vmatmul.mubr.msk.bf16.vlgmr.msra.gmra.mrb[80].mxu1 %vm5436_vm4, %v5519_v32  ;;  %v4659_v32 = vld [vmem:[%s6713_s2 + $0x220] sm:$0xff]  }
  0xf3   : > { %4356 = vmatpush3.bf16.msra.mxu1 %v5690_v63  ;;  %4327 = vmatprep.mubr.msk.bf16.mxu1 %vm5436_vm4, %v5601_v3  ;;  %v4660_v3 = vld [vmem:[%s6713_s2 + $0x228] sm:$0xff]  }
  0xf4   : > { %4357 = vmatprep.subr.bf16.mxu1 %v4656_v41 }
  0xf7   : > { %4358 = vmatpush3.bf16.msra.mxu1 %v4656_v41 }
  0xf8   : > { %2220 = vmatmul.mubr.bf16.gmra.mrb[84].mxu0 %v1919_v61  ;;  %4359 = vmatprep.subr.bf16.mxu1 %v4657_v37 }
  0xf9   : > { %2227 = vmatprep.mubr.bf16.mxu0 %v5660_v6 }
  0xfa   : > { %4328 = vmatmul.mubr.msk.bf16.gmra.mrb[84].mxu1 %vm5436_vm4, %v5672_v2  ;;  %v4661_v2 = vld [vmem:[%s6713_s2 + $0x230] sm:$0xff]  }
  0xfb   : > { %4331 = vmatprep.mubr.msk.bf16.mxu1 %vm5436_vm4, %v5699_v52  ;;  %4360 = vmatpush3.bf16.msra.mxu1 %v4657_v37  ;;  %v4662_v52 = vld [vmem:[%s6713_s2 + $0x238] sm:$0xff]  }
  0xfc   : > { %4361 = vmatprep.subr.bf16.mxu1 %v4658_v35 }
  0xff   : > { %4362 = vmatpush3.bf16.msra.mxu1 %v4658_v35 }
 0x100   : > { %2228 = vmatmul.mubr.bf16.gmra.mrb[88].mxu0 %v5907_v49  ;;  %4363 = vmatprep.subr.bf16.mxu1 %v4659_v32 }
 0x101   : > { %2235 = vmatprep.mubr.bf16.mxu0 %v5666_v33 }
 0x102   : > { %4332 = vmatmul.mubr.msk.bf16.gmra.mrb[88].mxu1 %vm5436_vm4, %v5719_v46 }
 0x103   : > { %4335 = vmatprep.mubr.msk.bf16.mxu1 %vm5436_vm4, %v5738_v62  ;;  %4364 = vmatpush3.bf16.msra.mxu1 %v4659_v32  ;;  %v3867_v63 = vpop.f32.mrb[0].mxu0  ;;  %v6862_v32 = vld [vmem:[#allocation20_spill] sm:$0xff] }
 0x104   : > { %4365 = vmatprep.subr.bf16.mxu1 %v4660_v3  ;;  %v3868_v46 = vpop.f32.mrb[1].mxu0 }
 0x105   : > { %v5959_v62 = vadd.f32 %v3868_v46, %v3867_v63  ;;  %v3870_v47 = vpop.f32.mrb[2].mxu0 }
 0x106   : > { %v3871_v59 = vpop.f32.mrb[3].mxu0 }
 0x107   : > { %4366 = vmatpush3.bf16.msra.mxu1 %v4660_v3  ;;  %v5964_v60 = vadd.f32 %v3871_v59, %v3870_v47  ;;  %v1957_v3 = vrot.slane %v6862_v32, 1 }
 0x108   : > { %2236 = vmatmul.mubr.bf16.gmra.mrb[92].mxu0 %v5660_v6  ;;  %4367 = vmatprep.subr.bf16.mxu1 %v4661_v2 }
 0x109   : > { %2243 = vmatprep.mubr.bf16.mxu0 %v5693_v14 }
 0x10a   : > { %4336 = vmatmul.mubr.msk.bf16.gmra.mrb[92].mxu1 %vm5436_vm4, %v5757_v11 }
 0x10b   : > { %4339 = vmatprep.mubr.msk.bf16.mxu1 %vm5436_vm4, %v5776_v13  ;;  %4368 = vmatpush3.bf16.msra.mxu1 %v4661_v2 }
 0x10c   : > { %4369 = vmatprep.subr.bf16.mxu1 %v4662_v52 }
 0x10f   : > { %4370 = vmatpush3.bf16.msra.mxu1 %v4662_v52 }
 0x110   : > { %2244 = vmatmul.mubr.bf16.gmra.mrb[96].mxu0 %v5666_v33 }
 0x111   : > { %2251 = vmatprep.mubr.bf16.mxu0 %v5713_v48 }
 0x112   : > { %4340 = vmatmul.mubr.msk.bf16.gmra.mrb[0].mxu1 %vm5436_vm4, %v5790_v7 }
 0x113   : > { %4343 = vmatprep.mubr.msk.bf16.mxu1 %vm5436_vm4, %v5804_v31 }
 0x115   : > { %v3873_v11 = vpop.f32.mrb[4].mxu0 }
 0x116   : > { %v3874_v13 = vpop.f32.mrb[5].mxu0 }
 0x117   : > { %v5976_v4 = vadd.f32 %v3874_v13, %v3873_v11  ;;  %v3876_v56 = vpop.f32.mrb[6].mxu0 }
 0x118   : > { %2252 = vmatmul.mubr.bf16.gmra.mrb[100].mxu0 %v5693_v14  ;;  %v3877_v36 = vpop.f32.mrb[7].mxu0 }
 0x119   : > { %2259 = vmatprep.mubr.bf16.mxu0 %v5732_v24  ;;  %v5984_v7 = vadd.f32 %v3877_v36, %v3876_v56 }
 0x11a   : > { %4344 = vmatmul.mubr.msk.bf16.gmra.mrb[4].mxu1 %vm5436_vm4, %v5615_v30 }
 0x11b   : > { %4347 = vmatprep.mubr.msk.bf16.mxu1 %vm5436_vm4, %v5627_v43 }
 0x120   : > { %2260 = vmatmul.mubr.bf16.gmra.mrb[104].mxu0 %v5713_v48 }
 0x121   : > { %2267 = vmatprep.mubr.bf16.mxu0 %v5751_v18 }
 0x122   : > { %4348 = vmatmul.mubr.msk.bf16.gmra.mrb[8].mxu1 %vm5436_vm4, %v5633_v21  ;;  %v1945_v21 = vrot.slane %v6854_v19, 1 }
 0x123   : > { %4351 = vmatprep.mubr.msk.bf16.mxu1 %vm5436_vm4, %v5643_v28 }
 0x124   : > { %v1946_v28 = vsel %vm1913_vm5, %v1944_v15, %v1945_v21  ;;  %v1960_v15 = vrot.slane %v6864_v5, 1 }
 0x127   : > { %v3879_v30 = vpop.f32.mrb[8].mxu0 }
 0x128   : > { %2268 = vmatmul.mubr.bf16.gmra.mrb[108].mxu0 %v5732_v24  ;;  %v3880_v25 = vpop.f32.mrb[9].mxu0 }
 0x129   : > { %2275 = vmatprep.mubr.bf16.mxu0 %v5770_v9  ;;  %v5996_v43 = vadd.f32 %v3880_v25, %v3879_v30  ;;  %v3882_v31 = vpop.f32.mrb[10].mxu0 }
 0x12a   : > { %4352 = vmatmul.mubr.bf16.gmra.mrb[12].mxu1 %v6852_v38  ;;  %v3883_v12 = vpop.f32.mrb[11].mxu0 }
 0x12b   : > { %4371 = vmatprep.mubr.bf16.mxu1 %v5907_v49  ;;  %v6002_v10 = vadd.f32 %v3883_v12, %v3882_v31  ;;  %v6863_v31 = vld [vmem:[#allocation23_spill] sm:$0xff] }
 0x12c   : > { %v1959_v12 = vrot.slane %v6863_v31, 1 }
 0x130   : > { %2276 = vmatmul.mubr.bf16.gmra.mrb[112].mxu0 %v5751_v18 }
 0x131   : > { %2283 = vmatprep.mubr.bf16.mxu0 %v1946_v28 }
 0x132   : > { %4372 = vmatmul.mubr.bf16.vlgmr.msra.gmra.mrb[80].mxu1 %v5660_v6  ;;  %v6857_v6 = vld [vmem:[#allocation14_spill] sm:$0xff] }
 0x133   : > { %4375 = vmatprep.mubr.bf16.mxu1 %v5666_v33  ;;  %v1950_v53 = vrot.slane %v6857_v6, 1 }
 0x135   : > { %v1952_v33 = vsel %vm1913_vm5, %v1950_v53, %v1951_v16  ;;  %v6865_v53 = vld [vmem:[#allocation26_spill] sm:$0xff]  ;;  %v6866_v16 = vld [vmem:[#allocation28_spill] sm:$0xff] }
 0x136   : > { %v1962_v58 = vrot.slane %v6865_v53, 1 }
 0x137   : > { %v3885_v54 = vpop.f32.mrb[12].mxu0 }
 0x138   : > { %2284 = vmatmul.mubr.bf16.gmra.mrb[116].mxu0 %v5770_v9  ;;  %v3886_v50 = vpop.f32.mrb[13].mxu0 }
 0x139   : > { %v6012_v39 = vadd.f32 %v3886_v50, %v3885_v54  ;;  %v3888_v8 = vpop.f32.mrb[14].mxu0  ;;  %2291 = vmatprep.mubr.bf16.mxu0 %v1949_v29  ;;  %v1961_v54 = vsel %vm1913_vm5, %v1959_v12, %v1960_v15 }
 0x13a   : > { %4376 = vmatmul.mubr.bf16.gmra.mrb[84].mxu1 %v5693_v14  ;;  %v3889_v44 = vpop.f32.mrb[15].mxu0 }
 0x13b   : > { %v6017_v23 = vadd.f32 %v3889_v44, %v3888_v8  ;;  %4379 = vmatprep.mubr.bf16.mxu1 %v5713_v48 }
 0x140   : > { %2292 = vmatmul.mubr.bf16.gmra.mrb[120].mxu0 %v1946_v28 }
 0x141   : > { %2299 = vmatprep.mubr.bf16.mxu0 %v1952_v33 }
 0x142   : > { %4380 = vmatmul.mubr.bf16.gmra.mrb[88].mxu1 %v5732_v24 }
 0x143   : > { %v3891_v14 = vpop.f32.mrb[16].mxu0  ;;  %4383 = vmatprep.mubr.bf16.mxu1 %v5751_v18  ;;  %v6861_v18 = vld [vmem:[#allocation19_spill] sm:$0xff] }
 0x144   : > { %v3892_v61 = vpop.f32.mrb[17].mxu0  ;;  %v1956_v35 = vrot.slane %v6861_v18, 1 }
 0x145   : > { %v4003_v34 = vpop.f32.mrb[16].mxu1  ;;  %v6025_v42 = vadd.f32 %v3892_v61, %v3891_v14  ;;  %v3894_v17 = vpop.f32.mrb[18].mxu0 }
 0x146   : > { %v4004_v57 = vpop.f32.mrb[17].mxu1  ;;  %v3895_v48 = vpop.f32.mrb[19].mxu0  ;;  %v1958_v13 = vsel %vm1913_vm5, %v1956_v35, %v1957_v3 }
 0x147   : > { %v6028_v38 = vadd.f32 %v4004_v57, %v4003_v34  ;;  %v4006_v49 = vpop.f32.mrb[18].mxu1  ;;  %v6030_v24 = vadd.f32 %v3895_v48, %v3894_v17 }
 0x148   : > { %v4007_v41 = vpop.f32.mrb[19].mxu1  ;;  %2300 = vmatmul.mubr.bf16.gmra.mrb[124].mxu0 %v1949_v29 }
 0x149   : > { %v6032_v37 = vadd.f32 %v4007_v41, %v4006_v49  ;;  %2307 = vmatprep.mubr.bf16.mxu0 %v1955_v51 }
 0x14a   : > { %4384 = vmatmul.mubr.bf16.gmra.mrb[92].mxu1 %v5770_v9 }
 0x14b   : > { %v3897_v2 = vpop.f32.mrb[20].mxu0  ;;  %4387 = vmatprep.mubr.bf16.mxu1 %v1946_v28 }
 0x14c   : > { %v3898_v63 = vpop.f32.mrb[21].mxu0 }
 0x14d   : > { %v4009_v52 = vpop.f32.mrb[20].mxu1  ;;  %v6037_v46 = vadd.f32 %v3898_v63, %v3897_v2  ;;  %v3900_v47 = vpop.f32.mrb[22].mxu0 }
 0x14e   : > { %v4010_v59 = vpop.f32.mrb[21].mxu1  ;;  %v3901_v11 = vpop.f32.mrb[23].mxu0 }
 0x14f   : > { %v6040_v56 = vadd.f32 %v4010_v59, %v4009_v52  ;;  %v4012_v36 = vpop.f32.mrb[22].mxu1  ;;  %v6042_v30 = vadd.f32 %v3901_v11, %v3900_v47 }
 0x150   : > { %v4013_v9 = vpop.f32.mrb[23].mxu1  ;;  %2308 = vmatmul.mubr.bf16.gmra.mrb[128].mxu0 %v1952_v33 }
 0x151   : > { %v6044_v25 = vadd.f32 %v4013_v9, %v4012_v36  ;;  %2315 = vmatprep.mubr.bf16.mxu0 %v1958_v13 }
 0x152   : > { %4388 = vmatmul.mubr.bf16.gmra.mrb[0].mxu1 %v1949_v29 }
 0x153   : > { %v3903_v19 = vpop.f32.mrb[24].mxu0  ;;  %4391 = vmatprep.mubr.bf16.mxu1 %v1952_v33  ;;  %v1963_v33 = vrot.slane %v6866_v16, 1 }
 0x154   : > { %v3904_v21 = vpop.f32.mrb[25].mxu0 }
 0x155   : > { %v4015_v28 = vpop.f32.mrb[24].mxu1  ;;  %v6048_v26 = vadd.f32 %v3904_v21, %v3903_v19  ;;  %v3906_v22 = vpop.f32.mrb[26].mxu0  ;;  %v1964_v17 = vsel %vm1913_vm5, %v1962_v58, %v1963_v33 }
 0x156   : > { %v4016_v45 = vpop.f32.mrb[25].mxu1  ;;  %v3907_v27 = vpop.f32.mrb[27].mxu0 }
 0x157   : > { %v6051_v50 = vadd.f32 %v4016_v45, %v4015_v28  ;;  %v4018_v8 = vpop.f32.mrb[26].mxu1  ;;  %v6053_v44 = vadd.f32 %v3907_v27, %v3906_v22 }
 0x158   : > { %v4019_v29 = vpop.f32.mrb[27].mxu1  ;;  %2316 = vmatmul.mubr.bf16.gmra.mrb[132].mxu0 %v1955_v51 }
 0x159   : > { %v6055_v6 = vadd.f32 %v4019_v29, %v4018_v8  ;;  %2323 = vmatprep.mubr.bf16.mxu0 %v1961_v54 }
 0x15a   : > { %4392 = vmatmul.mubr.bf16.gmra.mrb[4].mxu1 %v1955_v51 }
 0x15b   : > { %v3909_v20 = vpop.f32.mrb[28].mxu0  ;;  %4395 = vmatprep.mubr.bf16.mxu1 %v1958_v13 }
 0x15c   : > { %v3910_v0 = vpop.f32.mrb[29].mxu0 }
 0x15d   : > { %v4021_v55 = vpop.f32.mrb[28].mxu1  ;;  %v6059_v40 = vadd.f32 %v3910_v0, %v3909_v20  ;;  %v3912_v14 = vpop.f32.mrb[30].mxu0 }
 0x15e   : > { %v4022_v61 = vpop.f32.mrb[29].mxu1  ;;  %v3913_v34 = vpop.f32.mrb[31].mxu0 }
 0x15f   : > { %v6062_v57 = vadd.f32 %v4022_v61, %v4021_v55  ;;  %v4024_v48 = vpop.f32.mrb[30].mxu1  ;;  %v6064_v49 = vadd.f32 %v3913_v34, %v3912_v14 }
 0x160   : > { %v4025_v51 = vpop.f32.mrb[31].mxu1  ;;  %2324 = vmatmul.mubr.bf16.gmra.mrb[136].mxu0 %v1958_v13 }
 0x161   : > { %v6066_v41 = vadd.f32 %v4025_v51, %v4024_v48  ;;  %2331 = vmatprep.mubr.bf16.mxu0 %v1964_v17 }
 0x162   : > { %4396 = vmatmul.mubr.bf16.gmra.mrb[8].mxu1 %v1961_v54 }
 0x163   : > { %v3915_v18 = vpop.f32.mrb[32].mxu0  ;;  %4399 = vmatprep.mubr.bf16.mxu1 %v1964_v17 }
 0x164   : > { %v3916_v35 = vpop.f32.mrb[33].mxu0 }
 0x165   : > { %v4027_v32 = vpop.f32.mrb[32].mxu1  ;;  %v3917_v3 = vadd.f32 %v3916_v35, %v3915_v18  ;;  %v3918_v2 = vpop.f32.mrb[34].mxu0 }
 0x166   : > { %v4028_v63 = vpop.f32.mrb[33].mxu1  ;;  %v3919_v52 = vpop.f32.mrb[35].mxu0 }
 0x167   : > { %v6068_v47 = vadd.f32 %v4028_v63, %v4027_v32  ;;  %v4030_v59 = vpop.f32.mrb[34].mxu1  ;;  %v3920_v11 = vadd.f32 %v3919_v52, %v3918_v2 }
 0x168   : > { %v4031_v36 = vpop.f32.mrb[35].mxu1  ;;  %2332 = vmatmul.mubr.bf16.gmra.mrb[140].mxu0 %v1961_v54 }
 0x169   : > { %v6070_v9 = vadd.f32 %v4031_v36, %v4030_v59 }
 0x16a   : > { %4400 = vmatmul.mubr.bf16.gmra.mrb[12].mxu1 %v5904_v1 }
 0x16b   : > { %v3921_v13 = vpop.f32.mrb[36].mxu0 }
 0x16c   : > { %v3922_v31 = vpop.f32.mrb[37].mxu0 }
 0x16d   : > { %v4033_v12 = vpop.f32.mrb[36].mxu1  ;;  %v3923_v5 = vadd.f32 %v3922_v31, %v3921_v13  ;;  %v3924_v15 = vpop.f32.mrb[38].mxu0 }
 0x16e   : > { %v4034_v19 = vpop.f32.mrb[37].mxu1  ;;  %v3925_v21 = vpop.f32.mrb[39].mxu0 }
 0x16f   : > { %v6073_v28 = vadd.f32 %v4034_v19, %v4033_v12  ;;  %v4036_v22 = vpop.f32.mrb[38].mxu1  ;;  %v3926_v45 = vadd.f32 %v3925_v21, %v3924_v15 }
 0x170   : > { %v4037_v27 = vpop.f32.mrb[39].mxu1 }
 0x171   : > { %v6075_v8 = vadd.f32 %v4037_v27, %v4036_v22 }
 0x173   : > { %v3927_v29 = vpop.f32.mrb[40].mxu0 }
 0x174   : > { %v3928_v54 = vpop.f32.mrb[41].mxu0 }
 0x175   : > { %v4039_v53 = vpop.f32.mrb[40].mxu1  ;;  %v3929_v58 = vadd.f32 %v3928_v54, %v3927_v29  ;;  %v3930_v16 = vpop.f32.mrb[42].mxu0 }
 0x176   : > { %v4040_v1 = vpop.f32.mrb[41].mxu1  ;;  %v3931_v33 = vpop.f32.mrb[43].mxu0 }
 0x177   : > { %v6077_v20 = vadd.f32 %v4040_v1, %v4039_v53  ;;  %v4042_v0 = vpop.f32.mrb[42].mxu1  ;;  %v3932_v55 = vadd.f32 %v3931_v33, %v3930_v16 }
 0x178   : > { %v4043_v14 = vpop.f32.mrb[43].mxu1 }
 0x179   : > { %v6079_v61 = vadd.f32 %v4043_v14, %v4042_v0 }
 0x17b   : > { %v3933_v34 = vpop.f32.mrb[44].mxu0 }
 0x17c   : > { %v3934_v17 = vpop.f32.mrb[45].mxu0 }
 0x17d   : > { %v4045_v48 = vpop.f32.mrb[44].mxu1  ;;  %v3935_v51 = vadd.f32 %v3934_v17, %v3933_v34  ;;  %v3936_v18 = vpop.f32.mrb[46].mxu0 }
 0x17e   : > { %v4046_v35 = vpop.f32.mrb[45].mxu1  ;;  %v3937_v32 = vpop.f32.mrb[47].mxu0 }
 0x17f   : > { %v6081_v2 = vadd.f32 %v4046_v35, %v4045_v48  ;;  %v4048_v63 = vpop.f32.mrb[46].mxu1  ;;  %v3938_v52 = vadd.f32 %v3937_v32, %v3936_v18 }
 0x180   : > { %v4049_v59 = vpop.f32.mrb[47].mxu1 }
 0x181   : > { %v6083_v36 = vadd.f32 %v4049_v59, %v4048_v63 }
 0x183   : > { %v3939_v13 = vpop.f32.mrb[48].mxu0 }
 0x184   : > { %v3940_v31 = vpop.f32.mrb[49].mxu0 }
 0x185   : > { %v4051_v12 = vpop.f32.mrb[48].mxu1  ;;  %v6085_v15 = vadd.f32 %v3940_v31, %v3939_v13  ;;  %v3942_v19 = vpop.f32.mrb[50].mxu0 }
 0x186   : > { %v4052_v21 = vpop.f32.mrb[49].mxu1  ;;  %v3943_v22 = vpop.f32.mrb[51].mxu0 }
 0x187   : > { %v4053_v27 = vadd.f32 %v4052_v21, %v4051_v12  ;;  %v4054_v29 = vpop.f32.mrb[50].mxu1  ;;  %v6087_v54 = vadd.f32 %v3943_v22, %v3942_v19 }
 0x188   : > { %v4055_v53 = vpop.f32.mrb[51].mxu1 }
 0x189   : > { %v6089_v16 = vadd.f32 %v4053_v27, %v3917_v3  ;;  %v4056_v1 = vadd.f32 %v4055_v53, %v4054_v29 }
 0x18b   : > { %v6091_v33 = vadd.f32 %v4056_v1, %v3920_v11  ;;  %v3945_v0 = vpop.f32.mrb[52].mxu0 }
 0x18c   : > { %v3946_v14 = vpop.f32.mrb[53].mxu0 }
 0x18d   : > { %v4057_v34 = vpop.f32.mrb[52].mxu1  ;;  %v6093_v17 = vadd.f32 %v3946_v14, %v3945_v0  ;;  %v3948_v48 = vpop.f32.mrb[54].mxu0 }
 0x18e   : > { %v4058_v18 = vpop.f32.mrb[53].mxu1  ;;  %v3949_v35 = vpop.f32.mrb[55].mxu0 }
 0x18f   : > { %v4059_v32 = vadd.f32 %v4058_v18, %v4057_v34  ;;  %v4060_v63 = vpop.f32.mrb[54].mxu1  ;;  %v6095_v59 = vadd.f32 %v3949_v35, %v3948_v48 }
 0x190   : > { %v4061_v13 = vpop.f32.mrb[55].mxu1 }
 0x191   : > { %v6097_v31 = vadd.f32 %v4059_v32, %v3923_v5  ;;  %v4062_v3 = vadd.f32 %v4061_v13, %v4060_v63 }
 0x193   : > { %v6099_v12 = vadd.f32 %v4062_v3, %v3926_v45  ;;  %v3951_v11 = vpop.f32.mrb[56].mxu0 }
 0x194   : > { %v3952_v19 = vpop.f32.mrb[57].mxu0 }
 0x195   : > { %6867 = vst [vmem:[#allocation22_spill] sm:$0xff] %v6099_v12  ;;  %v4063_v21 = vpop.f32.mrb[56].mxu1  ;;  %v6101_v22 = vadd.f32 %v3952_v19, %v3951_v11  ;;  %v3954_v27 = vpop.f32.mrb[58].mxu0 }
 0x196   : > { %v4064_v29 = vpop.f32.mrb[57].mxu1  ;;  %v3955_v53 = vpop.f32.mrb[59].mxu0 }
 0x197   : > { %v4065_v1 = vadd.f32 %v4064_v29, %v4063_v21  ;;  %v4066_v0 = vpop.f32.mrb[58].mxu1  ;;  %v6103_v14 = vadd.f32 %v3955_v53, %v3954_v27 }
 0x198   : > { %v4067_v34 = vpop.f32.mrb[59].mxu1 }
 0x199   : > { %v6105_v48 = vadd.f32 %v4065_v1, %v3929_v58  ;;  %v4068_v5 = vadd.f32 %v4067_v34, %v4066_v0 }
 0x19b   : > { %v6107_v18 = vadd.f32 %v4068_v5, %v3932_v55  ;;  %v3957_v45 = vpop.f32.mrb[60].mxu0 }
 0x19c   : > { %v3958_v35 = vpop.f32.mrb[61].mxu0 }
 0x19d   : > { %v4069_v32 = vpop.f32.mrb[60].mxu1  ;;  %v6109_v63 = vadd.f32 %v3958_v35, %v3957_v45  ;;  %v3960_v13 = vpop.f32.mrb[62].mxu0 }
 0x19e   : > { %v4070_v3 = vpop.f32.mrb[61].mxu1  ;;  %v3961_v11 = vpop.f32.mrb[63].mxu0 }
 0x19f   : > { %v4071_v19 = vadd.f32 %v4070_v3, %v4069_v32  ;;  %v4072_v12 = vpop.f32.mrb[62].mxu1  ;;  %v6111_v21 = vadd.f32 %v3961_v11, %v3960_v13 }
 0x1a0   : > { %v4073_v27 = vpop.f32.mrb[63].mxu1 }
 0x1a1   : > { %v6113_v29 = vadd.f32 %v4071_v19, %v3935_v51  ;;  %v4074_v58 = vadd.f32 %v4073_v27, %v4072_v12 }
 0x1a3   : > { %v6115_v53 = vadd.f32 %v4074_v58, %v3938_v52  ;;  %v4277_v55 = vpop.f32.mrb[64].mxu0 }
 0x1a4   : > { %v1293_v1 = vadd.f32 %v4277_v55, %v5976_v4  ;;  %v1284_v0 = vpop.f32.mrb[65].mxu0 }
 0x1a5   : > { %v4075_v34 = vpop.f32.mrb[64].mxu1  ;;  %v1285_v5 = vadd.f32 %v5959_v62, %v1284_v0  ;;  %v4278_v45 = vpop.f32.mrb[66].mxu0 }
 0x1a6   : > { %v6120_v35 = vadd.f32 %v6040_v56, %v1293_v1  ;;  %v4076_v32 = vpop.f32.mrb[65].mxu1  ;;  %v1296_v13 = vadd.f32 %v4278_v45, %v5984_v7  ;;  %v1287_v3 = vpop.f32.mrb[67].mxu0 }
 0x1a7   : > { %v6124_v51 = vadd.f32 %v6028_v38, %v1285_v5  ;;  %v4077_v52 = vadd.f32 %v4076_v32, %v4075_v34  ;;  %v4078_v12 = vpop.f32.mrb[66].mxu1  ;;  %v1288_v11 = vadd.f32 %v5964_v60, %v1287_v3 }
 0x1a8   : > { %v6128_v4 = vadd.f32 %v6044_v25, %v1296_v13  ;;  %v4079_v19 = vpop.f32.mrb[67].mxu1 }
 0x1a9   : > { %v6131_v62 = vadd.f32 %v4077_v52, %v6085_v15  ;;  %v6134_v56 = vadd.f32 %v6032_v37, %v1288_v11  ;;  %v4080_v27 = vadd.f32 %v4079_v19, %v4078_v12 }
 0x1ab   : > { %6868 = vst [vmem:[#allocation2_spill] sm:$0xff] %v6131_v62  ;;  %v6137_v7 = vadd.f32 %v4080_v27, %v6087_v54  ;;  %v4281_v38 = vpop.f32.mrb[68].mxu0 }
 0x1ac   : > { %v1309_v58 = vadd.f32 %v4281_v38, %v6012_v39  ;;  %v1300_v55 = vpop.f32.mrb[69].mxu0 }
 0x1ad   : > { %6869 = vst [vmem:[#allocation3_spill] sm:$0xff] %v6137_v7  ;;  %v4081_v1 = vpop.f32.mrb[68].mxu1  ;;  %v1301_v60 = vadd.f32 %v5996_v43, %v1300_v55  ;;  %v4282_v25 = vpop.f32.mrb[70].mxu0 }
 0x1ae   : > { %v6142_v0 = vadd.f32 %v6062_v57, %v1309_v58  ;;  %v4082_v15 = vpop.f32.mrb[69].mxu1  ;;  %v1312_v34 = vadd.f32 %v4282_v25, %v6017_v23  ;;  %v1303_v37 = vpop.f32.mrb[71].mxu0 }
 0x1af   : > { %v6146_v5 = vadd.f32 %v6051_v50, %v1301_v60  ;;  %v4083_v54 = vadd.f32 %v4082_v15, %v4081_v1  ;;  %v4084_v45 = vpop.f32.mrb[70].mxu1  ;;  %v1304_v32 = vadd.f32 %v6002_v10, %v1303_v37 }
 0x1b0   : > { %v6150_v39 = vadd.f32 %v6066_v41, %v1312_v34  ;;  %v4085_v13 = vpop.f32.mrb[71].mxu1 }
 0x1b1   : > { %v6153_v43 = vadd.f32 %v4083_v54, %v6093_v17  ;;  %v6156_v57 = vadd.f32 %v6055_v6, %v1304_v32  ;;  %v4086_v3 = vadd.f32 %v4085_v13, %v4084_v45 }
 0x1b3   : > { %6870 = vst [vmem:[#allocation25_spill] sm:$0xff] %v6153_v43  ;;  %v6159_v23 = vadd.f32 %v4086_v3, %v6095_v59  ;;  %v4285_v50 = vpop.f32.mrb[72].mxu0  ;;  %v3732_v43 = vld [vmem:[%s4752_s12 + $0x60] sm:$0xf] }
 0x1b4   : > { %v1325_v52 = vadd.f32 %v4285_v50, %v6037_v46  ;;  %v1316_v12 = vpop.f32.mrb[73].mxu0 }
 0x1b5   : > { %6871 = vst [vmem:[#allocation10_spill] sm:$0xff] %v6159_v23  ;;  %v4087_v11 = vpop.f32.mrb[72].mxu1  ;;  %v1317_v10 = vadd.f32 %v6025_v42, %v1316_v12  ;;  %v4286_v41 = vpop.f32.mrb[74].mxu0 }
 0x1b6   : > { %v6164_v19 = vadd.f32 %v6073_v28, %v1325_v52  ;;  %v4088_v17 = vpop.f32.mrb[73].mxu1  ;;  %v1328_v27 = vadd.f32 %v4286_v41, %v6042_v30  ;;  %v1319_v6 = vpop.f32.mrb[75].mxu0 }
 0x1b7   : > { %v6168_v38 = vadd.f32 %v6068_v47, %v1317_v10  ;;  %v4089_v59 = vadd.f32 %v4088_v17, %v4087_v11  ;;  %v4090_v58 = vpop.f32.mrb[74].mxu1  ;;  %v1320_v55 = vadd.f32 %v6030_v24, %v1319_v6 }
 0x1b8   : > { %v6172_v46 = vadd.f32 %v6075_v8, %v1328_v27  ;;  %v4091_v1 = vpop.f32.mrb[75].mxu1 }
 0x1b9   : > { %v6175_v42 = vadd.f32 %v4089_v59, %v6101_v22  ;;  %v1625_v28 = vadd.f32 %v6070_v9, %v1320_v55  ;;  %v4092_v60 = vadd.f32 %v4091_v1, %v4090_v58 }
 0x1bb   : > { %6872 = vst [vmem:[#allocation11_spill] sm:$0xff] %v6175_v42  ;;  %v6179_v30 = vadd.f32 %v4092_v60, %v6103_v14  ;;  %v4289_v25 = vpop.f32.mrb[76].mxu0 }
 0x1bc   : > { %v1341_v47 = vadd.f32 %v4289_v25, %v6059_v40  ;;  %v1332_v15 = vpop.f32.mrb[77].mxu0 }
 0x1bd   : > { %6873 = vst [vmem:[#allocation29_spill] sm:$0xff] %v6179_v30  ;;  %v4093_v34 = vpop.f32.mrb[76].mxu1  ;;  %v1333_v24 = vadd.f32 %v6048_v26, %v1332_v15  ;;  %v4290_v37 = vpop.f32.mrb[78].mxu0 }
 0x1be   : > { %v6184_v8 = vadd.f32 %v6081_v2, %v1341_v47  ;;  %v4094_v54 = vpop.f32.mrb[77].mxu1  ;;  %v1344_v22 = vadd.f32 %v4290_v37, %v6064_v49  ;;  %v1335_v45 = vpop.f32.mrb[79].mxu0 }
 0x1bf   : > { %v6188_v9 = vadd.f32 %v6077_v20, %v1333_v24  ;;  %v4095_v14 = vadd.f32 %v4094_v54, %v4093_v34  ;;  %v4096_v32 = vpop.f32.mrb[78].mxu1  ;;  %v1336_v13 = vadd.f32 %v6053_v44, %v1335_v45 }
 0x1c0   : > { %v6192_v40 = vadd.f32 %v6083_v36, %v1344_v22  ;;  %v4097_v3 = vpop.f32.mrb[79].mxu1 }
 0x1c1   : > { %v6195_v26 = vadd.f32 %v4095_v14, %v6109_v63  ;;  %v1641_v2 = vadd.f32 %v6079_v61, %v1336_v13  ;;  %v4098_v50 = vadd.f32 %v4097_v3, %v4096_v32 }
 0x1c3   : > { %6874 = vst [vmem:[#allocation16_spill] sm:$0xff] %v6195_v26  ;;  %v6199_v49 = vadd.f32 %v4098_v50, %v6111_v21  ;;  %v4139_v52 = vpop.f32.mrb[80].mxu0 }
 0x1c4   : > { %v4140_v20 = vpop.f32.mrb[81].mxu0 }
 0x1c5   : > { %6875 = vst [vmem:[#allocation21_spill] sm:$0xff] %v6199_v49  ;;  %v4141_v12 = vadd.f32 %v4140_v20, %v4139_v52  ;;  %v4142_v11 = vpop.f32.mrb[82].mxu0 }
 0x1c6   : > { %v4143_v10 = vpop.f32.mrb[83].mxu0 }
 0x1c7   : > { %v4144_v41 = vadd.f32 %v4143_v10, %v4142_v11  ;;  %v6202_v44 = vadd.f32 %v4141_v12, %v6124_v51 }
 0x1c9   : > { %v6205_v36 = vadd.f32 %v4144_v41, %v6134_v56 }
 0x1cb   : > { %v4145_v63 = vpop.f32.mrb[84].mxu0 }
 0x1cc   : > { %v4146_v17 = vpop.f32.mrb[85].mxu0 }
 0x1cd   : > { %v4147_v27 = vadd.f32 %v4146_v17, %v4145_v63  ;;  %v4148_v61 = vpop.f32.mrb[86].mxu0 }
 0x1ce   : > { %v4149_v6 = vpop.f32.mrb[87].mxu0 }
 0x1cf   : > { %v4150_v59 = vadd.f32 %v4149_v6, %v4148_v61  ;;  %v4421_v21 = vadd.f32 %v4147_v27, %v6120_v35 }
 0x1d1   : > { %v6209_v58 = vadd.f32 %v4150_v59, %v6128_v4 }
 0x1d3   : > { %v4151_v55 = vpop.f32.mrb[88].mxu0 }
 0x1d4   : > { %v4152_v1 = vpop.f32.mrb[89].mxu0 }
 0x1d5   : > { %v4153_v60 = vadd.f32 %v4152_v1, %v4151_v55  ;;  %v4154_v25 = vpop.f32.mrb[90].mxu0 }
 0x1d6   : > { %v4155_v51 = vpop.f32.mrb[91].mxu0 }
 0x1d7   : > { %v4156_v47 = vadd.f32 %v4155_v51, %v4154_v25  ;;  %v6212_v56 = vadd.f32 %v4153_v60, %v6146_v5 }
 0x1d9   : > { %v6215_v15 = vadd.f32 %v4156_v47, %v6156_v57 }
 0x1db   : > { %v4157_v34 = vpop.f32.mrb[92].mxu0 }
 0x1dc   : > { %v4158_v24 = vpop.f32.mrb[93].mxu0 }
 0x1dd   : > { %v4159_v37 = vadd.f32 %v4158_v24, %v4157_v34  ;;  %v4160_v54 = vpop.f32.mrb[94].mxu0 }
 0x1de   : > { %v4161_v35 = vpop.f32.mrb[95].mxu0 }
 0x1df   : > { %v4162_v22 = vadd.f32 %v4161_v35, %v4160_v54  ;;  %v6218_v4 = vadd.f32 %v4159_v37, %v6142_v0 }
 0x1e1   : > { %v6221_v45 = vadd.f32 %v4162_v22, %v6150_v39 }
 0x1e3   : > { %v4163_v14 = vpop.f32.mrb[96].mxu0 }
 0x1e4   : > { %v4164_v32 = vpop.f32.mrb[97].mxu0 }
 0x1e5   : > { %v4165_v13 = vadd.f32 %v4164_v32, %v4163_v14  ;;  %v4166_v5 = vpop.f32.mrb[98].mxu0 }
 0x1e6   : > { %v4167_v3 = vpop.f32.mrb[99].mxu0 }
 0x1e7   : > { %v4168_v50 = vadd.f32 %v4167_v3, %v4166_v5  ;;  %v6224_v57 = vadd.f32 %v4165_v13, %v6168_v38 }
 0x1e9   : > { %v6226_v52 = vadd.f32 %v4168_v50, %v1625_v28 }
 0x1eb   : > { %v4169_v20 = vpop.f32.mrb[100].mxu0 }
 0x1ec   : > { %v4170_v12 = vpop.f32.mrb[101].mxu0 }
 0x1ed   : > { %v4171_v11 = vadd.f32 %v4170_v12, %v4169_v20  ;;  %v4172_v10 = vpop.f32.mrb[102].mxu0 }
 0x1ee   : > { %v4173_v0 = vpop.f32.mrb[103].mxu0 }
 0x1ef   : > { %v4174_v41 = vadd.f32 %v4173_v0, %v4172_v10  ;;  %v6229_v39 = vadd.f32 %v4171_v11, %v6164_v19 }
 0x1f1   : > { %v6232_v63 = vadd.f32 %v4174_v41, %v6172_v46 }
 0x1f3   : > { %v4175_v17 = vpop.f32.mrb[104].mxu0 }
 0x1f4   : > { %v4176_v27 = vpop.f32.mrb[105].mxu0 }
 0x1f5   : > { %v4177_v61 = vadd.f32 %v4176_v27, %v4175_v17  ;;  %v4178_v6 = vpop.f32.mrb[106].mxu0 }
 0x1f6   : > { %v4179_v38 = vpop.f32.mrb[107].mxu0 }
 0x1f7   : > { %v4180_v59 = vadd.f32 %v4179_v38, %v4178_v6  ;;  %v6235_v28 = vadd.f32 %v4177_v61, %v6188_v9  ;;  %v3702_v6 = vld [vmem:[%s4752_s12 + $0x18] sm:$0xf] }
 0x1f9   : > { %v6237_v55 = vadd.f32 %v4180_v59, %v1641_v2 }
 0x1fb   : > { %v4181_v1 = vpop.f32.mrb[108].mxu0 }
 0x1fc   : > { %v4182_v60 = vpop.f32.mrb[109].mxu0 }
 0x1fd   : > { %v4183_v25 = vadd.f32 %v4182_v60, %v4181_v1  ;;  %v4184_v51 = vpop.f32.mrb[110].mxu0 }
 0x1fe   : > { %v4185_v19 = vpop.f32.mrb[111].mxu0 }
 0x1ff   : > { %v4186_v47 = vadd.f32 %v4185_v19, %v4184_v51  ;;  %v6240_v46 = vadd.f32 %v4183_v25, %v6184_v8 }
 0x201   : > { %v6243_v34 = vadd.f32 %v4186_v47, %v6192_v40 }
 0x203   : > { %v4187_v24 = vpop.f32.mrb[112].mxu0 }
 0x204   : > { %v4188_v37 = vpop.f32.mrb[113].mxu0 }
 0x205   : > { %v4373_v54 = vpop.f32.mrb[80].mxu1  ;;  %v4189_v35 = vadd.f32 %v4188_v37, %v4187_v24  ;;  %v4190_v9 = vpop.f32.mrb[114].mxu0 }
 0x206   : > { %v4422_v22 = vadd.f32 %v4421_v21, %v4373_v54  ;;  %v2374_v2 = vpop.f32.mrb[81].mxu1  ;;  %v4191_v14 = vpop.f32.mrb[115].mxu0 }
 0x207   : > { %v4426_v32 = vadd.f32 %v6202_v44, %v2374_v2  ;;  %v4374_v13 = vpop.f32.mrb[82].mxu1  ;;  %v4192_v5 = vadd.f32 %v4191_v14, %v4190_v9  ;;  %v6247_v8 = vadd.f32 %v6089_v16, %v4189_v35  ;;  %v3697_v35 = vld [vmem:[%s4752_s12 + $0xc] sm:$0xf] }
 0x208   : > { %v3781_v3 = vpack.c.bf16 %v4422_v22, %v4422_v22  ;;  %v4430_v40 = vadd.f32 %v6209_v58, %v4374_v13  ;;  %v2377_v50 = vpop.f32.mrb[83].mxu1 }
 0x209   : > { %v3779_v20 = vpack.c.bf16 %v4426_v32, %v4426_v32  ;;  %v4434_v21 = vadd.f32 %v6205_v36, %v2377_v50  ;;  %v6252_v12 = vadd.f32 %v6091_v33, %v4192_v5 }
 0x20a   : > { %v2704_v44 = vshrl.u32 %v3781_v3, 16  ;;  %v2707_v11 = vshll.u32 %v3781_v3, 16  ;;  %v2534_v10 = vpack.c.bf16 %v4430_v40, %v4422_v22  ;;  %v3782_v0 = vpack.c.bf16 %v4430_v40, %v4430_v40  ;;  %v3705_v40 = vld [vmem:[%s4752_s12 + $0x20] sm:$0x1] }
 0x20b   : > { %v2687_v16 = vshrl.u32 %v3779_v20, 16  ;;  %v2690_v41 = vshll.u32 %v3779_v20, 16  ;;  %v2533_v17 = vpack.c.bf16 %v4434_v21, %v4426_v32  ;;  %v3780_v27 = vpack.c.bf16 %v4434_v21, %v4434_v21  ;;  %v4193_v58 = vpop.f32.mrb[116].mxu0 }
 0x20c   : > { %v2706_v61 = vrot.slane %v2704_v44, 7  ;;  %v2712_v38 = vshrl.u32 %v3782_v0, 16  ;;  %v2715_v59 = vshll.u32 %v3782_v0, 16  ;;  %v3126_v1 = vunpack.c.l.bf16 %v2534_v10  ;;  %v4194_v60 = vpop.f32.mrb[117].mxu0  ;;  %v3700_v0 = vld [vmem:[%s4752_s12 + $0x14] sm:$0x1] }
 0x20d   : > { %v2689_v36 = vrot.slane %v2687_v16, 7  ;;  %v6261_v25 = vunpack.c.h.bf16 %v2534_v10  ;;  %v2695_v51 = vshrl.u32 %v3780_v27, 16  ;;  %v2698_v19 = vshll.u32 %v3780_v27, 16  ;;  %v4377_v47 = vpop.f32.mrb[84].mxu1  ;;  %v4196_v24 = vpop.f32.mrb[118].mxu0 }
 0x20e   : > { %v2709_v37 = vor.u32 %v2707_v11, %v2706_v61  ;;  %v2710_v54 = vrot.slane %v2706_v61, 4  ;;  %v2714_v9 = vrot.slane %v2712_v38, 7  ;;  %v3195_v2 = vmul.f32 %v3126_v1, %v3126_v1  ;;  %v2390_v14 = vpop.f32.mrb[85].mxu1  ;;  %v4197_v32 = vpop.f32.mrb[119].mxu0 }
 0x20f   : > { %v2692_v13 = vor.u32 %v2690_v41, %v2689_v36  ;;  %v2693_v5 = vrot.slane %v2689_v36, 4  ;;  %v6279_v50 = vmul.f32 %v6261_v25, %v6261_v25  ;;  %v2697_v20 = vrot.slane %v2695_v51, 7  ;;  %v4378_v21 = vpop.f32.mrb[86].mxu1 }
 0x210   : > { %v3020_v44 = vsel %vm6257_vm11, %v2709_v37, %v3702_v6  ;;  %v2717_v11 = vor.u32 %v2715_v59, %v2714_v9  ;;  %v2719_v10 = vrot.slane %v2714_v9, 4  ;;  %v3124_v16 = vunpack.c.l.bf16 %v2533_v17  ;;  %v2393_v41 = vpop.f32.mrb[87].mxu1 }
 0x211   : > { %3703 = vst [vmem:[%s4752_s12 + $0x18] sm:$0xf] %v3020_v44  ;;  %v3011_v27 = vsel %vm6257_vm11, %v2692_v13, %v3697_v35  ;;  %v2700_v61 = vor.u32 %v2698_v19, %v2697_v20  ;;  %v2702_v38 = vrot.slane %v2697_v20, 4  ;;  %v3125_v36 = vunpack.c.h.bf16 %v2533_v17 }
 0x212   : > { %3698 = vst [vmem:[%s4752_s12 + $0xc] sm:$0xf] %v3011_v27  ;;  %v2718_v6 = vsel %vm6272_vm13, %v2710_v54, %v2717_v11  ;;  %v3024_v59 = vsel %vm6266_vm12, %v2719_v10, %v3705_v40  ;;  %v3193_v51 = vmul.f32 %v3124_v16, %v3124_v16  ;;  %v4438_v37 = vadd.f32 %v6218_v4, %v4377_v47 }
 0x213   : > { %3704 = vst [vmem:[%s4752_s12 + $0x1c] sm:$0xf] %v2718_v6  ;;  %3706 = vst [vmem:[%s4752_s12 + $0x20] sm:$0x1] %v3024_v59  ;;  %v2701_v35 = vsel %vm6272_vm13, %v2693_v5, %v2700_v61  ;;  %v3017_v19 = vsel %vm6266_vm12, %v2702_v38, %v3700_v0  ;;  %v3156_v9 = vadd.f32 %v3125_v36, %v3124_v16  ;;  %v6299_v13 = vpop.f32.mrb[120].mxu0 }
 0x214   : > { %v3194_v17 = vmul.f32 %v3125_v36, %v3125_v36  ;;  %3699 = vst [vmem:[%s4752_s12 + $0x10] sm:$0xf] %v2701_v35  ;;  %3701 = vst [vmem:[%s4752_s12 + $0x14] sm:$0x1] %v3017_v19  ;;  %v3785_v54 = vpack.c.bf16 %v4438_v37, %v4438_v37  ;;  %v6303_v20 = vadd.f32 %v4194_v60, %v4193_v58  ;;  %v6307_v47 = vpop.f32.mrb[121].mxu0 }
 0x215   : > { %v4442_v40 = vadd.f32 %v6212_v56, %v2390_v14  ;;  %v4446_v4 = vadd.f32 %v6221_v45, %v4378_v21  ;;  %v3157_v44 = vadd.f32 %v3156_v9, %v3126_v1  ;;  %v6309_v11 = vadd.f32 %v4197_v32, %v4196_v24  ;;  %v6312_v0 = vpop.f32.mrb[88].mxu1  ;;  %v6314_v16 = vpop.f32.mrb[122].mxu0  ;;  %v3712_v59 = vld [vmem:[%s4752_s12 + $0x30] sm:$0xf] }
 0x216   : > { %v3225_v5 = vadd.f32 %v3194_v17, %v3193_v51  ;;  %v4450_v10 = vadd.f32 %v6215_v15, %v2393_v41  ;;  %v2738_v27 = vshrl.u32 %v3785_v54, 16  ;;  %v2741_v58 = vshll.u32 %v3785_v54, 16  ;;  %v6316_v56 = vpop.f32.mrb[89].mxu1  ;;  %v6318_v45 = vpop.f32.mrb[123].mxu0 }
 0x217   : > { %v3783_v60 = vpack.c.bf16 %v4442_v40, %v4442_v40  ;;  %v2536_v61 = vpack.c.bf16 %v4446_v4, %v4438_v37  ;;  %v3786_v1 = vpack.c.bf16 %v4446_v4, %v4446_v4  ;;  %v4382_v32 = vpop.f32.mrb[90].mxu1 }
 0x218   : > { %v3226_v14 = vadd.f32 %v3225_v5, %v3195_v2  ;;  %v2535_v21 = vpack.c.bf16 %v4450_v10, %v4442_v40  ;;  %v3784_v24 = vpack.c.bf16 %v4450_v10, %v4450_v10  ;;  %v2740_v15 = vrot.slane %v2738_v27, 7  ;;  %v2409_v6 = vpop.f32.mrb[91].mxu1  ;;  %v3707_v40 = vld [vmem:[%s4752_s12 + $0x24] sm:$0xf] }
 0x219   : > { %v2721_v41 = vshrl.u32 %v3783_v60, 16  ;;  %v2724_v38 = vshll.u32 %v3783_v60, 16  ;;  %v6320_v36 = vunpack.c.l.bf16 %v2536_v61  ;;  %v2746_v51 = vshrl.u32 %v3786_v1, 16 }
 0x21a   : > { %v2749_v35 = vshll.u32 %v3786_v1, 16  ;;  %v6323_v37 = vunpack.c.h.bf16 %v2536_v61  ;;  %v2729_v19 = vshrl.u32 %v3784_v24, 16  ;;  %v2743_v2 = vor.u32 %v2741_v58, %v2740_v15 }
 0x21b   : > { %v2744_v9 = vrot.slane %v2740_v15, 4  ;;  %v2723_v17 = vrot.slane %v2721_v41, 7  ;;  %v6327_v54 = vmul.f32 %v6320_v36, %v6320_v36  ;;  %v2748_v4 = vrot.slane %v2746_v51, 7  ;;  %v6334_v60 = vpop.f32.mrb[124].mxu0  ;;  %v3715_v15 = vld [vmem:[%s4752_s12 + $0x38] sm:$0x1] }
 0x21c   : > { %v6332_v5 = vmul.f32 %v6323_v37, %v6323_v37  ;;  %v2731_v10 = vrot.slane %v2729_v19, 7  ;;  %v2732_v27 = vshll.u32 %v3784_v24, 16  ;;  %v3034_v58 = vsel %vm6257_vm11, %v2743_v2, %v3712_v59  ;;  %v3710_v41 = vld [vmem:[%s4752_s12 + $0x2c] sm:$0x1]  ;;  %v6340_v49 = vpop.f32.mrb[125].mxu0 }
 0x21d   : > { %v2726_v61 = vor.u32 %v2724_v38, %v2723_v17  ;;  %v2727_v1 = vrot.slane %v2723_v17, 4  ;;  %v3128_v30 = vunpack.c.l.bf16 %v2535_v21  ;;  %3713 = vst [vmem:[%s4752_s12 + $0x30] sm:$0xf] %v3034_v58  ;;  %v2751_v51 = vor.u32 %v2749_v35, %v2748_v4  ;;  %v4385_v24 = vpop.f32.mrb[92].mxu1  ;;  %v6343_v7 = vpop.f32.mrb[126].mxu0 }
 0x21e   : > { %v2753_v26 = vrot.slane %v2748_v4, 4  ;;  %v2734_v42 = vor.u32 %v2732_v27, %v2731_v10  ;;  %v2736_v19 = vrot.slane %v2731_v10, 4  ;;  %v3129_v59 = vunpack.c.h.bf16 %v2535_v21  ;;  %v6348_v23 = vpop.f32.mrb[93].mxu1  ;;  %v6350_v35 = vpop.f32.mrb[127].mxu0 }
 0x21f   : > { %v3027_v38 = vsel %vm6257_vm11, %v2726_v61, %v3707_v40  ;;  %v3158_v2 = vadd.f32 %v3157_v44, %v6261_v25  ;;  %v3197_v17 = vmul.f32 %v3128_v30, %v3128_v30  ;;  %v2752_v4 = vsel %vm6272_vm13, %v2744_v9, %v2751_v51  ;;  %v6361_v40 = vpop.f32.mrb[94].mxu1 }
 0x220   : > { %3708 = vst [vmem:[%s4752_s12 + $0x24] sm:$0xf] %v3027_v38  ;;  %v3038_v10 = vsel %vm6266_vm12, %v2753_v26, %v3715_v15  ;;  %v2735_v27 = vsel %vm6272_vm13, %v2727_v1, %v2734_v42  ;;  %v3031_v21 = vsel %vm6266_vm12, %v2736_v19, %v3710_v41  ;;  %3714 = vst [vmem:[%s4752_s12 + $0x34] sm:$0xf] %v2752_v4  ;;  %v6370_v26 = vpop.f32.mrb[95].mxu1 }
 0x221   : > { %3716 = vst [vmem:[%s4752_s12 + $0x38] sm:$0x1] %v3038_v10  ;;  %3709 = vst [vmem:[%s4752_s12 + $0x28] sm:$0xf] %v2735_v27  ;;  %v3159_v25 = vadd.f32 %v3158_v2, %v3128_v30  ;;  %v3198_v44 = vmul.f32 %v3129_v59, %v3129_v59  ;;  %v3227_v58 = vadd.f32 %v3226_v14, %v6279_v50  ;;  %v3722_v10 = vld [vmem:[%s4752_s12 + $0x48] sm:$0xf] }
 0x222   : > { %3711 = vst [vmem:[%s4752_s12 + $0x2c] sm:$0x1] %v3031_v21  ;;  %v4454_v9 = vadd.f32 %v6229_v39, %v6312_v0  ;;  %v6374_v42 = vadd.f32 %v6307_v47, %v6299_v13  ;;  %v4458_v61 = vadd.f32 %v6224_v57, %v6316_v56  ;;  %v4462_v1 = vadd.f32 %v6232_v63, %v4382_v32 }
 0x223   : > { %v6381_v30 = vadd.f32 %v6318_v45, %v6314_v16  ;;  %v3160_v15 = vadd.f32 %v3159_v25, %v3129_v59  ;;  %v3228_v50 = vadd.f32 %v3227_v58, %v3197_v17  ;;  %v4466_v39 = vadd.f32 %v6226_v52, %v2409_v6  ;;  %v6387_v47 = vpop.f32.mrb[128].mxu0 }
 0x224   : > { %v3789_v14 = vpack.c.bf16 %v4454_v9, %v4454_v9  ;;  %v3787_v0 = vpack.c.bf16 %v4458_v61, %v4458_v61  ;;  %v2538_v41 = vpack.c.bf16 %v4462_v1, %v4454_v9  ;;  %v3790_v51 = vpack.c.bf16 %v4462_v1, %v4462_v1  ;;  %v6390_v45 = vpop.f32.mrb[129].mxu0 }
 0x225   : > { %v6385_v13 = vadd.f32 %v6240_v46, %v4385_v24  ;;  %v3161_v57 = vadd.f32 %v3160_v15, %v6320_v36  ;;  %v3229_v63 = vadd.f32 %v3228_v50, %v3198_v44  ;;  %v6392_v6 = vpop.f32.mrb[0].mxu1  ;;  %v6394_v59 = vpop.f32.mrb[130].mxu0  ;;  %v2537_v25 = vpack.c.bf16 %v4466_v39, %v4458_v61  ;;  %v3725_v15 = vld [vmem:[%s4752_s12 + $0x50] sm:$0x1] }
 0x226   : > { %v2772_v56 = vshrl.u32 %v3789_v14, 16  ;;  %v2775_v16 = vshll.u32 %v3789_v14, 16  ;;  %v2755_v32 = vshrl.u32 %v3787_v0, 16  ;;  %v2758_v19 = vshll.u32 %v3787_v0, 16  ;;  %v6401_v17 = vpop.f32.mrb[1].mxu1  ;;  %v6403_v4 = vpop.f32.mrb[131].mxu0 }
 0x227   : > { %v2780_v38 = vshrl.u32 %v3790_v51, 16  ;;  %v2783_v52 = vshll.u32 %v3790_v51, 16  ;;  %v3230_v46 = vadd.f32 %v3229_v63, %v6327_v54  ;;  %v6397_v36 = vunpack.c.l.bf16 %v2538_v41  ;;  %v6406_v58 = vpop.f32.mrb[2].mxu1  ;;  %v3717_v54 = vld [vmem:[%s4752_s12 + $0x3c] sm:$0xf] }
 0x228   : > { %v2774_v24 = vrot.slane %v2772_v56, 7  ;;  %v6399_v2 = vunpack.c.h.bf16 %v2538_v41  ;;  %v2757_v27 = vrot.slane %v2755_v32, 7  ;;  %v3788_v44 = vpack.c.bf16 %v4466_v39, %v4466_v39  ;;  %v6416_v0 = vpop.f32.mrb[3].mxu1 }
 0x229   : > { %v2782_v21 = vrot.slane %v2780_v38, 7  ;;  %v3203_v50 = vmul.f32 %v6397_v36, %v6397_v36  ;;  %v3132_v32 = vunpack.c.l.bf16 %v2537_v25 }
 0x22a   : > { %v2777_v9 = vor.u32 %v2775_v16, %v2774_v24  ;;  %v2778_v1 = vrot.slane %v2774_v24, 4  ;;  %v6414_v14 = vmul.f32 %v6399_v2, %v6399_v2  ;;  %v2760_v61 = vor.u32 %v2758_v19, %v2757_v27 }
 0x22b   : > { %v2761_v39 = vrot.slane %v2757_v27, 4  ;;  %v2785_v41 = vor.u32 %v2783_v52, %v2782_v21  ;;  %v2787_v51 = vrot.slane %v2782_v21, 4  ;;  %v2763_v56 = vshrl.u32 %v3788_v44, 16  ;;  %v6427_v52 = vpop.f32.mrb[132].mxu0 }
 0x22c   : > { %v3048_v63 = vsel %vm6257_vm11, %v2777_v9, %v3722_v10  ;;  %v2766_v16 = vshll.u32 %v3788_v44, 16  ;;  %v3041_v38 = vsel %vm6257_vm11, %v2760_v61, %v3717_v54  ;;  %v3133_v27 = vunpack.c.h.bf16 %v2537_v25  ;;  %v3720_v54 = vld [vmem:[%s4752_s12 + $0x44] sm:$0x1] }
 0x22d   : > { %3723 = vst [vmem:[%s4752_s12 + $0x48] sm:$0xf] %v3048_v63  ;;  %v2786_v24 = vsel %vm6272_vm13, %v2778_v1, %v2785_v41  ;;  %v3052_v19 = vsel %vm6266_vm12, %v2787_v51, %v3725_v15  ;;  %3718 = vst [vmem:[%s4752_s12 + $0x3c] sm:$0xf] %v3041_v38  ;;  %v2765_v10 = vrot.slane %v2763_v56, 7  ;;  %v3162_v21 = vadd.f32 %v3161_v57, %v6323_v37  ;;  %v6434_v63 = vpop.f32.mrb[133].mxu0 }
 0x22e   : > { %3724 = vst [vmem:[%s4752_s12 + $0x4c] sm:$0xf] %v2786_v24  ;;  %3726 = vst [vmem:[%s4752_s12 + $0x50] sm:$0x1] %v3052_v19  ;;  %v3201_v44 = vmul.f32 %v3132_v32, %v3132_v32  ;;  %v3231_v9 = vadd.f32 %v3230_v46, %v6332_v5  ;;  %v3202_v61 = vmul.f32 %v3133_v27, %v3133_v27  ;;  %v6445_v41 = vpop.f32.mrb[4].mxu1  ;;  %v6447_v37 = vpop.f32.mrb[134].mxu0 }
 0x22f   : > { %v3793_v1 = vpack.c.bf16 %v6385_v13, %v6385_v13  ;;  %v6441_v25 = vadd.f32 %v6340_v49, %v6334_v60  ;;  %v4474_v15 = vadd.f32 %v6235_v28, %v6348_v23  ;;  %v2768_v57 = vor.u32 %v2766_v16, %v2765_v10  ;;  %v6449_v56 = vpop.f32.mrb[5].mxu1  ;;  %v6451_v38 = vpop.f32.mrb[135].mxu0 }
 0x230   : > { %v2770_v5 = vrot.slane %v2765_v10, 4  ;;  %v3163_v46 = vadd.f32 %v3162_v21, %v3132_v32  ;;  %v3232_v51 = vadd.f32 %v3231_v9, %v3201_v44  ;;  %v4478_v23 = vadd.f32 %v6243_v34, %v6361_v40  ;;  %v6455_v28 = vpop.f32.mrb[6].mxu1 }
 0x231   : > { %v2806_v24 = vshrl.u32 %v3793_v1, 16  ;;  %v2809_v49 = vshll.u32 %v3793_v1, 16  ;;  %v3791_v60 = vpack.c.bf16 %v4474_v15, %v4474_v15  ;;  %v2769_v16 = vsel %vm6272_vm13, %v2761_v39, %v2768_v57  ;;  %v6461_v21 = vpop.f32.mrb[7].mxu1 }
 0x232   : > { %v3045_v32 = vsel %vm6266_vm12, %v2770_v5, %v3720_v54  ;;  %v3164_v19 = vadd.f32 %v3163_v46, %v3133_v27  ;;  %v3233_v10 = vadd.f32 %v3232_v51, %v3202_v61  ;;  %3719 = vst [vmem:[%s4752_s12 + $0x40] sm:$0xf] %v2769_v16  ;;  %v2540_v34 = vpack.c.bf16 %v4478_v23, %v6385_v13  ;;  %v3727_v51 = vld [vmem:[%s4752_s12 + $0x54] sm:$0xf] }
 0x233   : > { %3721 = vst [vmem:[%s4752_s12 + $0x44] sm:$0x1] %v3045_v32  ;;  %v2808_v44 = vrot.slane %v2806_v24, 7  ;;  %v2789_v9 = vshrl.u32 %v3791_v60, 16  ;;  %v2792_v1 = vshll.u32 %v3791_v60, 16  ;;  %v3794_v39 = vpack.c.bf16 %v4478_v23, %v4478_v23  ;;  %v6476_v46 = vpop.f32.mrb[136].mxu0 }
 0x234   : > { %v3165_v40 = vadd.f32 %v3164_v19, %v6397_v36  ;;  %v3234_v62 = vadd.f32 %v3233_v10, %v3203_v50  ;;  %v6470_v54 = vadd.f32 %v6350_v35, %v6343_v7  ;;  %v6474_v5 = vunpack.c.l.bf16 %v2540_v34  ;;  %v6483_v7 = vpop.f32.mrb[137].mxu0 }
 0x235   : > { %v2811_v27 = vor.u32 %v2809_v49, %v2808_v44  ;;  %v2812_v61 = vrot.slane %v2808_v44, 4  ;;  %v6472_v57 = vrot.slane %v2789_v9, 7  ;;  %v2814_v13 = vshrl.u32 %v3794_v39, 16  ;;  %v6493_v16 = vpop.f32.mrb[8].mxu1  ;;  %v6495_v32 = vpop.f32.mrb[138].mxu0 }
 0x236   : > { %v2817_v24 = vshll.u32 %v3794_v39, 16  ;;  %v6479_v36 = vunpack.c.h.bf16 %v2540_v34  ;;  %v4482_v50 = vadd.f32 %v6237_v55, %v6370_v26  ;;  %v6491_v23 = vmul.f32 %v6474_v5, %v6474_v5  ;;  %v6502_v10 = vpop.f32.mrb[9].mxu1  ;;  %v6504_v44 = vpop.f32.mrb[139].mxu0 }
 0x237   : > { %v3062_v35 = vsel %vm6257_vm11, %v2811_v27, %v3732_v43  ;;  %v2794_v49 = vor.u32 %v2792_v1, %v6472_v57  ;;  %v2795_v60 = vrot.slane %v6472_v57, 4  ;;  %v2816_v55 = vrot.slane %v2814_v13, 7  ;;  %6882 = vst [vmem:[#allocation27_spill] sm:$0xff] %v6502_v10  ;;  %v3735_v1 = vld [vmem:[%s4752_s12 + $0x68] sm:$0x1]  ;;  %v6513_v57 = vpop.f32.mrb[10].mxu1 }
 0x238   : > { %3733 = vst [vmem:[%s4752_s12 + $0x60] sm:$0xf] %v3062_v35  ;;  %v6500_v26 = vmul.f32 %v6479_v36, %v6479_v36  ;;  %v2539_v43 = vpack.c.bf16 %v4482_v50, %v4474_v15  ;;  %v3792_v19 = vpack.c.bf16 %v4482_v50, %v4482_v50  ;;  %v3166_v34 = vadd.f32 %v3165_v40, %v6399_v2  ;;  %v6516_v10 = vpop.f32.mrb[11].mxu1 }
 0x239   : > { %v3055_v9 = vsel %vm6257_vm11, %v2794_v49, %v3727_v51  ;;  %v3235_v39 = vadd.f32 %v3234_v62, %v6414_v14  ;;  %v4484_v27 = vadd.f32 %v6097_v31, %v6303_v20  ;;  %v2819_v15 = vor.u32 %v2817_v24, %v2816_v55  ;;  %v3730_v24 = vld [vmem:[%s4752_s12 + $0x5c] sm:$0x1] }
 0x23a   : > { %3728 = vst [vmem:[%s4752_s12 + $0x54] sm:$0xf] %v3055_v9  ;;  %v2821_v13 = vrot.slane %v2816_v55, 4  ;;  %v2797_v50 = vshrl.u32 %v3792_v19, 16  ;;  %v2800_v35 = vshll.u32 %v3792_v19, 16  ;;  %v3136_v51 = vunpack.c.l.bf16 %v2539_v43 }
 0x23b   : > { %v3137_v49 = vunpack.c.h.bf16 %v2539_v43  ;;  %v4485_v2 = vadd.f32 %v4484_v27, %v6392_v6  ;;  %v6521_v62 = vadd.f32 %v6390_v45, %v6387_v47  ;;  %v2820_v31 = vsel %vm6272_vm13, %v2812_v61, %v2819_v15  ;;  %v6532_v9 = vpop.f32.mrb[140].mxu0  ;;  %v6883_v27 = vld [vmem:[#allocation22_spill] sm:$0xff] }
 0x23c   : > { %v3066_v20 = vsel %vm6266_vm12, %v2821_v13, %v3735_v1  ;;  %v2799_v14 = vrot.slane %v2797_v50, 7  ;;  %v4488_v40 = vadd.f32 %v6247_v8, %v6401_v17  ;;  %3734 = vst [vmem:[%s4752_s12 + $0x64] sm:$0xf] %v2820_v31  ;;  %v3167_v55 = vadd.f32 %v3166_v34, %v3136_v51  ;;  %v6536_v15 = vpop.f32.mrb[141].mxu0 }
 0x23d   : > { %3736 = vst [vmem:[%s4752_s12 + $0x68] sm:$0x1] %v3066_v20  ;;  %v3205_v43 = vmul.f32 %v3136_v51, %v3136_v51  ;;  %v3206_v6 = vmul.f32 %v3137_v49, %v3137_v49  ;;  %v3797_v19 = vpack.c.bf16 %v4485_v2, %v4485_v2  ;;  %v4490_v1 = vadd.f32 %v6883_v27, %v6309_v11  ;;  %v6538_v34 = vpop.f32.mrb[12].mxu1  ;;  %v6540_v51 = vpop.f32.mrb[142].mxu0 }
 0x23e   : > { %v2802_v47 = vor.u32 %v2800_v35, %v2799_v14  ;;  %v2804_v45 = vrot.slane %v2799_v14, 4  ;;  %v3795_v61 = vpack.c.bf16 %v4488_v40, %v4488_v40  ;;  %v3168_v8 = vadd.f32 %v3167_v55, %v3137_v49  ;;  %v6546_v11 = vpop.f32.mrb[13].mxu1  ;;  %v6548_v27 = vpop.f32.mrb[143].mxu0 }
 0x23f   : > { %v3236_v17 = vadd.f32 %v3235_v39, %v3205_v43  ;;  %v2840_v13 = vshrl.u32 %v3797_v19, 16  ;;  %v2843_v50 = vshll.u32 %v3797_v19, 16  ;;  %v4491_v43 = vadd.f32 %v4490_v1, %v6406_v58  ;;  %v6554_v19 = vpop.f32.mrb[14].mxu1 }
 0x240   : > { %v2803_v35 = vsel %vm6272_vm13, %v2795_v60, %v2802_v47  ;;  %v3059_v31 = vsel %vm6266_vm12, %v2804_v45, %v3730_v24  ;;  %v2823_v20 = vshrl.u32 %v3795_v61, 16  ;;  %v2826_v14 = vshll.u32 %v3795_v61, 16  ;;  %v3742_v60 = vld [vmem:[%s4752_s12 + $0x78] sm:$0xf] }
 0x241   : > { %3729 = vst [vmem:[%s4752_s12 + $0x58] sm:$0xf] %v2803_v35  ;;  %3731 = vst [vmem:[%s4752_s12 + $0x5c] sm:$0x1] %v3059_v31  ;;  %v3169_v39 = vadd.f32 %v3168_v8, %v6474_v5  ;;  %v3237_v49 = vadd.f32 %v3236_v17, %v3206_v6  ;;  %v2842_v55 = vrot.slane %v2840_v13, 7  ;;  %v6559_v24 = vadd.f32 %v6403_v4, %v6394_v59  ;;  %v6565_v5 = vpop.f32.mrb[15].mxu1 }
 0x242   : > { %v2825_v47 = vrot.slane %v2823_v20, 7  ;;  %v4494_v45 = vadd.f32 %v6252_v12, %v6416_v0  ;;  %v4496_v61 = vadd.f32 %v6113_v29, %v6441_v25  ;;  %v3737_v8 = vld [vmem:[%s4752_s12 + $0x6c] sm:$0xf]  ;;  %v2542_v17 = vpack.c.bf16 %v4491_v43, %v4485_v2 }
 0x243   : > { %v3238_v6 = vadd.f32 %v3237_v49, %v6491_v23  ;;  %v2845_v58 = vor.u32 %v2843_v50, %v2842_v55  ;;  %v2846_v1 = vrot.slane %v2842_v55, 4  ;;  %v3798_v59 = vpack.c.bf16 %v4491_v43, %v4491_v43 }
 0x244   : > { %v2828_v13 = vor.u32 %v2826_v14, %v2825_v47  ;;  %v2829_v35 = vrot.slane %v2825_v47, 4  ;;  %v2541_v4 = vpack.c.bf16 %v4494_v45, %v4488_v40  ;;  %v3142_v0 = vunpack.c.l.bf16 %v2542_v17 }
 0x245   : > { %v3076_v12 = vsel %vm6257_vm11, %v2845_v58, %v3742_v60  ;;  %v3143_v31 = vunpack.c.h.bf16 %v2542_v17  ;;  %v3796_v29 = vpack.c.bf16 %v4494_v45, %v4494_v45  ;;  %v2848_v23 = vshrl.u32 %v3798_v59, 16  ;;  %v3745_v58 = vld [vmem:[%s4752_s12 + $0x80] sm:$0x1] }
 0x246   : > { %3743 = vst [vmem:[%s4752_s12 + $0x78] sm:$0xf] %v3076_v12  ;;  %v3069_v25 = vsel %vm6257_vm11, %v2828_v13, %v3737_v8  ;;  %v2851_v50 = vshll.u32 %v3798_v59, 16  ;;  %v3140_v20 = vunpack.c.l.bf16 %v2541_v4  ;;  %v3211_v2 = vmul.f32 %v3142_v0, %v3142_v0 }
 0x247   : > { %3738 = vst [vmem:[%s4752_s12 + $0x6c] sm:$0xf] %v3069_v25  ;;  %v3212_v14 = vmul.f32 %v3143_v31, %v3143_v31  ;;  %v2831_v49 = vshrl.u32 %v3796_v29, 16  ;;  %v2834_v40 = vshll.u32 %v3796_v29, 16  ;;  %v2850_v55 = vrot.slane %v2848_v23, 7 }
 0x248   : > { %v3141_v43 = vunpack.c.h.bf16 %v2541_v4  ;;  %v3170_v60 = vadd.f32 %v3169_v39, %v6479_v36  ;;  %v3209_v47 = vmul.f32 %v3140_v20, %v3140_v20  ;;  %v3239_v17 = vadd.f32 %v3238_v6, %v6500_v26  ;;  %v3740_v25 = vld [vmem:[%s4752_s12 + $0x74] sm:$0x1] }
 0x249   : > { %v2833_v45 = vrot.slane %v2831_v49, 7  ;;  %v4497_v8 = vadd.f32 %v4496_v61, %v6445_v41  ;;  %v4219_v13 = vadd.f32 %v6434_v63, %v6427_v52  ;;  %v2853_v59 = vor.u32 %v2851_v50, %v2850_v55 }
 0x24a   : > { %v2855_v12 = vrot.slane %v2850_v55, 4  ;;  %v3171_v29 = vadd.f32 %v3170_v60, %v3140_v20  ;;  %v3210_v4 = vmul.f32 %v3141_v43, %v3141_v43  ;;  %v3240_v23 = vadd.f32 %v3239_v17, %v3209_v47  ;;  %v3752_v47 = vld [vmem:[%s4752_s12 + $0x90] sm:$0xf]  ;;  %v6884_v17 = vld [vmem:[#allocation25_spill] sm:$0xff] }
 0x24b   : > { %v2836_v36 = vor.u32 %v2834_v40, %v2833_v45  ;;  %v2838_v39 = vrot.slane %v2833_v45, 4  ;;  %v3801_v49 = vpack.c.bf16 %v4497_v8, %v4497_v8  ;;  %v2854_v26 = vsel %vm6272_vm13, %v2846_v1, %v2853_v59 }
 0x24c   : > { %v3080_v41 = vsel %vm6266_vm12, %v2855_v12, %v3745_v58  ;;  %v3172_v61 = vadd.f32 %v3171_v29, %v3141_v43  ;;  %v4499_v52 = vadd.f32 %v6105_v48, %v6374_v42  ;;  %3744 = vst [vmem:[%s4752_s12 + $0x7c] sm:$0xf] %v2854_v26  ;;  %v3241_v50 = vadd.f32 %v3240_v23, %v3210_v4 }
 0x24d   : > { %3746 = vst [vmem:[%s4752_s12 + $0x80] sm:$0x1] %v3080_v41  ;;  %v2837_v63 = vsel %vm6272_vm13, %v2829_v35, %v2836_v36  ;;  %v3073_v6 = vsel %vm6266_vm12, %v2838_v39, %v3740_v25  ;;  %v2874_v20 = vshrl.u32 %v3801_v49, 16  ;;  %v2877_v40 = vshll.u32 %v3801_v49, 16  ;;  %v3747_v39 = vld [vmem:[%s4752_s12 + $0x84] sm:$0xf] }
 0x24e   : > { %3739 = vst [vmem:[%s4752_s12 + $0x70] sm:$0xf] %v2837_v63  ;;  %3741 = vst [vmem:[%s4752_s12 + $0x74] sm:$0x1] %v3073_v6  ;;  %v3173_v1 = vadd.f32 %v3172_v61, %v3142_v0  ;;  %v4500_v55 = vadd.f32 %v4499_v52, %v6449_v56  ;;  %v4502_v48 = vadd.f32 %v6115_v53, %v6470_v54  ;;  %v3755_v52 = vld [vmem:[%s4752_s12 + $0x98] sm:$0x1] }
 0x24f   : > { %v3242_v42 = vadd.f32 %v3241_v50, %v3211_v2  ;;  %v2876_v43 = vrot.slane %v2874_v20, 7  ;;  %v6601_v60 = vadd.f32 %v6451_v38, %v6447_v37  ;;  %v4505_v35 = vadd.f32 %v6107_v18, %v6381_v30 }
 0x250   : > { %v3799_v58 = vpack.c.bf16 %v4500_v55, %v4500_v55  ;;  %v4503_v0 = vadd.f32 %v4502_v48, %v6455_v28  ;;  %v3174_v45 = vadd.f32 %v3173_v1, %v3143_v31  ;;  %v4508_v56 = vadd.f32 %v6884_v17, %v4219_v13 }
 0x251   : > { %v2879_v59 = vor.u32 %v2877_v40, %v2876_v43  ;;  %v2880_v12 = vrot.slane %v2876_v43, 4  ;;  %v4506_v53 = vadd.f32 %v4505_v35, %v6461_v21  ;;  %v3243_v54 = vadd.f32 %v3242_v42, %v3212_v14 }
 0x252   : > { %v2857_v2 = vshrl.u32 %v3799_v58, 16  ;;  %v2860_v37 = vshll.u32 %v3799_v58, 16  ;;  %v2544_v38 = vpack.c.bf16 %v4503_v0, %v4497_v8  ;;  %v3802_v25 = vpack.c.bf16 %v4503_v0, %v4503_v0 }
 0x253   : > { %v3090_v18 = vsel %vm6257_vm11, %v2879_v59, %v3752_v47  ;;  %v2543_v30 = vpack.c.bf16 %v4506_v53, %v4500_v55  ;;  %v3800_v29 = vpack.c.bf16 %v4506_v53, %v4506_v53  ;;  %v4509_v28 = vadd.f32 %v4508_v56, %v6493_v16  ;;  %v3750_v55 = vld [vmem:[%s4752_s12 + $0x8c] sm:$0x1] }
 0x254   : > { %3753 = vst [vmem:[%s4752_s12 + $0x90] sm:$0xf] %v3090_v18  ;;  %v2859_v31 = vrot.slane %v2857_v2, 7  ;;  %v2882_v13 = vshrl.u32 %v3802_v25, 16  ;;  %v2885_v4 = vshll.u32 %v3802_v25, 16  ;;  %v3146_v36 = vunpack.c.l.bf16 %v2544_v38  ;;  %v6886_v18 = vld [vmem:[#allocation10_spill] sm:$0xff] }
 0x255   : > { %v3147_v21 = vunpack.c.h.bf16 %v2544_v38  ;;  %v2865_v14 = vshrl.u32 %v3800_v29, 16  ;;  %v2868_v23 = vshll.u32 %v3800_v29, 16  ;;  %v3144_v8 = vunpack.c.l.bf16 %v2543_v30 }
 0x256   : > { %v2862_v49 = vor.u32 %v2860_v37, %v2859_v31  ;;  %v2863_v26 = vrot.slane %v2859_v31, 4  ;;  %v2884_v41 = vrot.slane %v2882_v13, 7  ;;  %v3215_v61 = vmul.f32 %v3146_v36, %v3146_v36  ;;  %v6887_v31 = vld [vmem:[#allocation3_spill] sm:$0xff] }
 0x257   : > { %v3216_v63 = vmul.f32 %v3147_v21, %v3147_v21  ;;  %v2867_v6 = vrot.slane %v2865_v14, 7  ;;  %v3145_v16 = vunpack.c.h.bf16 %v2543_v30  ;;  %v3175_v50 = vadd.f32 %v3174_v45, %v3144_v8 }
 0x258   : > { %v3083_v20 = vsel %vm6257_vm11, %v2862_v49, %v3747_v39  ;;  %v2887_v1 = vor.u32 %v2885_v4, %v2884_v41  ;;  %v2889_v40 = vrot.slane %v2884_v41, 4  ;;  %v3213_v48 = vmul.f32 %v3144_v8, %v3144_v8  ;;  %v6889_v8 = vld [vmem:[#allocation11_spill] sm:$0xff] }
 0x259   : > { %3748 = vst [vmem:[%s4752_s12 + $0x84] sm:$0xf] %v3083_v20  ;;  %v2870_v42 = vor.u32 %v2868_v23, %v2867_v6  ;;  %v2872_v43 = vrot.slane %v2867_v6, 4  ;;  %v3176_v35 = vadd.f32 %v3175_v50, %v3145_v16  ;;  %v3214_v47 = vmul.f32 %v3145_v16, %v3145_v16  ;;  %v3762_v23 = vld [vmem:[%s4752_s12 + $0xa8] sm:$0xf]  ;;  %v6890_v6 = vld [vmem:[#allocation16_spill] sm:$0xff] }
 0x25a   : > { %v2888_v58 = vsel %vm6272_vm13, %v2880_v12, %v2887_v1  ;;  %v3094_v0 = vsel %vm6266_vm12, %v2889_v40, %v3755_v52  ;;  %v3244_v45 = vadd.f32 %v3243_v54, %v3213_v48  ;;  %v3805_v17 = vpack.c.bf16 %v4509_v28, %v4509_v28  ;;  %v6885_v54 = vld [vmem:[#allocation2_spill] sm:$0xff]  ;;  %v3757_v40 = vld [vmem:[%s4752_s12 + $0x9c] sm:$0xf] }
 0x25b   : > { %3754 = vst [vmem:[%s4752_s12 + $0x94] sm:$0xf] %v2888_v58  ;;  %3756 = vst [vmem:[%s4752_s12 + $0x98] sm:$0x1] %v3094_v0  ;;  %v2871_v56 = vsel %vm6272_vm13, %v2863_v26, %v2870_v42  ;;  %v3087_v59 = vsel %vm6266_vm12, %v2872_v43, %v3750_v55  ;;  %v3177_v53 = vadd.f32 %v3176_v35, %v3146_v36  ;;  %v6888_v36 = vld [vmem:[#allocation27_spill] sm:$0xff] }
 0x25c   : > { %v4225_v2 = vadd.f32 %v6483_v7, %v6476_v46  ;;  %3749 = vst [vmem:[%s4752_s12 + $0x88] sm:$0xf] %v2871_v56  ;;  %3751 = vst [vmem:[%s4752_s12 + $0x8c] sm:$0x1] %v3087_v59  ;;  %v3245_v12 = vadd.f32 %v3244_v45, %v3214_v47  ;;  %v2908_v37 = vshrl.u32 %v3805_v17, 16  ;;  %v2911_v38 = vshll.u32 %v3805_v17, 16 }
 0x25d   : > { %v4511_v25 = vadd.f32 %v6885_v54, %v6521_v62  ;;  %v4514_v30 = vadd.f32 %v6886_v18, %v6601_v60  ;;  %v6639_v29 = vadd.f32 %v6504_v44, %v6495_v32  ;;  %v4517_v13 = vadd.f32 %v6887_v31, %v6559_v24  ;;  %v3765_v58 = vld [vmem:[%s4752_s12 + $0xb0] sm:$0x1]  ;;  %v3760_v59 = vld [vmem:[%s4752_s12 + $0xa4] sm:$0x1] }
 0x25e   : > { %v3178_v4 = vadd.f32 %v3177_v53, %v3147_v21  ;;  %v3246_v46 = vadd.f32 %v3245_v12, %v3215_v61  ;;  %v2910_v7 = vrot.slane %v2908_v37, 7  ;;  %v4231_v14 = vadd.f32 %v6536_v15, %v6532_v9 }
 0x25f   : > { %v4512_v39 = vadd.f32 %v4511_v25, %v6888_v36  ;;  %v4515_v62 = vadd.f32 %v4514_v30, %v6513_v57  ;;  %v4518_v60 = vadd.f32 %v4517_v13, %v6516_v10  ;;  %v4523_v32 = vadd.f32 %v6889_v8, %v4225_v2 }
 0x260   : > { %v4234_v44 = vadd.f32 %v6548_v27, %v6540_v51  ;;  %v2913_v24 = vor.u32 %v2911_v38, %v2910_v7  ;;  %v3247_v49 = vadd.f32 %v3246_v46, %v3216_v63  ;;  %v2914_v9 = vrot.slane %v2910_v7, 4 }
 0x261   : > { %v3803_v21 = vpack.c.bf16 %v4512_v39, %v4512_v39  ;;  %v2546_v26 = vpack.c.bf16 %v4515_v62, %v4509_v28  ;;  %v3806_v41 = vpack.c.bf16 %v4515_v62, %v4515_v62  ;;  %v2545_v61 = vpack.c.bf16 %v4518_v60, %v4512_v39 }
 0x262   : > { %v3804_v52 = vpack.c.bf16 %v4518_v60, %v4518_v60  ;;  %v3104_v15 = vsel %vm6257_vm11, %v2913_v24, %v3762_v23  ;;  %v4520_v10 = vadd.f32 %v6890_v6, %v4231_v14  ;;  %v4524_v7 = vadd.f32 %v4523_v32, %v6546_v11  ;;  %v6891_v14 = vld [vmem:[#allocation21_spill] sm:$0xff] }
 0x263   : > { %v2891_v57 = vshrl.u32 %v3803_v21, 16  ;;  %3763 = vst [vmem:[%s4752_s12 + $0xa8] sm:$0xf] %v3104_v15  ;;  %v2894_v16 = vshll.u32 %v3803_v21, 16  ;;  %v2916_v50 = vshrl.u32 %v3806_v41, 16  ;;  %v2919_v51 = vshll.u32 %v3806_v41, 16 }
 0x264   : > { %v3150_v27 = vunpack.c.l.bf16 %v2546_v26  ;;  %v3151_v28 = vunpack.c.h.bf16 %v2546_v26  ;;  %v2899_v63 = vshrl.u32 %v3804_v52, 16  ;;  %v3148_v1 = vunpack.c.l.bf16 %v2545_v61  ;;  %v3772_v15 = vld [vmem:[%s4752_s12 + $0xc0] sm:$0xf] }
 0x265   : > { %v2893_v20 = vrot.slane %v2891_v57, 7  ;;  %v2918_v55 = vrot.slane %v2916_v50, 7  ;;  %v2902_v42 = vshll.u32 %v3804_v52, 16  ;;  %v3149_v43 = vunpack.c.h.bf16 %v2545_v61  ;;  %v3767_v50 = vld [vmem:[%s4752_s12 + $0xb4] sm:$0xf] }
 0x266   : > { %v3219_v48 = vmul.f32 %v3150_v27, %v3150_v27  ;;  %v2901_v0 = vrot.slane %v2899_v63, 7  ;;  %v3179_v45 = vadd.f32 %v3178_v4, %v3148_v1  ;;  %v3217_v53 = vmul.f32 %v3148_v1, %v3148_v1 }
 0x267   : > { %v2896_v35 = vor.u32 %v2894_v16, %v2893_v20  ;;  %v2897_v47 = vrot.slane %v2893_v20, 4  ;;  %v2921_v17 = vor.u32 %v2919_v51, %v2918_v55  ;;  %v2923_v56 = vrot.slane %v2918_v55, 4 }
 0x268   : > { %v3218_v2 = vmul.f32 %v3149_v43, %v3149_v43  ;;  %v2904_v37 = vor.u32 %v2902_v42, %v2901_v0  ;;  %v2906_v38 = vrot.slane %v2901_v0, 4  ;;  %v3180_v54 = vadd.f32 %v3179_v45, %v3149_v43 }
 0x269   : > { %v3097_v12 = vsel %vm6257_vm11, %v2896_v35, %v3757_v40  ;;  %v2922_v25 = vsel %vm6272_vm13, %v2914_v9, %v2921_v17  ;;  %v3108_v18 = vsel %vm6266_vm12, %v2923_v56, %v3765_v58  ;;  %v3248_v30 = vadd.f32 %v3247_v49, %v3217_v53  ;;  %v3775_v40 = vld [vmem:[%s4752_s12 + $0xc8] sm:$0x1]  ;;  %v3770_v17 = vld [vmem:[%s4752_s12 + $0xbc] sm:$0x1] }
 0x26a   : > { %3758 = vst [vmem:[%s4752_s12 + $0x9c] sm:$0xf] %v3097_v12  ;;  %v4521_v31 = vadd.f32 %v4520_v10, %v6538_v34  ;;  %3764 = vst [vmem:[%s4752_s12 + $0xac] sm:$0xf] %v2922_v25  ;;  %v2905_v13 = vsel %vm6272_vm13, %v2897_v47, %v2904_v37  ;;  %v3101_v4 = vsel %vm6266_vm12, %v2906_v38, %v3760_v59  ;;  %v6892_v34 = vld [vmem:[#allocation29_spill] sm:$0xff] }
 0x26b   : > { %3766 = vst [vmem:[%s4752_s12 + $0xb0] sm:$0x1] %v3108_v18  ;;  %v3181_v46 = vadd.f32 %v3180_v54, %v3150_v27  ;;  %3759 = vst [vmem:[%s4752_s12 + $0xa0] sm:$0xf] %v2905_v13  ;;  %v3249_v36 = vadd.f32 %v3248_v30, %v3218_v2  ;;  %v4526_v23 = vadd.f32 %v6891_v14, %v4234_v44 }
 0x26c   : > { %3761 = vst [vmem:[%s4752_s12 + $0xa4] sm:$0x1] %v3101_v4  ;;  %v3809_v39 = vpack.c.bf16 %v4521_v31, %v4521_v31  ;;  %v4529_v62 = vadd.f32 %v6892_v34, %v6639_v29  ;;  %v3807_v60 = vpack.c.bf16 %v4524_v7, %v4524_v7  ;;  %v3220_v24 = vmul.f32 %v3151_v28, %v3151_v28 }
 0x26d   : > { %v3182_v8 = vadd.f32 %v3181_v46, %v3151_v28  ;;  %v3250_v21 = vadd.f32 %v3249_v36, %v3219_v48  ;;  %v4527_v26 = vadd.f32 %v4526_v23, %v6554_v19 }
 0x26e   : > { %v2942_v49 = vshrl.u32 %v3809_v39, 16  ;;  %v2945_v41 = vshll.u32 %v3809_v39, 16  ;;  %v2925_v11 = vshrl.u32 %v3807_v60, 16  ;;  %v4530_v32 = vadd.f32 %v4529_v62, %v6565_v5 }
 0x26f   : > { %v2548_v52 = vpack.c.bf16 %v4527_v26, %v4521_v31  ;;  %v3810_v9 = vpack.c.bf16 %v4527_v26, %v4527_v26  ;;  %v3251_v44 = vadd.f32 %v3250_v21, %v3220_v24  ;;  %v2928_v57 = vshll.u32 %v3807_v60, 16 }
 0x270   : > { %v2944_v61 = vrot.slane %v2942_v49, 7  ;;  %v2927_v29 = vrot.slane %v2925_v11, 7  ;;  %v2547_v6 = vpack.c.bf16 %v4530_v32, %v4524_v7  ;;  %v3808_v10 = vpack.c.bf16 %v4530_v32, %v4530_v32 }
 0x271   : > { %v2950_v51 = vshrl.u32 %v3810_v9, 16  ;;  %v2953_v28 = vshll.u32 %v3810_v9, 16  ;;  %v3154_v55 = vunpack.c.l.bf16 %v2548_v52  ;;  %v3155_v45 = vunpack.c.h.bf16 %v2548_v52 }
 0x272   : > { %v2947_v16 = vor.u32 %v2945_v41, %v2944_v61  ;;  %v2948_v19 = vrot.slane %v2944_v61, 4  ;;  %v2930_v27 = vor.u32 %v2928_v57, %v2927_v29  ;;  %v2933_v63 = vshrl.u32 %v3808_v10, 16 }
 0x273   : > { %v2952_v20 = vrot.slane %v2950_v51, 7  ;;  %v2936_v48 = vshll.u32 %v3808_v10, 16  ;;  %v3152_v42 = vunpack.c.l.bf16 %v2547_v6  ;;  %v3153_v58 = vunpack.c.h.bf16 %v2547_v6 }
 0x274   : > { %v3118_v5 = vsel %vm6257_vm11, %v2947_v16, %v3772_v15  ;;  %v3111_v1 = vsel %vm6257_vm11, %v2930_v27, %v3767_v50  ;;  %v2935_v47 = vrot.slane %v2933_v63, 7  ;;  %v2931_v0 = vrot.slane %v2927_v29, 4 }
 0x275   : > { %3773 = vst [vmem:[%s4752_s12 + $0xc0] sm:$0xf] %v3118_v5  ;;  %3768 = vst [vmem:[%s4752_s12 + $0xb4] sm:$0xf] %v3111_v1  ;;  %v2955_v43 = vor.u32 %v2953_v28, %v2952_v20  ;;  %v2957_v35 = vrot.slane %v2952_v20, 4  ;;  %v3183_v56 = vadd.f32 %v3182_v8, %v3152_v42  ;;  %v3221_v59 = vmul.f32 %v3152_v42, %v3152_v42 }
 0x276   : > { %v2938_v2 = vor.u32 %v2936_v48, %v2935_v47  ;;  %v2940_v12 = vrot.slane %v2935_v47, 4  ;;  %v3223_v37 = vmul.f32 %v3154_v55, %v3154_v55  ;;  %v3222_v54 = vmul.f32 %v3153_v58, %v3153_v58 }
 0x277   : > { %v2956_v33 = vsel %vm6272_vm13, %v2948_v19, %v2955_v43  ;;  %v3122_v53 = vsel %vm6266_vm12, %v2957_v35, %v3775_v40  ;;  %v3184_v38 = vadd.f32 %v3183_v56, %v3153_v58  ;;  %v3252_v25 = vadd.f32 %v3251_v44, %v3221_v59 }
 0x278   : > { %3774 = vst [vmem:[%s4752_s12 + $0xc4] sm:$0xf] %v2956_v33  ;;  %3776 = vst [vmem:[%s4752_s12 + $0xc8] sm:$0x1] %v3122_v53  ;;  %v2939_v18 = vsel %vm6272_vm13, %v2931_v0, %v2938_v2  ;;  %v3115_v30 = vsel %vm6266_vm12, %v2940_v12, %v3770_v17  ;;  %v3224_v4 = vmul.f32 %v3155_v45, %v3155_v45 }
 0x279   : > { %3769 = vst [vmem:[%s4752_s12 + $0xb8] sm:$0xf] %v2939_v18  ;;  %3771 = vst [vmem:[%s4752_s12 + $0xbc] sm:$0x1] %v3115_v30  ;;  %v3185_v31 = vadd.f32 %v3184_v38, %v3154_v55  ;;  %v3253_v13 = vadd.f32 %v3252_v25, %v3222_v54 }
 0x27b   : > { %v3186_v46 = vadd.f32 %v3185_v31, %v3155_v45  ;;  %v3254_v7 = vadd.f32 %v3253_v13, %v3223_v37 }
 0x27d   : > { %v3187_v36 = vrot.slane %v3186_v46, 4  ;;  %v3255_v39 = vadd.f32 %v3254_v7, %v3224_v4 }
 0x27f   : > { %v3188_v14 = vadd.f32 %v3187_v36, %v3186_v46  ;;  %v3256_v23 = vrot.slane %v3255_v39, 4 }
 0x281   : > { %v3189_v34 = vrot.slane %v3188_v14, 2  ;;  %v3257_v62 = vadd.f32 %v3256_v23, %v3255_v39 }
 0x283   : > { %v3190_v60 = vadd.f32 %v3189_v34, %v3188_v14  ;;  %v3258_v3 = vrot.slane %v3257_v62, 2 }
 0x285   : > { %v3191_v8 = vrot.slane %v3190_v60, 1  ;;  %v3259_v24 = vadd.f32 %v3258_v3, %v3257_v62 }
 0x287   : > { %v3260_v22 = vrot.slane %v3259_v24, 1  ;;  %v3192_v21 = vadd.f32 %v3191_v8, %v3190_v60 }
 0x289   : > { %v3261_v49 = vadd.f32 %v3260_v22, %v3259_v24 }
 0x28b   : > { %v3263_v26 = vsel %vm3014_vm9, %v3192_v21, %v3261_v49 }
 0x28c   : > { %3264 = vst [vmem:[%s208_s9] sm:$0x3] %v3263_v26 }
 0x28d PF: > { %s15_s15 = sadd.s32 1, %s4669_s15  }
 0x28e   : > { %p12_p4 = scmp.ge.s32.totalorder %s15_s15, 4  }
 0x290   :  { %14 = sbr.rel (!%p12_p4) target bundleno = 1 (0x1), region = 77 }

</bundles_post_ra>
